<compile_context>
chip_gen: v6e
topology: v6e:2x2x1
jax: 0.10.0
libtpu: 0.0.40
codegen_flags: <defaults>
</compile_context>

<pallas_src>
import functools

import jax
import jax.numpy as jnp
from jax.experimental import pallas as pl
from jax.experimental.pallas import tpu as pltpu


# ----------------------------------------------------------------------------- #
# Helpers
# ----------------------------------------------------------------------------- #
def _round_up(x, m):
    return (x + m - 1) // m * m


# ----------------------------------------------------------------------------- #
# Pallas kernels
# ----------------------------------------------------------------------------- #
def _gemm_bias_act_kernel(a_ref, b_ref, bias_ref, o_ref, *, act):
    """bf16 x bf16 -> f32 GEMM; output block is the K-accumulator; fused
    bias + activation epilogue on the last K step."""
    @pl.when(pl.program_id(2) == 0)
    def _init():
        o_ref[...] = jnp.zeros_like(o_ref)

    o_ref[...] += jnp.dot(a_ref[...], b_ref[...],
                          preferred_element_type=jnp.float32)

    @pl.when(pl.program_id(2) == pl.num_programs(2) - 1)
    def _fin():
        y = o_ref[...] + bias_ref[...]
        if act == 'relu':
            y = jnp.maximum(y, 0.0)
        elif act == 'lrelu':
            y = jnp.where(y >= 0, y, 0.2 * y)
        elif act == 'tanh':
            y = jnp.tanh(y)
        # act == 'none' -> bias only
        o_ref[...] = y


def fused_matmul(a, wk, bias, act='none'):
    """(M,K) x (Kp,Np) GEMM with fused bias+activation.

    `wk` is a pre-packed weight: bf16, K padded to a multiple of 128,
    N padded to a multiple of 128.  `bias` is the unpadded (N,) f32 bias.
    """
    M, K = a.shape
    Kp, Np = wk.shape
    N = bias.shape[0]
    a = a.astype(jnp.bfloat16)

    if M <= 256:
        tm = _round_up(M, 16)      # bf16 sublane packing friendly
        Mp = tm
    else:
        tm = 256
        Mp = _round_up(M, tm)
    tk = 256 if Kp % 256 == 0 else 128
    tn = 256 if Np % 256 == 0 else 128

    if (Mp, Kp) != (M, K):
        a = jnp.pad(a, ((0, Mp - M), (0, Kp - K)))
    bias2 = jnp.pad(bias.astype(jnp.float32).reshape(1, N),
                    ((0, 0), (0, Np - N)))

    out = pl.pallas_call(
        functools.partial(_gemm_bias_act_kernel, act=act),
        out_shape=jax.ShapeDtypeStruct((Mp, Np), jnp.float32),
        grid_spec=pltpu.PrefetchScalarGridSpec(
            num_scalar_prefetch=0,
            grid=(Mp // tm, Np // tn, Kp // tk),
            in_specs=[pl.BlockSpec((tm, tk), lambda i, j, k: (i, k)),
                      pl.BlockSpec((tk, tn), lambda i, j, k: (k, j)),
                      pl.BlockSpec((1, tn), lambda i, j, k: (0, j))],
            out_specs=pl.BlockSpec((tm, tn), lambda i, j, k: (i, j))),
        compiler_params=pltpu.CompilerParams(
            dimension_semantics=("parallel", "parallel", "arbitrary")),
    )(a, wk, bias2)
    if (Mp, Np) != (M, N):
        out = out[:M, :N]
    return out


def _bmm_kernel(a_ref, b_ref, o_ref):
    o_ref[...] = jnp.dot(a_ref[...], b_ref[...],
                         preferred_element_type=jnp.float32)


def batched_matmul(a, b, operand_dtype=jnp.bfloat16):
    """(B,M,K) x (B,K,N) -> (B,M,N) f32 in ONE pallas_call (batch grid axis).

    K is kept as a single full-extent block (the batched matmuls in this model
    have K <= 256)."""
    B, M, K = a.shape
    _, _, N = b.shape
    a = a.astype(operand_dtype)
    b = b.astype(operand_dtype)
    align = 8 if operand_dtype == jnp.float32 else 16
    Mp = _round_up(M, align)
    tm = Mp if Mp <= 256 else 256
    Mp = _round_up(Mp, tm)
    Np = _round_up(N, 128)
    tn = 256 if Np % 256 == 0 else 128
    if Mp != M:
        a = jnp.pad(a, ((0, 0), (0, Mp - M), (0, 0)))
    if Np != N:
        b = jnp.pad(b, ((0, 0), (0, 0), (0, Np - N)))

    out = pl.pallas_call(
        _bmm_kernel,
        out_shape=jax.ShapeDtypeStruct((B, Mp, Np), jnp.float32),
        grid_spec=pltpu.PrefetchScalarGridSpec(
            num_scalar_prefetch=0,
            grid=(B, Mp // tm, Np // tn),
            in_specs=[pl.BlockSpec((None, tm, K), lambda bi, i, j: (bi, i, 0)),
                      pl.BlockSpec((None, K, tn), lambda bi, i, j: (bi, 0, j))],
            out_specs=pl.BlockSpec((None, tm, tn), lambda bi, i, j: (bi, i, j))),
        compiler_params=pltpu.CompilerParams(
            dimension_semantics=("parallel", "parallel", "parallel")),
    )(a, b)
    if (Mp, Np) != (M, N):
        out = out[:, :M, :N]
    return out


def _combine_kernel(r_ref, i_ref, h_ref, ro_ref, io_ref):
    r = r_ref[...] * 0.5 + 0.5
    il = i_ref[...] * 0.5 + 0.5
    ro_ref[...] = r
    io_ref[...] = il
    h_ref[...] = r * il


def combine_pallas(refl, illum):
    """harmonized = (refl/2+0.5)*(illum/2+0.5); row-blocked fused elementwise."""
    B, C, H, W = refl.shape
    R = B * C * H
    r2 = refl.reshape(R, W).astype(jnp.float32)
    i2 = illum.reshape(R, W).astype(jnp.float32)
    tr = min(512, _round_up(R, 8))
    Rp = _round_up(R, tr)
    if Rp != R:
        r2 = jnp.pad(r2, ((0, Rp - R), (0, 0)))
        i2 = jnp.pad(i2, ((0, Rp - R), (0, 0)))
    spec = pl.BlockSpec((tr, W), lambda i: (i, 0))
    h, ro, io = pl.pallas_call(
        _combine_kernel,
        out_shape=(jax.ShapeDtypeStruct((Rp, W), jnp.float32),) * 3,
        grid_spec=pltpu.PrefetchScalarGridSpec(
            num_scalar_prefetch=0,
            grid=(Rp // tr,),
            in_specs=[spec, spec],
            out_specs=(spec, spec, spec)),
        compiler_params=pltpu.CompilerParams(dimension_semantics=("parallel",)),
    )(r2, i2)

    def unflat(t):
        return t[:R].reshape(B, C, H, W)
    return unflat(h), unflat(ro), unflat(io)


# ----------------------------------------------------------------------------- #
# Conv / norm building blocks (NHWC glue around the Pallas GEMM)
# ----------------------------------------------------------------------------- #
def pad2d(x, pad, mode):
    if pad == 0:
        return x
    pw = ((0, 0), (pad, pad), (pad, pad), (0, 0))
    if mode == 'zero':
        return jnp.pad(x, pw)
    if mode == 'reflect':
        return jnp.pad(x, pw, mode='reflect')
    if mode == 'replicate':
        return jnp.pad(x, pw, mode='edge')
    raise ValueError(mode)


def im2col_nhwc(x, kh, kw, stride):
    """x already padded, NHWC -> (B, OH, OW, kh*kw, C)."""
    B, H, W, C = x.shape
    OH = (H - kh) // stride + 1
    OW = (W - kw) // stride + 1
    cols = []
    for i in range(kh):
        for j in range(kw):
            cols.append(x[:, i:i + stride * (OH - 1) + 1:stride,
                          j:j + stride * (OW - 1) + 1:stride, :])
    col = jnp.stack(cols, axis=3)            # (B, OH, OW, kh*kw, C)
    return col, OH, OW


def conv2d(x, wk, bias, kh, kw, stride=1, act='none'):
    """x padded NHWC; wk pre-packed (Kp, Np) bf16; returns NHWC f32 output."""
    B, H, W, C = x.shape
    x = x.astype(jnp.bfloat16)               # halve im2col HBM traffic
    col, OH, OW = im2col_nhwc(x, kh, kw, stride)
    lhs = col.reshape(B * OH * OW, kh * kw * C)
    out = fused_matmul(lhs, wk, bias, act=act)
    return out.reshape(B, OH, OW, bias.shape[0])


def instance_norm(x, eps=1e-5):
    mean = x.mean(axis=(1, 2), keepdims=True)
    var = x.var(axis=(1, 2), keepdims=True)
    return (x - mean) / jnp.sqrt(var + eps)


def layer_norm_custom(x, gamma, beta, eps=1e-5):
    """Custom LayerNorm: per-sample mean/std over (H,W,C), unbiased std."""
    B = x.shape[0]
    flat = x.reshape(B, -1)
    mean = flat.mean(axis=1).reshape(B, 1, 1, 1)
    std = flat.std(axis=1, ddof=1).reshape(B, 1, 1, 1)
    xn = (x - mean) / (std + eps)
    return xn * gamma.reshape(1, 1, 1, -1) + beta.reshape(1, 1, 1, -1)


def act_fn(x, act):
    if act == 'relu':
        return jnp.maximum(x, 0.0)
    if act == 'lrelu':
        return jnp.where(x >= 0, x, 0.2 * x)
    if act == 'tanh':
        return jnp.tanh(x)
    if act == 'none':
        return x
    raise ValueError(act)


def conv_block(x, p, ksize, stride, pad, pad_type, norm, act):
    x = pad2d(x, pad, pad_type)
    fused_act = act if norm == 'none' else 'none'   # fuse act into GEMM epilogue
    y = conv2d(x, p['wk'], p['b'], ksize, ksize, stride, act=fused_act)
    if norm == 'in':
        y = instance_norm(y)
        y = act_fn(y, act)
    elif norm == 'ln':
        y = layer_norm_custom(y, p['gamma'], p['beta'])
        y = act_fn(y, act)
    return y


def upsample2x(x):   # nn.Upsample(scale_factor=2), nearest, NHWC
    return jnp.repeat(jnp.repeat(x, 2, axis=1), 2, axis=2)


# ----------------------------------------------------------------------------- #
# Parameter init (deterministic, synthetic) -- weights pre-packed to GEMM layout
# ----------------------------------------------------------------------------- #
def init_conv(key, cin, cout, k, with_ln=False):
    k1, k2 = jax.random.split(key)
    w = 0.02 * jax.random.normal(k1, (cout, cin, k, k), jnp.float32)
    K = cin * k * k
    Kp = _round_up(K, 128)
    Np = _round_up(cout, 128)
    wk = w.transpose(2, 3, 1, 0).reshape(K, cout)          # (kh,kw,Cin) x Cout
    wk = jnp.pad(wk, ((0, Kp - K), (0, Np - cout))).astype(jnp.bfloat16)
    p = {'wk': wk, 'b': jnp.zeros((cout,), jnp.float32)}
    if with_ln:
        p['gamma'] = jax.random.uniform(k2, (cout,), jnp.float32)
        p['beta'] = jnp.zeros((cout,), jnp.float32)
    return p


def init_encoder(key, n_down, n_res, input_dim, output_dim, dim):
    keys = iter(jax.random.split(key, 3 + n_down + 2 * n_res))
    p = {'conv0': init_conv(next(keys), input_dim, dim, 7),
         'down': [], 'res': [], 'extra': None}
    for _ in range(n_down):
        p['down'].append(init_conv(next(keys), dim, 2 * dim, 4))
        dim *= 2
    for _ in range(n_res):    # ContentEncoder ResBlocks use norm='ln'
        p['res'].append([init_conv(next(keys), dim, dim, 3, with_ln=True),
                         init_conv(next(keys), dim, dim, 3, with_ln=True)])
    if dim != output_dim:
        p['extra'] = init_conv(next(keys), dim, output_dim, 3)
    return p


def init_decoder(key, n_up, input_dim, output_dim):
    keys = jax.random.split(key, n_up + 1)
    p = {'up': [], 'out': None}
    dim = input_dim
    for i in range(n_up):     # Conv2dBlock(dim, dim//2, 5,1,2, norm='ln')
        p['up'].append(init_conv(keys[i], dim, dim // 2, 5, with_ln=True))
        dim //= 2
    p['out'] = init_conv(keys[-1], dim, output_dim, 7)      # norm none, tanh
    return p


def init_ifm(key, n_down, n_res, input_dim, output_dim, dim, res_with_ln=False):
    keys = iter(jax.random.split(key, 2 + n_down + 2 * n_res))
    p = {'conv0': init_conv(next(keys), input_dim, dim, 7), 'down': [], 'res': []}
    for _ in range(n_down):
        p['down'].append(init_conv(next(keys), dim, 2 * dim, 4))
        dim *= 2
    for _ in range(n_res):
        p['res'].append([init_conv(next(keys), dim, dim, 3, with_ln=res_with_ln),
                         init_conv(next(keys), dim, dim, 3, with_ln=res_with_ln)])
    p['out'] = init_conv(next(keys), dim, output_dim, 3)
    return p


# ----------------------------------------------------------------------------- #
# Sub-module forwards (NHWC)
# ----------------------------------------------------------------------------- #
def encoder_fwd(p, x, norm, res_norm, act, pad_type):
    x = conv_block(x, p['conv0'], 7, 1, 3, pad_type, norm, act)
    for pc in p['down']:
        x = conv_block(x, pc, 4, 2, 1, pad_type, norm, act)
    for pr1, pr2 in p['res']:
        res = x
        y = conv_block(x, pr1, 3, 1, 1, pad_type, res_norm, act)
        y = conv_block(y, pr2, 3, 1, 1, pad_type, res_norm, 'none')
        x = y + res
    if p['extra'] is not None:
        x = conv_block(x, p['extra'], 3, 1, 1, pad_type, norm, act)
    return x


def decoder_fwd(p, x, act, pad_type):
    for pc in p['up']:
        x = upsample2x(x)
        x = conv_block(x, pc, 5, 1, 2, pad_type, 'ln', act)
    # tanh fused into the GEMM epilogue of the last conv
    return conv_block(x, p['out'], 7, 1, 3, pad_type, 'none', 'tanh')


def ifm_fwd(p, x, norm, act, pad_type, lamda=10.0):
    y = conv_block(x, p['conv0'], 7, 1, 3, pad_type, norm, act)
    for pc in p['down']:
        y = conv_block(y, pc, 4, 2, 1, pad_type, norm, act)
    for pr1, pr2 in p['res']:
        res = y
        z = conv_block(y, pr1, 3, 1, 1, pad_type, norm, act)
        z = conv_block(z, pr2, 3, 1, 1, pad_type, norm, 'none')
        y = z + res
    content = conv_block(y, p['out'], 3, 1, 1, pad_type, 'none', 'tanh')

    b, h, w, c = content.shape
    fg_patch = content.reshape(b, h * w, c)                  # (b, hw, c)
    bg_patch = jnp.swapaxes(fg_patch, 1, 2)                  # (b, c, hw)
    fg_mu = fg_patch.mean(axis=2, keepdims=True)
    bg_mu = bg_patch.mean(axis=1, keepdims=True)
    fg_c = fg_patch - fg_mu
    bg_c = bg_patch - bg_mu
    # batched covariance GEMM (f32 operands: feeds a lamda-scaled softmax)
    fg_bg_conv = batched_matmul(fg_c, bg_c, operand_dtype=jnp.float32) / (c - 1)
    score = lamda * jnp.swapaxes(fg_bg_conv, 1, 2)
    match_score_soft = jax.nn.softmax(score, axis=1)
    match_score_soft = match_score_soft.reshape(b, h * w, h, w)   # NCHW-like att
    content_mean = content.mean(axis=-1, keepdims=True).transpose(0, 3, 1, 2)
    return match_score_soft, content_mean


def harmony_rec_block_fwd(p, bg_in, att, rate=2, stride=1):
    """bg_in NHWC; att (b, L, h', w') attention maps.  The per-sample
    conv_transpose2d is lowered to ONE batched GEMM."""
    b, h, w, dims = bg_in.shape
    kernel = 2 * rate
    s = rate * stride
    # extract_image_patches(..., padding='same'): zero 'same' padding + unfold
    out_rows = -(-h // s)
    out_cols = -(-w // s)
    pad_rows = max(0, (out_rows - 1) * s + kernel - h)
    pad_cols = max(0, (out_cols - 1) * s + kernel - w)
    pt, pb = pad_rows // 2, pad_rows - pad_rows // 2
    plft, prt = pad_cols // 2, pad_cols - pad_cols // 2
    xpad = jnp.pad(bg_in, ((0, 0), (pt, pb), (plft, prt), (0, 0)))
    col, OH, OW = im2col_nhwc(xpad, kernel, kernel, s)       # (b,OH,OW,k*k,C)
    L = OH * OW
    patches = col.reshape(b, L, kernel, kernel, dims)
    # conv_transpose weight -> equivalent forward-conv weight (flip spatially),
    # laid out as a batched GEMM rhs with K-order (i, j, l)
    wflip = jnp.flip(patches, axis=(2, 3))
    rhs = wflip.transpose(0, 2, 3, 1, 4).reshape(b, kernel * kernel * L, dims)

    # attention maps: NCHW -> NHWC, dilate by `rate`, pad, im2col -> GEMM lhs
    att_nhwc = att.transpose(0, 2, 3, 1)                     # (b, h', w', L)
    _, ha, wa, _ = att_nhwc.shape
    Hd, Wd = (ha - 1) * rate + 1, (wa - 1) * rate + 1
    att_d = jnp.zeros((b, Hd, Wd, L), att.dtype).at[:, ::rate, ::rate, :].set(att_nhwc)
    ph = kernel - 1 - 1                                      # conv_transpose padding=1
    att_p = jnp.pad(att_d, ((0, 0), (ph, ph), (ph, ph), (0, 0)))
    col2, OH2, OW2 = im2col_nhwc(att_p, kernel, kernel, 1)   # (b,OH2,OW2,k*k,L)
    lhs = col2.reshape(b, OH2 * OW2, kernel * kernel * L)

    acl = batched_matmul(lhs, rhs) * 0.25                    # (b, OH2*OW2, dims)
    ACL = acl.reshape(b, OH2, OW2, dims)
    con1 = jnp.concatenate([bg_in, ACL], axis=-1)
    ACL2 = conv_block(con1, p['conv'], 3, 1, 1, 'reflect', 'none', 'relu')
    return ACL2 + bg_in


# ----------------------------------------------------------------------------- #
# BaseGDGenerator
# ----------------------------------------------------------------------------- #
class CFG:
    input_nc = 4
    output_nc = 3
    ngf = 64
    n_downsample = 2
    activ = 'relu'
    pad_type = 'reflect'
    ifm_n_res = 1
    inharmonyfree_norm = 'in'
    inharmonyfree_embed_layers = 1
    reflectance_dim = 256   # ngf * 2**n_downsample == 256 (required by the module)


def init_model(key):
    ks = jax.random.split(key, 6)
    enc_out = CFG.ngf * (2 ** CFG.n_downsample)        # 256 == reflectance_dim
    params = {
        'r_enc': init_encoder(ks[0], CFG.n_downsample, 4, CFG.input_nc,
                              CFG.reflectance_dim, CFG.ngf),
        'i_enc': init_encoder(ks[1], CFG.n_downsample, 4, CFG.input_nc,
                              CFG.reflectance_dim, CFG.ngf),
        'r_dec': init_decoder(ks[2], CFG.n_downsample, enc_out, CFG.output_nc),
        'i_dec': init_decoder(ks[3], CFG.n_downsample, enc_out, CFG.output_nc),
        'ifm':   init_ifm(ks[4], CFG.n_downsample + 1, CFG.ifm_n_res, CFG.input_nc,
                          enc_out, CFG.ngf // 2,
                          res_with_ln=(CFG.inharmonyfree_norm == 'ln')),
        'rec':   [{'conv': init_conv(k, enc_out * 2, enc_out, 3)}
                  for k in jax.random.split(ks[5], CFG.inharmonyfree_embed_layers)],
    }
    return params


def forward(params, x_nchw):
    x = x_nchw.transpose(0, 2, 3, 1)                    # NCHW -> NHWC once
    match_score, ifm_mean = ifm_fwd(params['ifm'], x, CFG.inharmonyfree_norm,
                                    CFG.activ, CFG.pad_type)
    r_content = encoder_fwd(params['r_enc'], x, 'in', 'ln', CFG.activ, CFG.pad_type)
    i_content = encoder_fwd(params['i_enc'], x, 'in', 'ln', CFG.activ, CFG.pad_type)
    for pb in params['rec']:
        r_content = harmony_rec_block_fwd(pb, r_content, match_score,
                                          rate=2, stride=1)
    refl_raw = decoder_fwd(params['r_dec'], r_content, CFG.activ, CFG.pad_type)
    illum_raw = decoder_fwd(params['i_dec'], i_content, CFG.activ, CFG.pad_type)
    refl_nchw = refl_raw.transpose(0, 3, 1, 2)          # back to NCHW outputs
    illum_nchw = illum_raw.transpose(0, 3, 1, 2)
    harmonized, reflectance, illumination = combine_pallas(refl_nchw, illum_nchw)
    return harmonized, reflectance, illumination, ifm_mean


if __name__ == "__main__":
    key = jax.random.PRNGKey(0)
    pkey, xkey = jax.random.split(key)
    params = init_model(pkey)
    x = jax.random.normal(xkey, (2, CFG.input_nc, 16, 16), jnp.float32)

    fwd = jax.jit(forward)
    harmonized, reflectance, illumination, ifm_mean = fwd(params, x)
    jax.block_until_ready((harmonized, reflectance, illumination, ifm_mean))

    assert harmonized.shape == (2, 3, 16, 16)
    assert reflectance.shape == (2, 3, 16, 16)
    assert illumination.shape == (2, 3, 16, 16)
    assert ifm_mean.shape == (2, 1, 2, 2)
    assert bool(jnp.all(jnp.isfinite(harmonized)))
    print("KERNEL_OK")
</pallas_src>

<mosaic_0001>
module attributes {stable_mosaic.version = 11 : i64} {
  func.func @_gemm_bias_act_kernel(%arg0: i32, %arg1: i32, %arg2: i32, %arg3: memref<256x256xbf16, #tpu.memory_space<vmem>>, %arg4: memref<256x128xbf16, #tpu.memory_space<vmem>>, %arg5: memref<1x128xf32, #tpu.memory_space<vmem>>, %arg6: memref<256x128xf32, #tpu.memory_space<vmem>>) attributes {dimension_semantics = [#tpu.dimension_semantics<parallel>, #tpu.dimension_semantics<parallel>, #tpu.dimension_semantics<arbitrary>], iteration_bounds = array<i64: 2, 1, 1>, scalar_prefetch = 0 : i64, scratch_operands = 0 : i64, tpu.core_type = #tpu.core_type<tc>, window_params = [{transform_indices = @transform_0, window_bounds = array<i64: 256, 256>}, {transform_indices = @transform_1, window_bounds = array<i64: 256, 128>}, {transform_indices = @transform_2, window_bounds = array<i64: 1, 128>}, {transform_indices = @transform_3, window_bounds = array<i64: 256, 128>}]} {
    %c0_i32 = arith.constant 0 : i32
    %0 = arith.cmpi eq, %arg2, %c0_i32 : i32
    %1 = arith.extui %0 : i1 to i32
    %c0_i32_0 = arith.constant 0 : i32
    %2 = arith.cmpi ne, %1, %c0_i32_0 : i32
    scf.if %2 {
      %cst_10 = arith.constant 0.000000e+00 : f32
      %12 = vector.broadcast %cst_10 : f32 to vector<256x128xf32>
      %c0_11 = arith.constant 0 : index
      %c0_12 = arith.constant 0 : index
      %13 = vector.load %arg6[%c0_11, %c0_12] : memref<256x128xf32, #tpu.memory_space<vmem>>, vector<256x128xf32>
      tpu.vector_store %arg6[%c0_11, %c0_12], %12 {strides = array<i32>} : memref<256x128xf32, #tpu.memory_space<vmem>>, vector<256x128xf32>,
    } else {
    }
    %c0 = arith.constant 0 : index
    %c0_1 = arith.constant 0 : index
    %3 = vector.load %arg6[%c0, %c0_1] : memref<256x128xf32, #tpu.memory_space<vmem>>, vector<256x128xf32>
    %c0_2 = arith.constant 0 : index
    %c0_3 = arith.constant 0 : index
    %4 = vector.load %arg3[%c0_2, %c0_3] : memref<256x256xbf16, #tpu.memory_space<vmem>>, vector<256x256xbf16>
    %c0_4 = arith.constant 0 : index
    %c0_5 = arith.constant 0 : index
    %5 = vector.load %arg4[%c0_4, %c0_5] : memref<256x128xbf16, #tpu.memory_space<vmem>>, vector<256x128xbf16>
    %cst = arith.constant dense<0.000000e+00> : vector<256x128xf32>
    %6 = tpu.matmul %4, %5, %cst {dimension_numbers = #tpu.dot_dimension_numbers<[1], [0], [0], [1], [0, 0, 1, 1], [], []>} : vector<256x256xbf16>, vector<256x128xbf16>, vector<256x128xf32> -> vector<256x128xf32>
    %7 = arith.addf %3, %6 : vector<256x128xf32>
    %c0_6 = arith.constant 0 : index
    %c0_7 = arith.constant 0 : index
    %8 = vector.load %arg6[%c0_6, %c0_7] : memref<256x128xf32, #tpu.memory_space<vmem>>, vector<256x128xf32>
    tpu.vector_store %arg6[%c0_6, %c0_7], %7 {strides = array<i32>} : memref<256x128xf32, #tpu.memory_space<vmem>>, vector<256x128xf32>,
    %c0_i32_8 = arith.constant 0 : i32
    %9 = arith.cmpi eq, %arg2, %c0_i32_8 : i32
    %10 = arith.extui %9 : i1 to i32
    %c0_i32_9 = arith.constant 0 : i32
    %11 = arith.cmpi ne, %10, %c0_i32_9 : i32
    scf.if %11 {
      %c0_10 = arith.constant 0 : index
      %c0_11 = arith.constant 0 : index
      %12 = vector.load %arg6[%c0_10, %c0_11] : memref<256x128xf32, #tpu.memory_space<vmem>>, vector<256x128xf32>
      %c0_12 = arith.constant 0 : index
      %c0_13 = arith.constant 0 : index
      %13 = vector.load %arg5[%c0_12, %c0_13] : memref<1x128xf32, #tpu.memory_space<vmem>>, vector<1x128xf32>
      %14 = vector.broadcast %13 : vector<1x128xf32> to vector<256x128xf32>
      %15 = arith.addf %12, %14 : vector<256x128xf32>
      %c0_14 = arith.constant 0 : index
      %c0_15 = arith.constant 0 : index
      %16 = vector.load %arg6[%c0_14, %c0_15] : memref<256x128xf32, #tpu.memory_space<vmem>>, vector<256x128xf32>
      tpu.vector_store %arg6[%c0_14, %c0_15], %15 {strides = array<i32>} : memref<256x128xf32, #tpu.memory_space<vmem>>, vector<256x128xf32>,
    } else {
    }
    return
  }
  func.func @transform_0(%arg0: i32, %arg1: i32, %arg2: i32) -> (i32, i32) {
    %c0_i32 = arith.constant 0 : i32
    return %arg0, %arg2 : i32, i32
  }
  func.func @transform_1(%arg0: i32, %arg1: i32, %arg2: i32) -> (i32, i32) {
    %c0_i32 = arith.constant 0 : i32
    return %arg2, %arg1 : i32, i32
  }
  func.func @transform_2(%arg0: i32, %arg1: i32, %arg2: i32) -> (i32, i32) {
    %c0_i32 = arith.constant 0 : i32
    %c0_i32_0 = arith.constant 0 : i32
    return %c0_i32, %arg1 : i32, i32
  }
  func.func @transform_3(%arg0: i32, %arg1: i32, %arg2: i32) -> (i32, i32) {
    %c0_i32 = arith.constant 0 : i32
    return %arg0, %arg1 : i32, i32
  }
}

module attributes {stable_mosaic.version = 11 : i64} {
  func.func @_gemm_bias_act_kernel(%arg0: i32, %arg1: i32, %arg2: i32, %arg3: memref<128x256xbf16, #tpu.memory_space<vmem>>, %arg4: memref<256x128xbf16, #tpu.memory_space<vmem>>, %arg5: memref<1x128xf32, #tpu.memory_space<vmem>>, %arg6: memref<128x128xf32, #tpu.memory_space<vmem>>) attributes {dimension_semantics = [#tpu.dimension_semantics<parallel>, #tpu.dimension_semantics<parallel>, #tpu.dimension_semantics<arbitrary>], iteration_bounds = array<i64: 1, 1, 4>, scalar_prefetch = 0 : i64, scratch_operands = 0 : i64, tpu.core_type = #tpu.core_type<tc>, window_params = [{transform_indices = @transform_0, window_bounds = array<i64: 128, 256>}, {transform_indices = @transform_1, window_bounds = array<i64: 256, 128>}, {transform_indices = @transform_2, window_bounds = array<i64: 1, 128>}, {transform_indices = @transform_3, window_bounds = array<i64: 128, 128>}]} {
    %c0_i32 = arith.constant 0 : i32
    %0 = arith.cmpi eq, %arg2, %c0_i32 : i32
    %1 = arith.extui %0 : i1 to i32
    %c0_i32_0 = arith.constant 0 : i32
    %2 = arith.cmpi ne, %1, %c0_i32_0 : i32
    scf.if %2 {
      %cst_9 = arith.constant 0.000000e+00 : f32
      %12 = vector.broadcast %cst_9 : f32 to vector<128x128xf32>
      %c0_10 = arith.constant 0 : index
      %c0_11 = arith.constant 0 : index
      %13 = vector.load %arg6[%c0_10, %c0_11] : memref<128x128xf32, #tpu.memory_space<vmem>>, vector<128x128xf32>
      tpu.vector_store %arg6[%c0_10, %c0_11], %12 {strides = array<i32>} : memref<128x128xf32, #tpu.memory_space<vmem>>, vector<128x128xf32>,
    } else {
    }
    %c0 = arith.constant 0 : index
    %c0_1 = arith.constant 0 : index
    %3 = vector.load %arg6[%c0, %c0_1] : memref<128x128xf32, #tpu.memory_space<vmem>>, vector<128x128xf32>
    %c0_2 = arith.constant 0 : index
    %c0_3 = arith.constant 0 : index
    %4 = vector.load %arg3[%c0_2, %c0_3] : memref<128x256xbf16, #tpu.memory_space<vmem>>, vector<128x256xbf16>
    %c0_4 = arith.constant 0 : index
    %c0_5 = arith.constant 0 : index
    %5 = vector.load %arg4[%c0_4, %c0_5] : memref<256x128xbf16, #tpu.memory_space<vmem>>, vector<256x128xbf16>
    %cst = arith.constant dense<0.000000e+00> : vector<128x128xf32>
    %6 = tpu.matmul %4, %5, %cst {dimension_numbers = #tpu.dot_dimension_numbers<[1], [0], [0], [1], [0, 0, 1, 1], [], []>} : vector<128x256xbf16>, vector<256x128xbf16>, vector<128x128xf32> -> vector<128x128xf32>
    %7 = arith.addf %3, %6 : vector<128x128xf32>
    %c0_6 = arith.constant 0 : index
    %c0_7 = arith.constant 0 : index
    %8 = vector.load %arg6[%c0_6, %c0_7] : memref<128x128xf32, #tpu.memory_space<vmem>>, vector<128x128xf32>
    tpu.vector_store %arg6[%c0_6, %c0_7], %7 {strides = array<i32>} : memref<128x128xf32, #tpu.memory_space<vmem>>, vector<128x128xf32>,
    %c3_i32 = arith.constant 3 : i32
    %9 = arith.cmpi eq, %arg2, %c3_i32 : i32
    %10 = arith.extui %9 : i1 to i32
    %c0_i32_8 = arith.constant 0 : i32
    %11 = arith.cmpi ne, %10, %c0_i32_8 : i32
    scf.if %11 {
      %c0_9 = arith.constant 0 : index
      %c0_10 = arith.constant 0 : index
      %12 = vector.load %arg6[%c0_9, %c0_10] : memref<128x128xf32, #tpu.memory_space<vmem>>, vector<128x128xf32>
      %c0_11 = arith.constant 0 : index
      %c0_12 = arith.constant 0 : index
      %13 = vector.load %arg5[%c0_11, %c0_12] : memref<1x128xf32, #tpu.memory_space<vmem>>, vector<1x128xf32>
      %14 = vector.broadcast %13 : vector<1x128xf32> to vector<128x128xf32>
      %15 = arith.addf %12, %14 : vector<128x128xf32>
      %c0_13 = arith.constant 0 : index
      %c0_14 = arith.constant 0 : index
      %16 = vector.load %arg6[%c0_13, %c0_14] : memref<128x128xf32, #tpu.memory_space<vmem>>, vector<128x128xf32>
      tpu.vector_store %arg6[%c0_13, %c0_14], %15 {strides = array<i32>} : memref<128x128xf32, #tpu.memory_space<vmem>>, vector<128x128xf32>,
    } else {
    }
    return
  }
  func.func @transform_0(%arg0: i32, %arg1: i32, %arg2: i32) -> (i32, i32) {
    %c0_i32 = arith.constant 0 : i32
    return %arg0, %arg2 : i32, i32
  }
  func.func @transform_1(%arg0: i32, %arg1: i32, %arg2: i32) -> (i32, i32) {
    %c0_i32 = arith.constant 0 : i32
    return %arg2, %arg1 : i32, i32
  }
  func.func @transform_2(%arg0: i32, %arg1: i32, %arg2: i32) -> (i32, i32) {
    %c0_i32 = arith.constant 0 : i32
    %c0_i32_0 = arith.constant 0 : i32
    return %c0_i32, %arg1 : i32, i32
  }
  func.func @transform_3(%arg0: i32, %arg1: i32, %arg2: i32) -> (i32, i32) {
    %c0_i32 = arith.constant 0 : i32
    return %arg0, %arg1 : i32, i32
  }
}

module attributes {stable_mosaic.version = 11 : i64} {
  func.func @_gemm_bias_act_kernel(%arg0: i32, %arg1: i32, %arg2: i32, %arg3: memref<32x256xbf16, #tpu.memory_space<vmem>>, %arg4: memref<256x256xbf16, #tpu.memory_space<vmem>>, %arg5: memref<1x256xf32, #tpu.memory_space<vmem>>, %arg6: memref<32x256xf32, #tpu.memory_space<vmem>>) attributes {dimension_semantics = [#tpu.dimension_semantics<parallel>, #tpu.dimension_semantics<parallel>, #tpu.dimension_semantics<arbitrary>], iteration_bounds = array<i64: 1, 1, 8>, scalar_prefetch = 0 : i64, scratch_operands = 0 : i64, tpu.core_type = #tpu.core_type<tc>, window_params = [{transform_indices = @transform_0, window_bounds = array<i64: 32, 256>}, {transform_indices = @transform_1, window_bounds = array<i64: 256, 256>}, {transform_indices = @transform_2, window_bounds = array<i64: 1, 256>}, {transform_indices = @transform_3, window_bounds = array<i64: 32, 256>}]} {
    %c0_i32 = arith.constant 0 : i32
    %0 = arith.cmpi eq, %arg2, %c0_i32 : i32
    %1 = arith.extui %0 : i1 to i32
    %c0_i32_0 = arith.constant 0 : i32
    %2 = arith.cmpi ne, %1, %c0_i32_0 : i32
    scf.if %2 {
      %cst_9 = arith.constant 0.000000e+00 : f32
      %12 = vector.broadcast %cst_9 : f32 to vector<32x256xf32>
      %c0_10 = arith.constant 0 : index
      %c0_11 = arith.constant 0 : index
      %13 = vector.load %arg6[%c0_10, %c0_11] : memref<32x256xf32, #tpu.memory_space<vmem>>, vector<32x256xf32>
      tpu.vector_store %arg6[%c0_10, %c0_11], %12 {strides = array<i32>} : memref<32x256xf32, #tpu.memory_space<vmem>>, vector<32x256xf32>,
    } else {
    }
    %c0 = arith.constant 0 : index
    %c0_1 = arith.constant 0 : index
    %3 = vector.load %arg6[%c0, %c0_1] : memref<32x256xf32, #tpu.memory_space<vmem>>, vector<32x256xf32>
    %c0_2 = arith.constant 0 : index
    %c0_3 = arith.constant 0 : index
    %4 = vector.load %arg3[%c0_2, %c0_3] : memref<32x256xbf16, #tpu.memory_space<vmem>>, vector<32x256xbf16>
    %c0_4 = arith.constant 0 : index
    %c0_5 = arith.constant 0 : index
    %5 = vector.load %arg4[%c0_4, %c0_5] : memref<256x256xbf16, #tpu.memory_space<vmem>>, vector<256x256xbf16>
    %cst = arith.constant dense<0.000000e+00> : vector<32x256xf32>
    %6 = tpu.matmul %4, %5, %cst {dimension_numbers = #tpu.dot_dimension_numbers<[1], [0], [0], [1], [0, 0, 1, 1], [], []>} : vector<32x256xbf16>, vector<256x256xbf16>, vector<32x256xf32> -> vector<32x256xf32>
    %7 = arith.addf %3, %6 : vector<32x256xf32>
    %c0_6 = arith.constant 0 : index
    %c0_7 = arith.constant 0 : index
    %8 = vector.load %arg6[%c0_6, %c0_7] : memref<32x256xf32, #tpu.memory_space<vmem>>, vector<32x256xf32>
    tpu.vector_store %arg6[%c0_6, %c0_7], %7 {strides = array<i32>} : memref<32x256xf32, #tpu.memory_space<vmem>>, vector<32x256xf32>,
    %c7_i32 = arith.constant 7 : i32
    %9 = arith.cmpi eq, %arg2, %c7_i32 : i32
    %10 = arith.extui %9 : i1 to i32
    %c0_i32_8 = arith.constant 0 : i32
    %11 = arith.cmpi ne, %10, %c0_i32_8 : i32
    scf.if %11 {
      %c0_9 = arith.constant 0 : index
      %c0_10 = arith.constant 0 : index
      %12 = vector.load %arg6[%c0_9, %c0_10] : memref<32x256xf32, #tpu.memory_space<vmem>>, vector<32x256xf32>
      %c0_11 = arith.constant 0 : index
      %c0_12 = arith.constant 0 : index
      %13 = vector.load %arg5[%c0_11, %c0_12] : memref<1x256xf32, #tpu.memory_space<vmem>>, vector<1x256xf32>
      %14 = vector.broadcast %13 : vector<1x256xf32> to vector<32x256xf32>
      %15 = arith.addf %12, %14 : vector<32x256xf32>
      %c0_13 = arith.constant 0 : index
      %c0_14 = arith.constant 0 : index
      %16 = vector.load %arg6[%c0_13, %c0_14] : memref<32x256xf32, #tpu.memory_space<vmem>>, vector<32x256xf32>
      tpu.vector_store %arg6[%c0_13, %c0_14], %15 {strides = array<i32>} : memref<32x256xf32, #tpu.memory_space<vmem>>, vector<32x256xf32>,
    } else {
    }
    return
  }
  func.func @transform_0(%arg0: i32, %arg1: i32, %arg2: i32) -> (i32, i32) {
    %c0_i32 = arith.constant 0 : i32
    return %arg0, %arg2 : i32, i32
  }
  func.func @transform_1(%arg0: i32, %arg1: i32, %arg2: i32) -> (i32, i32) {
    %c0_i32 = arith.constant 0 : i32
    return %arg2, %arg1 : i32, i32
  }
  func.func @transform_2(%arg0: i32, %arg1: i32, %arg2: i32) -> (i32, i32) {
    %c0_i32 = arith.constant 0 : i32
    %c0_i32_0 = arith.constant 0 : i32
    return %c0_i32, %arg1 : i32, i32
  }
  func.func @transform_3(%arg0: i32, %arg1: i32, %arg2: i32) -> (i32, i32) {
    %c0_i32 = arith.constant 0 : i32
    return %arg0, %arg1 : i32, i32
  }
}

module attributes {stable_mosaic.version = 11 : i64} {
  func.func @_gemm_bias_act_kernel(%arg0: i32, %arg1: i32, %arg2: i32, %arg3: memref<32x256xbf16, #tpu.memory_space<vmem>>, %arg4: memref<256x256xbf16, #tpu.memory_space<vmem>>, %arg5: memref<1x256xf32, #tpu.memory_space<vmem>>, %arg6: memref<32x256xf32, #tpu.memory_space<vmem>>) attributes {dimension_semantics = [#tpu.dimension_semantics<parallel>, #tpu.dimension_semantics<parallel>, #tpu.dimension_semantics<arbitrary>], iteration_bounds = array<i64: 1, 1, 9>, scalar_prefetch = 0 : i64, scratch_operands = 0 : i64, tpu.core_type = #tpu.core_type<tc>, window_params = [{transform_indices = @transform_0, window_bounds = array<i64: 32, 256>}, {transform_indices = @transform_1, window_bounds = array<i64: 256, 256>}, {transform_indices = @transform_2, window_bounds = array<i64: 1, 256>}, {transform_indices = @transform_3, window_bounds = array<i64: 32, 256>}]} {
    %c0_i32 = arith.constant 0 : i32
    %0 = arith.cmpi eq, %arg2, %c0_i32 : i32
    %1 = arith.extui %0 : i1 to i32
    %c0_i32_0 = arith.constant 0 : i32
    %2 = arith.cmpi ne, %1, %c0_i32_0 : i32
    scf.if %2 {
      %cst_9 = arith.constant 0.000000e+00 : f32
      %12 = vector.broadcast %cst_9 : f32 to vector<32x256xf32>
      %c0_10 = arith.constant 0 : index
      %c0_11 = arith.constant 0 : index
      %13 = vector.load %arg6[%c0_10, %c0_11] : memref<32x256xf32, #tpu.memory_space<vmem>>, vector<32x256xf32>
      tpu.vector_store %arg6[%c0_10, %c0_11], %12 {strides = array<i32>} : memref<32x256xf32, #tpu.memory_space<vmem>>, vector<32x256xf32>,
    } else {
    }
    %c0 = arith.constant 0 : index
    %c0_1 = arith.constant 0 : index
    %3 = vector.load %arg6[%c0, %c0_1] : memref<32x256xf32, #tpu.memory_space<vmem>>, vector<32x256xf32>
    %c0_2 = arith.constant 0 : index
    %c0_3 = arith.constant 0 : index
    %4 = vector.load %arg3[%c0_2, %c0_3] : memref<32x256xbf16, #tpu.memory_space<vmem>>, vector<32x256xbf16>
    %c0_4 = arith.constant 0 : index
    %c0_5 = arith.constant 0 : index
    %5 = vector.load %arg4[%c0_4, %c0_5] : memref<256x256xbf16, #tpu.memory_space<vmem>>, vector<256x256xbf16>
    %cst = arith.constant dense<0.000000e+00> : vector<32x256xf32>
    %6 = tpu.matmul %4, %5, %cst {dimension_numbers = #tpu.dot_dimension_numbers<[1], [0], [0], [1], [0, 0, 1, 1], [], []>} : vector<32x256xbf16>, vector<256x256xbf16>, vector<32x256xf32> -> vector<32x256xf32>
    %7 = arith.addf %3, %6 : vector<32x256xf32>
    %c0_6 = arith.constant 0 : index
    %c0_7 = arith.constant 0 : index
    %8 = vector.load %arg6[%c0_6, %c0_7] : memref<32x256xf32, #tpu.memory_space<vmem>>, vector<32x256xf32>
    tpu.vector_store %arg6[%c0_6, %c0_7], %7 {strides = array<i32>} : memref<32x256xf32, #tpu.memory_space<vmem>>, vector<32x256xf32>,
    %c8_i32 = arith.constant 8 : i32
    %9 = arith.cmpi eq, %arg2, %c8_i32 : i32
    %10 = arith.extui %9 : i1 to i32
    %c0_i32_8 = arith.constant 0 : i32
    %11 = arith.cmpi ne, %10, %c0_i32_8 : i32
    scf.if %11 {
      %c0_9 = arith.constant 0 : index
      %c0_10 = arith.constant 0 : index
      %12 = vector.load %arg6[%c0_9, %c0_10] : memref<32x256xf32, #tpu.memory_space<vmem>>, vector<32x256xf32>
      %c0_11 = arith.constant 0 : index
      %c0_12 = arith.constant 0 : index
      %13 = vector.load %arg5[%c0_11, %c0_12] : memref<1x256xf32, #tpu.memory_space<vmem>>, vector<1x256xf32>
      %14 = vector.broadcast %13 : vector<1x256xf32> to vector<32x256xf32>
      %15 = arith.addf %12, %14 : vector<32x256xf32>
      %c0_13 = arith.constant 0 : index
      %c0_14 = arith.constant 0 : index
      %16 = vector.load %arg6[%c0_13, %c0_14] : memref<32x256xf32, #tpu.memory_space<vmem>>, vector<32x256xf32>
      tpu.vector_store %arg6[%c0_13, %c0_14], %15 {strides = array<i32>} : memref<32x256xf32, #tpu.memory_space<vmem>>, vector<32x256xf32>,
    } else {
    }
    return
  }
  func.func @transform_0(%arg0: i32, %arg1: i32, %arg2: i32) -> (i32, i32) {
    %c0_i32 = arith.constant 0 : i32
    return %arg0, %arg2 : i32, i32
  }
  func.func @transform_1(%arg0: i32, %arg1: i32, %arg2: i32) -> (i32, i32) {
    %c0_i32 = arith.constant 0 : i32
    return %arg2, %arg1 : i32, i32
  }
  func.func @transform_2(%arg0: i32, %arg1: i32, %arg2: i32) -> (i32, i32) {
    %c0_i32 = arith.constant 0 : i32
    %c0_i32_0 = arith.constant 0 : i32
    return %c0_i32, %arg1 : i32, i32
  }
  func.func @transform_3(%arg0: i32, %arg1: i32, %arg2: i32) -> (i32, i32) {
    %c0_i32 = arith.constant 0 : i32
    return %arg0, %arg1 : i32, i32
  }
}

module attributes {stable_mosaic.version = 11 : i64} {
  func.func @_gemm_bias_act_kernel(%arg0: i32, %arg1: i32, %arg2: i32, %arg3: memref<128x256xbf16, #tpu.memory_space<vmem>>, %arg4: memref<256x128xbf16, #tpu.memory_space<vmem>>, %arg5: memref<1x128xf32, #tpu.memory_space<vmem>>, %arg6: memref<128x128xf32, #tpu.memory_space<vmem>>) attributes {dimension_semantics = [#tpu.dimension_semantics<parallel>, #tpu.dimension_semantics<parallel>, #tpu.dimension_semantics<arbitrary>], iteration_bounds = array<i64: 1, 1, 2>, scalar_prefetch = 0 : i64, scratch_operands = 0 : i64, tpu.core_type = #tpu.core_type<tc>, window_params = [{transform_indices = @transform_0, window_bounds = array<i64: 128, 256>}, {transform_indices = @transform_1, window_bounds = array<i64: 256, 128>}, {transform_indices = @transform_2, window_bounds = array<i64: 1, 128>}, {transform_indices = @transform_3, window_bounds = array<i64: 128, 128>}]} {
    %c0_i32 = arith.constant 0 : i32
    %0 = arith.cmpi eq, %arg2, %c0_i32 : i32
    %1 = arith.extui %0 : i1 to i32
    %c0_i32_0 = arith.constant 0 : i32
    %2 = arith.cmpi ne, %1, %c0_i32_0 : i32
    scf.if %2 {
      %cst_9 = arith.constant 0.000000e+00 : f32
      %12 = vector.broadcast %cst_9 : f32 to vector<128x128xf32>
      %c0_10 = arith.constant 0 : index
      %c0_11 = arith.constant 0 : index
      %13 = vector.load %arg6[%c0_10, %c0_11] : memref<128x128xf32, #tpu.memory_space<vmem>>, vector<128x128xf32>
      tpu.vector_store %arg6[%c0_10, %c0_11], %12 {strides = array<i32>} : memref<128x128xf32, #tpu.memory_space<vmem>>, vector<128x128xf32>,
    } else {
    }
    %c0 = arith.constant 0 : index
    %c0_1 = arith.constant 0 : index
    %3 = vector.load %arg6[%c0, %c0_1] : memref<128x128xf32, #tpu.memory_space<vmem>>, vector<128x128xf32>
    %c0_2 = arith.constant 0 : index
    %c0_3 = arith.constant 0 : index
    %4 = vector.load %arg3[%c0_2, %c0_3] : memref<128x256xbf16, #tpu.memory_space<vmem>>, vector<128x256xbf16>
    %c0_4 = arith.constant 0 : index
    %c0_5 = arith.constant 0 : index
    %5 = vector.load %arg4[%c0_4, %c0_5] : memref<256x128xbf16, #tpu.memory_space<vmem>>, vector<256x128xbf16>
    %cst = arith.constant dense<0.000000e+00> : vector<128x128xf32>
    %6 = tpu.matmul %4, %5, %cst {dimension_numbers = #tpu.dot_dimension_numbers<[1], [0], [0], [1], [0, 0, 1, 1], [], []>} : vector<128x256xbf16>, vector<256x128xbf16>, vector<128x128xf32> -> vector<128x128xf32>
    %7 = arith.addf %3, %6 : vector<128x128xf32>
    %c0_6 = arith.constant 0 : index
    %c0_7 = arith.constant 0 : index
    %8 = vector.load %arg6[%c0_6, %c0_7] : memref<128x128xf32, #tpu.memory_space<vmem>>, vector<128x128xf32>
    tpu.vector_store %arg6[%c0_6, %c0_7], %7 {strides = array<i32>} : memref<128x128xf32, #tpu.memory_space<vmem>>, vector<128x128xf32>,
    %c1_i32 = arith.constant 1 : i32
    %9 = arith.cmpi eq, %arg2, %c1_i32 : i32
    %10 = arith.extui %9 : i1 to i32
    %c0_i32_8 = arith.constant 0 : i32
    %11 = arith.cmpi ne, %10, %c0_i32_8 : i32
    scf.if %11 {
      %c0_9 = arith.constant 0 : index
      %c0_10 = arith.constant 0 : index
      %12 = vector.load %arg6[%c0_9, %c0_10] : memref<128x128xf32, #tpu.memory_space<vmem>>, vector<128x128xf32>
      %c0_11 = arith.constant 0 : index
      %c0_12 = arith.constant 0 : index
      %13 = vector.load %arg5[%c0_11, %c0_12] : memref<1x128xf32, #tpu.memory_space<vmem>>, vector<1x128xf32>
      %14 = vector.broadcast %13 : vector<1x128xf32> to vector<128x128xf32>
      %15 = arith.addf %12, %14 : vector<128x128xf32>
      %c0_13 = arith.constant 0 : index
      %c0_14 = arith.constant 0 : index
      %16 = vector.load %arg6[%c0_13, %c0_14] : memref<128x128xf32, #tpu.memory_space<vmem>>, vector<128x128xf32>
      tpu.vector_store %arg6[%c0_13, %c0_14], %15 {strides = array<i32>} : memref<128x128xf32, #tpu.memory_space<vmem>>, vector<128x128xf32>,
    } else {
    }
    return
  }
  func.func @transform_0(%arg0: i32, %arg1: i32, %arg2: i32) -> (i32, i32) {
    %c0_i32 = arith.constant 0 : i32
    return %arg0, %arg2 : i32, i32
  }
  func.func @transform_1(%arg0: i32, %arg1: i32, %arg2: i32) -> (i32, i32) {
    %c0_i32 = arith.constant 0 : i32
    return %arg2, %arg1 : i32, i32
  }
  func.func @transform_2(%arg0: i32, %arg1: i32, %arg2: i32) -> (i32, i32) {
    %c0_i32 = arith.constant 0 : i32
    %c0_i32_0 = arith.constant 0 : i32
    return %c0_i32, %arg1 : i32, i32
  }
  func.func @transform_3(%arg0: i32, %arg1: i32, %arg2: i32) -> (i32, i32) {
    %c0_i32 = arith.constant 0 : i32
    return %arg0, %arg1 : i32, i32
  }
}

module attributes {stable_mosaic.version = 11 : i64} {
  func.func @_gemm_bias_act_kernel(%arg0: i32, %arg1: i32, %arg2: i32, %arg3: memref<32x256xbf16, #tpu.memory_space<vmem>>, %arg4: memref<256x128xbf16, #tpu.memory_space<vmem>>, %arg5: memref<1x128xf32, #tpu.memory_space<vmem>>, %arg6: memref<32x128xf32, #tpu.memory_space<vmem>>) attributes {dimension_semantics = [#tpu.dimension_semantics<parallel>, #tpu.dimension_semantics<parallel>, #tpu.dimension_semantics<arbitrary>], iteration_bounds = array<i64: 1, 1, 4>, scalar_prefetch = 0 : i64, scratch_operands = 0 : i64, tpu.core_type = #tpu.core_type<tc>, window_params = [{transform_indices = @transform_0, window_bounds = array<i64: 32, 256>}, {transform_indices = @transform_1, window_bounds = array<i64: 256, 128>}, {transform_indices = @transform_2, window_bounds = array<i64: 1, 128>}, {transform_indices = @transform_3, window_bounds = array<i64: 32, 128>}]} {
    %c0_i32 = arith.constant 0 : i32
    %0 = arith.cmpi eq, %arg2, %c0_i32 : i32
    %1 = arith.extui %0 : i1 to i32
    %c0_i32_0 = arith.constant 0 : i32
    %2 = arith.cmpi ne, %1, %c0_i32_0 : i32
    scf.if %2 {
      %cst_9 = arith.constant 0.000000e+00 : f32
      %12 = vector.broadcast %cst_9 : f32 to vector<32x128xf32>
      %c0_10 = arith.constant 0 : index
      %c0_11 = arith.constant 0 : index
      %13 = vector.load %arg6[%c0_10, %c0_11] : memref<32x128xf32, #tpu.memory_space<vmem>>, vector<32x128xf32>
      tpu.vector_store %arg6[%c0_10, %c0_11], %12 {strides = array<i32>} : memref<32x128xf32, #tpu.memory_space<vmem>>, vector<32x128xf32>,
    } else {
    }
    %c0 = arith.constant 0 : index
    %c0_1 = arith.constant 0 : index
    %3 = vector.load %arg6[%c0, %c0_1] : memref<32x128xf32, #tpu.memory_space<vmem>>, vector<32x128xf32>
    %c0_2 = arith.constant 0 : index
    %c0_3 = arith.constant 0 : index
    %4 = vector.load %arg3[%c0_2, %c0_3] : memref<32x256xbf16, #tpu.memory_space<vmem>>, vector<32x256xbf16>
    %c0_4 = arith.constant 0 : index
    %c0_5 = arith.constant 0 : index
    %5 = vector.load %arg4[%c0_4, %c0_5] : memref<256x128xbf16, #tpu.memory_space<vmem>>, vector<256x128xbf16>
    %cst = arith.constant dense<0.000000e+00> : vector<32x128xf32>
    %6 = tpu.matmul %4, %5, %cst {dimension_numbers = #tpu.dot_dimension_numbers<[1], [0], [0], [1], [0, 0, 1, 1], [], []>} : vector<32x256xbf16>, vector<256x128xbf16>, vector<32x128xf32> -> vector<32x128xf32>
    %7 = arith.addf %3, %6 : vector<32x128xf32>
    %c0_6 = arith.constant 0 : index
    %c0_7 = arith.constant 0 : index
    %8 = vector.load %arg6[%c0_6, %c0_7] : memref<32x128xf32, #tpu.memory_space<vmem>>, vector<32x128xf32>
    tpu.vector_store %arg6[%c0_6, %c0_7], %7 {strides = array<i32>} : memref<32x128xf32, #tpu.memory_space<vmem>>, vector<32x128xf32>,
    %c3_i32 = arith.constant 3 : i32
    %9 = arith.cmpi eq, %arg2, %c3_i32 : i32
    %10 = arith.extui %9 : i1 to i32
    %c0_i32_8 = arith.constant 0 : i32
    %11 = arith.cmpi ne, %10, %c0_i32_8 : i32
    scf.if %11 {
      %c0_9 = arith.constant 0 : index
      %c0_10 = arith.constant 0 : index
      %12 = vector.load %arg6[%c0_9, %c0_10] : memref<32x128xf32, #tpu.memory_space<vmem>>, vector<32x128xf32>
      %c0_11 = arith.constant 0 : index
      %c0_12 = arith.constant 0 : index
      %13 = vector.load %arg5[%c0_11, %c0_12] : memref<1x128xf32, #tpu.memory_space<vmem>>, vector<1x128xf32>
      %14 = vector.broadcast %13 : vector<1x128xf32> to vector<32x128xf32>
      %15 = arith.addf %12, %14 : vector<32x128xf32>
      %c0_13 = arith.constant 0 : index
      %c0_14 = arith.constant 0 : index
      %16 = vector.load %arg6[%c0_13, %c0_14] : memref<32x128xf32, #tpu.memory_space<vmem>>, vector<32x128xf32>
      tpu.vector_store %arg6[%c0_13, %c0_14], %15 {strides = array<i32>} : memref<32x128xf32, #tpu.memory_space<vmem>>, vector<32x128xf32>,
    } else {
    }
    return
  }
  func.func @transform_0(%arg0: i32, %arg1: i32, %arg2: i32) -> (i32, i32) {
    %c0_i32 = arith.constant 0 : i32
    return %arg0, %arg2 : i32, i32
  }
  func.func @transform_1(%arg0: i32, %arg1: i32, %arg2: i32) -> (i32, i32) {
    %c0_i32 = arith.constant 0 : i32
    return %arg2, %arg1 : i32, i32
  }
  func.func @transform_2(%arg0: i32, %arg1: i32, %arg2: i32) -> (i32, i32) {
    %c0_i32 = arith.constant 0 : i32
    %c0_i32_0 = arith.constant 0 : i32
    return %c0_i32, %arg1 : i32, i32
  }
  func.func @transform_3(%arg0: i32, %arg1: i32, %arg2: i32) -> (i32, i32) {
    %c0_i32 = arith.constant 0 : i32
    return %arg0, %arg1 : i32, i32
  }
}

module attributes {stable_mosaic.version = 11 : i64} {
  func.func @_gemm_bias_act_kernel(%arg0: i32, %arg1: i32, %arg2: i32, %arg3: memref<16x256xbf16, #tpu.memory_space<vmem>>, %arg4: memref<256x256xbf16, #tpu.memory_space<vmem>>, %arg5: memref<1x256xf32, #tpu.memory_space<vmem>>, %arg6: memref<16x256xf32, #tpu.memory_space<vmem>>) attributes {dimension_semantics = [#tpu.dimension_semantics<parallel>, #tpu.dimension_semantics<parallel>, #tpu.dimension_semantics<arbitrary>], iteration_bounds = array<i64: 1, 1, 8>, scalar_prefetch = 0 : i64, scratch_operands = 0 : i64, tpu.core_type = #tpu.core_type<tc>, window_params = [{transform_indices = @transform_0, window_bounds = array<i64: 16, 256>}, {transform_indices = @transform_1, window_bounds = array<i64: 256, 256>}, {transform_indices = @transform_2, window_bounds = array<i64: 1, 256>}, {transform_indices = @transform_3, window_bounds = array<i64: 16, 256>}]} {
    %c0_i32 = arith.constant 0 : i32
    %0 = arith.cmpi eq, %arg2, %c0_i32 : i32
    %1 = arith.extui %0 : i1 to i32
    %c0_i32_0 = arith.constant 0 : i32
    %2 = arith.cmpi ne, %1, %c0_i32_0 : i32
    scf.if %2 {
      %cst_9 = arith.constant 0.000000e+00 : f32
      %12 = vector.broadcast %cst_9 : f32 to vector<16x256xf32>
      %c0_10 = arith.constant 0 : index
      %c0_11 = arith.constant 0 : index
      %13 = vector.load %arg6[%c0_10, %c0_11] : memref<16x256xf32, #tpu.memory_space<vmem>>, vector<16x256xf32>
      tpu.vector_store %arg6[%c0_10, %c0_11], %12 {strides = array<i32>} : memref<16x256xf32, #tpu.memory_space<vmem>>, vector<16x256xf32>,
    } else {
    }
    %c0 = arith.constant 0 : index
    %c0_1 = arith.constant 0 : index
    %3 = vector.load %arg6[%c0, %c0_1] : memref<16x256xf32, #tpu.memory_space<vmem>>, vector<16x256xf32>
    %c0_2 = arith.constant 0 : index
    %c0_3 = arith.constant 0 : index
    %4 = vector.load %arg3[%c0_2, %c0_3] : memref<16x256xbf16, #tpu.memory_space<vmem>>, vector<16x256xbf16>
    %c0_4 = arith.constant 0 : index
    %c0_5 = arith.constant 0 : index
    %5 = vector.load %arg4[%c0_4, %c0_5] : memref<256x256xbf16, #tpu.memory_space<vmem>>, vector<256x256xbf16>
    %cst = arith.constant dense<0.000000e+00> : vector<16x256xf32>
    %6 = tpu.matmul %4, %5, %cst {dimension_numbers = #tpu.dot_dimension_numbers<[1], [0], [0], [1], [0, 0, 1, 1], [], []>} : vector<16x256xbf16>, vector<256x256xbf16>, vector<16x256xf32> -> vector<16x256xf32>
    %7 = arith.addf %3, %6 : vector<16x256xf32>
    %c0_6 = arith.constant 0 : index
    %c0_7 = arith.constant 0 : index
    %8 = vector.load %arg6[%c0_6, %c0_7] : memref<16x256xf32, #tpu.memory_space<vmem>>, vector<16x256xf32>
    tpu.vector_store %arg6[%c0_6, %c0_7], %7 {strides = array<i32>} : memref<16x256xf32, #tpu.memory_space<vmem>>, vector<16x256xf32>,
    %c7_i32 = arith.constant 7 : i32
    %9 = arith.cmpi eq, %arg2, %c7_i32 : i32
    %10 = arith.extui %9 : i1 to i32
    %c0_i32_8 = arith.constant 0 : i32
    %11 = arith.cmpi ne, %10, %c0_i32_8 : i32
    scf.if %11 {
      %c0_9 = arith.constant 0 : index
      %c0_10 = arith.constant 0 : index
      %12 = vector.load %arg6[%c0_9, %c0_10] : memref<16x256xf32, #tpu.memory_space<vmem>>, vector<16x256xf32>
      %c0_11 = arith.constant 0 : index
      %c0_12 = arith.constant 0 : index
      %13 = vector.load %arg5[%c0_11, %c0_12] : memref<1x256xf32, #tpu.memory_space<vmem>>, vector<1x256xf32>
      %14 = vector.broadcast %13 : vector<1x256xf32> to vector<16x256xf32>
      %15 = arith.addf %12, %14 : vector<16x256xf32>
      %c0_13 = arith.constant 0 : index
      %c0_14 = arith.constant 0 : index
      %16 = vector.load %arg6[%c0_13, %c0_14] : memref<16x256xf32, #tpu.memory_space<vmem>>, vector<16x256xf32>
      tpu.vector_store %arg6[%c0_13, %c0_14], %15 {strides = array<i32>} : memref<16x256xf32, #tpu.memory_space<vmem>>, vector<16x256xf32>,
    } else {
    }
    return
  }
  func.func @transform_0(%arg0: i32, %arg1: i32, %arg2: i32) -> (i32, i32) {
    %c0_i32 = arith.constant 0 : i32
    return %arg0, %arg2 : i32, i32
  }
  func.func @transform_1(%arg0: i32, %arg1: i32, %arg2: i32) -> (i32, i32) {
    %c0_i32 = arith.constant 0 : i32
    return %arg2, %arg1 : i32, i32
  }
  func.func @transform_2(%arg0: i32, %arg1: i32, %arg2: i32) -> (i32, i32) {
    %c0_i32 = arith.constant 0 : i32
    %c0_i32_0 = arith.constant 0 : i32
    return %c0_i32, %arg1 : i32, i32
  }
  func.func @transform_3(%arg0: i32, %arg1: i32, %arg2: i32) -> (i32, i32) {
    %c0_i32 = arith.constant 0 : i32
    return %arg0, %arg1 : i32, i32
  }
}

module attributes {stable_mosaic.version = 11 : i64} {
  func.func @_gemm_bias_act_kernel(%arg0: i32, %arg1: i32, %arg2: i32, %arg3: memref<16x256xbf16, #tpu.memory_space<vmem>>, %arg4: memref<256x256xbf16, #tpu.memory_space<vmem>>, %arg5: memref<1x256xf32, #tpu.memory_space<vmem>>, %arg6: memref<16x256xf32, #tpu.memory_space<vmem>>) attributes {dimension_semantics = [#tpu.dimension_semantics<parallel>, #tpu.dimension_semantics<parallel>, #tpu.dimension_semantics<arbitrary>], iteration_bounds = array<i64: 1, 1, 9>, scalar_prefetch = 0 : i64, scratch_operands = 0 : i64, tpu.core_type = #tpu.core_type<tc>, window_params = [{transform_indices = @transform_0, window_bounds = array<i64: 16, 256>}, {transform_indices = @transform_1, window_bounds = array<i64: 256, 256>}, {transform_indices = @transform_2, window_bounds = array<i64: 1, 256>}, {transform_indices = @transform_3, window_bounds = array<i64: 16, 256>}]} {
    %c0_i32 = arith.constant 0 : i32
    %0 = arith.cmpi eq, %arg2, %c0_i32 : i32
    %1 = arith.extui %0 : i1 to i32
    %c0_i32_0 = arith.constant 0 : i32
    %2 = arith.cmpi ne, %1, %c0_i32_0 : i32
    scf.if %2 {
      %cst_9 = arith.constant 0.000000e+00 : f32
      %12 = vector.broadcast %cst_9 : f32 to vector<16x256xf32>
      %c0_10 = arith.constant 0 : index
      %c0_11 = arith.constant 0 : index
      %13 = vector.load %arg6[%c0_10, %c0_11] : memref<16x256xf32, #tpu.memory_space<vmem>>, vector<16x256xf32>
      tpu.vector_store %arg6[%c0_10, %c0_11], %12 {strides = array<i32>} : memref<16x256xf32, #tpu.memory_space<vmem>>, vector<16x256xf32>,
    } else {
    }
    %c0 = arith.constant 0 : index
    %c0_1 = arith.constant 0 : index
    %3 = vector.load %arg6[%c0, %c0_1] : memref<16x256xf32, #tpu.memory_space<vmem>>, vector<16x256xf32>
    %c0_2 = arith.constant 0 : index
    %c0_3 = arith.constant 0 : index
    %4 = vector.load %arg3[%c0_2, %c0_3] : memref<16x256xbf16, #tpu.memory_space<vmem>>, vector<16x256xbf16>
    %c0_4 = arith.constant 0 : index
    %c0_5 = arith.constant 0 : index
    %5 = vector.load %arg4[%c0_4, %c0_5] : memref<256x256xbf16, #tpu.memory_space<vmem>>, vector<256x256xbf16>
    %cst = arith.constant dense<0.000000e+00> : vector<16x256xf32>
    %6 = tpu.matmul %4, %5, %cst {dimension_numbers = #tpu.dot_dimension_numbers<[1], [0], [0], [1], [0, 0, 1, 1], [], []>} : vector<16x256xbf16>, vector<256x256xbf16>, vector<16x256xf32> -> vector<16x256xf32>
    %7 = arith.addf %3, %6 : vector<16x256xf32>
    %c0_6 = arith.constant 0 : index
    %c0_7 = arith.constant 0 : index
    %8 = vector.load %arg6[%c0_6, %c0_7] : memref<16x256xf32, #tpu.memory_space<vmem>>, vector<16x256xf32>
    tpu.vector_store %arg6[%c0_6, %c0_7], %7 {strides = array<i32>} : memref<16x256xf32, #tpu.memory_space<vmem>>, vector<16x256xf32>,
    %c8_i32 = arith.constant 8 : i32
    %9 = arith.cmpi eq, %arg2, %c8_i32 : i32
    %10 = arith.extui %9 : i1 to i32
    %c0_i32_8 = arith.constant 0 : i32
    %11 = arith.cmpi ne, %10, %c0_i32_8 : i32
    scf.if %11 {
      %c0_9 = arith.constant 0 : index
      %c0_10 = arith.constant 0 : index
      %12 = vector.load %arg6[%c0_9, %c0_10] : memref<16x256xf32, #tpu.memory_space<vmem>>, vector<16x256xf32>
      %c0_11 = arith.constant 0 : index
      %c0_12 = arith.constant 0 : index
      %13 = vector.load %arg5[%c0_11, %c0_12] : memref<1x256xf32, #tpu.memory_space<vmem>>, vector<1x256xf32>
      %14 = vector.broadcast %13 : vector<1x256xf32> to vector<16x256xf32>
      %15 = arith.addf %12, %14 : vector<16x256xf32>
      %c0_13 = arith.constant 0 : index
      %c0_14 = arith.constant 0 : index
      %16 = vector.load %arg6[%c0_13, %c0_14] : memref<16x256xf32, #tpu.memory_space<vmem>>, vector<16x256xf32>
      tpu.vector_store %arg6[%c0_13, %c0_14], %15 {strides = array<i32>} : memref<16x256xf32, #tpu.memory_space<vmem>>, vector<16x256xf32>,
    } else {
    }
    return
  }
  func.func @transform_0(%arg0: i32, %arg1: i32, %arg2: i32) -> (i32, i32) {
    %c0_i32 = arith.constant 0 : i32
    return %arg0, %arg2 : i32, i32
  }
  func.func @transform_1(%arg0: i32, %arg1: i32, %arg2: i32) -> (i32, i32) {
    %c0_i32 = arith.constant 0 : i32
    return %arg2, %arg1 : i32, i32
  }
  func.func @transform_2(%arg0: i32, %arg1: i32, %arg2: i32) -> (i32, i32) {
    %c0_i32 = arith.constant 0 : i32
    %c0_i32_0 = arith.constant 0 : i32
    return %c0_i32, %arg1 : i32, i32
  }
  func.func @transform_3(%arg0: i32, %arg1: i32, %arg2: i32) -> (i32, i32) {
    %c0_i32 = arith.constant 0 : i32
    return %arg0, %arg1 : i32, i32
  }
}

module attributes {stable_mosaic.version = 11 : i64} {
  func.func @_gemm_bias_act_kernel(%arg0: i32, %arg1: i32, %arg2: i32, %arg3: memref<16x256xbf16, #tpu.memory_space<vmem>>, %arg4: memref<256x256xbf16, #tpu.memory_space<vmem>>, %arg5: memref<1x256xf32, #tpu.memory_space<vmem>>, %arg6: memref<16x256xf32, #tpu.memory_space<vmem>>) attributes {dimension_semantics = [#tpu.dimension_semantics<parallel>, #tpu.dimension_semantics<parallel>, #tpu.dimension_semantics<arbitrary>], iteration_bounds = array<i64: 1, 1, 9>, scalar_prefetch = 0 : i64, scratch_operands = 0 : i64, tpu.core_type = #tpu.core_type<tc>, window_params = [{transform_indices = @transform_0, window_bounds = array<i64: 16, 256>}, {transform_indices = @transform_1, window_bounds = array<i64: 256, 256>}, {transform_indices = @transform_2, window_bounds = array<i64: 1, 256>}, {transform_indices = @transform_3, window_bounds = array<i64: 16, 256>}]} {
    %c0_i32 = arith.constant 0 : i32
    %0 = arith.cmpi eq, %arg2, %c0_i32 : i32
    %1 = arith.extui %0 : i1 to i32
    %c0_i32_0 = arith.constant 0 : i32
    %2 = arith.cmpi ne, %1, %c0_i32_0 : i32
    scf.if %2 {
      %cst_9 = arith.constant 0.000000e+00 : f32
      %12 = vector.broadcast %cst_9 : f32 to vector<16x256xf32>
      %c0_10 = arith.constant 0 : index
      %c0_11 = arith.constant 0 : index
      %13 = vector.load %arg6[%c0_10, %c0_11] : memref<16x256xf32, #tpu.memory_space<vmem>>, vector<16x256xf32>
      tpu.vector_store %arg6[%c0_10, %c0_11], %12 {strides = array<i32>} : memref<16x256xf32, #tpu.memory_space<vmem>>, vector<16x256xf32>,
    } else {
    }
    %c0 = arith.constant 0 : index
    %c0_1 = arith.constant 0 : index
    %3 = vector.load %arg6[%c0, %c0_1] : memref<16x256xf32, #tpu.memory_space<vmem>>, vector<16x256xf32>
    %c0_2 = arith.constant 0 : index
    %c0_3 = arith.constant 0 : index
    %4 = vector.load %arg3[%c0_2, %c0_3] : memref<16x256xbf16, #tpu.memory_space<vmem>>, vector<16x256xbf16>
    %c0_4 = arith.constant 0 : index
    %c0_5 = arith.constant 0 : index
    %5 = vector.load %arg4[%c0_4, %c0_5] : memref<256x256xbf16, #tpu.memory_space<vmem>>, vector<256x256xbf16>
    %cst = arith.constant dense<0.000000e+00> : vector<16x256xf32>
    %6 = tpu.matmul %4, %5, %cst {dimension_numbers = #tpu.dot_dimension_numbers<[1], [0], [0], [1], [0, 0, 1, 1], [], []>} : vector<16x256xbf16>, vector<256x256xbf16>, vector<16x256xf32> -> vector<16x256xf32>
    %7 = arith.addf %3, %6 : vector<16x256xf32>
    %c0_6 = arith.constant 0 : index
    %c0_7 = arith.constant 0 : index
    %8 = vector.load %arg6[%c0_6, %c0_7] : memref<16x256xf32, #tpu.memory_space<vmem>>, vector<16x256xf32>
    tpu.vector_store %arg6[%c0_6, %c0_7], %7 {strides = array<i32>} : memref<16x256xf32, #tpu.memory_space<vmem>>, vector<16x256xf32>,
    %c8_i32 = arith.constant 8 : i32
    %9 = arith.cmpi eq, %arg2, %c8_i32 : i32
    %10 = arith.extui %9 : i1 to i32
    %c0_i32_8 = arith.constant 0 : i32
    %11 = arith.cmpi ne, %10, %c0_i32_8 : i32
    scf.if %11 {
      %c0_9 = arith.constant 0 : index
      %c0_10 = arith.constant 0 : index
      %12 = vector.load %arg6[%c0_9, %c0_10] : memref<16x256xf32, #tpu.memory_space<vmem>>, vector<16x256xf32>
      %c0_11 = arith.constant 0 : index
      %c0_12 = arith.constant 0 : index
      %13 = vector.load %arg5[%c0_11, %c0_12] : memref<1x256xf32, #tpu.memory_space<vmem>>, vector<1x256xf32>
      %14 = vector.broadcast %13 : vector<1x256xf32> to vector<16x256xf32>
      %15 = arith.addf %12, %14 : vector<16x256xf32>
      %16 = math.tanh %15 : vector<16x256xf32>
      %c0_13 = arith.constant 0 : index
      %c0_14 = arith.constant 0 : index
      %17 = vector.load %arg6[%c0_13, %c0_14] : memref<16x256xf32, #tpu.memory_space<vmem>>, vector<16x256xf32>
      tpu.vector_store %arg6[%c0_13, %c0_14], %16 {strides = array<i32>} : memref<16x256xf32, #tpu.memory_space<vmem>>, vector<16x256xf32>,
    } else {
    }
    return
  }
  func.func @transform_0(%arg0: i32, %arg1: i32, %arg2: i32) -> (i32, i32) {
    %c0_i32 = arith.constant 0 : i32
    return %arg0, %arg2 : i32, i32
  }
  func.func @transform_1(%arg0: i32, %arg1: i32, %arg2: i32) -> (i32, i32) {
    %c0_i32 = arith.constant 0 : i32
    return %arg2, %arg1 : i32, i32
  }
  func.func @transform_2(%arg0: i32, %arg1: i32, %arg2: i32) -> (i32, i32) {
    %c0_i32 = arith.constant 0 : i32
    %c0_i32_0 = arith.constant 0 : i32
    return %c0_i32, %arg1 : i32, i32
  }
  func.func @transform_3(%arg0: i32, %arg1: i32, %arg2: i32) -> (i32, i32) {
    %c0_i32 = arith.constant 0 : i32
    return %arg0, %arg1 : i32, i32
  }
}

module attributes {stable_mosaic.version = 11 : i64} {
  func.func @_bmm_kernel(%arg0: i32, %arg1: i32, %arg2: i32, %arg3: memref<1x8x256xf32, #tpu.memory_space<vmem>>, %arg4: memref<1x256x128xf32, #tpu.memory_space<vmem>>, %arg5: memref<1x8x128xf32, #tpu.memory_space<vmem>>) attributes {dimension_semantics = [#tpu.dimension_semantics<parallel>, #tpu.dimension_semantics<parallel>, #tpu.dimension_semantics<parallel>], iteration_bounds = array<i64: 2, 1, 1>, scalar_prefetch = 0 : i64, scratch_operands = 0 : i64, tpu.core_type = #tpu.core_type<tc>, window_params = [{transform_indices = @transform_0, window_bounds = array<i64: 1, 8, 256>}, {transform_indices = @transform_1, window_bounds = array<i64: 1, 256, 128>}, {transform_indices = @transform_2, window_bounds = array<i64: 1, 8, 128>}]} {
    %c0 = arith.constant 0 : index
    %c0_0 = arith.constant 0 : index
    %c0_1 = arith.constant 0 : index
    %0 = vector.load %arg3[%c0, %c0_0, %c0_1] : memref<1x8x256xf32, #tpu.memory_space<vmem>>, vector<1x8x256xf32>
    %1 = vector.shape_cast %0 : vector<1x8x256xf32> to vector<8x256xf32>
    %c0_2 = arith.constant 0 : index
    %c0_3 = arith.constant 0 : index
    %c0_4 = arith.constant 0 : index
    %2 = vector.load %arg4[%c0_2, %c0_3, %c0_4] : memref<1x256x128xf32, #tpu.memory_space<vmem>>, vector<1x256x128xf32>
    %3 = vector.shape_cast %2 : vector<1x256x128xf32> to vector<256x128xf32>
    %cst = arith.constant dense<0.000000e+00> : vector<8x128xf32>
    %4 = tpu.matmul %1, %3, %cst {dimension_numbers = #tpu.dot_dimension_numbers<[1], [0], [0], [1], [0, 0, 1, 1], [], []>} : vector<8x256xf32>, vector<256x128xf32>, vector<8x128xf32> -> vector<8x128xf32>
    %c0_5 = arith.constant 0 : index
    %c0_6 = arith.constant 0 : index
    %c0_7 = arith.constant 0 : index
    %5 = vector.load %arg5[%c0_5, %c0_6, %c0_7] : memref<1x8x128xf32, #tpu.memory_space<vmem>>, vector<1x8x128xf32>
    %6 = vector.shape_cast %5 : vector<1x8x128xf32> to vector<8x128xf32>
    %7 = vector.shape_cast %4 : vector<8x128xf32> to vector<1x8x128xf32>
    tpu.vector_store %arg5[%c0_5, %c0_6, %c0_7], %7 {strides = array<i32>} : memref<1x8x128xf32, #tpu.memory_space<vmem>>, vector<1x8x128xf32>,
    return
  }
  func.func @transform_0(%arg0: i32, %arg1: i32, %arg2: i32) -> (i32, i32, i32) {
    %c0_i32 = arith.constant 0 : i32
    %c0_i32_0 = arith.constant 0 : i32
    return %arg0, %arg1, %c0_i32 : i32, i32, i32
  }
  func.func @transform_1(%arg0: i32, %arg1: i32, %arg2: i32) -> (i32, i32, i32) {
    %c0_i32 = arith.constant 0 : i32
    %c0_i32_0 = arith.constant 0 : i32
    return %arg0, %c0_i32, %arg2 : i32, i32, i32
  }
  func.func @transform_2(%arg0: i32, %arg1: i32, %arg2: i32) -> (i32, i32, i32) {
    %c0_i32 = arith.constant 0 : i32
    return %arg0, %arg1, %arg2 : i32, i32, i32
  }
}

module attributes {stable_mosaic.version = 11 : i64} {
  func.func @_bmm_kernel(%arg0: i32, %arg1: i32, %arg2: i32, %arg3: memref<1x16x64xbf16, #tpu.memory_space<vmem>>, %arg4: memref<1x64x256xbf16, #tpu.memory_space<vmem>>, %arg5: memref<1x16x256xf32, #tpu.memory_space<vmem>>) attributes {dimension_semantics = [#tpu.dimension_semantics<parallel>, #tpu.dimension_semantics<parallel>, #tpu.dimension_semantics<parallel>], iteration_bounds = array<i64: 2, 1, 1>, scalar_prefetch = 0 : i64, scratch_operands = 0 : i64, tpu.core_type = #tpu.core_type<tc>, window_params = [{transform_indices = @transform_0, window_bounds = array<i64: 1, 16, 64>}, {transform_indices = @transform_1, window_bounds = array<i64: 1, 64, 256>}, {transform_indices = @transform_2, window_bounds = array<i64: 1, 16, 256>}]} {
    %c0 = arith.constant 0 : index
    %c0_0 = arith.constant 0 : index
    %c0_1 = arith.constant 0 : index
    %0 = vector.load %arg3[%c0, %c0_0, %c0_1] : memref<1x16x64xbf16, #tpu.memory_space<vmem>>, vector<1x16x64xbf16>
    %1 = vector.shape_cast %0 : vector<1x16x64xbf16> to vector<16x64xbf16>
    %c0_2 = arith.constant 0 : index
    %c0_3 = arith.constant 0 : index
    %c0_4 = arith.constant 0 : index
    %2 = vector.load %arg4[%c0_2, %c0_3, %c0_4] : memref<1x64x256xbf16, #tpu.memory_space<vmem>>, vector<1x64x256xbf16>
    %3 = vector.shape_cast %2 : vector<1x64x256xbf16> to vector<64x256xbf16>
    %cst = arith.constant dense<0.000000e+00> : vector<16x256xf32>
    %4 = tpu.matmul %1, %3, %cst {dimension_numbers = #tpu.dot_dimension_numbers<[1], [0], [0], [1], [0, 0, 1, 1], [], []>} : vector<16x64xbf16>, vector<64x256xbf16>, vector<16x256xf32> -> vector<16x256xf32>
    %c0_5 = arith.constant 0 : index
    %c0_6 = arith.constant 0 : index
    %c0_7 = arith.constant 0 : index
    %5 = vector.load %arg5[%c0_5, %c0_6, %c0_7] : memref<1x16x256xf32, #tpu.memory_space<vmem>>, vector<1x16x256xf32>
    %6 = vector.shape_cast %5 : vector<1x16x256xf32> to vector<16x256xf32>
    %7 = vector.shape_cast %4 : vector<16x256xf32> to vector<1x16x256xf32>
    tpu.vector_store %arg5[%c0_5, %c0_6, %c0_7], %7 {strides = array<i32>} : memref<1x16x256xf32, #tpu.memory_space<vmem>>, vector<1x16x256xf32>,
    return
  }
  func.func @transform_0(%arg0: i32, %arg1: i32, %arg2: i32) -> (i32, i32, i32) {
    %c0_i32 = arith.constant 0 : i32
    %c0_i32_0 = arith.constant 0 : i32
    return %arg0, %arg1, %c0_i32 : i32, i32, i32
  }
  func.func @transform_1(%arg0: i32, %arg1: i32, %arg2: i32) -> (i32, i32, i32) {
    %c0_i32 = arith.constant 0 : i32
    %c0_i32_0 = arith.constant 0 : i32
    return %arg0, %c0_i32, %arg2 : i32, i32, i32
  }
  func.func @transform_2(%arg0: i32, %arg1: i32, %arg2: i32) -> (i32, i32, i32) {
    %c0_i32 = arith.constant 0 : i32
    return %arg0, %arg1, %arg2 : i32, i32, i32
  }
}

module attributes {stable_mosaic.version = 11 : i64} {
  func.func @_gemm_bias_act_kernel(%arg0: i32, %arg1: i32, %arg2: i32, %arg3: memref<32x256xbf16, #tpu.memory_space<vmem>>, %arg4: memref<256x256xbf16, #tpu.memory_space<vmem>>, %arg5: memref<1x256xf32, #tpu.memory_space<vmem>>, %arg6: memref<32x256xf32, #tpu.memory_space<vmem>>) attributes {dimension_semantics = [#tpu.dimension_semantics<parallel>, #tpu.dimension_semantics<parallel>, #tpu.dimension_semantics<arbitrary>], iteration_bounds = array<i64: 1, 1, 18>, scalar_prefetch = 0 : i64, scratch_operands = 0 : i64, tpu.core_type = #tpu.core_type<tc>, window_params = [{transform_indices = @transform_0, window_bounds = array<i64: 32, 256>}, {transform_indices = @transform_1, window_bounds = array<i64: 256, 256>}, {transform_indices = @transform_2, window_bounds = array<i64: 1, 256>}, {transform_indices = @transform_3, window_bounds = array<i64: 32, 256>}]} {
    %c0_i32 = arith.constant 0 : i32
    %0 = arith.cmpi eq, %arg2, %c0_i32 : i32
    %1 = arith.extui %0 : i1 to i32
    %c0_i32_0 = arith.constant 0 : i32
    %2 = arith.cmpi ne, %1, %c0_i32_0 : i32
    scf.if %2 {
      %cst_9 = arith.constant 0.000000e+00 : f32
      %12 = vector.broadcast %cst_9 : f32 to vector<32x256xf32>
      %c0_10 = arith.constant 0 : index
      %c0_11 = arith.constant 0 : index
      %13 = vector.load %arg6[%c0_10, %c0_11] : memref<32x256xf32, #tpu.memory_space<vmem>>, vector<32x256xf32>
      tpu.vector_store %arg6[%c0_10, %c0_11], %12 {strides = array<i32>} : memref<32x256xf32, #tpu.memory_space<vmem>>, vector<32x256xf32>,
    } else {
    }
    %c0 = arith.constant 0 : index
    %c0_1 = arith.constant 0 : index
    %3 = vector.load %arg6[%c0, %c0_1] : memref<32x256xf32, #tpu.memory_space<vmem>>, vector<32x256xf32>
    %c0_2 = arith.constant 0 : index
    %c0_3 = arith.constant 0 : index
    %4 = vector.load %arg3[%c0_2, %c0_3] : memref<32x256xbf16, #tpu.memory_space<vmem>>, vector<32x256xbf16>
    %c0_4 = arith.constant 0 : index
    %c0_5 = arith.constant 0 : index
    %5 = vector.load %arg4[%c0_4, %c0_5] : memref<256x256xbf16, #tpu.memory_space<vmem>>, vector<256x256xbf16>
    %cst = arith.constant dense<0.000000e+00> : vector<32x256xf32>
    %6 = tpu.matmul %4, %5, %cst {dimension_numbers = #tpu.dot_dimension_numbers<[1], [0], [0], [1], [0, 0, 1, 1], [], []>} : vector<32x256xbf16>, vector<256x256xbf16>, vector<32x256xf32> -> vector<32x256xf32>
    %7 = arith.addf %3, %6 : vector<32x256xf32>
    %c0_6 = arith.constant 0 : index
    %c0_7 = arith.constant 0 : index
    %8 = vector.load %arg6[%c0_6, %c0_7] : memref<32x256xf32, #tpu.memory_space<vmem>>, vector<32x256xf32>
    tpu.vector_store %arg6[%c0_6, %c0_7], %7 {strides = array<i32>} : memref<32x256xf32, #tpu.memory_space<vmem>>, vector<32x256xf32>,
    %c17_i32 = arith.constant 17 : i32
    %9 = arith.cmpi eq, %arg2, %c17_i32 : i32
    %10 = arith.extui %9 : i1 to i32
    %c0_i32_8 = arith.constant 0 : i32
    %11 = arith.cmpi ne, %10, %c0_i32_8 : i32
    scf.if %11 {
      %c0_9 = arith.constant 0 : index
      %c0_10 = arith.constant 0 : index
      %12 = vector.load %arg6[%c0_9, %c0_10] : memref<32x256xf32, #tpu.memory_space<vmem>>, vector<32x256xf32>
      %c0_11 = arith.constant 0 : index
      %c0_12 = arith.constant 0 : index
      %13 = vector.load %arg5[%c0_11, %c0_12] : memref<1x256xf32, #tpu.memory_space<vmem>>, vector<1x256xf32>
      %14 = vector.broadcast %13 : vector<1x256xf32> to vector<32x256xf32>
      %15 = arith.addf %12, %14 : vector<32x256xf32>
      %cst_13 = arith.constant 0.000000e+00 : f32
      %16 = vector.broadcast %cst_13 : f32 to vector<32x256xf32>
      %17 = arith.maximumf %15, %16 : vector<32x256xf32>
      %c0_14 = arith.constant 0 : index
      %c0_15 = arith.constant 0 : index
      %18 = vector.load %arg6[%c0_14, %c0_15] : memref<32x256xf32, #tpu.memory_space<vmem>>, vector<32x256xf32>
      tpu.vector_store %arg6[%c0_14, %c0_15], %17 {strides = array<i32>} : memref<32x256xf32, #tpu.memory_space<vmem>>, vector<32x256xf32>,
    } else {
    }
    return
  }
  func.func @transform_0(%arg0: i32, %arg1: i32, %arg2: i32) -> (i32, i32) {
    %c0_i32 = arith.constant 0 : i32
    return %arg0, %arg2 : i32, i32
  }
  func.func @transform_1(%arg0: i32, %arg1: i32, %arg2: i32) -> (i32, i32) {
    %c0_i32 = arith.constant 0 : i32
    return %arg2, %arg1 : i32, i32
  }
  func.func @transform_2(%arg0: i32, %arg1: i32, %arg2: i32) -> (i32, i32) {
    %c0_i32 = arith.constant 0 : i32
    %c0_i32_0 = arith.constant 0 : i32
    return %c0_i32, %arg1 : i32, i32
  }
  func.func @transform_3(%arg0: i32, %arg1: i32, %arg2: i32) -> (i32, i32) {
    %c0_i32 = arith.constant 0 : i32
    return %arg0, %arg1 : i32, i32
  }
}

module attributes {stable_mosaic.version = 11 : i64} {
  func.func @_gemm_bias_act_kernel(%arg0: i32, %arg1: i32, %arg2: i32, %arg3: memref<128x256xbf16, #tpu.memory_space<vmem>>, %arg4: memref<256x128xbf16, #tpu.memory_space<vmem>>, %arg5: memref<1x128xf32, #tpu.memory_space<vmem>>, %arg6: memref<128x128xf32, #tpu.memory_space<vmem>>) attributes {dimension_semantics = [#tpu.dimension_semantics<parallel>, #tpu.dimension_semantics<parallel>, #tpu.dimension_semantics<arbitrary>], iteration_bounds = array<i64: 1, 1, 25>, scalar_prefetch = 0 : i64, scratch_operands = 0 : i64, tpu.core_type = #tpu.core_type<tc>, window_params = [{transform_indices = @transform_0, window_bounds = array<i64: 128, 256>}, {transform_indices = @transform_1, window_bounds = array<i64: 256, 128>}, {transform_indices = @transform_2, window_bounds = array<i64: 1, 128>}, {transform_indices = @transform_3, window_bounds = array<i64: 128, 128>}]} {
    %c0_i32 = arith.constant 0 : i32
    %0 = arith.cmpi eq, %arg2, %c0_i32 : i32
    %1 = arith.extui %0 : i1 to i32
    %c0_i32_0 = arith.constant 0 : i32
    %2 = arith.cmpi ne, %1, %c0_i32_0 : i32
    scf.if %2 {
      %cst_9 = arith.constant 0.000000e+00 : f32
      %12 = vector.broadcast %cst_9 : f32 to vector<128x128xf32>
      %c0_10 = arith.constant 0 : index
      %c0_11 = arith.constant 0 : index
      %13 = vector.load %arg6[%c0_10, %c0_11] : memref<128x128xf32, #tpu.memory_space<vmem>>, vector<128x128xf32>
      tpu.vector_store %arg6[%c0_10, %c0_11], %12 {strides = array<i32>} : memref<128x128xf32, #tpu.memory_space<vmem>>, vector<128x128xf32>,
    } else {
    }
    %c0 = arith.constant 0 : index
    %c0_1 = arith.constant 0 : index
    %3 = vector.load %arg6[%c0, %c0_1] : memref<128x128xf32, #tpu.memory_space<vmem>>, vector<128x128xf32>
    %c0_2 = arith.constant 0 : index
    %c0_3 = arith.constant 0 : index
    %4 = vector.load %arg3[%c0_2, %c0_3] : memref<128x256xbf16, #tpu.memory_space<vmem>>, vector<128x256xbf16>
    %c0_4 = arith.constant 0 : index
    %c0_5 = arith.constant 0 : index
    %5 = vector.load %arg4[%c0_4, %c0_5] : memref<256x128xbf16, #tpu.memory_space<vmem>>, vector<256x128xbf16>
    %cst = arith.constant dense<0.000000e+00> : vector<128x128xf32>
    %6 = tpu.matmul %4, %5, %cst {dimension_numbers = #tpu.dot_dimension_numbers<[1], [0], [0], [1], [0, 0, 1, 1], [], []>} : vector<128x256xbf16>, vector<256x128xbf16>, vector<128x128xf32> -> vector<128x128xf32>
    %7 = arith.addf %3, %6 : vector<128x128xf32>
    %c0_6 = arith.constant 0 : index
    %c0_7 = arith.constant 0 : index
    %8 = vector.load %arg6[%c0_6, %c0_7] : memref<128x128xf32, #tpu.memory_space<vmem>>, vector<128x128xf32>
    tpu.vector_store %arg6[%c0_6, %c0_7], %7 {strides = array<i32>} : memref<128x128xf32, #tpu.memory_space<vmem>>, vector<128x128xf32>,
    %c24_i32 = arith.constant 24 : i32
    %9 = arith.cmpi eq, %arg2, %c24_i32 : i32
    %10 = arith.extui %9 : i1 to i32
    %c0_i32_8 = arith.constant 0 : i32
    %11 = arith.cmpi ne, %10, %c0_i32_8 : i32
    scf.if %11 {
      %c0_9 = arith.constant 0 : index
      %c0_10 = arith.constant 0 : index
      %12 = vector.load %arg6[%c0_9, %c0_10] : memref<128x128xf32, #tpu.memory_space<vmem>>, vector<128x128xf32>
      %c0_11 = arith.constant 0 : index
      %c0_12 = arith.constant 0 : index
      %13 = vector.load %arg5[%c0_11, %c0_12] : memref<1x128xf32, #tpu.memory_space<vmem>>, vector<1x128xf32>
      %14 = vector.broadcast %13 : vector<1x128xf32> to vector<128x128xf32>
      %15 = arith.addf %12, %14 : vector<128x128xf32>
      %c0_13 = arith.constant 0 : index
      %c0_14 = arith.constant 0 : index
      %16 = vector.load %arg6[%c0_13, %c0_14] : memref<128x128xf32, #tpu.memory_space<vmem>>, vector<128x128xf32>
      tpu.vector_store %arg6[%c0_13, %c0_14], %15 {strides = array<i32>} : memref<128x128xf32, #tpu.memory_space<vmem>>, vector<128x128xf32>,
    } else {
    }
    return
  }
  func.func @transform_0(%arg0: i32, %arg1: i32, %arg2: i32) -> (i32, i32) {
    %c0_i32 = arith.constant 0 : i32
    return %arg0, %arg2 : i32, i32
  }
  func.func @transform_1(%arg0: i32, %arg1: i32, %arg2: i32) -> (i32, i32) {
    %c0_i32 = arith.constant 0 : i32
    return %arg2, %arg1 : i32, i32
  }
  func.func @transform_2(%arg0: i32, %arg1: i32, %arg2: i32) -> (i32, i32) {
    %c0_i32 = arith.constant 0 : i32
    %c0_i32_0 = arith.constant 0 : i32
    return %c0_i32, %arg1 : i32, i32
  }
  func.func @transform_3(%arg0: i32, %arg1: i32, %arg2: i32) -> (i32, i32) {
    %c0_i32 = arith.constant 0 : i32
    return %arg0, %arg1 : i32, i32
  }
}

module attributes {stable_mosaic.version = 11 : i64} {
  func.func @_gemm_bias_act_kernel(%arg0: i32, %arg1: i32, %arg2: i32, %arg3: memref<256x128xbf16, #tpu.memory_space<vmem>>, %arg4: memref<128x128xbf16, #tpu.memory_space<vmem>>, %arg5: memref<1x128xf32, #tpu.memory_space<vmem>>, %arg6: memref<256x128xf32, #tpu.memory_space<vmem>>) attributes {dimension_semantics = [#tpu.dimension_semantics<parallel>, #tpu.dimension_semantics<parallel>, #tpu.dimension_semantics<arbitrary>], iteration_bounds = array<i64: 2, 1, 25>, scalar_prefetch = 0 : i64, scratch_operands = 0 : i64, tpu.core_type = #tpu.core_type<tc>, window_params = [{transform_indices = @transform_0, window_bounds = array<i64: 256, 128>}, {transform_indices = @transform_1, window_bounds = array<i64: 128, 128>}, {transform_indices = @transform_2, window_bounds = array<i64: 1, 128>}, {transform_indices = @transform_3, window_bounds = array<i64: 256, 128>}]} {
    %c0_i32 = arith.constant 0 : i32
    %0 = arith.cmpi eq, %arg2, %c0_i32 : i32
    %1 = arith.extui %0 : i1 to i32
    %c0_i32_0 = arith.constant 0 : i32
    %2 = arith.cmpi ne, %1, %c0_i32_0 : i32
    scf.if %2 {
      %cst_9 = arith.constant 0.000000e+00 : f32
      %12 = vector.broadcast %cst_9 : f32 to vector<256x128xf32>
      %c0_10 = arith.constant 0 : index
      %c0_11 = arith.constant 0 : index
      %13 = vector.load %arg6[%c0_10, %c0_11] : memref<256x128xf32, #tpu.memory_space<vmem>>, vector<256x128xf32>
      tpu.vector_store %arg6[%c0_10, %c0_11], %12 {strides = array<i32>} : memref<256x128xf32, #tpu.memory_space<vmem>>, vector<256x128xf32>,
    } else {
    }
    %c0 = arith.constant 0 : index
    %c0_1 = arith.constant 0 : index
    %3 = vector.load %arg6[%c0, %c0_1] : memref<256x128xf32, #tpu.memory_space<vmem>>, vector<256x128xf32>
    %c0_2 = arith.constant 0 : index
    %c0_3 = arith.constant 0 : index
    %4 = vector.load %arg3[%c0_2, %c0_3] : memref<256x128xbf16, #tpu.memory_space<vmem>>, vector<256x128xbf16>
    %c0_4 = arith.constant 0 : index
    %c0_5 = arith.constant 0 : index
    %5 = vector.load %arg4[%c0_4, %c0_5] : memref<128x128xbf16, #tpu.memory_space<vmem>>, vector<128x128xbf16>
    %cst = arith.constant dense<0.000000e+00> : vector<256x128xf32>
    %6 = tpu.matmul %4, %5, %cst {dimension_numbers = #tpu.dot_dimension_numbers<[1], [0], [0], [1], [0, 0, 1, 1], [], []>} : vector<256x128xbf16>, vector<128x128xbf16>, vector<256x128xf32> -> vector<256x128xf32>
    %7 = arith.addf %3, %6 : vector<256x128xf32>
    %c0_6 = arith.constant 0 : index
    %c0_7 = arith.constant 0 : index
    %8 = vector.load %arg6[%c0_6, %c0_7] : memref<256x128xf32, #tpu.memory_space<vmem>>, vector<256x128xf32>
    tpu.vector_store %arg6[%c0_6, %c0_7], %7 {strides = array<i32>} : memref<256x128xf32, #tpu.memory_space<vmem>>, vector<256x128xf32>,
    %c24_i32 = arith.constant 24 : i32
    %9 = arith.cmpi eq, %arg2, %c24_i32 : i32
    %10 = arith.extui %9 : i1 to i32
    %c0_i32_8 = arith.constant 0 : i32
    %11 = arith.cmpi ne, %10, %c0_i32_8 : i32
    scf.if %11 {
      %c0_9 = arith.constant 0 : index
      %c0_10 = arith.constant 0 : index
      %12 = vector.load %arg6[%c0_9, %c0_10] : memref<256x128xf32, #tpu.memory_space<vmem>>, vector<256x128xf32>
      %c0_11 = arith.constant 0 : index
      %c0_12 = arith.constant 0 : index
      %13 = vector.load %arg5[%c0_11, %c0_12] : memref<1x128xf32, #tpu.memory_space<vmem>>, vector<1x128xf32>
      %14 = vector.broadcast %13 : vector<1x128xf32> to vector<256x128xf32>
      %15 = arith.addf %12, %14 : vector<256x128xf32>
      %c0_13 = arith.constant 0 : index
      %c0_14 = arith.constant 0 : index
      %16 = vector.load %arg6[%c0_13, %c0_14] : memref<256x128xf32, #tpu.memory_space<vmem>>, vector<256x128xf32>
      tpu.vector_store %arg6[%c0_13, %c0_14], %15 {strides = array<i32>} : memref<256x128xf32, #tpu.memory_space<vmem>>, vector<256x128xf32>,
    } else {
    }
    return
  }
  func.func @transform_0(%arg0: i32, %arg1: i32, %arg2: i32) -> (i32, i32) {
    %c0_i32 = arith.constant 0 : i32
    return %arg0, %arg2 : i32, i32
  }
  func.func @transform_1(%arg0: i32, %arg1: i32, %arg2: i32) -> (i32, i32) {
    %c0_i32 = arith.constant 0 : i32
    return %arg2, %arg1 : i32, i32
  }
  func.func @transform_2(%arg0: i32, %arg1: i32, %arg2: i32) -> (i32, i32) {
    %c0_i32 = arith.constant 0 : i32
    %c0_i32_0 = arith.constant 0 : i32
    return %c0_i32, %arg1 : i32, i32
  }
  func.func @transform_3(%arg0: i32, %arg1: i32, %arg2: i32) -> (i32, i32) {
    %c0_i32 = arith.constant 0 : i32
    return %arg0, %arg1 : i32, i32
  }
}

module attributes {stable_mosaic.version = 11 : i64} {
  func.func @_gemm_bias_act_kernel(%arg0: i32, %arg1: i32, %arg2: i32, %arg3: memref<256x128xbf16, #tpu.memory_space<vmem>>, %arg4: memref<128x128xbf16, #tpu.memory_space<vmem>>, %arg5: memref<1x128xf32, #tpu.memory_space<vmem>>, %arg6: memref<256x128xf32, #tpu.memory_space<vmem>>) attributes {dimension_semantics = [#tpu.dimension_semantics<parallel>, #tpu.dimension_semantics<parallel>, #tpu.dimension_semantics<arbitrary>], iteration_bounds = array<i64: 2, 1, 25>, scalar_prefetch = 0 : i64, scratch_operands = 0 : i64, tpu.core_type = #tpu.core_type<tc>, window_params = [{transform_indices = @transform_0, window_bounds = array<i64: 256, 128>}, {transform_indices = @transform_1, window_bounds = array<i64: 128, 128>}, {transform_indices = @transform_2, window_bounds = array<i64: 1, 128>}, {transform_indices = @transform_3, window_bounds = array<i64: 256, 128>}]} {
    %c0_i32 = arith.constant 0 : i32
    %0 = arith.cmpi eq, %arg2, %c0_i32 : i32
    %1 = arith.extui %0 : i1 to i32
    %c0_i32_0 = arith.constant 0 : i32
    %2 = arith.cmpi ne, %1, %c0_i32_0 : i32
    scf.if %2 {
      %cst_9 = arith.constant 0.000000e+00 : f32
      %12 = vector.broadcast %cst_9 : f32 to vector<256x128xf32>
      %c0_10 = arith.constant 0 : index
      %c0_11 = arith.constant 0 : index
      %13 = vector.load %arg6[%c0_10, %c0_11] : memref<256x128xf32, #tpu.memory_space<vmem>>, vector<256x128xf32>
      tpu.vector_store %arg6[%c0_10, %c0_11], %12 {strides = array<i32>} : memref<256x128xf32, #tpu.memory_space<vmem>>, vector<256x128xf32>,
    } else {
    }
    %c0 = arith.constant 0 : index
    %c0_1 = arith.constant 0 : index
    %3 = vector.load %arg6[%c0, %c0_1] : memref<256x128xf32, #tpu.memory_space<vmem>>, vector<256x128xf32>
    %c0_2 = arith.constant 0 : index
    %c0_3 = arith.constant 0 : index
    %4 = vector.load %arg3[%c0_2, %c0_3] : memref<256x128xbf16, #tpu.memory_space<vmem>>, vector<256x128xbf16>
    %c0_4 = arith.constant 0 : index
    %c0_5 = arith.constant 0 : index
    %5 = vector.load %arg4[%c0_4, %c0_5] : memref<128x128xbf16, #tpu.memory_space<vmem>>, vector<128x128xbf16>
    %cst = arith.constant dense<0.000000e+00> : vector<256x128xf32>
    %6 = tpu.matmul %4, %5, %cst {dimension_numbers = #tpu.dot_dimension_numbers<[1], [0], [0], [1], [0, 0, 1, 1], [], []>} : vector<256x128xbf16>, vector<128x128xbf16>, vector<256x128xf32> -> vector<256x128xf32>
    %7 = arith.addf %3, %6 : vector<256x128xf32>
    %c0_6 = arith.constant 0 : index
    %c0_7 = arith.constant 0 : index
    %8 = vector.load %arg6[%c0_6, %c0_7] : memref<256x128xf32, #tpu.memory_space<vmem>>, vector<256x128xf32>
    tpu.vector_store %arg6[%c0_6, %c0_7], %7 {strides = array<i32>} : memref<256x128xf32, #tpu.memory_space<vmem>>, vector<256x128xf32>,
    %c24_i32 = arith.constant 24 : i32
    %9 = arith.cmpi eq, %arg2, %c24_i32 : i32
    %10 = arith.extui %9 : i1 to i32
    %c0_i32_8 = arith.constant 0 : i32
    %11 = arith.cmpi ne, %10, %c0_i32_8 : i32
    scf.if %11 {
      %c0_9 = arith.constant 0 : index
      %c0_10 = arith.constant 0 : index
      %12 = vector.load %arg6[%c0_9, %c0_10] : memref<256x128xf32, #tpu.memory_space<vmem>>, vector<256x128xf32>
      %c0_11 = arith.constant 0 : index
      %c0_12 = arith.constant 0 : index
      %13 = vector.load %arg5[%c0_11, %c0_12] : memref<1x128xf32, #tpu.memory_space<vmem>>, vector<1x128xf32>
      %14 = vector.broadcast %13 : vector<1x128xf32> to vector<256x128xf32>
      %15 = arith.addf %12, %14 : vector<256x128xf32>
      %16 = math.tanh %15 : vector<256x128xf32>
      %c0_13 = arith.constant 0 : index
      %c0_14 = arith.constant 0 : index
      %17 = vector.load %arg6[%c0_13, %c0_14] : memref<256x128xf32, #tpu.memory_space<vmem>>, vector<256x128xf32>
      tpu.vector_store %arg6[%c0_13, %c0_14], %16 {strides = array<i32>} : memref<256x128xf32, #tpu.memory_space<vmem>>, vector<256x128xf32>,
    } else {
    }
    return
  }
  func.func @transform_0(%arg0: i32, %arg1: i32, %arg2: i32) -> (i32, i32) {
    %c0_i32 = arith.constant 0 : i32
    return %arg0, %arg2 : i32, i32
  }
  func.func @transform_1(%arg0: i32, %arg1: i32, %arg2: i32) -> (i32, i32) {
    %c0_i32 = arith.constant 0 : i32
    return %arg2, %arg1 : i32, i32
  }
  func.func @transform_2(%arg0: i32, %arg1: i32, %arg2: i32) -> (i32, i32) {
    %c0_i32 = arith.constant 0 : i32
    %c0_i32_0 = arith.constant 0 : i32
    return %c0_i32, %arg1 : i32, i32
  }
  func.func @transform_3(%arg0: i32, %arg1: i32, %arg2: i32) -> (i32, i32) {
    %c0_i32 = arith.constant 0 : i32
    return %arg0, %arg1 : i32, i32
  }
}

module attributes {stable_mosaic.version = 11 : i64} {
  func.func @_combine_kernel(%arg0: i32, %arg1: memref<96x16xf32, #tpu.memory_space<vmem>>, %arg2: memref<96x16xf32, #tpu.memory_space<vmem>>, %arg3: memref<96x16xf32, #tpu.memory_space<vmem>>, %arg4: memref<96x16xf32, #tpu.memory_space<vmem>>, %arg5: memref<96x16xf32, #tpu.memory_space<vmem>>) attributes {dimension_semantics = [#tpu.dimension_semantics<parallel>], iteration_bounds = array<i64: 1>, scalar_prefetch = 0 : i64, scratch_operands = 0 : i64, tpu.core_type = #tpu.core_type<tc>, window_params = [{transform_indices = @transform_0, window_bounds = array<i64: 96, 16>}, {transform_indices = @transform_1, window_bounds = array<i64: 96, 16>}, {transform_indices = @transform_2, window_bounds = array<i64: 96, 16>}, {transform_indices = @transform_3, window_bounds = array<i64: 96, 16>}, {transform_indices = @transform_4, window_bounds = array<i64: 96, 16>}]} {
    %c0 = arith.constant 0 : index
    %c0_0 = arith.constant 0 : index
    %0 = vector.load %arg1[%c0, %c0_0] : memref<96x16xf32, #tpu.memory_space<vmem>>, vector<96x16xf32>
    %cst = arith.constant 5.000000e-01 : f32
    %1 = vector.broadcast %cst : f32 to vector<96x16xf32>
    %2 = arith.mulf %0, %1 : vector<96x16xf32>
    %cst_1 = arith.constant 5.000000e-01 : f32
    %3 = vector.broadcast %cst_1 : f32 to vector<96x16xf32>
    %4 = arith.addf %2, %3 : vector<96x16xf32>
    %c0_2 = arith.constant 0 : index
    %c0_3 = arith.constant 0 : index
    %5 = vector.load %arg2[%c0_2, %c0_3] : memref<96x16xf32, #tpu.memory_space<vmem>>, vector<96x16xf32>
    %cst_4 = arith.constant 5.000000e-01 : f32
    %6 = vector.broadcast %cst_4 : f32 to vector<96x16xf32>
    %7 = arith.mulf %5, %6 : vector<96x16xf32>
    %cst_5 = arith.constant 5.000000e-01 : f32
    %8 = vector.broadcast %cst_5 : f32 to vector<96x16xf32>
    %9 = arith.addf %7, %8 : vector<96x16xf32>
    %c0_6 = arith.constant 0 : index
    %c0_7 = arith.constant 0 : index
    %10 = vector.load %arg4[%c0_6, %c0_7] : memref<96x16xf32, #tpu.memory_space<vmem>>, vector<96x16xf32>
    tpu.vector_store %arg4[%c0_6, %c0_7], %4 {strides = array<i32>} : memref<96x16xf32, #tpu.memory_space<vmem>>, vector<96x16xf32>,
    %c0_8 = arith.constant 0 : index
    %c0_9 = arith.constant 0 : index
    %11 = vector.load %arg5[%c0_8, %c0_9] : memref<96x16xf32, #tpu.memory_space<vmem>>, vector<96x16xf32>
    tpu.vector_store %arg5[%c0_8, %c0_9], %9 {strides = array<i32>} : memref<96x16xf32, #tpu.memory_space<vmem>>, vector<96x16xf32>,
    %12 = arith.mulf %4, %9 : vector<96x16xf32>
    %c0_10 = arith.constant 0 : index
    %c0_11 = arith.constant 0 : index
    %13 = vector.load %arg3[%c0_10, %c0_11] : memref<96x16xf32, #tpu.memory_space<vmem>>, vector<96x16xf32>
    tpu.vector_store %arg3[%c0_10, %c0_11], %12 {strides = array<i32>} : memref<96x16xf32, #tpu.memory_space<vmem>>, vector<96x16xf32>,
    return
  }
  func.func @transform_0(%arg0: i32) -> (i32, i32) {
    %c0_i32 = arith.constant 0 : i32
    %c0_i32_0 = arith.constant 0 : i32
    return %arg0, %c0_i32 : i32, i32
  }
  func.func @transform_1(%arg0: i32) -> (i32, i32) {
    %c0_i32 = arith.constant 0 : i32
    %c0_i32_0 = arith.constant 0 : i32
    return %arg0, %c0_i32 : i32, i32
  }
  func.func @transform_2(%arg0: i32) -> (i32, i32) {
    %c0_i32 = arith.constant 0 : i32
    %c0_i32_0 = arith.constant 0 : i32
    return %arg0, %c0_i32 : i32, i32
  }
  func.func @transform_3(%arg0: i32) -> (i32, i32) {
    %c0_i32 = arith.constant 0 : i32
    %c0_i32_0 = arith.constant 0 : i32
    return %arg0, %c0_i32 : i32, i32
  }
  func.func @transform_4(%arg0: i32) -> (i32, i32) {
    %c0_i32 = arith.constant 0 : i32
    %c0_i32_0 = arith.constant 0 : i32
    return %arg0, %c0_i32 : i32, i32
  }
}

</mosaic_0001>

<bundles_post_ra>
// kernel: forward.47
= control target key start
LH: loop header
LB: loop body
LE: loop exit
PB: predicated region body
PF: predicated region fallthrough
CT: control target
= control target key end

     0   :  { %s1426_s12 = smov 0   ;;  %s1428_s13 = smov 0   ;;  %s1619_s0 = inlined_call_operand.vmem [shape: bf16[512,256], index: 0, kind: input, shape index: {}]   ;;  %s1620_s1 = inlined_call_operand.vmem [shape: bf16[256,128], index: 1, kind: input, shape index: {}]   ;;  %s1621_s2 = inlined_call_operand.vmem [shape: f32[1,128], index: 2, kind: input, shape index: {}]   ;;  %s1622_s3 = inlined_call_operand.vmem [shape: f32[512,128], index: 3, kind: output, shape index: {}]  }
   0x1   :  { %s1430_s14 = smov 0  }
   0x2 LB: > { %s32_s15 = sadd.s32 1, %s1400_s13  ;;  %p1107_p0 = scmp.ge.s32.totalorder %s1404_s14, 1  ;;  %s1404_s14 = sphi %s1430_s14, %s13_s14   ;;  %s1400_s13 = sphi %s1428_s13, %s1624_s13   ;;  %s1396_s12 = sphi %s1426_s12, %s1623_s12  }
   0x3   : > { %p34_p1 = scmp.ge.s32.totalorder %s32_s15, 2  ;;  %p191_p2 = scmp.lt.s32.totalorder %s1404_s14, 3 }
   0x5   : > { %s1626_s15 = smov (%p34_p1, %s32_s15), 0  ;;  %p192_p3 = pnand %p1107_p0, %p191_p2 }
   0x6   : > { %s1108_s18 = sshll.u32 (!%p192_p3), %s1396_s12, 5 }
   0x7   : > { %195 = sbr.rel (%p192_p3) target bundleno = 305 (0x131), region = 32  ;;  %p236_p4 = scmp.lt.s32.totalorder (!%p192_p3), %s1108_s18, 63 }
   0xc   : > { %v1318_v0 = vld [vmem:[%s1620_s1 + $0x78] sm:$0xff]   ;;  %v1320_v2 = vld [vmem:[%s1620_s1 + $0x70] sm:$0xff]   ;;  %v1322_v4 = vld [vmem:[%s1620_s1 + $0x68] sm:$0xff]   ;;  %s1628_s18 = smov (!%p236_p4, %s1108_s18), 63 }
   0xd   : > { %v1319_v1 = vld [vmem:[%s1620_s1 + $0x38] sm:$0xff]   ;;  %1165 = vmatprep.subr.bf16.mxu0 %v1318_v0  ;;  %1277 = vmatprep.subr.bf16.mxu1 %v1318_v0  ;;  %v1321_v3 = vld [vmem:[%s1620_s1 + $0x30] sm:$0xff]   ;;  %v1323_v5 = vld [vmem:[%s1620_s1 + $0x28] sm:$0xff]   ;;  %s1164_s6 = sshll.u32 %s1628_s18, 3 }
   0xe   : > { %1166 = vmatpush3.bf16.msra.mxu0 %v1319_v1  ;;  %1285 = vmatpush3.bf16.msra.mxu1 %v1319_v1  ;;  %v1324_v6 = vld [vmem:[%s1620_s1 + $0x60] sm:$0xff]   ;;  %v1326_v8 = vld [vmem:[%s1620_s1 + $0x58] sm:$0xff]   ;;  %s1479_s11 = scalar_lea.vmem %s1619_s0, %s1164_s6  ;;  %v1328_v10 = vld [vmem:[%s1620_s1 + $0x50] sm:$0xff]   ;;  %s1544_s8 = scalar_lea.vmem %s1622_s3, %s1164_s6 }
   0xf   : > { %1167 = vmatprep.subr.bf16.mxu0 %v1320_v2  ;;  %1278 = vmatprep.subr.bf16.mxu1 %v1320_v2  ;;  %v1325_v7 = vld [vmem:[%s1620_s1 + $0x20] sm:$0xff]   ;;  %v1327_v9 = vld [vmem:[%s1620_s1 + $0x18] sm:$0xff]   ;;  %v1329_v13 = vld [vmem:[%s1620_s1 + $0x10] sm:$0xff]  }
  0x10   : > { %v1336_v11 = vld [vmem:[%s1479_s11 + $0x4] ss:$8 sps:$4 sm:$0xff]   ;;  %v1334_v18 = vld [vmem:[%s1479_s11] ss:$8 sps:$4 sm:$0xff]   ;;  %v1340_v20 = vld [vmem:[%s1479_s11 + $0x14] ss:$8 sps:$4 sm:$0xff]  }
  0x11   : > { %v1339_v12 = vld [vmem:[%s1479_s11 + $0x84] ss:$8 sps:$4 sm:$0xff]   ;;  %688 = vmatprep.mubr.bf16.mxu0 %v1336_v11  ;;  %v1337_v19 = vld [vmem:[%s1479_s11 + $0x80] ss:$8 sps:$4 sm:$0xff]   ;;  %v1342_v21 = vld [vmem:[%s1479_s11 + $0x94] ss:$8 sps:$4 sm:$0xff]  }
  0x12   : > { %1168 = vmatpush3.bf16.msra.mxu0 %v1321_v3  ;;  %1286 = vmatpush3.bf16.msra.mxu1 %v1321_v3  ;;  %v1330_v14 = vld [vmem:[%s1620_s1 + $0x48] sm:$0xff]   ;;  %v1332_v16 = vld [vmem:[%s1620_s1 + $0x40] sm:$0xff]   ;;  %v1344_v22 = vld [vmem:[%s1479_s11 + $0x10] ss:$8 sps:$4 sm:$0xff]  }
  0x13   : > { %1169 = vmatprep.subr.bf16.mxu0 %v1322_v4  ;;  %1279 = vmatprep.subr.bf16.mxu1 %v1322_v4  ;;  %v1331_v15 = vld [vmem:[%s1620_s1 + $0x8] sm:$0xff]   ;;  %v1333_v17 = vld [vmem:[%s1620_s1] sm:$0xff]   ;;  %v1345_v23 = vld [vmem:[%s1479_s11 + $0x90] ss:$8 sps:$4 sm:$0xff]  }
  0x14   : > { %752 = vmatprep.mubr.bf16.mxu1 %v1339_v12  ;;  %v1346_v24 = vld [vmem:[%s1479_s11 + $0x24] ss:$8 sps:$4 sm:$0xff]   ;;  %v1350_v26 = vld [vmem:[%s1479_s11 + $0x20] ss:$8 sps:$4 sm:$0xff]   ;;  %v1352_v28 = vld [vmem:[%s1479_s11 + $0x34] ss:$8 sps:$4 sm:$0xff]  }
  0x15   : > { %v1348_v25 = vld [vmem:[%s1479_s11 + $0xa4] ss:$8 sps:$4 sm:$0xff]   ;;  %v1351_v27 = vld [vmem:[%s1479_s11 + $0xa0] ss:$8 sps:$4 sm:$0xff]   ;;  %v1354_v29 = vld [vmem:[%s1479_s11 + $0xb4] ss:$8 sps:$4 sm:$0xff]  }
  0x16   : > { %1170 = vmatpush3.bf16.msra.mxu0 %v1323_v5  ;;  %1287 = vmatpush3.bf16.msra.mxu1 %v1323_v5  ;;  %v1356_v30 = vld [vmem:[%s1479_s11 + $0x30] ss:$8 sps:$4 sm:$0xff]   ;;  %v1358_v32 = vld [vmem:[%s1479_s11 + $0x44] ss:$8 sps:$4 sm:$0xff]   ;;  %v1362_v34 = vld [vmem:[%s1479_s11 + $0x40] ss:$8 sps:$4 sm:$0xff]  }
  0x17   : > { %1171 = vmatprep.subr.bf16.mxu0 %v1324_v6  ;;  %1280 = vmatprep.subr.bf16.mxu1 %v1324_v6  ;;  %v1357_v31 = vld [vmem:[%s1479_s11 + $0xb0] ss:$8 sps:$4 sm:$0xff]   ;;  %v1360_v33 = vld [vmem:[%s1479_s11 + $0xc4] ss:$8 sps:$4 sm:$0xff]   ;;  %v1363_v35 = vld [vmem:[%s1479_s11 + $0xc0] ss:$8 sps:$4 sm:$0xff]  }
  0x18   : > { %v1364_v36 = vld [vmem:[%s1479_s11 + $0x54] ss:$8 sps:$4 sm:$0xff]   ;;  %v1368_v38 = vld [vmem:[%s1479_s11 + $0x50] ss:$8 sps:$4 sm:$0xff]   ;;  %v1370_v40 = vld [vmem:[%s1479_s11 + $0x64] ss:$8 sps:$4 sm:$0xff]  }
  0x19   : > { %v1366_v37 = vld [vmem:[%s1479_s11 + $0xd4] ss:$8 sps:$4 sm:$0xff]   ;;  %v1369_v39 = vld [vmem:[%s1479_s11 + $0xd0] ss:$8 sps:$4 sm:$0xff]   ;;  %v1372_v41 = vld [vmem:[%s1479_s11 + $0xe4] ss:$8 sps:$4 sm:$0xff]  }
  0x1a   : > { %1172 = vmatpush3.bf16.msra.mxu0 %v1325_v7  ;;  %1288 = vmatpush3.bf16.msra.mxu1 %v1325_v7  ;;  %v1374_v42 = vld [vmem:[%s1479_s11 + $0x60] ss:$8 sps:$4 sm:$0xff]   ;;  %v1376_v44 = vld [vmem:[%s1479_s11 + $0x74] ss:$8 sps:$4 sm:$0xff]   ;;  %v1380_v46 = vld [vmem:[%s1479_s11 + $0x70] ss:$8 sps:$4 sm:$0xff]  }
  0x1b   : > { %1173 = vmatprep.subr.bf16.mxu0 %v1326_v8  ;;  %1281 = vmatprep.subr.bf16.mxu1 %v1326_v8  ;;  %v1375_v43 = vld [vmem:[%s1479_s11 + $0xe0] ss:$8 sps:$4 sm:$0xff]   ;;  %v1378_v45 = vld [vmem:[%s1479_s11 + $0xf4] ss:$8 sps:$4 sm:$0xff]   ;;  %v1381_v47 = vld [vmem:[%s1479_s11 + $0xf0] ss:$8 sps:$4 sm:$0xff]  }
  0x1c   : > { %v1537_v54 = vld [vmem:[%s1621_s2] ss:$0 sm:$0xff] }
  0x1e   : > { %1174 = vmatpush3.bf16.msra.mxu0 %v1327_v9  ;;  %1289 = vmatpush3.bf16.msra.mxu1 %v1327_v9 }
  0x1f   : > { %1175 = vmatprep.subr.bf16.mxu0 %v1328_v10  ;;  %1282 = vmatprep.subr.bf16.mxu1 %v1328_v10 }
  0x22   : > { %1176 = vmatpush3.bf16.msra.mxu0 %v1329_v13  ;;  %1290 = vmatpush3.bf16.msra.mxu1 %v1329_v13 }
  0x23   : > { %1177 = vmatprep.subr.bf16.mxu0 %v1330_v14  ;;  %1283 = vmatprep.subr.bf16.mxu1 %v1330_v14 }
  0x26   : > { %1178 = vmatpush3.bf16.msra.mxu0 %v1331_v15  ;;  %1291 = vmatpush3.bf16.msra.mxu1 %v1331_v15 }
  0x27   : > { %1179 = vmatprep.subr.bf16.mxu0 %v1332_v16  ;;  %1284 = vmatprep.subr.bf16.mxu1 %v1332_v16 }
  0x2a   : > { %1180 = vmatpush3.bf16.msra.mxu0 %v1333_v17  ;;  %1292 = vmatpush3.bf16.msra.mxu1 %v1333_v17 }
  0x2d   : > { %689 = vmatmul.mubr.bf16.vlgmr.msra.gmra.mxu0 %v1334_v18  ;;  %753 = vmatmul.mubr.bf16.vlgmr.msra.gmra.mxu1 %v1337_v19 }
  0x2e   : > { %696 = vmatprep.mubr.bf16.mxu0 %v1340_v20  ;;  %760 = vmatprep.mubr.bf16.mxu1 %v1342_v21 }
  0x35   : > { %697 = vmatmul.mubr.bf16.gmra.mxu0 %v1344_v22  ;;  %761 = vmatmul.mubr.bf16.gmra.mxu1 %v1345_v23 }
  0x36   : > { %704 = vmatprep.mubr.bf16.mxu0 %v1346_v24  ;;  %768 = vmatprep.mubr.bf16.mxu1 %v1348_v25 }
  0x3d   : > { %705 = vmatmul.mubr.bf16.gmra.mxu0 %v1350_v26  ;;  %769 = vmatmul.mubr.bf16.gmra.mxu1 %v1351_v27 }
  0x3e   : > { %712 = vmatprep.mubr.bf16.mxu0 %v1352_v28  ;;  %776 = vmatprep.mubr.bf16.mxu1 %v1354_v29 }
  0x45   : > { %713 = vmatmul.mubr.bf16.gmra.mxu0 %v1356_v30  ;;  %777 = vmatmul.mubr.bf16.gmra.mxu1 %v1357_v31 }
  0x46   : > { %720 = vmatprep.mubr.bf16.mxu0 %v1358_v32  ;;  %784 = vmatprep.mubr.bf16.mxu1 %v1360_v33 }
  0x4d   : > { %721 = vmatmul.mubr.bf16.gmra.mxu0 %v1362_v34  ;;  %785 = vmatmul.mubr.bf16.gmra.mxu1 %v1363_v35 }
  0x4e   : > { %728 = vmatprep.mubr.bf16.mxu0 %v1364_v36  ;;  %792 = vmatprep.mubr.bf16.mxu1 %v1366_v37 }
  0x55   : > { %729 = vmatmul.mubr.bf16.gmra.mxu0 %v1368_v38  ;;  %793 = vmatmul.mubr.bf16.gmra.mxu1 %v1369_v39 }
  0x56   : > { %736 = vmatprep.mubr.bf16.mxu0 %v1370_v40  ;;  %800 = vmatprep.mubr.bf16.mxu1 %v1372_v41 }
  0x5d   : > { %737 = vmatmul.mubr.bf16.gmra.mxu0 %v1374_v42  ;;  %801 = vmatmul.mubr.bf16.gmra.mxu1 %v1375_v43 }
  0x5e   : > { %744 = vmatprep.mubr.bf16.mxu0 %v1376_v44  ;;  %808 = vmatprep.mubr.bf16.mxu1 %v1378_v45 }
  0x65   : > { %745 = vmatmul.mubr.bf16.gmra.mxu0 %v1380_v46  ;;  %809 = vmatmul.mubr.bf16.gmra.mxu1 %v1381_v47 }
  0xed   : > { %v1181_v48 = vpop.f32.mrf.mxu0  ;;  %v1229_v49 = vpop.f32.mrf.mxu1 }
  0xef   : > { %v1182_v50 = vpop.f32.mrf.mxu0  ;;  %v1230_v51 = vpop.f32.mrf.mxu1 }
  0xf0   : > { %v1183_v52 = vadd.f32 %v1182_v50, %v1181_v48  ;;  %v1231_v53 = vadd.f32 %v1230_v51, %v1229_v49 }
  0xf1   : > { %v1184_v55 = vpop.f32.mrf.mxu0  ;;  %v1232_v56 = vpop.f32.mrf.mxu1 }
  0xf2   : > { %v923_v59 = vadd.f32 %v1183_v52, %v1537_v54  ;;  %v939_v60 = vadd.f32 %v1231_v53, %v1537_v54 }
  0xf3   : > { %v1185_v57 = vpop.f32.mrf.mxu0  ;;  %v1233_v58 = vpop.f32.mrf.mxu1 }
  0xf4   : > { %v1186_v61 = vadd.f32 %v1185_v57, %v1184_v55  ;;  %v1234_v62 = vadd.f32 %v1233_v58, %v1232_v56  ;;  %955 = vst [vmem:[%s1544_s8] sm:$0xff] %v923_v59  ;;  %971 = vst [vmem:[%s1544_s8 + $0x80] sm:$0xff] %v939_v60 }
  0xf5   : > { %v1187_v63 = vpop.f32.mrf.mxu0  ;;  %v1235_v0 = vpop.f32.mrf.mxu1 }
  0xf6   : > { %v924_v3 = vadd.f32 %v1186_v61, %v1537_v54  ;;  %v940_v4 = vadd.f32 %v1234_v62, %v1537_v54 }
  0xf7   : > { %v1188_v1 = vpop.f32.mrf.mxu0  ;;  %v1236_v2 = vpop.f32.mrf.mxu1 }
  0xf8   : > { %v1189_v5 = vadd.f32 %v1188_v1, %v1187_v63  ;;  %v1237_v6 = vadd.f32 %v1236_v2, %v1235_v0  ;;  %956 = vst [vmem:[%s1544_s8 + $0x8] sm:$0xff] %v924_v3  ;;  %972 = vst [vmem:[%s1544_s8 + $0x88] sm:$0xff] %v940_v4 }
  0xf9   : > { %v1190_v7 = vpop.f32.mrf.mxu0  ;;  %v1238_v8 = vpop.f32.mrf.mxu1 }
  0xfa   : > { %v925_v11 = vadd.f32 %v1189_v5, %v1537_v54  ;;  %v941_v12 = vadd.f32 %v1237_v6, %v1537_v54 }
  0xfb   : > { %v1191_v9 = vpop.f32.mrf.mxu0  ;;  %v1239_v10 = vpop.f32.mrf.mxu1 }
  0xfc   : > { %v1192_v13 = vadd.f32 %v1191_v9, %v1190_v7  ;;  %v1240_v14 = vadd.f32 %v1239_v10, %v1238_v8  ;;  %957 = vst [vmem:[%s1544_s8 + $0x10] sm:$0xff] %v925_v11  ;;  %973 = vst [vmem:[%s1544_s8 + $0x90] sm:$0xff] %v941_v12 }
  0xfd   : > { %v1193_v15 = vpop.f32.mrf.mxu0  ;;  %v1241_v16 = vpop.f32.mrf.mxu1 }
  0xfe   : > { %v926_v19 = vadd.f32 %v1192_v13, %v1537_v54  ;;  %v942_v20 = vadd.f32 %v1240_v14, %v1537_v54 }
  0xff   : > { %v1194_v17 = vpop.f32.mrf.mxu0  ;;  %v1242_v18 = vpop.f32.mrf.mxu1 }
 0x100   : > { %v1195_v21 = vadd.f32 %v1194_v17, %v1193_v15  ;;  %v1243_v22 = vadd.f32 %v1242_v18, %v1241_v16  ;;  %958 = vst [vmem:[%s1544_s8 + $0x18] sm:$0xff] %v926_v19  ;;  %974 = vst [vmem:[%s1544_s8 + $0x98] sm:$0xff] %v942_v20 }
 0x101   : > { %v1196_v23 = vpop.f32.mrf.mxu0  ;;  %v1244_v24 = vpop.f32.mrf.mxu1 }
 0x102   : > { %v927_v27 = vadd.f32 %v1195_v21, %v1537_v54  ;;  %v943_v28 = vadd.f32 %v1243_v22, %v1537_v54 }
 0x103   : > { %v1197_v25 = vpop.f32.mrf.mxu0  ;;  %v1245_v26 = vpop.f32.mrf.mxu1 }
 0x104   : > { %v1198_v29 = vadd.f32 %v1197_v25, %v1196_v23  ;;  %v1246_v30 = vadd.f32 %v1245_v26, %v1244_v24  ;;  %959 = vst [vmem:[%s1544_s8 + $0x20] sm:$0xff] %v927_v27  ;;  %975 = vst [vmem:[%s1544_s8 + $0xa0] sm:$0xff] %v943_v28 }
 0x105   : > { %v1199_v31 = vpop.f32.mrf.mxu0  ;;  %v1247_v32 = vpop.f32.mrf.mxu1 }
 0x106   : > { %v928_v35 = vadd.f32 %v1198_v29, %v1537_v54  ;;  %v944_v36 = vadd.f32 %v1246_v30, %v1537_v54 }
 0x107   : > { %v1200_v33 = vpop.f32.mrf.mxu0  ;;  %v1248_v34 = vpop.f32.mrf.mxu1 }
 0x108   : > { %v1201_v37 = vadd.f32 %v1200_v33, %v1199_v31  ;;  %v1249_v38 = vadd.f32 %v1248_v34, %v1247_v32  ;;  %960 = vst [vmem:[%s1544_s8 + $0x28] sm:$0xff] %v928_v35  ;;  %976 = vst [vmem:[%s1544_s8 + $0xa8] sm:$0xff] %v944_v36 }
 0x109   : > { %v1202_v39 = vpop.f32.mrf.mxu0  ;;  %v1250_v40 = vpop.f32.mrf.mxu1 }
 0x10a   : > { %v929_v43 = vadd.f32 %v1201_v37, %v1537_v54  ;;  %v945_v44 = vadd.f32 %v1249_v38, %v1537_v54 }
 0x10b   : > { %v1203_v41 = vpop.f32.mrf.mxu0  ;;  %v1251_v42 = vpop.f32.mrf.mxu1 }
 0x10c   : > { %v1204_v45 = vadd.f32 %v1203_v41, %v1202_v39  ;;  %v1252_v46 = vadd.f32 %v1251_v42, %v1250_v40  ;;  %961 = vst [vmem:[%s1544_s8 + $0x30] sm:$0xff] %v929_v43  ;;  %977 = vst [vmem:[%s1544_s8 + $0xb0] sm:$0xff] %v945_v44 }
 0x10d   : > { %v1205_v47 = vpop.f32.mrf.mxu0  ;;  %v1253_v48 = vpop.f32.mrf.mxu1 }
 0x10e   : > { %v930_v51 = vadd.f32 %v1204_v45, %v1537_v54  ;;  %v946_v52 = vadd.f32 %v1252_v46, %v1537_v54 }
 0x10f   : > { %v1206_v49 = vpop.f32.mrf.mxu0  ;;  %v1254_v50 = vpop.f32.mrf.mxu1 }
 0x110   : > { %v1207_v53 = vadd.f32 %v1206_v49, %v1205_v47  ;;  %v1255_v55 = vadd.f32 %v1254_v50, %v1253_v48  ;;  %962 = vst [vmem:[%s1544_s8 + $0x38] sm:$0xff] %v930_v51  ;;  %978 = vst [vmem:[%s1544_s8 + $0xb8] sm:$0xff] %v946_v52 }
 0x111   : > { %v1208_v56 = vpop.f32.mrf.mxu0  ;;  %v1256_v57 = vpop.f32.mrf.mxu1 }
 0x112   : > { %v931_v60 = vadd.f32 %v1207_v53, %v1537_v54  ;;  %v947_v61 = vadd.f32 %v1255_v55, %v1537_v54 }
 0x113   : > { %v1209_v58 = vpop.f32.mrf.mxu0  ;;  %v1257_v59 = vpop.f32.mrf.mxu1 }
 0x114   : > { %v1210_v62 = vadd.f32 %v1209_v58, %v1208_v56  ;;  %v1258_v63 = vadd.f32 %v1257_v59, %v1256_v57  ;;  %963 = vst [vmem:[%s1544_s8 + $0x40] sm:$0xff] %v931_v60  ;;  %979 = vst [vmem:[%s1544_s8 + $0xc0] sm:$0xff] %v947_v61 }
 0x115   : > { %v1211_v0 = vpop.f32.mrf.mxu0  ;;  %v1259_v1 = vpop.f32.mrf.mxu1 }
 0x116   : > { %v932_v4 = vadd.f32 %v1210_v62, %v1537_v54  ;;  %v948_v5 = vadd.f32 %v1258_v63, %v1537_v54 }
 0x117   : > { %v1212_v2 = vpop.f32.mrf.mxu0  ;;  %v1260_v3 = vpop.f32.mrf.mxu1 }
 0x118   : > { %v1213_v6 = vadd.f32 %v1212_v2, %v1211_v0  ;;  %v1261_v7 = vadd.f32 %v1260_v3, %v1259_v1  ;;  %964 = vst [vmem:[%s1544_s8 + $0x48] sm:$0xff] %v932_v4  ;;  %980 = vst [vmem:[%s1544_s8 + $0xc8] sm:$0xff] %v948_v5 }
 0x119   : > { %v1214_v8 = vpop.f32.mrf.mxu0  ;;  %v1262_v9 = vpop.f32.mrf.mxu1 }
 0x11a   : > { %v933_v12 = vadd.f32 %v1213_v6, %v1537_v54  ;;  %v949_v13 = vadd.f32 %v1261_v7, %v1537_v54 }
 0x11b   : > { %v1215_v10 = vpop.f32.mrf.mxu0  ;;  %v1263_v11 = vpop.f32.mrf.mxu1 }
 0x11c   : > { %v1216_v14 = vadd.f32 %v1215_v10, %v1214_v8  ;;  %v1264_v15 = vadd.f32 %v1263_v11, %v1262_v9  ;;  %965 = vst [vmem:[%s1544_s8 + $0x50] sm:$0xff] %v933_v12  ;;  %981 = vst [vmem:[%s1544_s8 + $0xd0] sm:$0xff] %v949_v13 }
 0x11d   : > { %v1217_v16 = vpop.f32.mrf.mxu0  ;;  %v1265_v17 = vpop.f32.mrf.mxu1 }
 0x11e   : > { %v934_v20 = vadd.f32 %v1216_v14, %v1537_v54  ;;  %v950_v21 = vadd.f32 %v1264_v15, %v1537_v54 }
 0x11f   : > { %v1218_v18 = vpop.f32.mrf.mxu0  ;;  %v1266_v19 = vpop.f32.mrf.mxu1 }
 0x120   : > { %v1219_v22 = vadd.f32 %v1218_v18, %v1217_v16  ;;  %v1267_v23 = vadd.f32 %v1266_v19, %v1265_v17  ;;  %966 = vst [vmem:[%s1544_s8 + $0x58] sm:$0xff] %v934_v20  ;;  %982 = vst [vmem:[%s1544_s8 + $0xd8] sm:$0xff] %v950_v21 }
 0x121   : > { %v1220_v24 = vpop.f32.mrf.mxu0  ;;  %v1268_v25 = vpop.f32.mrf.mxu1 }
 0x122   : > { %v935_v28 = vadd.f32 %v1219_v22, %v1537_v54  ;;  %v951_v29 = vadd.f32 %v1267_v23, %v1537_v54 }
 0x123   : > { %v1221_v26 = vpop.f32.mrf.mxu0  ;;  %v1269_v27 = vpop.f32.mrf.mxu1 }
 0x124   : > { %v1222_v30 = vadd.f32 %v1221_v26, %v1220_v24  ;;  %v1270_v31 = vadd.f32 %v1269_v27, %v1268_v25  ;;  %967 = vst [vmem:[%s1544_s8 + $0x60] sm:$0xff] %v935_v28  ;;  %983 = vst [vmem:[%s1544_s8 + $0xe0] sm:$0xff] %v951_v29 }
 0x125   : > { %v1223_v32 = vpop.f32.mrf.mxu0  ;;  %v1271_v33 = vpop.f32.mrf.mxu1 }
 0x126   : > { %v936_v36 = vadd.f32 %v1222_v30, %v1537_v54  ;;  %v952_v37 = vadd.f32 %v1270_v31, %v1537_v54 }
 0x127   : > { %v1224_v34 = vpop.f32.mrf.mxu0  ;;  %v1272_v35 = vpop.f32.mrf.mxu1 }
 0x128   : > { %v1225_v38 = vadd.f32 %v1224_v34, %v1223_v32  ;;  %v1273_v39 = vadd.f32 %v1272_v35, %v1271_v33  ;;  %968 = vst [vmem:[%s1544_s8 + $0x68] sm:$0xff] %v936_v36  ;;  %984 = vst [vmem:[%s1544_s8 + $0xe8] sm:$0xff] %v952_v37 }
 0x129   : > { %v1226_v40 = vpop.f32.mrf.mxu0  ;;  %v1274_v41 = vpop.f32.mrf.mxu1 }
 0x12a   : > { %v937_v44 = vadd.f32 %v1225_v38, %v1537_v54  ;;  %v953_v45 = vadd.f32 %v1273_v39, %v1537_v54 }
 0x12b   : > { %v1227_v42 = vpop.f32.mrf.mxu0  ;;  %v1275_v43 = vpop.f32.mrf.mxu1 }
 0x12c   : > { %v1228_v46 = vadd.f32 %v1227_v42, %v1226_v40  ;;  %v1276_v47 = vadd.f32 %v1275_v43, %v1274_v41  ;;  %969 = vst [vmem:[%s1544_s8 + $0x70] sm:$0xff] %v937_v44  ;;  %985 = vst [vmem:[%s1544_s8 + $0xf0] sm:$0xff] %v953_v45 }
 0x12e   : > { %v938_v48 = vadd.f32 %v1228_v46, %v1537_v54  ;;  %v954_v49 = vadd.f32 %v1276_v47, %v1537_v54 }
 0x130   : > { %970 = vst [vmem:[%s1544_s8 + $0x78] sm:$0xff] %v938_v48  ;;  %986 = vst [vmem:[%s1544_s8 + $0xf8] sm:$0xff] %v954_v49 }
 0x131 PF: > { %s13_s14 = sadd.s32 1, %s1404_s14   ;;  %s1623_s12 = smov %s1400_s13 }
 0x132   : > { %p10_p5 = scmp.ge.s32.totalorder %s13_s14, 4   ;;  %s1624_s13 = smov %s1626_s15 }
 0x134   :  { %12 = sbr.rel (!%p10_p5) target bundleno = 2 (0x2), region = 76 }

// kernel: forward.48
= control target key start
LH: loop header
LB: loop body
LE: loop exit
PB: predicated region body
PF: predicated region fallthrough
CT: control target
= control target key end

     0   :  { %s1182_s12 = smov 0   ;;  %s1184_s13 = smov 0   ;;  %s1546_s0 = inlined_call_operand.vmem [shape: bf16[128,1024], index: 0, kind: input, shape index: {}]   ;;  %s1547_s1 = inlined_call_operand.vmem [shape: bf16[1024,128], index: 1, kind: input, shape index: {}]   ;;  %s1548_s2 = inlined_call_operand.vmem [shape: f32[1,128], index: 2, kind: input, shape index: {}]   ;;  %s1549_s3 = inlined_call_operand.vmem [shape: f32[128,128], index: 3, kind: output, shape index: {}]  }
   0x1   :  { %s1186_s14 = smov 0   ;;  %s1188_s15 = smov 0  }
   0x2   :  { %s1190_s16 = smov 0  }
   0x3 LB: > { %s25_s17 = sadd.s32 1, %s1155_s15  ;;  %p48_p1 = scmp.ne.s32.totalorder %s1147_s13, %s1143_s12  ;;  %s1159_s16 = sphi %s1190_s16, %s13_s16   ;;  %s1155_s15 = sphi %s1188_s15, %s1553_s15   ;;  %s1151_s14 = sphi %s1186_s14, %s1552_s14   ;;  %s1147_s13 = sphi %s1184_s13, %s1551_s13   ;;  %s1143_s12 = sphi %s1182_s12, %s1550_s12  }
   0x4   : > { %p26_p0 = scmp.ge.s32.totalorder %s25_s17, 4  ;;  %p49_p2 = scmp.eq.s32.totalorder %s1159_s16, 0 }
   0x5   : > { %s41_s19 = sadd.s32 1, %s1147_s13  ;;  %p912_p5 = scmp.ge.s32.totalorder %s1159_s16, 4 }
   0x6   : > { %s1555_s17 = smov (%p26_p0, %s25_s17), 0  ;;  %p50_p3 = por %p49_p2, %p48_p1 }
   0x7   : > { %s37_s18 = ssub.s32 %s1155_s15, %s1555_s17  ;;  %162 = sbr.rel (%p912_p5) target bundleno = 32 (0x20), region = 20 }
   0x8   : > { %p39_p4 = scmp.eq.s32.totalorder %s37_s18, 0 }
   0xa   : > { %s1217_s20 = scalar_select %p39_p4, %s1147_s13, %s41_s19  }
   0xc   : > { %165 = sbr.rel (!%p50_p3) target bundleno = 32 (0x20), region = 24  ;;  %s167_s21 = sand.u32 (%p50_p3), 1, %s1147_s13  }
   0xd   : > { %s959_s22 = sshll.u32 (%p50_p3), %s1155_s15, 3  ;;  %s913_s23 = sshll.u32 (%p50_p3), %s167_s21, 7 }
   0xe   : > { %s1225_s26 = scalar_lea.vmem (%p50_p3), %s1546_s0, %s959_s22  ;;  %s169_s27 = scalar_lea.vmem (%p50_p3), [#allocation2], %s913_s23 }
   0xf   : > { %v234_v0 = vld [vmem:[%s1225_s26] sm:$0xff] (%p50_p3) }
  0x10   : > { %v236_v1 = vld [vmem:[%s1225_s26 + $0x20] sm:$0xff] (%p50_p3)  ;;  %235 = vst [vmem:[%s169_s27] sm:$0xff] (%p50_p3), %v234_v0 }
  0x11   : > { %v238_v2 = vld [vmem:[%s1225_s26 + $0x40] sm:$0xff]  ;;  %237 = vst [vmem:[%s169_s27 + $0x8] sm:$0xff] %v236_v1 }
  0x12   : > { %239 = vst [vmem:[%s169_s27 + $0x10] sm:$0xff] %v238_v2  ;;  %v240_v3 = vld [vmem:[%s1225_s26 + $0x60] sm:$0xff] }
  0x13   : > { %v242_v4 = vld [vmem:[%s1225_s26 + $0x80] sm:$0xff]  ;;  %241 = vst [vmem:[%s169_s27 + $0x18] sm:$0xff] %v240_v3 }
  0x14   : > { %v244_v5 = vld [vmem:[%s1225_s26 + $0xa0] sm:$0xff]  ;;  %243 = vst [vmem:[%s169_s27 + $0x20] sm:$0xff] %v242_v4 }
  0x15   : > { %245 = vst [vmem:[%s169_s27 + $0x28] sm:$0xff] %v244_v5  ;;  %v246_v6 = vld [vmem:[%s1225_s26 + $0xc0] sm:$0xff] }
  0x16   : > { %v248_v7 = vld [vmem:[%s1225_s26 + $0xe0] sm:$0xff]  ;;  %247 = vst [vmem:[%s169_s27 + $0x30] sm:$0xff] %v246_v6 }
  0x17   : > { %v250_v8 = vld [vmem:[%s1225_s26 + $0x100] sm:$0xff]  ;;  %249 = vst [vmem:[%s169_s27 + $0x38] sm:$0xff] %v248_v7 }
  0x18   : > { %251 = vst [vmem:[%s169_s27 + $0x40] sm:$0xff] %v250_v8  ;;  %v252_v9 = vld [vmem:[%s1225_s26 + $0x120] sm:$0xff] }
  0x19   : > { %v254_v10 = vld [vmem:[%s1225_s26 + $0x140] sm:$0xff]  ;;  %253 = vst [vmem:[%s169_s27 + $0x48] sm:$0xff] %v252_v9 }
  0x1a   : > { %v256_v11 = vld [vmem:[%s1225_s26 + $0x160] sm:$0xff]  ;;  %255 = vst [vmem:[%s169_s27 + $0x50] sm:$0xff] %v254_v10 }
  0x1b   : > { %257 = vst [vmem:[%s169_s27 + $0x58] sm:$0xff] %v256_v11  ;;  %v258_v12 = vld [vmem:[%s1225_s26 + $0x180] sm:$0xff] }
  0x1c   : > { %v260_v13 = vld [vmem:[%s1225_s26 + $0x1a0] sm:$0xff]  ;;  %259 = vst [vmem:[%s169_s27 + $0x60] sm:$0xff] %v258_v12 }
  0x1d   : > { %v262_v14 = vld [vmem:[%s1225_s26 + $0x1c0] sm:$0xff]  ;;  %261 = vst [vmem:[%s169_s27 + $0x68] sm:$0xff] %v260_v13 }
  0x1e   : > { %263 = vst [vmem:[%s169_s27 + $0x70] sm:$0xff] %v262_v14  ;;  %v264_v15 = vld [vmem:[%s1225_s26 + $0x1e0] sm:$0xff] }
  0x1f   : > { %265 = vst [vmem:[%s169_s27 + $0x78] sm:$0xff] %v264_v15 }
  0x20 PF: > { %p916_p6 = scmp.ge.s32.totalorder %s1159_s16, 1  ;;  %p282_p7 = scmp.lt.s32.totalorder %s1159_s16, 5 }
  0x22   : > { %p283_p8 = pnand %p916_p6, %p282_p7 }
  0x23   : > { %s289_s28 = sand.u32 (!%p283_p8), 1, %s1143_s12   ;;  %s918_s29 = sshll.u32 (!%p283_p8), %s1151_s14, 5 }
  0x24   : > { %286 = sbr.rel (%p283_p8) target bundleno = 328 (0x148), region = 66  ;;  %s917_s30 = sshll.u32 (!%p283_p8), %s289_s28, 7 }
  0x25   : > { %p329_p9 = scmp.lt.s32.totalorder (!%p283_p8), %s918_s29, 127  ;;  %s1252_s8 = scalar_lea.vmem (!%p283_p8), [#allocation2], %s917_s30 }
  0x26   : > { %p920_p10 = scmp.ne.s32.totalorder (!%p283_p8), %s1151_s14, 0 }
  0x29   : > { %s1557_s29 = smov (!%p329_p9, %s918_s29), 127  ;;  %353 = sbr.rel (%p920_p10) target bundleno = 55 (0x37), region = 74 }
  0x2a   : > { %s919_s4 = sshll.u32 %s1557_s29, 2 }
  0x2b   : > { %s1250_s7 = scalar_lea.vmem %s1547_s1, %s919_s4 }
  0x2e   : > { %v1161_v16 = vmov 0.0  }
  0x2f   : > { %354 = vst [vmem:[%s1549_s3] sm:$0xff] %v1161_v16  ;;  %355 = vst [vmem:[%s1549_s3 + $0x8] sm:$0xff] %v1161_v16 }
  0x30   : > { %356 = vst [vmem:[%s1549_s3 + $0x10] sm:$0xff] %v1161_v16  ;;  %357 = vst [vmem:[%s1549_s3 + $0x18] sm:$0xff] %v1161_v16 }
  0x31   : > { %358 = vst [vmem:[%s1549_s3 + $0x20] sm:$0xff] %v1161_v16  ;;  %359 = vst [vmem:[%s1549_s3 + $0x28] sm:$0xff] %v1161_v16 }
  0x32   : > { %360 = vst [vmem:[%s1549_s3 + $0x30] sm:$0xff] %v1161_v16  ;;  %361 = vst [vmem:[%s1549_s3 + $0x38] sm:$0xff] %v1161_v16 }
  0x33   : > { %362 = vst [vmem:[%s1549_s3 + $0x40] sm:$0xff] %v1161_v16  ;;  %363 = vst [vmem:[%s1549_s3 + $0x48] sm:$0xff] %v1161_v16 }
  0x34   : > { %364 = vst [vmem:[%s1549_s3 + $0x50] sm:$0xff] %v1161_v16  ;;  %365 = vst [vmem:[%s1549_s3 + $0x58] sm:$0xff] %v1161_v16 }
  0x35   : > { %366 = vst [vmem:[%s1549_s3 + $0x60] sm:$0xff] %v1161_v16  ;;  %367 = vst [vmem:[%s1549_s3 + $0x68] sm:$0xff] %v1161_v16 }
  0x36   : > { %368 = vst [vmem:[%s1549_s3 + $0x70] sm:$0xff] %v1161_v16  ;;  %369 = vst [vmem:[%s1549_s3 + $0x78] sm:$0xff] %v1161_v16 }
  0x37 PF: > { %v1081_v17 = vld [vmem:[%s1250_s7 + $0x78] sm:$0xff]   ;;  %v1083_v19 = vld [vmem:[%s1250_s7 + $0x70] sm:$0xff]   ;;  %v1085_v21 = vld [vmem:[%s1250_s7 + $0x68] sm:$0xff]   ;;  %p953_p11 = scmp.ne.s32.totalorder %s1151_s14, 3 }
  0x38   : > { %v1082_v18 = vld [vmem:[%s1250_s7 + $0x38] sm:$0xff]   ;;  %960 = vmatprep.subr.bf16.mxu0 %v1081_v17  ;;  %1024 = vmatprep.subr.bf16.mxu1 %v1081_v17  ;;  %v1084_v20 = vld [vmem:[%s1250_s7 + $0x30] sm:$0xff]   ;;  %v1086_v22 = vld [vmem:[%s1250_s7 + $0x28] sm:$0xff]  }
  0x39   : > { %961 = vmatpush3.bf16.msra.mxu0 %v1082_v18  ;;  %1032 = vmatpush3.bf16.msra.mxu1 %v1082_v18  ;;  %v1087_v23 = vld [vmem:[%s1250_s7 + $0x60] sm:$0xff]   ;;  %v1089_v25 = vld [vmem:[%s1250_s7 + $0x58] sm:$0xff]   ;;  %v1091_v27 = vld [vmem:[%s1250_s7 + $0x50] sm:$0xff]  }
  0x3a   : > { %962 = vmatprep.subr.bf16.mxu0 %v1083_v19  ;;  %1025 = vmatprep.subr.bf16.mxu1 %v1083_v19  ;;  %v1088_v24 = vld [vmem:[%s1250_s7 + $0x20] sm:$0xff]   ;;  %v1090_v26 = vld [vmem:[%s1250_s7 + $0x18] sm:$0xff]   ;;  %v1092_v30 = vld [vmem:[%s1250_s7 + $0x10] sm:$0xff]  }
  0x3b   : > { %v1099_v28 = vld [vmem:[%s1252_s8 + $0x4] ss:$8 sps:$4 sm:$0xff]   ;;  %v1097_v35 = vld [vmem:[%s1252_s8] ss:$8 sps:$4 sm:$0xff]   ;;  %v1103_v37 = vld [vmem:[%s1252_s8 + $0x14] ss:$8 sps:$4 sm:$0xff]  }
  0x3c   : > { %v1102_v29 = vld [vmem:[%s1252_s8 + $0x44] ss:$8 sps:$4 sm:$0xff]   ;;  %642 = vmatprep.mubr.bf16.mxu0 %v1099_v28  ;;  %v1100_v36 = vld [vmem:[%s1252_s8 + $0x40] ss:$8 sps:$4 sm:$0xff]   ;;  %v1105_v38 = vld [vmem:[%s1252_s8 + $0x54] ss:$8 sps:$4 sm:$0xff]  }
  0x3d   : > { %963 = vmatpush3.bf16.msra.mxu0 %v1084_v20  ;;  %1033 = vmatpush3.bf16.msra.mxu1 %v1084_v20  ;;  %v1093_v31 = vld [vmem:[%s1250_s7 + $0x48] sm:$0xff]   ;;  %v1095_v33 = vld [vmem:[%s1250_s7 + $0x40] sm:$0xff]   ;;  %v1107_v39 = vld [vmem:[%s1252_s8 + $0x10] ss:$8 sps:$4 sm:$0xff]  }
  0x3e   : > { %964 = vmatprep.subr.bf16.mxu0 %v1085_v21  ;;  %1026 = vmatprep.subr.bf16.mxu1 %v1085_v21  ;;  %v1094_v32 = vld [vmem:[%s1250_s7 + $0x8] sm:$0xff]   ;;  %v1096_v34 = vld [vmem:[%s1250_s7] sm:$0xff]   ;;  %v1108_v40 = vld [vmem:[%s1252_s8 + $0x50] ss:$8 sps:$4 sm:$0xff]  }
  0x3f   : > { %674 = vmatprep.mubr.bf16.mxu1 %v1102_v29  ;;  %v1109_v41 = vld [vmem:[%s1252_s8 + $0x24] ss:$8 sps:$4 sm:$0xff]   ;;  %v1113_v43 = vld [vmem:[%s1252_s8 + $0x20] ss:$8 sps:$4 sm:$0xff]   ;;  %v1115_v45 = vld [vmem:[%s1252_s8 + $0x34] ss:$8 sps:$4 sm:$0xff]  }
  0x40   : > { %v1111_v42 = vld [vmem:[%s1252_s8 + $0x64] ss:$8 sps:$4 sm:$0xff]   ;;  %v1114_v44 = vld [vmem:[%s1252_s8 + $0x60] ss:$8 sps:$4 sm:$0xff]   ;;  %v1117_v46 = vld [vmem:[%s1252_s8 + $0x74] ss:$8 sps:$4 sm:$0xff]  }
  0x41   : > { %965 = vmatpush3.bf16.msra.mxu0 %v1086_v22  ;;  %1034 = vmatpush3.bf16.msra.mxu1 %v1086_v22  ;;  %v1119_v47 = vld [vmem:[%s1252_s8 + $0x30] ss:$8 sps:$4 sm:$0xff]   ;;  %v370_v51 = vld [vmem:[%s1549_s3] sm:$0xff]  ;;  %v371_v61 = vld [vmem:[%s1549_s3 + $0x8] sm:$0xff] }
  0x42   : > { %966 = vmatprep.subr.bf16.mxu0 %v1087_v23  ;;  %1027 = vmatprep.subr.bf16.mxu1 %v1087_v23  ;;  %v1120_v48 = vld [vmem:[%s1252_s8 + $0x70] ss:$8 sps:$4 sm:$0xff]   ;;  %v378_v53 = vld [vmem:[%s1549_s3 + $0x40] sm:$0xff]  ;;  %v379_v63 = vld [vmem:[%s1549_s3 + $0x48] sm:$0xff] }
  0x43   : > { %v372_v7 = vld [vmem:[%s1549_s3 + $0x10] sm:$0xff]  ;;  %v373_v17 = vld [vmem:[%s1549_s3 + $0x18] sm:$0xff]  ;;  %v382_v29 = vld [vmem:[%s1549_s3 + $0x60] sm:$0xff] }
  0x44   : > { %v380_v9 = vld [vmem:[%s1549_s3 + $0x50] sm:$0xff]  ;;  %v381_v19 = vld [vmem:[%s1549_s3 + $0x58] sm:$0xff] }
  0x45   : > { %967 = vmatpush3.bf16.msra.mxu0 %v1088_v24  ;;  %1035 = vmatpush3.bf16.msra.mxu1 %v1088_v24 }
  0x46   : > { %968 = vmatprep.subr.bf16.mxu0 %v1089_v25  ;;  %1028 = vmatprep.subr.bf16.mxu1 %v1089_v25 }
  0x49   : > { %969 = vmatpush3.bf16.msra.mxu0 %v1090_v26  ;;  %1036 = vmatpush3.bf16.msra.mxu1 %v1090_v26 }
  0x4a   : > { %970 = vmatprep.subr.bf16.mxu0 %v1091_v27  ;;  %1029 = vmatprep.subr.bf16.mxu1 %v1091_v27  ;;  %v374_v27 = vld [vmem:[%s1549_s3 + $0x20] sm:$0xff] }
  0x4d   : > { %971 = vmatpush3.bf16.msra.mxu0 %v1092_v30  ;;  %1037 = vmatpush3.bf16.msra.mxu1 %v1092_v30 }
  0x4e   : > { %972 = vmatprep.subr.bf16.mxu0 %v1093_v31  ;;  %1030 = vmatprep.subr.bf16.mxu1 %v1093_v31 }
  0x51   : > { %973 = vmatpush3.bf16.msra.mxu0 %v1094_v32  ;;  %1038 = vmatpush3.bf16.msra.mxu1 %v1094_v32 }
  0x52   : > { %974 = vmatprep.subr.bf16.mxu0 %v1095_v33  ;;  %1031 = vmatprep.subr.bf16.mxu1 %v1095_v33 }
  0x55   : > { %975 = vmatpush3.bf16.msra.mxu0 %v1096_v34  ;;  %1039 = vmatpush3.bf16.msra.mxu1 %v1096_v34 }
  0x58   : > { %643 = vmatmul.mubr.bf16.vlgmr.msra.gmra.mxu0 %v1097_v35  ;;  %675 = vmatmul.mubr.bf16.vlgmr.msra.gmra.mxu1 %v1100_v36 }
  0x59   : > { %650 = vmatprep.mubr.bf16.mxu0 %v1103_v37  ;;  %682 = vmatprep.mubr.bf16.mxu1 %v1105_v38  ;;  %v375_v37 = vld [vmem:[%s1549_s3 + $0x28] sm:$0xff] }
  0x60   : > { %651 = vmatmul.mubr.bf16.gmra.mxu0 %v1107_v39  ;;  %683 = vmatmul.mubr.bf16.gmra.mxu1 %v1108_v40  ;;  %v383_v39 = vld [vmem:[%s1549_s3 + $0x68] sm:$0xff] }
  0x61   : > { %658 = vmatprep.mubr.bf16.mxu0 %v1109_v41  ;;  %690 = vmatprep.mubr.bf16.mxu1 %v1111_v42 }
  0x68   : > { %659 = vmatmul.mubr.bf16.gmra.mxu0 %v1113_v43  ;;  %691 = vmatmul.mubr.bf16.gmra.mxu1 %v1114_v44 }
  0x69   : > { %666 = vmatprep.mubr.bf16.mxu0 %v1115_v45  ;;  %698 = vmatprep.mubr.bf16.mxu1 %v1117_v46 }
  0x70   : > { %667 = vmatmul.mubr.bf16.gmra.mxu0 %v1119_v47  ;;  %699 = vmatmul.mubr.bf16.gmra.mxu1 %v1120_v48  ;;  %v376_v47 = vld [vmem:[%s1549_s3 + $0x30] sm:$0xff] }
 0x118   : > { %v976_v49 = vpop.f32.mrf.mxu0  ;;  %v1000_v50 = vpop.f32.mrf.mxu1 }
 0x11a   : > { %v977_v52 = vpop.f32.mrf.mxu0  ;;  %v1001_v54 = vpop.f32.mrf.mxu1 }
 0x11b   : > { %v978_v55 = vadd.f32 %v977_v52, %v976_v49  ;;  %v1002_v56 = vadd.f32 %v1001_v54, %v1000_v50  ;;  %v384_v49 = vld [vmem:[%s1549_s3 + $0x70] sm:$0xff] }
 0x11c   : > { %v979_v57 = vpop.f32.mrf.mxu0  ;;  %v1003_v58 = vpop.f32.mrf.mxu1 }
 0x11d   : > { %v707_v59 = vadd.f32 %v978_v55, %v370_v51  ;;  %v715_v60 = vadd.f32 %v1002_v56, %v378_v53 }
 0x11e   : > { %v980_v62 = vpop.f32.mrf.mxu0  ;;  %v1004_v0 = vpop.f32.mrf.mxu1 }
 0x11f   : > { %723 = vst [vmem:[%s1549_s3] sm:$0xff] %v707_v59  ;;  %731 = vst [vmem:[%s1549_s3 + $0x40] sm:$0xff] %v715_v60  ;;  %v981_v1 = vadd.f32 %v980_v62, %v979_v57  ;;  %v1005_v2 = vadd.f32 %v1004_v0, %v1003_v58  ;;  %v377_v57 = vld [vmem:[%s1549_s3 + $0x38] sm:$0xff] }
 0x120   : > { %v982_v3 = vpop.f32.mrf.mxu0  ;;  %v1006_v4 = vpop.f32.mrf.mxu1  ;;  %v385_v59 = vld [vmem:[%s1549_s3 + $0x78] sm:$0xff] }
 0x121   : > { %v708_v5 = vadd.f32 %v981_v1, %v371_v61  ;;  %v716_v6 = vadd.f32 %v1005_v2, %v379_v63 }
 0x122   : > { %v983_v8 = vpop.f32.mrf.mxu0  ;;  %v1007_v10 = vpop.f32.mrf.mxu1 }
 0x123   : > { %724 = vst [vmem:[%s1549_s3 + $0x8] sm:$0xff] %v708_v5  ;;  %732 = vst [vmem:[%s1549_s3 + $0x48] sm:$0xff] %v716_v6  ;;  %v984_v11 = vadd.f32 %v983_v8, %v982_v3  ;;  %v1008_v12 = vadd.f32 %v1007_v10, %v1006_v4 }
 0x124   : > { %v985_v13 = vpop.f32.mrf.mxu0  ;;  %v1009_v14 = vpop.f32.mrf.mxu1 }
 0x125   : > { %v709_v15 = vadd.f32 %v984_v11, %v372_v7  ;;  %v717_v16 = vadd.f32 %v1008_v12, %v380_v9 }
 0x126   : > { %v986_v18 = vpop.f32.mrf.mxu0  ;;  %v1010_v20 = vpop.f32.mrf.mxu1 }
 0x127   : > { %725 = vst [vmem:[%s1549_s3 + $0x10] sm:$0xff] %v709_v15  ;;  %733 = vst [vmem:[%s1549_s3 + $0x50] sm:$0xff] %v717_v16  ;;  %v987_v21 = vadd.f32 %v986_v18, %v985_v13  ;;  %v1011_v22 = vadd.f32 %v1010_v20, %v1009_v14 }
 0x128   : > { %v988_v23 = vpop.f32.mrf.mxu0  ;;  %v1012_v24 = vpop.f32.mrf.mxu1 }
 0x129   : > { %v710_v25 = vadd.f32 %v987_v21, %v373_v17  ;;  %v718_v26 = vadd.f32 %v1011_v22, %v381_v19 }
 0x12a   : > { %v989_v28 = vpop.f32.mrf.mxu0  ;;  %v1013_v30 = vpop.f32.mrf.mxu1 }
 0x12b   : > { %726 = vst [vmem:[%s1549_s3 + $0x18] sm:$0xff] %v710_v25  ;;  %734 = vst [vmem:[%s1549_s3 + $0x58] sm:$0xff] %v718_v26  ;;  %v990_v31 = vadd.f32 %v989_v28, %v988_v23  ;;  %v1014_v32 = vadd.f32 %v1013_v30, %v1012_v24 }
 0x12c   : > { %v991_v33 = vpop.f32.mrf.mxu0  ;;  %v1015_v34 = vpop.f32.mrf.mxu1 }
 0x12d   : > { %v711_v35 = vadd.f32 %v990_v31, %v374_v27  ;;  %v719_v36 = vadd.f32 %v1014_v32, %v382_v29 }
 0x12e   : > { %v992_v38 = vpop.f32.mrf.mxu0  ;;  %v1016_v40 = vpop.f32.mrf.mxu1 }
 0x12f   : > { %727 = vst [vmem:[%s1549_s3 + $0x20] sm:$0xff] %v711_v35  ;;  %735 = vst [vmem:[%s1549_s3 + $0x60] sm:$0xff] %v719_v36  ;;  %v993_v41 = vadd.f32 %v992_v38, %v991_v33  ;;  %v1017_v42 = vadd.f32 %v1016_v40, %v1015_v34 }
 0x130   : > { %v994_v43 = vpop.f32.mrf.mxu0  ;;  %v1018_v44 = vpop.f32.mrf.mxu1 }
 0x131   : > { %v712_v45 = vadd.f32 %v993_v41, %v375_v37  ;;  %v720_v46 = vadd.f32 %v1017_v42, %v383_v39 }
 0x132   : > { %v995_v48 = vpop.f32.mrf.mxu0  ;;  %v1019_v50 = vpop.f32.mrf.mxu1 }
 0x133   : > { %728 = vst [vmem:[%s1549_s3 + $0x28] sm:$0xff] %v712_v45  ;;  %736 = vst [vmem:[%s1549_s3 + $0x68] sm:$0xff] %v720_v46  ;;  %v996_v51 = vadd.f32 %v995_v48, %v994_v43  ;;  %v1020_v52 = vadd.f32 %v1019_v50, %v1018_v44 }
 0x134   : > { %v997_v53 = vpop.f32.mrf.mxu0  ;;  %v1021_v54 = vpop.f32.mrf.mxu1 }
 0x135   : > { %v713_v55 = vadd.f32 %v996_v51, %v376_v47  ;;  %v721_v56 = vadd.f32 %v1020_v52, %v384_v49 }
 0x136   : > { %v998_v58 = vpop.f32.mrf.mxu0  ;;  %v1022_v60 = vpop.f32.mrf.mxu1 }
 0x137   : > { %729 = vst [vmem:[%s1549_s3 + $0x30] sm:$0xff] %v713_v55  ;;  %737 = vst [vmem:[%s1549_s3 + $0x70] sm:$0xff] %v721_v56  ;;  %v999_v61 = vadd.f32 %v998_v58, %v997_v53  ;;  %v1023_v62 = vadd.f32 %v1022_v60, %v1021_v54  ;;  %742 = sbr.rel (%p953_p11) target bundleno = 328 (0x148), region = 78 }
 0x139   : > { %v714_v63 = vadd.f32 %v999_v61, %v377_v57  ;;  %v722_v0 = vadd.f32 %v1023_v62, %v385_v59 }
 0x13b   : > { %730 = vst [vmem:[%s1549_s3 + $0x38] sm:$0xff] %v714_v63  ;;  %738 = vst [vmem:[%s1549_s3 + $0x78] sm:$0xff] %v722_v0 }
 0x13c   : > { %v743_v1 = vld [vmem:[%s1549_s3] sm:$0xff]  ;;  %v744_v3 = vld [vmem:[%s1549_s3 + $0x8] sm:$0xff]  ;;  %v745_v6 = vld [vmem:[%s1549_s3 + $0x10] sm:$0xff] }
 0x13d   : > { %v954_v2 = vld [vmem:[%s1548_s2] ss:$0 sm:$0xff]  ;;  %v746_v7 = vld [vmem:[%s1549_s3 + $0x18] sm:$0xff]  ;;  %v748_v12 = vld [vmem:[%s1549_s3 + $0x28] sm:$0xff] }
 0x13e   : > { %v766_v4 = vadd.f32 %v954_v2, %v743_v1  ;;  %v767_v5 = vadd.f32 %v954_v2, %v744_v3  ;;  %v747_v8 = vld [vmem:[%s1549_s3 + $0x20] sm:$0xff]  ;;  %v768_v9 = vadd.f32 %v954_v2, %v745_v6  ;;  %v769_v10 = vadd.f32 %v954_v2, %v746_v7  ;;  %v749_v13 = vld [vmem:[%s1549_s3 + $0x30] sm:$0xff]  ;;  %v752_v19 = vld [vmem:[%s1549_s3 + $0x48] sm:$0xff] }
 0x13f   : > { %v770_v11 = vadd.f32 %v954_v2, %v747_v8  ;;  %v771_v15 = vadd.f32 %v954_v2, %v748_v12  ;;  %v772_v16 = vadd.f32 %v954_v2, %v749_v13  ;;  %v751_v18 = vld [vmem:[%s1549_s3 + $0x40] sm:$0xff]  ;;  %v753_v20 = vld [vmem:[%s1549_s3 + $0x50] sm:$0xff]  ;;  %v775_v22 = vadd.f32 %v954_v2, %v752_v19  ;;  %v754_v24 = vld [vmem:[%s1549_s3 + $0x58] sm:$0xff] }
 0x140   : > { %782 = vst [vmem:[%s1549_s3] sm:$0xff] %v766_v4  ;;  %783 = vst [vmem:[%s1549_s3 + $0x8] sm:$0xff] %v767_v5  ;;  %v774_v21 = vadd.f32 %v954_v2, %v751_v18  ;;  %v776_v23 = vadd.f32 %v954_v2, %v753_v20  ;;  %v755_v25 = vld [vmem:[%s1549_s3 + $0x60] sm:$0xff]  ;;  %v756_v26 = vld [vmem:[%s1549_s3 + $0x68] sm:$0xff]  ;;  %v777_v27 = vadd.f32 %v954_v2, %v754_v24 }
 0x141   : > { %784 = vst [vmem:[%s1549_s3 + $0x10] sm:$0xff] %v768_v9  ;;  %785 = vst [vmem:[%s1549_s3 + $0x18] sm:$0xff] %v769_v10  ;;  %v778_v28 = vadd.f32 %v954_v2, %v755_v25  ;;  %v779_v29 = vadd.f32 %v954_v2, %v756_v26  ;;  %v757_v30 = vld [vmem:[%s1549_s3 + $0x70] sm:$0xff] }
 0x142   : > { %v750_v14 = vld [vmem:[%s1549_s3 + $0x38] sm:$0xff]  ;;  %786 = vst [vmem:[%s1549_s3 + $0x20] sm:$0xff] %v770_v11  ;;  %787 = vst [vmem:[%s1549_s3 + $0x28] sm:$0xff] %v771_v15  ;;  %v780_v32 = vadd.f32 %v954_v2, %v757_v30 }
 0x143   : > { %v773_v17 = vadd.f32 %v954_v2, %v750_v14  ;;  %788 = vst [vmem:[%s1549_s3 + $0x30] sm:$0xff] %v772_v16  ;;  %v758_v31 = vld [vmem:[%s1549_s3 + $0x78] sm:$0xff]  ;;  %790 = vst [vmem:[%s1549_s3 + $0x40] sm:$0xff] %v774_v21 }
 0x144   : > { %791 = vst [vmem:[%s1549_s3 + $0x48] sm:$0xff] %v775_v22  ;;  %792 = vst [vmem:[%s1549_s3 + $0x50] sm:$0xff] %v776_v23  ;;  %v781_v33 = vadd.f32 %v954_v2, %v758_v31 }
 0x145   : > { %789 = vst [vmem:[%s1549_s3 + $0x38] sm:$0xff] %v773_v17  ;;  %793 = vst [vmem:[%s1549_s3 + $0x58] sm:$0xff] %v777_v27 }
 0x146   : > { %794 = vst [vmem:[%s1549_s3 + $0x60] sm:$0xff] %v778_v28  ;;  %795 = vst [vmem:[%s1549_s3 + $0x68] sm:$0xff] %v779_v29 }
 0x147   : > { %796 = vst [vmem:[%s1549_s3 + $0x70] sm:$0xff] %v780_v32  ;;  %797 = vst [vmem:[%s1549_s3 + $0x78] sm:$0xff] %v781_v33 }
 0x148 PF: > { %s13_s16 = sadd.s32 1, %s1159_s16   ;;  %s1550_s12 = smov %s1147_s13 }
 0x149   : > { %p10_p12 = scmp.ge.s32.totalorder %s13_s16, 6   ;;  %s1551_s13 = smov %s1217_s20 }
 0x14a   : > { %s1552_s14 = smov %s1155_s15  ;;  %s1553_s15 = smov %s1555_s17 }
 0x14b   :  { %12 = sbr.rel (!%p10_p12) target bundleno = 3 (0x3), region = 119 }

// kernel: forward.49
= control target key start
LH: loop header
LB: loop body
LE: loop exit
PB: predicated region body
PF: predicated region fallthrough
CT: control target
= control target key end

     0   :  { %s1031_s12 = smov 0   ;;  %s1033_s13 = smov 0   ;;  %s1261_s0 = inlined_call_operand.vmem [shape: bf16[32,2048], index: 0, kind: input, shape index: {}]   ;;  %s1262_s1 = inlined_call_operand.vmem [shape: bf16[2048,256], index: 1, kind: input, shape index: {}]   ;;  %s1263_s2 = inlined_call_operand.vmem [shape: f32[1,256], index: 2, kind: input, shape index: {}]   ;;  %s1264_s3 = inlined_call_operand.vmem [shape: f32[32,256], index: 3, kind: output, shape index: {}]  }
   0x1   :  { %s1035_s14 = smov 0   ;;  %s1037_s15 = smov 0  }
   0x2   :  { %s1039_s16 = smov 0  }
   0x3 LB: > { %s25_s17 = sadd.s32 1, %s1004_s15  ;;  %p48_p1 = scmp.ne.s32.totalorder %s996_s13, %s992_s12  ;;  %s1008_s16 = sphi %s1039_s16, %s13_s16   ;;  %s1004_s15 = sphi %s1037_s15, %s1268_s15   ;;  %s1000_s14 = sphi %s1035_s14, %s1267_s14   ;;  %s996_s13 = sphi %s1033_s13, %s1266_s13   ;;  %s992_s12 = sphi %s1031_s12, %s1265_s12  }
   0x4   : > { %p26_p0 = scmp.ge.s32.totalorder %s25_s17, 8  ;;  %p49_p2 = scmp.eq.s32.totalorder %s1008_s16, 0 }
   0x5   : > { %s41_s19 = sadd.s32 1, %s996_s13  ;;  %p790_p5 = scmp.ge.s32.totalorder %s1008_s16, 8 }
   0x6   : > { %s1270_s17 = smov (%p26_p0, %s25_s17), 0  ;;  %p50_p3 = por %p49_p2, %p48_p1 }
   0x7   : > { %s37_s18 = ssub.s32 %s1004_s15, %s1270_s17  ;;  %164 = sbr.rel (%p790_p5) target bundleno = 20 (0x14), region = 20 }
   0x8   : > { %p39_p4 = scmp.eq.s32.totalorder %s37_s18, 0 }
   0xa   : > { %s1066_s20 = scalar_select %p39_p4, %s996_s13, %s41_s19  }
   0xc   : > { %167 = sbr.rel (!%p50_p3) target bundleno = 20 (0x14), region = 24  ;;  %s169_s21 = sand.u32 (%p50_p3), 1, %s996_s13  }
   0xd   : > { %s841_s22 = sshll.u32 (%p50_p3), %s1004_s15, 3  ;;  %s791_s23 = sshll.u32 (%p50_p3), %s169_s21, 5 }
   0xe   : > { %s177_s26 = scalar_lea.vmem (%p50_p3), %s1261_s0, %s841_s22  ;;  %s171_s27 = scalar_lea.vmem (%p50_p3), [#allocation2], %s791_s23 }
   0xf   : > { %v212_v0 = vld [vmem:[%s177_s26] sm:$0xff] (%p50_p3) }
  0x10   : > { %v214_v1 = vld [vmem:[%s177_s26 + $0x40] sm:$0xff] (%p50_p3)  ;;  %213 = vst [vmem:[%s171_s27] sm:$0xff] (%p50_p3), %v212_v0 }
  0x11   : > { %v216_v2 = vld [vmem:[%s177_s26 + $0x80] sm:$0xff]  ;;  %215 = vst [vmem:[%s171_s27 + $0x8] sm:$0xff] %v214_v1 }
  0x12   : > { %217 = vst [vmem:[%s171_s27 + $0x10] sm:$0xff] %v216_v2  ;;  %v218_v3 = vld [vmem:[%s177_s26 + $0xc0] sm:$0xff] }
  0x13   : > { %219 = vst [vmem:[%s171_s27 + $0x18] sm:$0xff] %v218_v3 }
  0x14 PF: > { %p794_p6 = scmp.ge.s32.totalorder %s1008_s16, 1  ;;  %p239_p7 = scmp.lt.s32.totalorder %s1008_s16, 9 }
  0x16   : > { %p240_p8 = pnand %p794_p6, %p239_p7 }
  0x17   : > { %s246_s28 = sand.u32 (!%p240_p8), 1, %s992_s12   ;;  %s796_s29 = sshll.u32 (!%p240_p8), %s1000_s14, 5 }
  0x18   : > { %243 = sbr.rel (%p240_p8) target bundleno = 320 (0x140), region = 66  ;;  %s795_s30 = sshll.u32 (!%p240_p8), %s246_s28, 5 }
  0x19   : > { %p292_p9 = scmp.lt.s32.totalorder (!%p240_p8), %s796_s29, 255  ;;  %s1083_s8 = scalar_lea.vmem (!%p240_p8), [#allocation2], %s795_s30 }
  0x1a   : > { %p799_p10 = scmp.ne.s32.totalorder (!%p240_p8), %s1000_s14, 0 }
  0x1d   : > { %s1272_s29 = smov (!%p292_p9, %s796_s29), 255  ;;  %322 = sbr.rel (%p799_p10) target bundleno = 39 (0x27), region = 74 }
  0x1e   : > { %s842_s4 = sshll.u32 %s1272_s29, 3 }
  0x1f   : > { %s1081_s7 = scalar_lea.vmem %s1262_s1, %s842_s4 }
  0x22   : > { %v1010_v4 = vmov 0.0  }
  0x23   : > { %323 = vst [vmem:[%s1264_s3] sm:$0xff] %v1010_v4  ;;  %324 = vst [vmem:[%s1264_s3 + $0x8] sm:$0xff] %v1010_v4 }
  0x24   : > { %325 = vst [vmem:[%s1264_s3 + $0x10] sm:$0xff] %v1010_v4  ;;  %326 = vst [vmem:[%s1264_s3 + $0x18] sm:$0xff] %v1010_v4 }
  0x25   : > { %327 = vst [vmem:[%s1264_s3 + $0x20] sm:$0xff] %v1010_v4  ;;  %328 = vst [vmem:[%s1264_s3 + $0x28] sm:$0xff] %v1010_v4 }
  0x26   : > { %329 = vst [vmem:[%s1264_s3 + $0x30] sm:$0xff] %v1010_v4  ;;  %330 = vst [vmem:[%s1264_s3 + $0x38] sm:$0xff] %v1010_v4 }
  0x27 PF: > { %v916_v5 = vld [vmem:[%s1081_s7 + $0x74] ss:$8 sps:$4 sm:$0xff]   ;;  %v918_v6 = vld [vmem:[%s1081_s7 + $0x70] ss:$8 sps:$4 sm:$0xff]   ;;  %v919_v7 = vld [vmem:[%s1081_s7 + $0x64] ss:$8 sps:$4 sm:$0xff]  }
  0x28   : > { %555 = vmatprep.subr.bf16.mxu0 %v916_v5  ;;  %843 = vmatprep.subr.bf16.mxu1 %v916_v5  ;;  %v921_v8 = vld [vmem:[%s1081_s7 + $0x60] ss:$8 sps:$4 sm:$0xff]   ;;  %v922_v9 = vld [vmem:[%s1081_s7 + $0x54] ss:$8 sps:$4 sm:$0xff]   ;;  %v924_v10 = vld [vmem:[%s1081_s7 + $0x50] ss:$8 sps:$4 sm:$0xff]  }
  0x29   : > { %556 = vmatpush1.bf16.msra.mxu0 %v918_v6  ;;  %859 = vmatpush1.bf16.msra.mxu1 %v918_v6  ;;  %v925_v11 = vld [vmem:[%s1081_s7 + $0x44] ss:$8 sps:$4 sm:$0xff]   ;;  %v927_v12 = vld [vmem:[%s1081_s7 + $0x40] ss:$8 sps:$4 sm:$0xff]   ;;  %v928_v13 = vld [vmem:[%s1081_s7 + $0x34] ss:$8 sps:$4 sm:$0xff]  }
  0x2a   : > { %557 = vmatprep.subr.bf16.mxu0 %v919_v7  ;;  %844 = vmatprep.subr.bf16.mxu1 %v919_v7  ;;  %v930_v14 = vld [vmem:[%s1081_s7 + $0x30] ss:$8 sps:$4 sm:$0xff]   ;;  %v931_v15 = vld [vmem:[%s1081_s7 + $0x24] ss:$8 sps:$4 sm:$0xff]   ;;  %v933_v16 = vld [vmem:[%s1081_s7 + $0x20] ss:$8 sps:$4 sm:$0xff]  }
  0x2b   : > { %v934_v17 = vld [vmem:[%s1081_s7 + $0x14] ss:$8 sps:$4 sm:$0xff]   ;;  %v966_v18 = vld [vmem:[%s1083_s8 + $0x4] ss:$8 sps:$4 sm:$0xff]   ;;  %v936_v19 = vld [vmem:[%s1081_s7 + $0x10] ss:$8 sps:$4 sm:$0xff]  }
  0x2c   : > { %v969_v20 = vld [vmem:[%s1083_s8 + $0x14] ss:$8 sps:$4 sm:$0xff]   ;;  %v937_v21 = vld [vmem:[%s1081_s7 + $0x4] ss:$8 sps:$4 sm:$0xff]   ;;  %587 = vmatprep.mubr.bf16.mxu0 %v966_v18  ;;  %v939_v22 = vld [vmem:[%s1081_s7] ss:$8 sps:$4 sm:$0xff]  }
  0x2d   : > { %558 = vmatpush1.bf16.msra.mxu0 %v921_v8  ;;  %860 = vmatpush1.bf16.msra.mxu1 %v921_v8  ;;  %v940_v23 = vld [vmem:[%s1081_s7 + $0xf4] ss:$8 sps:$4 sm:$0xff]   ;;  %v942_v24 = vld [vmem:[%s1081_s7 + $0xf0] ss:$8 sps:$4 sm:$0xff]   ;;  %v943_v25 = vld [vmem:[%s1081_s7 + $0xe4] ss:$8 sps:$4 sm:$0xff]  }
  0x2e   : > { %559 = vmatprep.subr.bf16.mxu0 %v922_v9  ;;  %845 = vmatprep.subr.bf16.mxu1 %v922_v9  ;;  %v945_v26 = vld [vmem:[%s1081_s7 + $0xe0] ss:$8 sps:$4 sm:$0xff]   ;;  %v946_v27 = vld [vmem:[%s1081_s7 + $0xd4] ss:$8 sps:$4 sm:$0xff]   ;;  %v948_v28 = vld [vmem:[%s1081_s7 + $0xd0] ss:$8 sps:$4 sm:$0xff]  }
  0x2f   : > { %597 = vmatprep.mubr.bf16.mxu1 %v969_v20  ;;  %v949_v29 = vld [vmem:[%s1081_s7 + $0xc4] ss:$8 sps:$4 sm:$0xff]   ;;  %v951_v30 = vld [vmem:[%s1081_s7 + $0xc0] ss:$8 sps:$4 sm:$0xff]   ;;  %v952_v31 = vld [vmem:[%s1081_s7 + $0xb4] ss:$8 sps:$4 sm:$0xff]  }
  0x30   : > { %v954_v32 = vld [vmem:[%s1081_s7 + $0xb0] ss:$8 sps:$4 sm:$0xff]   ;;  %v955_v33 = vld [vmem:[%s1081_s7 + $0xa4] ss:$8 sps:$4 sm:$0xff]   ;;  %v957_v34 = vld [vmem:[%s1081_s7 + $0xa0] ss:$8 sps:$4 sm:$0xff]  }
  0x31   : > { %560 = vmatpush1.bf16.msra.mxu0 %v924_v10  ;;  %861 = vmatpush1.bf16.msra.mxu1 %v924_v10  ;;  %v958_v35 = vld [vmem:[%s1081_s7 + $0x94] ss:$8 sps:$4 sm:$0xff]   ;;  %v960_v36 = vld [vmem:[%s1081_s7 + $0x90] ss:$8 sps:$4 sm:$0xff]   ;;  %v961_v37 = vld [vmem:[%s1081_s7 + $0x84] ss:$8 sps:$4 sm:$0xff]  }
  0x32   : > { %561 = vmatprep.subr.bf16.mxu0 %v925_v11  ;;  %846 = vmatprep.subr.bf16.mxu1 %v925_v11  ;;  %v963_v38 = vld [vmem:[%s1081_s7 + $0x80] ss:$8 sps:$4 sm:$0xff]   ;;  %v967_v40 = vld [vmem:[%s1083_s8 + $0x10] ss:$8 sps:$4 sm:$0xff]   ;;  %p836_p11 = scmp.ne.s32.totalorder %s1000_s14, 7 }
  0x33   : > { %v964_v39 = vld [vmem:[%s1083_s8] ss:$8 sps:$4 sm:$0xff]   ;;  %v333_v51 = vld [vmem:[%s1264_s3 + $0x10] sm:$0xff]  ;;  %v334_v57 = vld [vmem:[%s1264_s3 + $0x18] sm:$0xff] }
  0x34   : > { %v331_v41 = vld [vmem:[%s1264_s3] sm:$0xff]  ;;  %v332_v45 = vld [vmem:[%s1264_s3 + $0x8] sm:$0xff]  ;;  %v337_v52 = vld [vmem:[%s1264_s3 + $0x30] sm:$0xff] }
  0x35   : > { %562 = vmatpush1.bf16.msra.mxu0 %v927_v12  ;;  %862 = vmatpush1.bf16.msra.mxu1 %v927_v12  ;;  %v335_v42 = vld [vmem:[%s1264_s3 + $0x20] sm:$0xff]  ;;  %v336_v46 = vld [vmem:[%s1264_s3 + $0x28] sm:$0xff]  ;;  %v338_v58 = vld [vmem:[%s1264_s3 + $0x38] sm:$0xff] }
  0x36   : > { %563 = vmatprep.subr.bf16.mxu0 %v928_v13  ;;  %847 = vmatprep.subr.bf16.mxu1 %v928_v13 }
  0x39   : > { %564 = vmatpush1.bf16.msra.mxu0 %v930_v14  ;;  %863 = vmatpush1.bf16.msra.mxu1 %v930_v14 }
  0x3a   : > { %565 = vmatprep.subr.bf16.mxu0 %v931_v15  ;;  %848 = vmatprep.subr.bf16.mxu1 %v931_v15 }
  0x3d   : > { %566 = vmatpush1.bf16.msra.mxu0 %v933_v16  ;;  %864 = vmatpush1.bf16.msra.mxu1 %v933_v16 }
  0x3e   : > { %567 = vmatprep.subr.bf16.mxu0 %v934_v17  ;;  %849 = vmatprep.subr.bf16.mxu1 %v934_v17 }
  0x41   : > { %568 = vmatpush1.bf16.msra.mxu0 %v936_v19  ;;  %865 = vmatpush1.bf16.msra.mxu1 %v936_v19 }
  0x42   : > { %569 = vmatprep.subr.bf16.mxu0 %v937_v21  ;;  %850 = vmatprep.subr.bf16.mxu1 %v937_v21 }
  0x45   : > { %570 = vmatpush1.bf16.msra.mxu0 %v939_v22  ;;  %866 = vmatpush1.bf16.msra.mxu1 %v939_v22 }
  0x46   : > { %571 = vmatprep.subr.bf16.mxu0 %v940_v23  ;;  %851 = vmatprep.subr.bf16.mxu1 %v940_v23 }
  0x49   : > { %572 = vmatpush2.bf16.msra.mxu0 %v942_v24  ;;  %867 = vmatpush2.bf16.msra.mxu1 %v942_v24 }
  0x4a   : > { %573 = vmatprep.subr.bf16.mxu0 %v943_v25  ;;  %852 = vmatprep.subr.bf16.mxu1 %v943_v25 }
  0x4d   : > { %574 = vmatpush2.bf16.msra.mxu0 %v945_v26  ;;  %868 = vmatpush2.bf16.msra.mxu1 %v945_v26 }
  0x4e   : > { %575 = vmatprep.subr.bf16.mxu0 %v946_v27  ;;  %853 = vmatprep.subr.bf16.mxu1 %v946_v27 }
  0x51   : > { %576 = vmatpush2.bf16.msra.mxu0 %v948_v28  ;;  %869 = vmatpush2.bf16.msra.mxu1 %v948_v28 }
  0x52   : > { %577 = vmatprep.subr.bf16.mxu0 %v949_v29  ;;  %854 = vmatprep.subr.bf16.mxu1 %v949_v29 }
  0x55   : > { %578 = vmatpush2.bf16.msra.mxu0 %v951_v30  ;;  %870 = vmatpush2.bf16.msra.mxu1 %v951_v30 }
  0x56   : > { %579 = vmatprep.subr.bf16.mxu0 %v952_v31  ;;  %855 = vmatprep.subr.bf16.mxu1 %v952_v31 }
  0x59   : > { %580 = vmatpush2.bf16.msra.mxu0 %v954_v32  ;;  %871 = vmatpush2.bf16.msra.mxu1 %v954_v32 }
  0x5a   : > { %581 = vmatprep.subr.bf16.mxu0 %v955_v33  ;;  %856 = vmatprep.subr.bf16.mxu1 %v955_v33 }
  0x5d   : > { %582 = vmatpush2.bf16.msra.mxu0 %v957_v34  ;;  %872 = vmatpush2.bf16.msra.mxu1 %v957_v34 }
  0x5e   : > { %583 = vmatprep.subr.bf16.mxu0 %v958_v35  ;;  %857 = vmatprep.subr.bf16.mxu1 %v958_v35 }
  0x61   : > { %584 = vmatpush2.bf16.msra.mxu0 %v960_v36  ;;  %873 = vmatpush2.bf16.msra.mxu1 %v960_v36 }
  0x62   : > { %585 = vmatprep.subr.bf16.mxu0 %v961_v37  ;;  %858 = vmatprep.subr.bf16.mxu1 %v961_v37 }
  0x65   : > { %586 = vmatpush2.bf16.msra.mxu0 %v963_v38  ;;  %874 = vmatpush2.bf16.msra.mxu1 %v963_v38 }
  0x68   : > { %588 = vmatmul.mubr.bf16.vlgmr.msra.gmra.mxu0 %v964_v39  ;;  %598 = vmatmul.mubr.bf16.vlgmr.msra.gmra.mxu1 %v967_v40 }
 0x128   : > { %v589_v43 = vpop.f32.mrf.mxu0  ;;  %v599_v44 = vpop.f32.mrf.mxu1 }
 0x129   : > { %v608_v47 = vadd.f32 %v589_v43, %v331_v41  ;;  %v612_v48 = vadd.f32 %v599_v44, %v335_v42 }
 0x12a   : > { %v591_v49 = vpop.f32.mrf.mxu0  ;;  %v601_v50 = vpop.f32.mrf.mxu1 }
 0x12b   : > { %616 = vst [vmem:[%s1264_s3] sm:$0xff] %v608_v47  ;;  %620 = vst [vmem:[%s1264_s3 + $0x20] sm:$0xff] %v612_v48  ;;  %v609_v53 = vadd.f32 %v591_v49, %v332_v45  ;;  %v613_v54 = vadd.f32 %v601_v50, %v336_v46 }
 0x12c   : > { %v593_v55 = vpop.f32.mrf.mxu0  ;;  %v603_v56 = vpop.f32.mrf.mxu1 }
 0x12d   : > { %617 = vst [vmem:[%s1264_s3 + $0x8] sm:$0xff] %v609_v53  ;;  %621 = vst [vmem:[%s1264_s3 + $0x28] sm:$0xff] %v613_v54  ;;  %v610_v59 = vadd.f32 %v593_v55, %v333_v51  ;;  %v614_v60 = vadd.f32 %v603_v56, %v337_v52  ;;  %627 = sbr.rel (%p836_p11) target bundleno = 320 (0x140), region = 78 }
 0x12e   : > { %v595_v61 = vpop.f32.mrf.mxu0  ;;  %v605_v62 = vpop.f32.mrf.mxu1 }
 0x12f   : > { %618 = vst [vmem:[%s1264_s3 + $0x10] sm:$0xff] %v610_v59  ;;  %622 = vst [vmem:[%s1264_s3 + $0x30] sm:$0xff] %v614_v60  ;;  %v611_v63 = vadd.f32 %v595_v61, %v334_v57  ;;  %v615_v0 = vadd.f32 %v605_v62, %v338_v58 }
 0x131   : > { %619 = vst [vmem:[%s1264_s3 + $0x18] sm:$0xff] %v611_v63  ;;  %623 = vst [vmem:[%s1264_s3 + $0x38] sm:$0xff] %v615_v0 }
 0x132   : > { %v638_v1 = vlaneseq  ;;  %v636_v3 = vld [vmem:[%s1263_s2] sm:$0x3] }
 0x133   : > { %v628_v4 = vld [vmem:[%s1264_s3] sm:$0xff] }
 0x134   : > { %v639_v2 = vshrl.u32 %v638_v1, 7  ;;  %v629_v6 = vld [vmem:[%s1264_s3 + $0x8] sm:$0xff]  ;;  %v632_v10 = vld [vmem:[%s1264_s3 + $0x20] sm:$0xff] }
 0x135   : > { %v633_v13 = vld [vmem:[%s1264_s3 + $0x28] sm:$0xff] }
 0x136   : > { %v640_v5 = vsub.s32 0, %v639_v2  ;;  %v644_v7 = vsub.s32 1, %v639_v2  ;;  %v630_v8 = vld [vmem:[%s1264_s3 + $0x10] sm:$0xff] }
 0x137   : > { %v634_v14 = vld [vmem:[%s1264_s3 + $0x30] sm:$0xff] }
 0x138   : > { %v631_v9 = vld [vmem:[%s1264_s3 + $0x18] sm:$0xff]  ;;  %v641_v11 = vrot.slane %v636_v3, %v640_v5  ;;  %v645_v12 = vrot.slane %v636_v3, %v644_v7 }
 0x139   : > { %v635_v15 = vld [vmem:[%s1264_s3 + $0x38] sm:$0xff] }
 0x13a   : > { %v648_v16 = vadd.f32 %v641_v11, %v628_v4  ;;  %v649_v17 = vadd.f32 %v645_v12, %v629_v6  ;;  %v650_v18 = vadd.f32 %v641_v11, %v630_v8  ;;  %v651_v19 = vadd.f32 %v645_v12, %v631_v9 }
 0x13b   : > { %v652_v20 = vadd.f32 %v641_v11, %v632_v10  ;;  %v653_v21 = vadd.f32 %v645_v12, %v633_v13  ;;  %v654_v22 = vadd.f32 %v641_v11, %v634_v14  ;;  %v655_v23 = vadd.f32 %v645_v12, %v635_v15 }
 0x13c   : > { %656 = vst [vmem:[%s1264_s3] sm:$0xff] %v648_v16  ;;  %657 = vst [vmem:[%s1264_s3 + $0x8] sm:$0xff] %v649_v17 }
 0x13d   : > { %658 = vst [vmem:[%s1264_s3 + $0x10] sm:$0xff] %v650_v18  ;;  %659 = vst [vmem:[%s1264_s3 + $0x18] sm:$0xff] %v651_v19 }
 0x13e   : > { %660 = vst [vmem:[%s1264_s3 + $0x20] sm:$0xff] %v652_v20  ;;  %661 = vst [vmem:[%s1264_s3 + $0x28] sm:$0xff] %v653_v21 }
 0x13f   : > { %662 = vst [vmem:[%s1264_s3 + $0x30] sm:$0xff] %v654_v22  ;;  %663 = vst [vmem:[%s1264_s3 + $0x38] sm:$0xff] %v655_v23 }
 0x140 PF: > { %s13_s16 = sadd.s32 1, %s1008_s16   ;;  %s1265_s12 = smov %s996_s13 }
 0x141   : > { %p10_p12 = scmp.ge.s32.totalorder %s13_s16, 10   ;;  %s1266_s13 = smov %s1066_s20 }
 0x142   : > { %s1267_s14 = smov %s1004_s15  ;;  %s1268_s15 = smov %s1270_s17 }
 0x143   :  { %12 = sbr.rel (!%p10_p12) target bundleno = 3 (0x3), region = 119 }

// kernel: forward.50
= control target key start
LH: loop header
LB: loop body
LE: loop exit
PB: predicated region body
PF: predicated region fallthrough
CT: control target
= control target key end

     0   :  { %s1031_s12 = smov 0   ;;  %s1033_s13 = smov 0   ;;  %s1261_s0 = inlined_call_operand.vmem [shape: bf16[32,2304], index: 0, kind: input, shape index: {}]   ;;  %s1262_s1 = inlined_call_operand.vmem [shape: bf16[2304,256], index: 1, kind: input, shape index: {}]   ;;  %s1263_s2 = inlined_call_operand.vmem [shape: f32[1,256], index: 2, kind: input, shape index: {}]   ;;  %s1264_s3 = inlined_call_operand.vmem [shape: f32[32,256], index: 3, kind: output, shape index: {}]  }
   0x1   :  { %s1035_s14 = smov 0   ;;  %s1037_s15 = smov 0  }
   0x2   :  { %s1039_s16 = smov 0  }
   0x3 LB: > { %s25_s17 = sadd.s32 1, %s1004_s15  ;;  %p48_p1 = scmp.ne.s32.totalorder %s996_s13, %s992_s12  ;;  %s1008_s16 = sphi %s1039_s16, %s13_s16   ;;  %s1004_s15 = sphi %s1037_s15, %s1268_s15   ;;  %s1000_s14 = sphi %s1035_s14, %s1267_s14   ;;  %s996_s13 = sphi %s1033_s13, %s1266_s13   ;;  %s992_s12 = sphi %s1031_s12, %s1265_s12  }
   0x4   : > { %p26_p0 = scmp.ge.s32.totalorder %s25_s17, 9  ;;  %p49_p2 = scmp.eq.s32.totalorder %s1008_s16, 0 }
   0x5   : > { %s41_s19 = sadd.s32 1, %s996_s13  ;;  %p790_p5 = scmp.ge.s32.totalorder %s1008_s16, 9 }
   0x6   : > { %s1270_s17 = smov (%p26_p0, %s25_s17), 0  ;;  %p50_p3 = por %p49_p2, %p48_p1 }
   0x7   : > { %s37_s18 = ssub.s32 %s1004_s15, %s1270_s17  ;;  %164 = sbr.rel (%p790_p5) target bundleno = 18 (0x12), region = 20 }
   0x8   : > { %p39_p4 = scmp.eq.s32.totalorder %s37_s18, 0 }
   0xa   : > { %s1066_s20 = scalar_select %p39_p4, %s996_s13, %s41_s19  }
   0xc   : > { %167 = sbr.rel (!%p50_p3) target bundleno = 18 (0x12), region = 24  ;;  %s169_s21 = sand.u32 (%p50_p3), 1, %s996_s13  }
   0xd   : > { %s841_s22 = sshll.u32 (%p50_p3), %s1004_s15, 3  ;;  %s791_s23 = sshll.u32 (%p50_p3), %s169_s21, 5 }
   0xe   : > { %s177_s26 = scalar_lea.vmem (%p50_p3), %s1261_s0, %s841_s22  ;;  %s171_s27 = scalar_lea.vmem (%p50_p3), [#allocation2], %s791_s23 }
   0xf   : > { %v212_v0 = vld [vmem:[%s177_s26] sm:$0xff] (%p50_p3)  ;;  %v214_v1 = vld [vmem:[%s177_s26 + $0x48] sm:$0xff] (%p50_p3)  ;;  %v216_v2 = vld [vmem:[%s177_s26 + $0x90] sm:$0xff] (%p50_p3) }
  0x10   : > { %213 = vst [vmem:[%s171_s27] sm:$0xff] (%p50_p3), %v212_v0  ;;  %215 = vst [vmem:[%s171_s27 + $0x8] sm:$0xff] (%p50_p3), %v214_v1  ;;  %v218_v3 = vld [vmem:[%s177_s26 + $0xd8] sm:$0xff] (%p50_p3) }
  0x11   : > { %217 = vst [vmem:[%s171_s27 + $0x10] sm:$0xff] %v216_v2  ;;  %219 = vst [vmem:[%s171_s27 + $0x18] sm:$0xff] %v218_v3 }
  0x12 PF: > { %p794_p6 = scmp.ge.s32.totalorder %s1008_s16, 1  ;;  %p239_p7 = scmp.lt.s32.totalorder %s1008_s16, 10 }
  0x14   : > { %p240_p8 = pnand %p794_p6, %p239_p7 }
  0x15   : > { %s246_s28 = sand.u32 (!%p240_p8), 1, %s992_s12   ;;  %s796_s29 = sshll.u32 (!%p240_p8), %s1000_s14, 5 }
  0x16   : > { %243 = sbr.rel (%p240_p8) target bundleno = 318 (0x13e), region = 66  ;;  %s795_s30 = sshll.u32 (!%p240_p8), %s246_s28, 5 }
  0x17   : > { %p292_p9 = scmp.lt.s32.totalorder (!%p240_p8), %s796_s29, 287  ;;  %s1083_s8 = scalar_lea.vmem (!%p240_p8), [#allocation2], %s795_s30 }
  0x18   : > { %p799_p10 = scmp.ne.s32.totalorder (!%p240_p8), %s1000_s14, 0 }
  0x1b   : > { %s1272_s29 = smov (!%p292_p9, %s796_s29), 287  ;;  %322 = sbr.rel (%p799_p10) target bundleno = 37 (0x25), region = 74 }
  0x1c   : > { %s842_s4 = sshll.u32 %s1272_s29, 3 }
  0x1d   : > { %s1081_s7 = scalar_lea.vmem %s1262_s1, %s842_s4 }
  0x20   : > { %v1010_v4 = vmov 0.0  }
  0x21   : > { %323 = vst [vmem:[%s1264_s3] sm:$0xff] %v1010_v4  ;;  %324 = vst [vmem:[%s1264_s3 + $0x8] sm:$0xff] %v1010_v4 }
  0x22   : > { %325 = vst [vmem:[%s1264_s3 + $0x10] sm:$0xff] %v1010_v4  ;;  %326 = vst [vmem:[%s1264_s3 + $0x18] sm:$0xff] %v1010_v4 }
  0x23   : > { %327 = vst [vmem:[%s1264_s3 + $0x20] sm:$0xff] %v1010_v4  ;;  %328 = vst [vmem:[%s1264_s3 + $0x28] sm:$0xff] %v1010_v4 }
  0x24   : > { %329 = vst [vmem:[%s1264_s3 + $0x30] sm:$0xff] %v1010_v4  ;;  %330 = vst [vmem:[%s1264_s3 + $0x38] sm:$0xff] %v1010_v4 }
  0x25 PF: > { %v916_v5 = vld [vmem:[%s1081_s7 + $0x74] ss:$8 sps:$4 sm:$0xff]   ;;  %v918_v6 = vld [vmem:[%s1081_s7 + $0x70] ss:$8 sps:$4 sm:$0xff]   ;;  %v919_v7 = vld [vmem:[%s1081_s7 + $0x64] ss:$8 sps:$4 sm:$0xff]  }
  0x26   : > { %555 = vmatprep.subr.bf16.mxu0 %v916_v5  ;;  %843 = vmatprep.subr.bf16.mxu1 %v916_v5  ;;  %v921_v8 = vld [vmem:[%s1081_s7 + $0x60] ss:$8 sps:$4 sm:$0xff]   ;;  %v922_v9 = vld [vmem:[%s1081_s7 + $0x54] ss:$8 sps:$4 sm:$0xff]   ;;  %v924_v10 = vld [vmem:[%s1081_s7 + $0x50] ss:$8 sps:$4 sm:$0xff]  }
  0x27   : > { %556 = vmatpush1.bf16.msra.mxu0 %v918_v6  ;;  %859 = vmatpush1.bf16.msra.mxu1 %v918_v6  ;;  %v925_v11 = vld [vmem:[%s1081_s7 + $0x44] ss:$8 sps:$4 sm:$0xff]   ;;  %v927_v12 = vld [vmem:[%s1081_s7 + $0x40] ss:$8 sps:$4 sm:$0xff]   ;;  %v928_v13 = vld [vmem:[%s1081_s7 + $0x34] ss:$8 sps:$4 sm:$0xff]  }
  0x28   : > { %557 = vmatprep.subr.bf16.mxu0 %v919_v7  ;;  %844 = vmatprep.subr.bf16.mxu1 %v919_v7  ;;  %v930_v14 = vld [vmem:[%s1081_s7 + $0x30] ss:$8 sps:$4 sm:$0xff]   ;;  %v931_v15 = vld [vmem:[%s1081_s7 + $0x24] ss:$8 sps:$4 sm:$0xff]   ;;  %v933_v16 = vld [vmem:[%s1081_s7 + $0x20] ss:$8 sps:$4 sm:$0xff]  }
  0x29   : > { %v934_v17 = vld [vmem:[%s1081_s7 + $0x14] ss:$8 sps:$4 sm:$0xff]   ;;  %v966_v18 = vld [vmem:[%s1083_s8 + $0x4] ss:$8 sps:$4 sm:$0xff]   ;;  %v936_v19 = vld [vmem:[%s1081_s7 + $0x10] ss:$8 sps:$4 sm:$0xff]  }
  0x2a   : > { %v969_v20 = vld [vmem:[%s1083_s8 + $0x14] ss:$8 sps:$4 sm:$0xff]   ;;  %v937_v21 = vld [vmem:[%s1081_s7 + $0x4] ss:$8 sps:$4 sm:$0xff]   ;;  %587 = vmatprep.mubr.bf16.mxu0 %v966_v18  ;;  %v939_v22 = vld [vmem:[%s1081_s7] ss:$8 sps:$4 sm:$0xff]  }
  0x2b   : > { %558 = vmatpush1.bf16.msra.mxu0 %v921_v8  ;;  %860 = vmatpush1.bf16.msra.mxu1 %v921_v8  ;;  %v940_v23 = vld [vmem:[%s1081_s7 + $0xf4] ss:$8 sps:$4 sm:$0xff]   ;;  %v942_v24 = vld [vmem:[%s1081_s7 + $0xf0] ss:$8 sps:$4 sm:$0xff]   ;;  %v943_v25 = vld [vmem:[%s1081_s7 + $0xe4] ss:$8 sps:$4 sm:$0xff]  }
  0x2c   : > { %559 = vmatprep.subr.bf16.mxu0 %v922_v9  ;;  %845 = vmatprep.subr.bf16.mxu1 %v922_v9  ;;  %v945_v26 = vld [vmem:[%s1081_s7 + $0xe0] ss:$8 sps:$4 sm:$0xff]   ;;  %v946_v27 = vld [vmem:[%s1081_s7 + $0xd4] ss:$8 sps:$4 sm:$0xff]   ;;  %v948_v28 = vld [vmem:[%s1081_s7 + $0xd0] ss:$8 sps:$4 sm:$0xff]  }
  0x2d   : > { %597 = vmatprep.mubr.bf16.mxu1 %v969_v20  ;;  %v949_v29 = vld [vmem:[%s1081_s7 + $0xc4] ss:$8 sps:$4 sm:$0xff]   ;;  %v951_v30 = vld [vmem:[%s1081_s7 + $0xc0] ss:$8 sps:$4 sm:$0xff]   ;;  %v952_v31 = vld [vmem:[%s1081_s7 + $0xb4] ss:$8 sps:$4 sm:$0xff]  }
  0x2e   : > { %v954_v32 = vld [vmem:[%s1081_s7 + $0xb0] ss:$8 sps:$4 sm:$0xff]   ;;  %v955_v33 = vld [vmem:[%s1081_s7 + $0xa4] ss:$8 sps:$4 sm:$0xff]   ;;  %v957_v34 = vld [vmem:[%s1081_s7 + $0xa0] ss:$8 sps:$4 sm:$0xff]  }
  0x2f   : > { %560 = vmatpush1.bf16.msra.mxu0 %v924_v10  ;;  %861 = vmatpush1.bf16.msra.mxu1 %v924_v10  ;;  %v958_v35 = vld [vmem:[%s1081_s7 + $0x94] ss:$8 sps:$4 sm:$0xff]   ;;  %v960_v36 = vld [vmem:[%s1081_s7 + $0x90] ss:$8 sps:$4 sm:$0xff]   ;;  %v961_v37 = vld [vmem:[%s1081_s7 + $0x84] ss:$8 sps:$4 sm:$0xff]  }
  0x30   : > { %561 = vmatprep.subr.bf16.mxu0 %v925_v11  ;;  %846 = vmatprep.subr.bf16.mxu1 %v925_v11  ;;  %v963_v38 = vld [vmem:[%s1081_s7 + $0x80] ss:$8 sps:$4 sm:$0xff]   ;;  %v967_v40 = vld [vmem:[%s1083_s8 + $0x10] ss:$8 sps:$4 sm:$0xff]   ;;  %p836_p11 = scmp.ne.s32.totalorder %s1000_s14, 8 }
  0x31   : > { %v964_v39 = vld [vmem:[%s1083_s8] ss:$8 sps:$4 sm:$0xff]   ;;  %v333_v51 = vld [vmem:[%s1264_s3 + $0x10] sm:$0xff]  ;;  %v334_v57 = vld [vmem:[%s1264_s3 + $0x18] sm:$0xff] }
  0x32   : > { %v331_v41 = vld [vmem:[%s1264_s3] sm:$0xff]  ;;  %v332_v45 = vld [vmem:[%s1264_s3 + $0x8] sm:$0xff]  ;;  %v337_v52 = vld [vmem:[%s1264_s3 + $0x30] sm:$0xff] }
  0x33   : > { %562 = vmatpush1.bf16.msra.mxu0 %v927_v12  ;;  %862 = vmatpush1.bf16.msra.mxu1 %v927_v12  ;;  %v335_v42 = vld [vmem:[%s1264_s3 + $0x20] sm:$0xff]  ;;  %v336_v46 = vld [vmem:[%s1264_s3 + $0x28] sm:$0xff]  ;;  %v338_v58 = vld [vmem:[%s1264_s3 + $0x38] sm:$0xff] }
  0x34   : > { %563 = vmatprep.subr.bf16.mxu0 %v928_v13  ;;  %847 = vmatprep.subr.bf16.mxu1 %v928_v13 }
  0x37   : > { %564 = vmatpush1.bf16.msra.mxu0 %v930_v14  ;;  %863 = vmatpush1.bf16.msra.mxu1 %v930_v14 }
  0x38   : > { %565 = vmatprep.subr.bf16.mxu0 %v931_v15  ;;  %848 = vmatprep.subr.bf16.mxu1 %v931_v15 }
  0x3b   : > { %566 = vmatpush1.bf16.msra.mxu0 %v933_v16  ;;  %864 = vmatpush1.bf16.msra.mxu1 %v933_v16 }
  0x3c   : > { %567 = vmatprep.subr.bf16.mxu0 %v934_v17  ;;  %849 = vmatprep.subr.bf16.mxu1 %v934_v17 }
  0x3f   : > { %568 = vmatpush1.bf16.msra.mxu0 %v936_v19  ;;  %865 = vmatpush1.bf16.msra.mxu1 %v936_v19 }
  0x40   : > { %569 = vmatprep.subr.bf16.mxu0 %v937_v21  ;;  %850 = vmatprep.subr.bf16.mxu1 %v937_v21 }
  0x43   : > { %570 = vmatpush1.bf16.msra.mxu0 %v939_v22  ;;  %866 = vmatpush1.bf16.msra.mxu1 %v939_v22 }
  0x44   : > { %571 = vmatprep.subr.bf16.mxu0 %v940_v23  ;;  %851 = vmatprep.subr.bf16.mxu1 %v940_v23 }
  0x47   : > { %572 = vmatpush2.bf16.msra.mxu0 %v942_v24  ;;  %867 = vmatpush2.bf16.msra.mxu1 %v942_v24 }
  0x48   : > { %573 = vmatprep.subr.bf16.mxu0 %v943_v25  ;;  %852 = vmatprep.subr.bf16.mxu1 %v943_v25 }
  0x4b   : > { %574 = vmatpush2.bf16.msra.mxu0 %v945_v26  ;;  %868 = vmatpush2.bf16.msra.mxu1 %v945_v26 }
  0x4c   : > { %575 = vmatprep.subr.bf16.mxu0 %v946_v27  ;;  %853 = vmatprep.subr.bf16.mxu1 %v946_v27 }
  0x4f   : > { %576 = vmatpush2.bf16.msra.mxu0 %v948_v28  ;;  %869 = vmatpush2.bf16.msra.mxu1 %v948_v28 }
  0x50   : > { %577 = vmatprep.subr.bf16.mxu0 %v949_v29  ;;  %854 = vmatprep.subr.bf16.mxu1 %v949_v29 }
  0x53   : > { %578 = vmatpush2.bf16.msra.mxu0 %v951_v30  ;;  %870 = vmatpush2.bf16.msra.mxu1 %v951_v30 }
  0x54   : > { %579 = vmatprep.subr.bf16.mxu0 %v952_v31  ;;  %855 = vmatprep.subr.bf16.mxu1 %v952_v31 }
  0x57   : > { %580 = vmatpush2.bf16.msra.mxu0 %v954_v32  ;;  %871 = vmatpush2.bf16.msra.mxu1 %v954_v32 }
  0x58   : > { %581 = vmatprep.subr.bf16.mxu0 %v955_v33  ;;  %856 = vmatprep.subr.bf16.mxu1 %v955_v33 }
  0x5b   : > { %582 = vmatpush2.bf16.msra.mxu0 %v957_v34  ;;  %872 = vmatpush2.bf16.msra.mxu1 %v957_v34 }
  0x5c   : > { %583 = vmatprep.subr.bf16.mxu0 %v958_v35  ;;  %857 = vmatprep.subr.bf16.mxu1 %v958_v35 }
  0x5f   : > { %584 = vmatpush2.bf16.msra.mxu0 %v960_v36  ;;  %873 = vmatpush2.bf16.msra.mxu1 %v960_v36 }
  0x60   : > { %585 = vmatprep.subr.bf16.mxu0 %v961_v37  ;;  %858 = vmatprep.subr.bf16.mxu1 %v961_v37 }
  0x63   : > { %586 = vmatpush2.bf16.msra.mxu0 %v963_v38  ;;  %874 = vmatpush2.bf16.msra.mxu1 %v963_v38 }
  0x66   : > { %588 = vmatmul.mubr.bf16.vlgmr.msra.gmra.mxu0 %v964_v39  ;;  %598 = vmatmul.mubr.bf16.vlgmr.msra.gmra.mxu1 %v967_v40 }
 0x126   : > { %v589_v43 = vpop.f32.mrf.mxu0  ;;  %v599_v44 = vpop.f32.mrf.mxu1 }
 0x127   : > { %v608_v47 = vadd.f32 %v589_v43, %v331_v41  ;;  %v612_v48 = vadd.f32 %v599_v44, %v335_v42 }
 0x128   : > { %v591_v49 = vpop.f32.mrf.mxu0  ;;  %v601_v50 = vpop.f32.mrf.mxu1 }
 0x129   : > { %616 = vst [vmem:[%s1264_s3] sm:$0xff] %v608_v47  ;;  %620 = vst [vmem:[%s1264_s3 + $0x20] sm:$0xff] %v612_v48  ;;  %v609_v53 = vadd.f32 %v591_v49, %v332_v45  ;;  %v613_v54 = vadd.f32 %v601_v50, %v336_v46 }
 0x12a   : > { %v593_v55 = vpop.f32.mrf.mxu0  ;;  %v603_v56 = vpop.f32.mrf.mxu1 }
 0x12b   : > { %617 = vst [vmem:[%s1264_s3 + $0x8] sm:$0xff] %v609_v53  ;;  %621 = vst [vmem:[%s1264_s3 + $0x28] sm:$0xff] %v613_v54  ;;  %v610_v59 = vadd.f32 %v593_v55, %v333_v51  ;;  %v614_v60 = vadd.f32 %v603_v56, %v337_v52  ;;  %627 = sbr.rel (%p836_p11) target bundleno = 318 (0x13e), region = 78 }
 0x12c   : > { %v595_v61 = vpop.f32.mrf.mxu0  ;;  %v605_v62 = vpop.f32.mrf.mxu1 }
 0x12d   : > { %618 = vst [vmem:[%s1264_s3 + $0x10] sm:$0xff] %v610_v59  ;;  %622 = vst [vmem:[%s1264_s3 + $0x30] sm:$0xff] %v614_v60  ;;  %v611_v63 = vadd.f32 %v595_v61, %v334_v57  ;;  %v615_v0 = vadd.f32 %v605_v62, %v338_v58 }
 0x12f   : > { %619 = vst [vmem:[%s1264_s3 + $0x18] sm:$0xff] %v611_v63  ;;  %623 = vst [vmem:[%s1264_s3 + $0x38] sm:$0xff] %v615_v0 }
 0x130   : > { %v638_v1 = vlaneseq  ;;  %v636_v3 = vld [vmem:[%s1263_s2] sm:$0x3] }
 0x131   : > { %v628_v4 = vld [vmem:[%s1264_s3] sm:$0xff] }
 0x132   : > { %v639_v2 = vshrl.u32 %v638_v1, 7  ;;  %v629_v6 = vld [vmem:[%s1264_s3 + $0x8] sm:$0xff]  ;;  %v632_v10 = vld [vmem:[%s1264_s3 + $0x20] sm:$0xff] }
 0x133   : > { %v633_v13 = vld [vmem:[%s1264_s3 + $0x28] sm:$0xff] }
 0x134   : > { %v640_v5 = vsub.s32 0, %v639_v2  ;;  %v644_v7 = vsub.s32 1, %v639_v2  ;;  %v630_v8 = vld [vmem:[%s1264_s3 + $0x10] sm:$0xff] }
 0x135   : > { %v634_v14 = vld [vmem:[%s1264_s3 + $0x30] sm:$0xff] }
 0x136   : > { %v631_v9 = vld [vmem:[%s1264_s3 + $0x18] sm:$0xff]  ;;  %v641_v11 = vrot.slane %v636_v3, %v640_v5  ;;  %v645_v12 = vrot.slane %v636_v3, %v644_v7 }
 0x137   : > { %v635_v15 = vld [vmem:[%s1264_s3 + $0x38] sm:$0xff] }
 0x138   : > { %v648_v16 = vadd.f32 %v641_v11, %v628_v4  ;;  %v649_v17 = vadd.f32 %v645_v12, %v629_v6  ;;  %v650_v18 = vadd.f32 %v641_v11, %v630_v8  ;;  %v651_v19 = vadd.f32 %v645_v12, %v631_v9 }
 0x139   : > { %v652_v20 = vadd.f32 %v641_v11, %v632_v10  ;;  %v653_v21 = vadd.f32 %v645_v12, %v633_v13  ;;  %v654_v22 = vadd.f32 %v641_v11, %v634_v14  ;;  %v655_v23 = vadd.f32 %v645_v12, %v635_v15 }
 0x13a   : > { %656 = vst [vmem:[%s1264_s3] sm:$0xff] %v648_v16  ;;  %657 = vst [vmem:[%s1264_s3 + $0x8] sm:$0xff] %v649_v17 }
 0x13b   : > { %658 = vst [vmem:[%s1264_s3 + $0x10] sm:$0xff] %v650_v18  ;;  %659 = vst [vmem:[%s1264_s3 + $0x18] sm:$0xff] %v651_v19 }
 0x13c   : > { %660 = vst [vmem:[%s1264_s3 + $0x20] sm:$0xff] %v652_v20  ;;  %661 = vst [vmem:[%s1264_s3 + $0x28] sm:$0xff] %v653_v21 }
 0x13d   : > { %662 = vst [vmem:[%s1264_s3 + $0x30] sm:$0xff] %v654_v22  ;;  %663 = vst [vmem:[%s1264_s3 + $0x38] sm:$0xff] %v655_v23 }
 0x13e PF: > { %s13_s16 = sadd.s32 1, %s1008_s16   ;;  %s1265_s12 = smov %s996_s13 }
 0x13f   : > { %p10_p12 = scmp.ge.s32.totalorder %s13_s16, 11   ;;  %s1266_s13 = smov %s1066_s20 }
 0x140   : > { %s1267_s14 = smov %s1004_s15  ;;  %s1268_s15 = smov %s1270_s17 }
 0x141   :  { %12 = sbr.rel (!%p10_p12) target bundleno = 3 (0x3), region = 119 }

// kernel: forward.40
= control target key start
LH: loop header
LB: loop body
LE: loop exit
PB: predicated region body
PF: predicated region fallthrough
CT: control target
= control target key end

     0   :  { %s1182_s12 = smov 0   ;;  %s1184_s13 = smov 0   ;;  %s1546_s0 = inlined_call_operand.vmem [shape: bf16[128,512], index: 0, kind: input, shape index: {}]   ;;  %s1547_s1 = inlined_call_operand.vmem [shape: bf16[512,128], index: 1, kind: input, shape index: {}]   ;;  %s1548_s2 = inlined_call_operand.vmem [shape: f32[1,128], index: 2, kind: input, shape index: {}]   ;;  %s1549_s3 = inlined_call_operand.vmem [shape: f32[128,128], index: 3, kind: output, shape index: {}]  }
   0x1   :  { %s1186_s14 = smov 0   ;;  %s1188_s15 = smov 0  }
   0x2   :  { %s1190_s16 = smov 0  }
   0x3 LB: > { %s25_s17 = sadd.s32 1, %s1155_s15  ;;  %p48_p1 = scmp.ne.s32.totalorder %s1147_s13, %s1143_s12  ;;  %s1159_s16 = sphi %s1190_s16, %s13_s16   ;;  %s1155_s15 = sphi %s1188_s15, %s1553_s15   ;;  %s1151_s14 = sphi %s1186_s14, %s1552_s14   ;;  %s1147_s13 = sphi %s1184_s13, %s1551_s13   ;;  %s1143_s12 = sphi %s1182_s12, %s1550_s12  }
   0x4   : > { %p26_p0 = scmp.ge.s32.totalorder %s25_s17, 2  ;;  %p49_p2 = scmp.eq.s32.totalorder %s1159_s16, 0 }
   0x5   : > { %s41_s19 = sadd.s32 1, %s1147_s13  ;;  %p912_p5 = scmp.ge.s32.totalorder %s1159_s16, 2 }
   0x6   : > { %s1555_s17 = smov (%p26_p0, %s25_s17), 0  ;;  %p50_p3 = por %p49_p2, %p48_p1 }
   0x7   : > { %s37_s18 = ssub.s32 %s1155_s15, %s1555_s17  ;;  %162 = sbr.rel (%p912_p5) target bundleno = 24 (0x18), region = 20 }
   0x8   : > { %p39_p4 = scmp.eq.s32.totalorder %s37_s18, 0 }
   0xa   : > { %s1217_s20 = scalar_select %p39_p4, %s1147_s13, %s41_s19  }
   0xc   : > { %165 = sbr.rel (!%p50_p3) target bundleno = 24 (0x18), region = 24  ;;  %s167_s21 = sand.u32 (%p50_p3), 1, %s1147_s13  }
   0xd   : > { %s959_s22 = sshll.u32 (%p50_p3), %s1155_s15, 3  ;;  %s913_s23 = sshll.u32 (%p50_p3), %s167_s21, 7 }
   0xe   : > { %s1225_s26 = scalar_lea.vmem (%p50_p3), %s1546_s0, %s959_s22  ;;  %s169_s27 = scalar_lea.vmem (%p50_p3), [#allocation2], %s913_s23 }
   0xf   : > { %v234_v0 = vld [vmem:[%s1225_s26] sm:$0xff] (%p50_p3)  ;;  %v236_v1 = vld [vmem:[%s1225_s26 + $0x10] sm:$0xff] (%p50_p3) }
  0x10   : > { %v238_v2 = vld [vmem:[%s1225_s26 + $0x20] sm:$0xff] (%p50_p3)  ;;  %235 = vst [vmem:[%s169_s27] sm:$0xff] (%p50_p3), %v234_v0  ;;  %237 = vst [vmem:[%s169_s27 + $0x8] sm:$0xff] (%p50_p3), %v236_v1  ;;  %v240_v3 = vld [vmem:[%s1225_s26 + $0x30] sm:$0xff] (%p50_p3) }
  0x11   : > { %239 = vst [vmem:[%s169_s27 + $0x10] sm:$0xff] %v238_v2  ;;  %v242_v4 = vld [vmem:[%s1225_s26 + $0x40] sm:$0xff]  ;;  %v244_v5 = vld [vmem:[%s1225_s26 + $0x50] sm:$0xff]  ;;  %241 = vst [vmem:[%s169_s27 + $0x18] sm:$0xff] %v240_v3 }
  0x12   : > { %243 = vst [vmem:[%s169_s27 + $0x20] sm:$0xff] %v242_v4  ;;  %245 = vst [vmem:[%s169_s27 + $0x28] sm:$0xff] %v244_v5  ;;  %v246_v6 = vld [vmem:[%s1225_s26 + $0x60] sm:$0xff]  ;;  %v248_v7 = vld [vmem:[%s1225_s26 + $0x70] sm:$0xff] }
  0x13   : > { %v250_v8 = vld [vmem:[%s1225_s26 + $0x80] sm:$0xff]  ;;  %247 = vst [vmem:[%s169_s27 + $0x30] sm:$0xff] %v246_v6  ;;  %249 = vst [vmem:[%s169_s27 + $0x38] sm:$0xff] %v248_v7  ;;  %v252_v9 = vld [vmem:[%s1225_s26 + $0x90] sm:$0xff] }
  0x14   : > { %251 = vst [vmem:[%s169_s27 + $0x40] sm:$0xff] %v250_v8  ;;  %v254_v10 = vld [vmem:[%s1225_s26 + $0xa0] sm:$0xff]  ;;  %v256_v11 = vld [vmem:[%s1225_s26 + $0xb0] sm:$0xff]  ;;  %253 = vst [vmem:[%s169_s27 + $0x48] sm:$0xff] %v252_v9 }
  0x15   : > { %255 = vst [vmem:[%s169_s27 + $0x50] sm:$0xff] %v254_v10  ;;  %257 = vst [vmem:[%s169_s27 + $0x58] sm:$0xff] %v256_v11  ;;  %v258_v12 = vld [vmem:[%s1225_s26 + $0xc0] sm:$0xff]  ;;  %v260_v13 = vld [vmem:[%s1225_s26 + $0xd0] sm:$0xff] }
  0x16   : > { %v262_v14 = vld [vmem:[%s1225_s26 + $0xe0] sm:$0xff]  ;;  %259 = vst [vmem:[%s169_s27 + $0x60] sm:$0xff] %v258_v12  ;;  %261 = vst [vmem:[%s169_s27 + $0x68] sm:$0xff] %v260_v13  ;;  %v264_v15 = vld [vmem:[%s1225_s26 + $0xf0] sm:$0xff] }
  0x17   : > { %263 = vst [vmem:[%s169_s27 + $0x70] sm:$0xff] %v262_v14  ;;  %265 = vst [vmem:[%s169_s27 + $0x78] sm:$0xff] %v264_v15 }
  0x18 PF: > { %p916_p6 = scmp.ge.s32.totalorder %s1159_s16, 1  ;;  %p282_p7 = scmp.lt.s32.totalorder %s1159_s16, 3 }
  0x1a   : > { %p283_p8 = pnand %p916_p6, %p282_p7 }
  0x1b   : > { %s289_s28 = sand.u32 (!%p283_p8), 1, %s1143_s12   ;;  %s918_s29 = sshll.u32 (!%p283_p8), %s1151_s14, 5 }
  0x1c   : > { %286 = sbr.rel (%p283_p8) target bundleno = 320 (0x140), region = 66  ;;  %s917_s30 = sshll.u32 (!%p283_p8), %s289_s28, 7 }
  0x1d   : > { %p329_p9 = scmp.lt.s32.totalorder (!%p283_p8), %s918_s29, 63  ;;  %s1252_s8 = scalar_lea.vmem (!%p283_p8), [#allocation2], %s917_s30 }
  0x1e   : > { %p920_p10 = scmp.ne.s32.totalorder (!%p283_p8), %s1151_s14, 0 }
  0x21   : > { %s1557_s29 = smov (!%p329_p9, %s918_s29), 63  ;;  %353 = sbr.rel (%p920_p10) target bundleno = 47 (0x2f), region = 74 }
  0x22   : > { %s919_s4 = sshll.u32 %s1557_s29, 2 }
  0x23   : > { %s1250_s7 = scalar_lea.vmem %s1547_s1, %s919_s4 }
  0x26   : > { %v1161_v16 = vmov 0.0  }
  0x27   : > { %354 = vst [vmem:[%s1549_s3] sm:$0xff] %v1161_v16  ;;  %355 = vst [vmem:[%s1549_s3 + $0x8] sm:$0xff] %v1161_v16 }
  0x28   : > { %356 = vst [vmem:[%s1549_s3 + $0x10] sm:$0xff] %v1161_v16  ;;  %357 = vst [vmem:[%s1549_s3 + $0x18] sm:$0xff] %v1161_v16 }
  0x29   : > { %358 = vst [vmem:[%s1549_s3 + $0x20] sm:$0xff] %v1161_v16  ;;  %359 = vst [vmem:[%s1549_s3 + $0x28] sm:$0xff] %v1161_v16 }
  0x2a   : > { %360 = vst [vmem:[%s1549_s3 + $0x30] sm:$0xff] %v1161_v16  ;;  %361 = vst [vmem:[%s1549_s3 + $0x38] sm:$0xff] %v1161_v16 }
  0x2b   : > { %362 = vst [vmem:[%s1549_s3 + $0x40] sm:$0xff] %v1161_v16  ;;  %363 = vst [vmem:[%s1549_s3 + $0x48] sm:$0xff] %v1161_v16 }
  0x2c   : > { %364 = vst [vmem:[%s1549_s3 + $0x50] sm:$0xff] %v1161_v16  ;;  %365 = vst [vmem:[%s1549_s3 + $0x58] sm:$0xff] %v1161_v16 }
  0x2d   : > { %366 = vst [vmem:[%s1549_s3 + $0x60] sm:$0xff] %v1161_v16  ;;  %367 = vst [vmem:[%s1549_s3 + $0x68] sm:$0xff] %v1161_v16 }
  0x2e   : > { %368 = vst [vmem:[%s1549_s3 + $0x70] sm:$0xff] %v1161_v16  ;;  %369 = vst [vmem:[%s1549_s3 + $0x78] sm:$0xff] %v1161_v16 }
  0x2f PF: > { %v1081_v17 = vld [vmem:[%s1250_s7 + $0x78] sm:$0xff]   ;;  %v1083_v19 = vld [vmem:[%s1250_s7 + $0x70] sm:$0xff]   ;;  %v1085_v21 = vld [vmem:[%s1250_s7 + $0x68] sm:$0xff]   ;;  %p953_p11 = scmp.ne.s32.totalorder %s1151_s14, 1 }
  0x30   : > { %v1082_v18 = vld [vmem:[%s1250_s7 + $0x38] sm:$0xff]   ;;  %960 = vmatprep.subr.bf16.mxu0 %v1081_v17  ;;  %1024 = vmatprep.subr.bf16.mxu1 %v1081_v17  ;;  %v1084_v20 = vld [vmem:[%s1250_s7 + $0x30] sm:$0xff]   ;;  %v1086_v22 = vld [vmem:[%s1250_s7 + $0x28] sm:$0xff]  }
  0x31   : > { %961 = vmatpush3.bf16.msra.mxu0 %v1082_v18  ;;  %1032 = vmatpush3.bf16.msra.mxu1 %v1082_v18  ;;  %v1087_v23 = vld [vmem:[%s1250_s7 + $0x60] sm:$0xff]   ;;  %v1089_v25 = vld [vmem:[%s1250_s7 + $0x58] sm:$0xff]   ;;  %v1091_v27 = vld [vmem:[%s1250_s7 + $0x50] sm:$0xff]  }
  0x32   : > { %962 = vmatprep.subr.bf16.mxu0 %v1083_v19  ;;  %1025 = vmatprep.subr.bf16.mxu1 %v1083_v19  ;;  %v1088_v24 = vld [vmem:[%s1250_s7 + $0x20] sm:$0xff]   ;;  %v1090_v26 = vld [vmem:[%s1250_s7 + $0x18] sm:$0xff]   ;;  %v1092_v30 = vld [vmem:[%s1250_s7 + $0x10] sm:$0xff]  }
  0x33   : > { %v1099_v28 = vld [vmem:[%s1252_s8 + $0x4] ss:$8 sps:$4 sm:$0xff]   ;;  %v1097_v35 = vld [vmem:[%s1252_s8] ss:$8 sps:$4 sm:$0xff]   ;;  %v1103_v37 = vld [vmem:[%s1252_s8 + $0x14] ss:$8 sps:$4 sm:$0xff]  }
  0x34   : > { %v1102_v29 = vld [vmem:[%s1252_s8 + $0x44] ss:$8 sps:$4 sm:$0xff]   ;;  %642 = vmatprep.mubr.bf16.mxu0 %v1099_v28  ;;  %v1100_v36 = vld [vmem:[%s1252_s8 + $0x40] ss:$8 sps:$4 sm:$0xff]   ;;  %v1105_v38 = vld [vmem:[%s1252_s8 + $0x54] ss:$8 sps:$4 sm:$0xff]  }
  0x35   : > { %963 = vmatpush3.bf16.msra.mxu0 %v1084_v20  ;;  %1033 = vmatpush3.bf16.msra.mxu1 %v1084_v20  ;;  %v1093_v31 = vld [vmem:[%s1250_s7 + $0x48] sm:$0xff]   ;;  %v1095_v33 = vld [vmem:[%s1250_s7 + $0x40] sm:$0xff]   ;;  %v1107_v39 = vld [vmem:[%s1252_s8 + $0x10] ss:$8 sps:$4 sm:$0xff]  }
  0x36   : > { %964 = vmatprep.subr.bf16.mxu0 %v1085_v21  ;;  %1026 = vmatprep.subr.bf16.mxu1 %v1085_v21  ;;  %v1094_v32 = vld [vmem:[%s1250_s7 + $0x8] sm:$0xff]   ;;  %v1096_v34 = vld [vmem:[%s1250_s7] sm:$0xff]   ;;  %v1108_v40 = vld [vmem:[%s1252_s8 + $0x50] ss:$8 sps:$4 sm:$0xff]  }
  0x37   : > { %674 = vmatprep.mubr.bf16.mxu1 %v1102_v29  ;;  %v1109_v41 = vld [vmem:[%s1252_s8 + $0x24] ss:$8 sps:$4 sm:$0xff]   ;;  %v1113_v43 = vld [vmem:[%s1252_s8 + $0x20] ss:$8 sps:$4 sm:$0xff]   ;;  %v1115_v45 = vld [vmem:[%s1252_s8 + $0x34] ss:$8 sps:$4 sm:$0xff]  }
  0x38   : > { %v1111_v42 = vld [vmem:[%s1252_s8 + $0x64] ss:$8 sps:$4 sm:$0xff]   ;;  %v1114_v44 = vld [vmem:[%s1252_s8 + $0x60] ss:$8 sps:$4 sm:$0xff]   ;;  %v1117_v46 = vld [vmem:[%s1252_s8 + $0x74] ss:$8 sps:$4 sm:$0xff]  }
  0x39   : > { %965 = vmatpush3.bf16.msra.mxu0 %v1086_v22  ;;  %1034 = vmatpush3.bf16.msra.mxu1 %v1086_v22  ;;  %v1119_v47 = vld [vmem:[%s1252_s8 + $0x30] ss:$8 sps:$4 sm:$0xff]   ;;  %v370_v51 = vld [vmem:[%s1549_s3] sm:$0xff]  ;;  %v371_v61 = vld [vmem:[%s1549_s3 + $0x8] sm:$0xff] }
  0x3a   : > { %966 = vmatprep.subr.bf16.mxu0 %v1087_v23  ;;  %1027 = vmatprep.subr.bf16.mxu1 %v1087_v23  ;;  %v1120_v48 = vld [vmem:[%s1252_s8 + $0x70] ss:$8 sps:$4 sm:$0xff]   ;;  %v378_v53 = vld [vmem:[%s1549_s3 + $0x40] sm:$0xff]  ;;  %v379_v63 = vld [vmem:[%s1549_s3 + $0x48] sm:$0xff] }
  0x3b   : > { %v372_v7 = vld [vmem:[%s1549_s3 + $0x10] sm:$0xff]  ;;  %v373_v17 = vld [vmem:[%s1549_s3 + $0x18] sm:$0xff]  ;;  %v382_v29 = vld [vmem:[%s1549_s3 + $0x60] sm:$0xff] }
  0x3c   : > { %v380_v9 = vld [vmem:[%s1549_s3 + $0x50] sm:$0xff]  ;;  %v381_v19 = vld [vmem:[%s1549_s3 + $0x58] sm:$0xff] }
  0x3d   : > { %967 = vmatpush3.bf16.msra.mxu0 %v1088_v24  ;;  %1035 = vmatpush3.bf16.msra.mxu1 %v1088_v24 }
  0x3e   : > { %968 = vmatprep.subr.bf16.mxu0 %v1089_v25  ;;  %1028 = vmatprep.subr.bf16.mxu1 %v1089_v25 }
  0x41   : > { %969 = vmatpush3.bf16.msra.mxu0 %v1090_v26  ;;  %1036 = vmatpush3.bf16.msra.mxu1 %v1090_v26 }
  0x42   : > { %970 = vmatprep.subr.bf16.mxu0 %v1091_v27  ;;  %1029 = vmatprep.subr.bf16.mxu1 %v1091_v27  ;;  %v374_v27 = vld [vmem:[%s1549_s3 + $0x20] sm:$0xff] }
  0x45   : > { %971 = vmatpush3.bf16.msra.mxu0 %v1092_v30  ;;  %1037 = vmatpush3.bf16.msra.mxu1 %v1092_v30 }
  0x46   : > { %972 = vmatprep.subr.bf16.mxu0 %v1093_v31  ;;  %1030 = vmatprep.subr.bf16.mxu1 %v1093_v31 }
  0x49   : > { %973 = vmatpush3.bf16.msra.mxu0 %v1094_v32  ;;  %1038 = vmatpush3.bf16.msra.mxu1 %v1094_v32 }
  0x4a   : > { %974 = vmatprep.subr.bf16.mxu0 %v1095_v33  ;;  %1031 = vmatprep.subr.bf16.mxu1 %v1095_v33 }
  0x4d   : > { %975 = vmatpush3.bf16.msra.mxu0 %v1096_v34  ;;  %1039 = vmatpush3.bf16.msra.mxu1 %v1096_v34 }
  0x50   : > { %643 = vmatmul.mubr.bf16.vlgmr.msra.gmra.mxu0 %v1097_v35  ;;  %675 = vmatmul.mubr.bf16.vlgmr.msra.gmra.mxu1 %v1100_v36 }
  0x51   : > { %650 = vmatprep.mubr.bf16.mxu0 %v1103_v37  ;;  %682 = vmatprep.mubr.bf16.mxu1 %v1105_v38  ;;  %v375_v37 = vld [vmem:[%s1549_s3 + $0x28] sm:$0xff] }
  0x58   : > { %651 = vmatmul.mubr.bf16.gmra.mxu0 %v1107_v39  ;;  %683 = vmatmul.mubr.bf16.gmra.mxu1 %v1108_v40  ;;  %v383_v39 = vld [vmem:[%s1549_s3 + $0x68] sm:$0xff] }
  0x59   : > { %658 = vmatprep.mubr.bf16.mxu0 %v1109_v41  ;;  %690 = vmatprep.mubr.bf16.mxu1 %v1111_v42 }
  0x60   : > { %659 = vmatmul.mubr.bf16.gmra.mxu0 %v1113_v43  ;;  %691 = vmatmul.mubr.bf16.gmra.mxu1 %v1114_v44 }
  0x61   : > { %666 = vmatprep.mubr.bf16.mxu0 %v1115_v45  ;;  %698 = vmatprep.mubr.bf16.mxu1 %v1117_v46 }
  0x68   : > { %667 = vmatmul.mubr.bf16.gmra.mxu0 %v1119_v47  ;;  %699 = vmatmul.mubr.bf16.gmra.mxu1 %v1120_v48  ;;  %v376_v47 = vld [vmem:[%s1549_s3 + $0x30] sm:$0xff] }
 0x110   : > { %v976_v49 = vpop.f32.mrf.mxu0  ;;  %v1000_v50 = vpop.f32.mrf.mxu1 }
 0x112   : > { %v977_v52 = vpop.f32.mrf.mxu0  ;;  %v1001_v54 = vpop.f32.mrf.mxu1 }
 0x113   : > { %v978_v55 = vadd.f32 %v977_v52, %v976_v49  ;;  %v1002_v56 = vadd.f32 %v1001_v54, %v1000_v50  ;;  %v384_v49 = vld [vmem:[%s1549_s3 + $0x70] sm:$0xff] }
 0x114   : > { %v979_v57 = vpop.f32.mrf.mxu0  ;;  %v1003_v58 = vpop.f32.mrf.mxu1 }
 0x115   : > { %v707_v59 = vadd.f32 %v978_v55, %v370_v51  ;;  %v715_v60 = vadd.f32 %v1002_v56, %v378_v53 }
 0x116   : > { %v980_v62 = vpop.f32.mrf.mxu0  ;;  %v1004_v0 = vpop.f32.mrf.mxu1 }
 0x117   : > { %723 = vst [vmem:[%s1549_s3] sm:$0xff] %v707_v59  ;;  %731 = vst [vmem:[%s1549_s3 + $0x40] sm:$0xff] %v715_v60  ;;  %v981_v1 = vadd.f32 %v980_v62, %v979_v57  ;;  %v1005_v2 = vadd.f32 %v1004_v0, %v1003_v58  ;;  %v377_v57 = vld [vmem:[%s1549_s3 + $0x38] sm:$0xff] }
 0x118   : > { %v982_v3 = vpop.f32.mrf.mxu0  ;;  %v1006_v4 = vpop.f32.mrf.mxu1  ;;  %v385_v59 = vld [vmem:[%s1549_s3 + $0x78] sm:$0xff] }
 0x119   : > { %v708_v5 = vadd.f32 %v981_v1, %v371_v61  ;;  %v716_v6 = vadd.f32 %v1005_v2, %v379_v63 }
 0x11a   : > { %v983_v8 = vpop.f32.mrf.mxu0  ;;  %v1007_v10 = vpop.f32.mrf.mxu1 }
 0x11b   : > { %724 = vst [vmem:[%s1549_s3 + $0x8] sm:$0xff] %v708_v5  ;;  %732 = vst [vmem:[%s1549_s3 + $0x48] sm:$0xff] %v716_v6  ;;  %v984_v11 = vadd.f32 %v983_v8, %v982_v3  ;;  %v1008_v12 = vadd.f32 %v1007_v10, %v1006_v4 }
 0x11c   : > { %v985_v13 = vpop.f32.mrf.mxu0  ;;  %v1009_v14 = vpop.f32.mrf.mxu1 }
 0x11d   : > { %v709_v15 = vadd.f32 %v984_v11, %v372_v7  ;;  %v717_v16 = vadd.f32 %v1008_v12, %v380_v9 }
 0x11e   : > { %v986_v18 = vpop.f32.mrf.mxu0  ;;  %v1010_v20 = vpop.f32.mrf.mxu1 }
 0x11f   : > { %725 = vst [vmem:[%s1549_s3 + $0x10] sm:$0xff] %v709_v15  ;;  %733 = vst [vmem:[%s1549_s3 + $0x50] sm:$0xff] %v717_v16  ;;  %v987_v21 = vadd.f32 %v986_v18, %v985_v13  ;;  %v1011_v22 = vadd.f32 %v1010_v20, %v1009_v14 }
 0x120   : > { %v988_v23 = vpop.f32.mrf.mxu0  ;;  %v1012_v24 = vpop.f32.mrf.mxu1 }
 0x121   : > { %v710_v25 = vadd.f32 %v987_v21, %v373_v17  ;;  %v718_v26 = vadd.f32 %v1011_v22, %v381_v19 }
 0x122   : > { %v989_v28 = vpop.f32.mrf.mxu0  ;;  %v1013_v30 = vpop.f32.mrf.mxu1 }
 0x123   : > { %726 = vst [vmem:[%s1549_s3 + $0x18] sm:$0xff] %v710_v25  ;;  %734 = vst [vmem:[%s1549_s3 + $0x58] sm:$0xff] %v718_v26  ;;  %v990_v31 = vadd.f32 %v989_v28, %v988_v23  ;;  %v1014_v32 = vadd.f32 %v1013_v30, %v1012_v24 }
 0x124   : > { %v991_v33 = vpop.f32.mrf.mxu0  ;;  %v1015_v34 = vpop.f32.mrf.mxu1 }
 0x125   : > { %v711_v35 = vadd.f32 %v990_v31, %v374_v27  ;;  %v719_v36 = vadd.f32 %v1014_v32, %v382_v29 }
 0x126   : > { %v992_v38 = vpop.f32.mrf.mxu0  ;;  %v1016_v40 = vpop.f32.mrf.mxu1 }
 0x127   : > { %727 = vst [vmem:[%s1549_s3 + $0x20] sm:$0xff] %v711_v35  ;;  %735 = vst [vmem:[%s1549_s3 + $0x60] sm:$0xff] %v719_v36  ;;  %v993_v41 = vadd.f32 %v992_v38, %v991_v33  ;;  %v1017_v42 = vadd.f32 %v1016_v40, %v1015_v34 }
 0x128   : > { %v994_v43 = vpop.f32.mrf.mxu0  ;;  %v1018_v44 = vpop.f32.mrf.mxu1 }
 0x129   : > { %v712_v45 = vadd.f32 %v993_v41, %v375_v37  ;;  %v720_v46 = vadd.f32 %v1017_v42, %v383_v39 }
 0x12a   : > { %v995_v48 = vpop.f32.mrf.mxu0  ;;  %v1019_v50 = vpop.f32.mrf.mxu1 }
 0x12b   : > { %728 = vst [vmem:[%s1549_s3 + $0x28] sm:$0xff] %v712_v45  ;;  %736 = vst [vmem:[%s1549_s3 + $0x68] sm:$0xff] %v720_v46  ;;  %v996_v51 = vadd.f32 %v995_v48, %v994_v43  ;;  %v1020_v52 = vadd.f32 %v1019_v50, %v1018_v44 }
 0x12c   : > { %v997_v53 = vpop.f32.mrf.mxu0  ;;  %v1021_v54 = vpop.f32.mrf.mxu1 }
 0x12d   : > { %v713_v55 = vadd.f32 %v996_v51, %v376_v47  ;;  %v721_v56 = vadd.f32 %v1020_v52, %v384_v49 }
 0x12e   : > { %v998_v58 = vpop.f32.mrf.mxu0  ;;  %v1022_v60 = vpop.f32.mrf.mxu1 }
 0x12f   : > { %729 = vst [vmem:[%s1549_s3 + $0x30] sm:$0xff] %v713_v55  ;;  %737 = vst [vmem:[%s1549_s3 + $0x70] sm:$0xff] %v721_v56  ;;  %v999_v61 = vadd.f32 %v998_v58, %v997_v53  ;;  %v1023_v62 = vadd.f32 %v1022_v60, %v1021_v54  ;;  %742 = sbr.rel (%p953_p11) target bundleno = 320 (0x140), region = 78 }
 0x131   : > { %v714_v63 = vadd.f32 %v999_v61, %v377_v57  ;;  %v722_v0 = vadd.f32 %v1023_v62, %v385_v59 }
 0x133   : > { %730 = vst [vmem:[%s1549_s3 + $0x38] sm:$0xff] %v714_v63  ;;  %738 = vst [vmem:[%s1549_s3 + $0x78] sm:$0xff] %v722_v0 }
 0x134   : > { %v743_v1 = vld [vmem:[%s1549_s3] sm:$0xff]  ;;  %v744_v3 = vld [vmem:[%s1549_s3 + $0x8] sm:$0xff]  ;;  %v745_v6 = vld [vmem:[%s1549_s3 + $0x10] sm:$0xff] }
 0x135   : > { %v954_v2 = vld [vmem:[%s1548_s2] ss:$0 sm:$0xff]  ;;  %v746_v7 = vld [vmem:[%s1549_s3 + $0x18] sm:$0xff]  ;;  %v748_v12 = vld [vmem:[%s1549_s3 + $0x28] sm:$0xff] }
 0x136   : > { %v766_v4 = vadd.f32 %v954_v2, %v743_v1  ;;  %v767_v5 = vadd.f32 %v954_v2, %v744_v3  ;;  %v747_v8 = vld [vmem:[%s1549_s3 + $0x20] sm:$0xff]  ;;  %v768_v9 = vadd.f32 %v954_v2, %v745_v6  ;;  %v769_v10 = vadd.f32 %v954_v2, %v746_v7  ;;  %v749_v13 = vld [vmem:[%s1549_s3 + $0x30] sm:$0xff]  ;;  %v752_v19 = vld [vmem:[%s1549_s3 + $0x48] sm:$0xff] }
 0x137   : > { %v770_v11 = vadd.f32 %v954_v2, %v747_v8  ;;  %v771_v15 = vadd.f32 %v954_v2, %v748_v12  ;;  %v772_v16 = vadd.f32 %v954_v2, %v749_v13  ;;  %v751_v18 = vld [vmem:[%s1549_s3 + $0x40] sm:$0xff]  ;;  %v753_v20 = vld [vmem:[%s1549_s3 + $0x50] sm:$0xff]  ;;  %v775_v22 = vadd.f32 %v954_v2, %v752_v19  ;;  %v754_v24 = vld [vmem:[%s1549_s3 + $0x58] sm:$0xff] }
 0x138   : > { %782 = vst [vmem:[%s1549_s3] sm:$0xff] %v766_v4  ;;  %783 = vst [vmem:[%s1549_s3 + $0x8] sm:$0xff] %v767_v5  ;;  %v774_v21 = vadd.f32 %v954_v2, %v751_v18  ;;  %v776_v23 = vadd.f32 %v954_v2, %v753_v20  ;;  %v755_v25 = vld [vmem:[%s1549_s3 + $0x60] sm:$0xff]  ;;  %v756_v26 = vld [vmem:[%s1549_s3 + $0x68] sm:$0xff]  ;;  %v777_v27 = vadd.f32 %v954_v2, %v754_v24 }
 0x139   : > { %784 = vst [vmem:[%s1549_s3 + $0x10] sm:$0xff] %v768_v9  ;;  %785 = vst [vmem:[%s1549_s3 + $0x18] sm:$0xff] %v769_v10  ;;  %v778_v28 = vadd.f32 %v954_v2, %v755_v25  ;;  %v779_v29 = vadd.f32 %v954_v2, %v756_v26  ;;  %v757_v30 = vld [vmem:[%s1549_s3 + $0x70] sm:$0xff] }
 0x13a   : > { %v750_v14 = vld [vmem:[%s1549_s3 + $0x38] sm:$0xff]  ;;  %786 = vst [vmem:[%s1549_s3 + $0x20] sm:$0xff] %v770_v11  ;;  %787 = vst [vmem:[%s1549_s3 + $0x28] sm:$0xff] %v771_v15  ;;  %v780_v32 = vadd.f32 %v954_v2, %v757_v30 }
 0x13b   : > { %v773_v17 = vadd.f32 %v954_v2, %v750_v14  ;;  %788 = vst [vmem:[%s1549_s3 + $0x30] sm:$0xff] %v772_v16  ;;  %v758_v31 = vld [vmem:[%s1549_s3 + $0x78] sm:$0xff]  ;;  %790 = vst [vmem:[%s1549_s3 + $0x40] sm:$0xff] %v774_v21 }
 0x13c   : > { %791 = vst [vmem:[%s1549_s3 + $0x48] sm:$0xff] %v775_v22  ;;  %792 = vst [vmem:[%s1549_s3 + $0x50] sm:$0xff] %v776_v23  ;;  %v781_v33 = vadd.f32 %v954_v2, %v758_v31 }
 0x13d   : > { %789 = vst [vmem:[%s1549_s3 + $0x38] sm:$0xff] %v773_v17  ;;  %793 = vst [vmem:[%s1549_s3 + $0x58] sm:$0xff] %v777_v27 }
 0x13e   : > { %794 = vst [vmem:[%s1549_s3 + $0x60] sm:$0xff] %v778_v28  ;;  %795 = vst [vmem:[%s1549_s3 + $0x68] sm:$0xff] %v779_v29 }
 0x13f   : > { %796 = vst [vmem:[%s1549_s3 + $0x70] sm:$0xff] %v780_v32  ;;  %797 = vst [vmem:[%s1549_s3 + $0x78] sm:$0xff] %v781_v33 }
 0x140 PF: > { %s13_s16 = sadd.s32 1, %s1159_s16   ;;  %s1550_s12 = smov %s1147_s13 }
 0x141   : > { %p10_p12 = scmp.ge.s32.totalorder %s13_s16, 4   ;;  %s1551_s13 = smov %s1217_s20 }
 0x142   : > { %s1552_s14 = smov %s1155_s15  ;;  %s1553_s15 = smov %s1555_s17 }
 0x143   :  { %12 = sbr.rel (!%p10_p12) target bundleno = 3 (0x3), region = 119 }

// kernel: forward.41
= control target key start
LH: loop header
LB: loop body
LE: loop exit
PB: predicated region body
PF: predicated region fallthrough
CT: control target
= control target key end

     0   :  { %s864_s12 = smov 0   ;;  %s866_s13 = smov 0   ;;  %s1018_s0 = inlined_call_operand.vmem [shape: bf16[32,1024], index: 0, kind: input, shape index: {}]   ;;  %s1019_s1 = inlined_call_operand.vmem [shape: bf16[1024,128], index: 1, kind: input, shape index: {}]   ;;  %s1020_s2 = inlined_call_operand.vmem [shape: f32[1,128], index: 2, kind: input, shape index: {}]   ;;  %s1021_s3 = inlined_call_operand.vmem [shape: f32[32,128], index: 3, kind: output, shape index: {}]  }
   0x1   :  { %s868_s14 = smov 0   ;;  %s870_s15 = smov 0  }
   0x2   :  { %s872_s16 = smov 0  }
   0x3 LB: > { %s25_s17 = sadd.s32 1, %s837_s15  ;;  %p48_p1 = scmp.ne.s32.totalorder %s829_s13, %s825_s12  ;;  %s841_s16 = sphi %s872_s16, %s13_s16   ;;  %s837_s15 = sphi %s870_s15, %s1025_s15   ;;  %s833_s14 = sphi %s868_s14, %s1024_s14   ;;  %s829_s13 = sphi %s866_s13, %s1023_s13   ;;  %s825_s12 = sphi %s864_s12, %s1022_s12  }
   0x4   : > { %p26_p0 = scmp.ge.s32.totalorder %s25_s17, 4  ;;  %p49_p2 = scmp.eq.s32.totalorder %s841_s16, 0 }
   0x5   : > { %s41_s19 = sadd.s32 1, %s829_s13  ;;  %p660_p5 = scmp.ge.s32.totalorder %s841_s16, 4 }
   0x6   : > { %s1027_s17 = smov (%p26_p0, %s25_s17), 0  ;;  %p50_p3 = por %p49_p2, %p48_p1 }
   0x7   : > { %s37_s18 = ssub.s32 %s837_s15, %s1027_s17  ;;  %162 = sbr.rel (%p660_p5) target bundleno = 20 (0x14), region = 20 }
   0x8   : > { %p39_p4 = scmp.eq.s32.totalorder %s37_s18, 0 }
   0xa   : > { %s899_s20 = scalar_select %p39_p4, %s829_s13, %s41_s19  }
   0xc   : > { %165 = sbr.rel (!%p50_p3) target bundleno = 20 (0x14), region = 24  ;;  %s167_s21 = sand.u32 (%p50_p3), 1, %s829_s13  }
   0xd   : > { %s695_s22 = sshll.u32 (%p50_p3), %s837_s15, 3  ;;  %s661_s23 = sshll.u32 (%p50_p3), %s167_s21, 5 }
   0xe   : > { %s175_s26 = scalar_lea.vmem (%p50_p3), %s1018_s0, %s695_s22  ;;  %s169_s27 = scalar_lea.vmem (%p50_p3), [#allocation2], %s661_s23 }
   0xf   : > { %v210_v0 = vld [vmem:[%s175_s26] sm:$0xff] (%p50_p3) }
  0x10   : > { %v212_v1 = vld [vmem:[%s175_s26 + $0x20] sm:$0xff] (%p50_p3)  ;;  %211 = vst [vmem:[%s169_s27] sm:$0xff] (%p50_p3), %v210_v0 }
  0x11   : > { %v214_v2 = vld [vmem:[%s175_s26 + $0x40] sm:$0xff]  ;;  %213 = vst [vmem:[%s169_s27 + $0x8] sm:$0xff] %v212_v1 }
  0x12   : > { %215 = vst [vmem:[%s169_s27 + $0x10] sm:$0xff] %v214_v2  ;;  %v216_v3 = vld [vmem:[%s175_s26 + $0x60] sm:$0xff] }
  0x13   : > { %217 = vst [vmem:[%s169_s27 + $0x18] sm:$0xff] %v216_v3 }
  0x14 PF: > { %p664_p6 = scmp.ge.s32.totalorder %s841_s16, 1  ;;  %p234_p7 = scmp.lt.s32.totalorder %s841_s16, 5 }
  0x16   : > { %p235_p8 = pnand %p664_p6, %p234_p7 }
  0x17   : > { %s241_s28 = sand.u32 (!%p235_p8), 1, %s825_s12   ;;  %s666_s29 = sshll.u32 (!%p235_p8), %s833_s14, 5 }
  0x18   : > { %238 = sbr.rel (%p235_p8) target bundleno = 284 (0x11c), region = 66  ;;  %s665_s30 = sshll.u32 (!%p235_p8), %s241_s28, 5 }
  0x19   : > { %p281_p9 = scmp.lt.s32.totalorder (!%p235_p8), %s666_s29, 127  ;;  %s916_s8 = scalar_lea.vmem (!%p235_p8), [#allocation2], %s665_s30 }
  0x1a   : > { %p668_p10 = scmp.ne.s32.totalorder (!%p235_p8), %s833_s14, 0 }
  0x1d   : > { %s1029_s29 = smov (!%p281_p9, %s666_s29), 127  ;;  %305 = sbr.rel (%p668_p10) target bundleno = 37 (0x25), region = 74 }
  0x1e   : > { %s667_s4 = sshll.u32 %s1029_s29, 2 }
  0x1f   : > { %s914_s7 = scalar_lea.vmem %s1019_s1, %s667_s4 }
  0x22   : > { %v843_v4 = vmov 0.0  }
  0x23   : > { %306 = vst [vmem:[%s1021_s3] sm:$0xff] %v843_v4  ;;  %307 = vst [vmem:[%s1021_s3 + $0x8] sm:$0xff] %v843_v4 }
  0x24   : > { %308 = vst [vmem:[%s1021_s3 + $0x10] sm:$0xff] %v843_v4  ;;  %309 = vst [vmem:[%s1021_s3 + $0x18] sm:$0xff] %v843_v4 }
  0x25 PF: > { %v781_v5 = vld [vmem:[%s914_s7 + $0x78] sm:$0xff]   ;;  %v783_v7 = vld [vmem:[%s914_s7 + $0x70] sm:$0xff]   ;;  %v785_v9 = vld [vmem:[%s914_s7 + $0x68] sm:$0xff]   ;;  %p689_p11 = scmp.ne.s32.totalorder %s833_s14, 3 }
  0x26   : > { %v782_v6 = vld [vmem:[%s914_s7 + $0x38] sm:$0xff]   ;;  %696 = vmatprep.subr.bf16.mxu0 %v781_v5  ;;  %724 = vmatprep.subr.bf16.mxu1 %v781_v5  ;;  %v784_v8 = vld [vmem:[%s914_s7 + $0x30] sm:$0xff]   ;;  %v786_v10 = vld [vmem:[%s914_s7 + $0x28] sm:$0xff]  }
  0x27   : > { %697 = vmatpush3.bf16.msra.mxu0 %v782_v6  ;;  %732 = vmatpush3.bf16.msra.mxu1 %v782_v6  ;;  %v787_v11 = vld [vmem:[%s914_s7 + $0x60] sm:$0xff]   ;;  %v789_v13 = vld [vmem:[%s914_s7 + $0x58] sm:$0xff]   ;;  %v791_v15 = vld [vmem:[%s914_s7 + $0x50] sm:$0xff]  }
  0x28   : > { %698 = vmatprep.subr.bf16.mxu0 %v783_v7  ;;  %725 = vmatprep.subr.bf16.mxu1 %v783_v7  ;;  %v788_v12 = vld [vmem:[%s914_s7 + $0x20] sm:$0xff]   ;;  %v790_v14 = vld [vmem:[%s914_s7 + $0x18] sm:$0xff]   ;;  %v792_v18 = vld [vmem:[%s914_s7 + $0x10] sm:$0xff]  }
  0x29   : > { %v799_v16 = vld [vmem:[%s916_s8 + $0x4] ss:$8 sps:$4 sm:$0xff]   ;;  %v802_v17 = vld [vmem:[%s916_s8 + $0x14] ss:$8 sps:$4 sm:$0xff]   ;;  %v797_v23 = vld [vmem:[%s916_s8] ss:$8 sps:$4 sm:$0xff]  }
  0x2a   : > { %v793_v19 = vld [vmem:[%s914_s7 + $0x48] sm:$0xff]   ;;  %498 = vmatprep.mubr.bf16.mxu0 %v799_v16  ;;  %506 = vmatprep.mubr.bf16.mxu1 %v802_v17  ;;  %v795_v21 = vld [vmem:[%s914_s7 + $0x40] sm:$0xff]   ;;  %v800_v24 = vld [vmem:[%s916_s8 + $0x10] ss:$8 sps:$4 sm:$0xff]  }
  0x2b   : > { %699 = vmatpush3.bf16.msra.mxu0 %v784_v8  ;;  %733 = vmatpush3.bf16.msra.mxu1 %v784_v8  ;;  %v794_v20 = vld [vmem:[%s914_s7 + $0x8] sm:$0xff]   ;;  %v796_v22 = vld [vmem:[%s914_s7] sm:$0xff]   ;;  %v312_v29 = vld [vmem:[%s1021_s3 + $0x10] sm:$0xff] }
  0x2c   : > { %700 = vmatprep.subr.bf16.mxu0 %v785_v9  ;;  %726 = vmatprep.subr.bf16.mxu1 %v785_v9  ;;  %v310_v27 = vld [vmem:[%s1021_s3] sm:$0xff]  ;;  %v311_v37 = vld [vmem:[%s1021_s3 + $0x8] sm:$0xff]  ;;  %v313_v39 = vld [vmem:[%s1021_s3 + $0x18] sm:$0xff] }
  0x2f   : > { %701 = vmatpush3.bf16.msra.mxu0 %v786_v10  ;;  %734 = vmatpush3.bf16.msra.mxu1 %v786_v10 }
  0x30   : > { %702 = vmatprep.subr.bf16.mxu0 %v787_v11  ;;  %727 = vmatprep.subr.bf16.mxu1 %v787_v11 }
  0x33   : > { %703 = vmatpush3.bf16.msra.mxu0 %v788_v12  ;;  %735 = vmatpush3.bf16.msra.mxu1 %v788_v12 }
  0x34   : > { %704 = vmatprep.subr.bf16.mxu0 %v789_v13  ;;  %728 = vmatprep.subr.bf16.mxu1 %v789_v13 }
  0x37   : > { %705 = vmatpush3.bf16.msra.mxu0 %v790_v14  ;;  %736 = vmatpush3.bf16.msra.mxu1 %v790_v14 }
  0x38   : > { %706 = vmatprep.subr.bf16.mxu0 %v791_v15  ;;  %729 = vmatprep.subr.bf16.mxu1 %v791_v15 }
  0x3b   : > { %707 = vmatpush3.bf16.msra.mxu0 %v792_v18  ;;  %737 = vmatpush3.bf16.msra.mxu1 %v792_v18 }
  0x3c   : > { %708 = vmatprep.subr.bf16.mxu0 %v793_v19  ;;  %730 = vmatprep.subr.bf16.mxu1 %v793_v19 }
  0x3f   : > { %709 = vmatpush3.bf16.msra.mxu0 %v794_v20  ;;  %738 = vmatpush3.bf16.msra.mxu1 %v794_v20 }
  0x40   : > { %710 = vmatprep.subr.bf16.mxu0 %v795_v21  ;;  %731 = vmatprep.subr.bf16.mxu1 %v795_v21 }
  0x43   : > { %711 = vmatpush3.bf16.msra.mxu0 %v796_v22  ;;  %739 = vmatpush3.bf16.msra.mxu1 %v796_v22 }
  0x46   : > { %499 = vmatmul.mubr.bf16.vlgmr.msra.gmra.mxu0 %v797_v23  ;;  %507 = vmatmul.mubr.bf16.vlgmr.msra.gmra.mxu1 %v800_v24 }
 0x106   : > { %v712_v25 = vpop.f32.mrf.mxu0  ;;  %v718_v26 = vpop.f32.mrf.mxu1 }
 0x108   : > { %v713_v28 = vpop.f32.mrf.mxu0  ;;  %v719_v30 = vpop.f32.mrf.mxu1 }
 0x109   : > { %v714_v31 = vadd.f32 %v713_v28, %v712_v25  ;;  %v720_v32 = vadd.f32 %v719_v30, %v718_v26 }
 0x10a   : > { %v715_v33 = vpop.f32.mrf.mxu0  ;;  %v721_v34 = vpop.f32.mrf.mxu1 }
 0x10b   : > { %v515_v35 = vadd.f32 %v714_v31, %v310_v27  ;;  %v517_v36 = vadd.f32 %v720_v32, %v312_v29 }
 0x10c   : > { %v716_v38 = vpop.f32.mrf.mxu0  ;;  %v722_v40 = vpop.f32.mrf.mxu1 }
 0x10d   : > { %519 = vst [vmem:[%s1021_s3] sm:$0xff] %v515_v35  ;;  %521 = vst [vmem:[%s1021_s3 + $0x10] sm:$0xff] %v517_v36  ;;  %v717_v41 = vadd.f32 %v716_v38, %v715_v33  ;;  %v723_v42 = vadd.f32 %v722_v40, %v721_v34  ;;  %526 = sbr.rel (%p689_p11) target bundleno = 284 (0x11c), region = 78 }
 0x10f   : > { %v516_v43 = vadd.f32 %v717_v41, %v311_v37  ;;  %v518_v44 = vadd.f32 %v723_v42, %v313_v39 }
 0x111   : > { %520 = vst [vmem:[%s1021_s3 + $0x8] sm:$0xff] %v516_v43  ;;  %522 = vst [vmem:[%s1021_s3 + $0x18] sm:$0xff] %v518_v44 }
 0x112   : > { %v690_v46 = vld [vmem:[%s1020_s2] ss:$0 sm:$0xff] }
 0x114   : > { %v527_v45 = vld [vmem:[%s1021_s3] sm:$0xff]  ;;  %v529_v50 = vld [vmem:[%s1021_s3 + $0x10] sm:$0xff] }
 0x115   : > { %v538_v48 = vadd.f32 %v690_v46, %v527_v45  ;;  %v540_v52 = vadd.f32 %v690_v46, %v529_v50 }
 0x117   : > { %542 = vst [vmem:[%s1021_s3] sm:$0xff] %v538_v48  ;;  %544 = vst [vmem:[%s1021_s3 + $0x10] sm:$0xff] %v540_v52 }
 0x118   : > { %v528_v47 = vld [vmem:[%s1021_s3 + $0x8] sm:$0xff]  ;;  %v530_v51 = vld [vmem:[%s1021_s3 + $0x18] sm:$0xff] }
 0x119   : > { %v539_v49 = vadd.f32 %v690_v46, %v528_v47  ;;  %v541_v53 = vadd.f32 %v690_v46, %v530_v51 }
 0x11b   : > { %543 = vst [vmem:[%s1021_s3 + $0x8] sm:$0xff] %v539_v49  ;;  %545 = vst [vmem:[%s1021_s3 + $0x18] sm:$0xff] %v541_v53 }
 0x11c PF: > { %s13_s16 = sadd.s32 1, %s841_s16   ;;  %s1022_s12 = smov %s829_s13 }
 0x11d   : > { %p10_p12 = scmp.ge.s32.totalorder %s13_s16, 6   ;;  %s1023_s13 = smov %s899_s20 }
 0x11e   : > { %s1024_s14 = smov %s837_s15  ;;  %s1025_s15 = smov %s1027_s17 }
 0x11f   :  { %12 = sbr.rel (!%p10_p12) target bundleno = 3 (0x3), region = 119 }

// kernel: forward.42
= control target key start
LH: loop header
LB: loop body
LE: loop exit
PB: predicated region body
PF: predicated region fallthrough
CT: control target
= control target key end

     0   :  { %s936_s12 = smov 0   ;;  %s938_s13 = smov 0   ;;  %s1107_s0 = inlined_call_operand.vmem [shape: bf16[16,2048], index: 0, kind: input, shape index: {}]   ;;  %s1108_s1 = inlined_call_operand.vmem [shape: bf16[2048,256], index: 1, kind: input, shape index: {}]   ;;  %s1109_s2 = inlined_call_operand.vmem [shape: f32[1,256], index: 2, kind: input, shape index: {}]   ;;  %s1110_s3 = inlined_call_operand.vmem [shape: f32[16,256], index: 3, kind: output, shape index: {}]  }
   0x1   :  { %s940_s14 = smov 0   ;;  %s942_s15 = smov 0  }
   0x2   :  { %s944_s16 = smov 0  }
   0x3 LB: > { %s25_s17 = sadd.s32 1, %s909_s15  ;;  %p48_p1 = scmp.ne.s32.totalorder %s901_s13, %s897_s12  ;;  %s913_s16 = sphi %s944_s16, %s13_s16   ;;  %s909_s15 = sphi %s942_s15, %s1114_s15   ;;  %s905_s14 = sphi %s940_s14, %s1113_s14   ;;  %s901_s13 = sphi %s938_s13, %s1112_s13   ;;  %s897_s12 = sphi %s936_s12, %s1111_s12  }
   0x4   : > { %p26_p0 = scmp.ge.s32.totalorder %s25_s17, 8  ;;  %p49_p2 = scmp.eq.s32.totalorder %s913_s16, 0 }
   0x5   : > { %s41_s19 = sadd.s32 1, %s901_s13  ;;  %p732_p5 = scmp.ge.s32.totalorder %s913_s16, 8 }
   0x6   : > { %s1116_s17 = smov (%p26_p0, %s25_s17), 0  ;;  %p50_p3 = por %p49_p2, %p48_p1 }
   0x7   : > { %s37_s18 = ssub.s32 %s909_s15, %s1116_s17  ;;  %164 = sbr.rel (%p732_p5) target bundleno = 18 (0x12), region = 20 }
   0x8   : > { %p39_p4 = scmp.eq.s32.totalorder %s37_s18, 0 }
   0xa   : > { %s971_s20 = scalar_select %p39_p4, %s901_s13, %s41_s19  }
   0xc   : > { %167 = sbr.rel (!%p50_p3) target bundleno = 18 (0x12), region = 24  ;;  %s169_s21 = sand.u32 (%p50_p3), 1, %s901_s13  }
   0xd   : > { %s781_s22 = sshll.u32 (%p50_p3), %s909_s15, 3  ;;  %s733_s23 = sshll.u32 (%p50_p3), %s169_s21, 4 }
   0xe   : > { %s177_s26 = scalar_lea.vmem (%p50_p3), %s1107_s0, %s781_s22  ;;  %s171_s27 = scalar_lea.vmem (%p50_p3), [#allocation2], %s733_s23 }
   0xf   : > { %v208_v0 = vld [vmem:[%s177_s26] sm:$0xff] (%p50_p3) }
  0x10   : > { %v210_v1 = vld [vmem:[%s177_s26 + $0x40] sm:$0xff] (%p50_p3)  ;;  %209 = vst [vmem:[%s171_s27] sm:$0xff] (%p50_p3), %v208_v0 }
  0x11   : > { %211 = vst [vmem:[%s171_s27 + $0x8] sm:$0xff] %v210_v1 }
  0x12 PF: > { %p736_p6 = scmp.ge.s32.totalorder %s913_s16, 1  ;;  %p231_p7 = scmp.lt.s32.totalorder %s913_s16, 9 }
  0x14   : > { %p232_p8 = pnand %p736_p6, %p231_p7 }
  0x15   : > { %s238_s28 = sand.u32 (!%p232_p8), 1, %s897_s12   ;;  %s738_s29 = sshll.u32 (!%p232_p8), %s905_s14, 5 }
  0x16   : > { %235 = sbr.rel (%p232_p8) target bundleno = 314 (0x13a), region = 66  ;;  %s983_s30 = sshll.u32 (!%p232_p8), %s238_s28, 4 }
  0x17   : > { %p284_p9 = scmp.lt.s32.totalorder (!%p232_p8), %s738_s29, 255  ;;  %s240_s8 = scalar_lea.vmem (!%p232_p8), [#allocation2], %s983_s30 }
  0x18   : > { %p741_p10 = scmp.ne.s32.totalorder (!%p232_p8), %s905_s14, 0 }
  0x1b   : > { %s1118_s29 = smov (!%p284_p9, %s738_s29), 255  ;;  %314 = sbr.rel (%p741_p10) target bundleno = 35 (0x23), region = 74 }
  0x1c   : > { %s782_s4 = sshll.u32 %s1118_s29, 3 }
  0x1d   : > { %s988_s7 = scalar_lea.vmem %s1108_s1, %s782_s4 }
  0x20   : > { %v915_v2 = vmov 0.0  }
  0x21   : > { %315 = vst [vmem:[%s1110_s3] sm:$0xff] %v915_v2  ;;  %316 = vst [vmem:[%s1110_s3 + $0x8] sm:$0xff] %v915_v2 }
  0x22   : > { %317 = vst [vmem:[%s1110_s3 + $0x10] sm:$0xff] %v915_v2  ;;  %318 = vst [vmem:[%s1110_s3 + $0x18] sm:$0xff] %v915_v2 }
  0x23 PF: > { %v824_v3 = vld [vmem:[%s988_s7 + $0x74] ss:$8 sps:$4 sm:$0xff]   ;;  %v826_v4 = vld [vmem:[%s988_s7 + $0x70] ss:$8 sps:$4 sm:$0xff]   ;;  %v827_v5 = vld [vmem:[%s988_s7 + $0x64] ss:$8 sps:$4 sm:$0xff]  }
  0x24   : > { %527 = vmatprep.subr.bf16.mxu0 %v824_v3  ;;  %v829_v6 = vld [vmem:[%s988_s7 + $0x60] ss:$8 sps:$4 sm:$0xff]   ;;  %v830_v7 = vld [vmem:[%s988_s7 + $0x54] ss:$8 sps:$4 sm:$0xff]   ;;  %v832_v8 = vld [vmem:[%s988_s7 + $0x50] ss:$8 sps:$4 sm:$0xff]  }
  0x25   : > { %528 = vmatpush1.bf16.msra.mxu0 %v826_v4  ;;  %v833_v9 = vld [vmem:[%s988_s7 + $0x44] ss:$8 sps:$4 sm:$0xff]   ;;  %v835_v10 = vld [vmem:[%s988_s7 + $0x40] ss:$8 sps:$4 sm:$0xff]   ;;  %v836_v11 = vld [vmem:[%s988_s7 + $0x34] ss:$8 sps:$4 sm:$0xff]  }
  0x26   : > { %529 = vmatprep.subr.bf16.mxu0 %v827_v5  ;;  %v838_v12 = vld [vmem:[%s988_s7 + $0x30] ss:$8 sps:$4 sm:$0xff]   ;;  %v839_v13 = vld [vmem:[%s988_s7 + $0x24] ss:$8 sps:$4 sm:$0xff]   ;;  %v841_v14 = vld [vmem:[%s988_s7 + $0x20] ss:$8 sps:$4 sm:$0xff]  }
  0x27   : > { %v842_v15 = vld [vmem:[%s988_s7 + $0x14] ss:$8 sps:$4 sm:$0xff]   ;;  %v844_v17 = vld [vmem:[%s988_s7 + $0x10] ss:$8 sps:$4 sm:$0xff]   ;;  %v845_v18 = vld [vmem:[%s988_s7 + $0x4] ss:$8 sps:$4 sm:$0xff]  }
  0x28   : > { %v874_v16 = vld [vmem:[%s240_s8 + $0x4] ss:$8 sps:$4 sm:$0xff]   ;;  %v847_v19 = vld [vmem:[%s988_s7] ss:$8 sps:$4 sm:$0xff]   ;;  %v850_v21 = vld [vmem:[%s988_s7 + $0xf0] ss:$8 sps:$4 sm:$0xff]  }
  0x29   : > { %530 = vmatpush1.bf16.msra.mxu0 %v829_v6  ;;  %559 = vmatprep.mubr.bf16.mxu0 %v874_v16  ;;  %v848_v20 = vld [vmem:[%s988_s7 + $0xf4] ss:$8 sps:$4 sm:$0xff]   ;;  %v851_v22 = vld [vmem:[%s988_s7 + $0xe4] ss:$8 sps:$4 sm:$0xff]   ;;  %v853_v23 = vld [vmem:[%s988_s7 + $0xe0] ss:$8 sps:$4 sm:$0xff]  }
  0x2a   : > { %531 = vmatprep.subr.bf16.mxu0 %v830_v7  ;;  %v854_v24 = vld [vmem:[%s988_s7 + $0xd4] ss:$8 sps:$4 sm:$0xff]   ;;  %v856_v25 = vld [vmem:[%s988_s7 + $0xd0] ss:$8 sps:$4 sm:$0xff]   ;;  %v857_v26 = vld [vmem:[%s988_s7 + $0xc4] ss:$8 sps:$4 sm:$0xff]  }
  0x2b   : > { %v859_v27 = vld [vmem:[%s988_s7 + $0xc0] ss:$8 sps:$4 sm:$0xff]   ;;  %v860_v28 = vld [vmem:[%s988_s7 + $0xb4] ss:$8 sps:$4 sm:$0xff]   ;;  %v862_v29 = vld [vmem:[%s988_s7 + $0xb0] ss:$8 sps:$4 sm:$0xff]  }
  0x2c   : > { %v863_v30 = vld [vmem:[%s988_s7 + $0xa4] ss:$8 sps:$4 sm:$0xff]   ;;  %v865_v31 = vld [vmem:[%s988_s7 + $0xa0] ss:$8 sps:$4 sm:$0xff]   ;;  %v866_v32 = vld [vmem:[%s988_s7 + $0x94] ss:$8 sps:$4 sm:$0xff]  }
  0x2d   : > { %532 = vmatpush1.bf16.msra.mxu0 %v832_v8  ;;  %v868_v33 = vld [vmem:[%s988_s7 + $0x90] ss:$8 sps:$4 sm:$0xff]   ;;  %v869_v34 = vld [vmem:[%s988_s7 + $0x84] ss:$8 sps:$4 sm:$0xff]   ;;  %v871_v35 = vld [vmem:[%s988_s7 + $0x80] ss:$8 sps:$4 sm:$0xff]  }
  0x2e   : > { %533 = vmatprep.subr.bf16.mxu0 %v833_v9  ;;  %v872_v36 = vld [vmem:[%s240_s8] ss:$8 sps:$4 sm:$0xff]   ;;  %p776_p11 = scmp.ne.s32.totalorder %s905_s14, 7 }
  0x2f   : > { %v319_v37 = vld [vmem:[%s1110_s3] sm:$0xff]  ;;  %v320_v39 = vld [vmem:[%s1110_s3 + $0x8] sm:$0xff]  ;;  %v321_v42 = vld [vmem:[%s1110_s3 + $0x10] sm:$0xff] }
  0x30   : > { %v322_v45 = vld [vmem:[%s1110_s3 + $0x18] sm:$0xff] }
  0x31   : > { %534 = vmatpush1.bf16.msra.mxu0 %v835_v10 }
  0x32   : > { %535 = vmatprep.subr.bf16.mxu0 %v836_v11 }
  0x35   : > { %536 = vmatpush1.bf16.msra.mxu0 %v838_v12 }
  0x36   : > { %537 = vmatprep.subr.bf16.mxu0 %v839_v13 }
  0x39   : > { %538 = vmatpush1.bf16.msra.mxu0 %v841_v14 }
  0x3a   : > { %539 = vmatprep.subr.bf16.mxu0 %v842_v15 }
  0x3d   : > { %540 = vmatpush1.bf16.msra.mxu0 %v844_v17 }
  0x3e   : > { %541 = vmatprep.subr.bf16.mxu0 %v845_v18 }
  0x41   : > { %542 = vmatpush1.bf16.msra.mxu0 %v847_v19 }
  0x42   : > { %543 = vmatprep.subr.bf16.mxu0 %v848_v20 }
  0x45   : > { %544 = vmatpush2.bf16.msra.mxu0 %v850_v21 }
  0x46   : > { %545 = vmatprep.subr.bf16.mxu0 %v851_v22 }
  0x49   : > { %546 = vmatpush2.bf16.msra.mxu0 %v853_v23 }
  0x4a   : > { %547 = vmatprep.subr.bf16.mxu0 %v854_v24 }
  0x4d   : > { %548 = vmatpush2.bf16.msra.mxu0 %v856_v25 }
  0x4e   : > { %549 = vmatprep.subr.bf16.mxu0 %v857_v26 }
  0x51   : > { %550 = vmatpush2.bf16.msra.mxu0 %v859_v27 }
  0x52   : > { %551 = vmatprep.subr.bf16.mxu0 %v860_v28 }
  0x55   : > { %552 = vmatpush2.bf16.msra.mxu0 %v862_v29 }
  0x56   : > { %553 = vmatprep.subr.bf16.mxu0 %v863_v30 }
  0x59   : > { %554 = vmatpush2.bf16.msra.mxu0 %v865_v31 }
  0x5a   : > { %555 = vmatprep.subr.bf16.mxu0 %v866_v32 }
  0x5d   : > { %556 = vmatpush2.bf16.msra.mxu0 %v868_v33 }
  0x5e   : > { %557 = vmatprep.subr.bf16.mxu0 %v869_v34 }
  0x61   : > { %558 = vmatpush2.bf16.msra.mxu0 %v871_v35 }
  0x64   : > { %560 = vmatmul.mubr.bf16.vlgmr.msra.gmra.mxu0 %v872_v36 }
 0x124   : > { %v561_v38 = vpop.f32.mrf.mxu0 }
 0x125   : > { %v570_v40 = vadd.f32 %v561_v38, %v319_v37 }
 0x126   : > { %v563_v41 = vpop.f32.mrf.mxu0 }
 0x127   : > { %574 = vst [vmem:[%s1110_s3] sm:$0xff] %v570_v40  ;;  %v571_v43 = vadd.f32 %v563_v41, %v320_v39 }
 0x128   : > { %v565_v44 = vpop.f32.mrf.mxu0 }
 0x129   : > { %575 = vst [vmem:[%s1110_s3 + $0x8] sm:$0xff] %v571_v43  ;;  %v572_v46 = vadd.f32 %v565_v44, %v321_v42  ;;  %581 = sbr.rel (%p776_p11) target bundleno = 314 (0x13a), region = 78 }
 0x12a   : > { %v567_v47 = vpop.f32.mrf.mxu0 }
 0x12b   : > { %576 = vst [vmem:[%s1110_s3 + $0x10] sm:$0xff] %v572_v46  ;;  %v573_v48 = vadd.f32 %v567_v47, %v322_v45 }
 0x12d   : > { %577 = vst [vmem:[%s1110_s3 + $0x18] sm:$0xff] %v573_v48 }
 0x12e   : > { %v588_v49 = vlaneseq  ;;  %v586_v51 = vld [vmem:[%s1109_s2] sm:$0x3] }
 0x12f   : > { %v582_v52 = vld [vmem:[%s1110_s3] sm:$0xff] }
 0x130   : > { %v589_v50 = vshrl.u32 %v588_v49, 7  ;;  %v583_v55 = vld [vmem:[%s1110_s3 + $0x8] sm:$0xff] }
 0x132   : > { %v590_v53 = vsub.s32 0, %v589_v50  ;;  %v594_v54 = vsub.s32 1, %v589_v50  ;;  %v584_v56 = vld [vmem:[%s1110_s3 + $0x10] sm:$0xff] }
 0x134   : > { %v585_v57 = vld [vmem:[%s1110_s3 + $0x18] sm:$0xff]  ;;  %v591_v58 = vrot.slane %v586_v51, %v590_v53  ;;  %v595_v59 = vrot.slane %v586_v51, %v594_v54 }
 0x136   : > { %v598_v60 = vadd.f32 %v591_v58, %v582_v52  ;;  %v599_v61 = vadd.f32 %v595_v59, %v583_v55  ;;  %v600_v62 = vadd.f32 %v591_v58, %v584_v56  ;;  %v601_v63 = vadd.f32 %v595_v59, %v585_v57 }
 0x138   : > { %602 = vst [vmem:[%s1110_s3] sm:$0xff] %v598_v60  ;;  %603 = vst [vmem:[%s1110_s3 + $0x8] sm:$0xff] %v599_v61 }
 0x139   : > { %604 = vst [vmem:[%s1110_s3 + $0x10] sm:$0xff] %v600_v62  ;;  %605 = vst [vmem:[%s1110_s3 + $0x18] sm:$0xff] %v601_v63 }
 0x13a PF: > { %s13_s16 = sadd.s32 1, %s913_s16   ;;  %s1111_s12 = smov %s901_s13 }
 0x13b   : > { %p10_p12 = scmp.ge.s32.totalorder %s13_s16, 10   ;;  %s1112_s13 = smov %s971_s20 }
 0x13c   : > { %s1113_s14 = smov %s909_s15  ;;  %s1114_s15 = smov %s1116_s17 }
 0x13d   :  { %12 = sbr.rel (!%p10_p12) target bundleno = 3 (0x3), region = 119 }

// kernel: forward.43
= control target key start
LH: loop header
LB: loop body
LE: loop exit
PB: predicated region body
PF: predicated region fallthrough
CT: control target
= control target key end

     0   :  { %s936_s12 = smov 0   ;;  %s938_s13 = smov 0   ;;  %s1107_s0 = inlined_call_operand.vmem [shape: bf16[16,2304], index: 0, kind: input, shape index: {}]   ;;  %s1108_s1 = inlined_call_operand.vmem [shape: bf16[2304,256], index: 1, kind: input, shape index: {}]   ;;  %s1109_s2 = inlined_call_operand.vmem [shape: f32[1,256], index: 2, kind: input, shape index: {}]   ;;  %s1110_s3 = inlined_call_operand.vmem [shape: f32[16,256], index: 3, kind: output, shape index: {}]  }
   0x1   :  { %s940_s14 = smov 0   ;;  %s942_s15 = smov 0  }
   0x2   :  { %s944_s16 = smov 0  }
   0x3 LB: > { %s25_s17 = sadd.s32 1, %s909_s15  ;;  %p48_p1 = scmp.ne.s32.totalorder %s901_s13, %s897_s12  ;;  %s913_s16 = sphi %s944_s16, %s13_s16   ;;  %s909_s15 = sphi %s942_s15, %s1114_s15   ;;  %s905_s14 = sphi %s940_s14, %s1113_s14   ;;  %s901_s13 = sphi %s938_s13, %s1112_s13   ;;  %s897_s12 = sphi %s936_s12, %s1111_s12  }
   0x4   : > { %p26_p0 = scmp.ge.s32.totalorder %s25_s17, 9  ;;  %p49_p2 = scmp.eq.s32.totalorder %s913_s16, 0 }
   0x5   : > { %s41_s19 = sadd.s32 1, %s901_s13  ;;  %p732_p5 = scmp.ge.s32.totalorder %s913_s16, 9 }
   0x6   : > { %s1116_s17 = smov (%p26_p0, %s25_s17), 0  ;;  %p50_p3 = por %p49_p2, %p48_p1 }
   0x7   : > { %s37_s18 = ssub.s32 %s909_s15, %s1116_s17  ;;  %164 = sbr.rel (%p732_p5) target bundleno = 17 (0x11), region = 20 }
   0x8   : > { %p39_p4 = scmp.eq.s32.totalorder %s37_s18, 0 }
   0xa   : > { %s971_s20 = scalar_select %p39_p4, %s901_s13, %s41_s19  }
   0xc   : > { %167 = sbr.rel (!%p50_p3) target bundleno = 17 (0x11), region = 24  ;;  %s169_s21 = sand.u32 (%p50_p3), 1, %s901_s13  }
   0xd   : > { %s781_s22 = sshll.u32 (%p50_p3), %s909_s15, 3  ;;  %s733_s23 = sshll.u32 (%p50_p3), %s169_s21, 4 }
   0xe   : > { %s177_s26 = scalar_lea.vmem (%p50_p3), %s1107_s0, %s781_s22  ;;  %s171_s27 = scalar_lea.vmem (%p50_p3), [#allocation2], %s733_s23 }
   0xf   : > { %v208_v0 = vld [vmem:[%s177_s26] sm:$0xff] (%p50_p3)  ;;  %v210_v1 = vld [vmem:[%s177_s26 + $0x48] sm:$0xff] (%p50_p3) }
  0x10   : > { %209 = vst [vmem:[%s171_s27] sm:$0xff] (%p50_p3), %v208_v0  ;;  %211 = vst [vmem:[%s171_s27 + $0x8] sm:$0xff] (%p50_p3), %v210_v1 }
  0x11 PF: > { %p736_p6 = scmp.ge.s32.totalorder %s913_s16, 1  ;;  %p231_p7 = scmp.lt.s32.totalorder %s913_s16, 10 }
  0x13   : > { %p232_p8 = pnand %p736_p6, %p231_p7 }
  0x14   : > { %s238_s28 = sand.u32 (!%p232_p8), 1, %s897_s12   ;;  %s738_s29 = sshll.u32 (!%p232_p8), %s905_s14, 5 }
  0x15   : > { %235 = sbr.rel (%p232_p8) target bundleno = 313 (0x139), region = 66  ;;  %s983_s30 = sshll.u32 (!%p232_p8), %s238_s28, 4 }
  0x16   : > { %p284_p9 = scmp.lt.s32.totalorder (!%p232_p8), %s738_s29, 287  ;;  %s240_s8 = scalar_lea.vmem (!%p232_p8), [#allocation2], %s983_s30 }
  0x17   : > { %p741_p10 = scmp.ne.s32.totalorder (!%p232_p8), %s905_s14, 0 }
  0x1a   : > { %s1118_s29 = smov (!%p284_p9, %s738_s29), 287  ;;  %314 = sbr.rel (%p741_p10) target bundleno = 34 (0x22), region = 74 }
  0x1b   : > { %s782_s4 = sshll.u32 %s1118_s29, 3 }
  0x1c   : > { %s988_s7 = scalar_lea.vmem %s1108_s1, %s782_s4 }
  0x1f   : > { %v915_v2 = vmov 0.0  }
  0x20   : > { %315 = vst [vmem:[%s1110_s3] sm:$0xff] %v915_v2  ;;  %316 = vst [vmem:[%s1110_s3 + $0x8] sm:$0xff] %v915_v2 }
  0x21   : > { %317 = vst [vmem:[%s1110_s3 + $0x10] sm:$0xff] %v915_v2  ;;  %318 = vst [vmem:[%s1110_s3 + $0x18] sm:$0xff] %v915_v2 }
  0x22 PF: > { %v824_v3 = vld [vmem:[%s988_s7 + $0x74] ss:$8 sps:$4 sm:$0xff]   ;;  %v826_v4 = vld [vmem:[%s988_s7 + $0x70] ss:$8 sps:$4 sm:$0xff]   ;;  %v827_v5 = vld [vmem:[%s988_s7 + $0x64] ss:$8 sps:$4 sm:$0xff]  }
  0x23   : > { %527 = vmatprep.subr.bf16.mxu0 %v824_v3  ;;  %v829_v6 = vld [vmem:[%s988_s7 + $0x60] ss:$8 sps:$4 sm:$0xff]   ;;  %v830_v7 = vld [vmem:[%s988_s7 + $0x54] ss:$8 sps:$4 sm:$0xff]   ;;  %v832_v8 = vld [vmem:[%s988_s7 + $0x50] ss:$8 sps:$4 sm:$0xff]  }
  0x24   : > { %528 = vmatpush1.bf16.msra.mxu0 %v826_v4  ;;  %v833_v9 = vld [vmem:[%s988_s7 + $0x44] ss:$8 sps:$4 sm:$0xff]   ;;  %v835_v10 = vld [vmem:[%s988_s7 + $0x40] ss:$8 sps:$4 sm:$0xff]   ;;  %v836_v11 = vld [vmem:[%s988_s7 + $0x34] ss:$8 sps:$4 sm:$0xff]  }
  0x25   : > { %529 = vmatprep.subr.bf16.mxu0 %v827_v5  ;;  %v838_v12 = vld [vmem:[%s988_s7 + $0x30] ss:$8 sps:$4 sm:$0xff]   ;;  %v839_v13 = vld [vmem:[%s988_s7 + $0x24] ss:$8 sps:$4 sm:$0xff]   ;;  %v841_v14 = vld [vmem:[%s988_s7 + $0x20] ss:$8 sps:$4 sm:$0xff]  }
  0x26   : > { %v842_v15 = vld [vmem:[%s988_s7 + $0x14] ss:$8 sps:$4 sm:$0xff]   ;;  %v844_v17 = vld [vmem:[%s988_s7 + $0x10] ss:$8 sps:$4 sm:$0xff]   ;;  %v845_v18 = vld [vmem:[%s988_s7 + $0x4] ss:$8 sps:$4 sm:$0xff]  }
  0x27   : > { %v874_v16 = vld [vmem:[%s240_s8 + $0x4] ss:$8 sps:$4 sm:$0xff]   ;;  %v847_v19 = vld [vmem:[%s988_s7] ss:$8 sps:$4 sm:$0xff]   ;;  %v850_v21 = vld [vmem:[%s988_s7 + $0xf0] ss:$8 sps:$4 sm:$0xff]  }
  0x28   : > { %530 = vmatpush1.bf16.msra.mxu0 %v829_v6  ;;  %559 = vmatprep.mubr.bf16.mxu0 %v874_v16  ;;  %v848_v20 = vld [vmem:[%s988_s7 + $0xf4] ss:$8 sps:$4 sm:$0xff]   ;;  %v851_v22 = vld [vmem:[%s988_s7 + $0xe4] ss:$8 sps:$4 sm:$0xff]   ;;  %v853_v23 = vld [vmem:[%s988_s7 + $0xe0] ss:$8 sps:$4 sm:$0xff]  }
  0x29   : > { %531 = vmatprep.subr.bf16.mxu0 %v830_v7  ;;  %v854_v24 = vld [vmem:[%s988_s7 + $0xd4] ss:$8 sps:$4 sm:$0xff]   ;;  %v856_v25 = vld [vmem:[%s988_s7 + $0xd0] ss:$8 sps:$4 sm:$0xff]   ;;  %v857_v26 = vld [vmem:[%s988_s7 + $0xc4] ss:$8 sps:$4 sm:$0xff]  }
  0x2a   : > { %v859_v27 = vld [vmem:[%s988_s7 + $0xc0] ss:$8 sps:$4 sm:$0xff]   ;;  %v860_v28 = vld [vmem:[%s988_s7 + $0xb4] ss:$8 sps:$4 sm:$0xff]   ;;  %v862_v29 = vld [vmem:[%s988_s7 + $0xb0] ss:$8 sps:$4 sm:$0xff]  }
  0x2b   : > { %v863_v30 = vld [vmem:[%s988_s7 + $0xa4] ss:$8 sps:$4 sm:$0xff]   ;;  %v865_v31 = vld [vmem:[%s988_s7 + $0xa0] ss:$8 sps:$4 sm:$0xff]   ;;  %v866_v32 = vld [vmem:[%s988_s7 + $0x94] ss:$8 sps:$4 sm:$0xff]  }
  0x2c   : > { %532 = vmatpush1.bf16.msra.mxu0 %v832_v8  ;;  %v868_v33 = vld [vmem:[%s988_s7 + $0x90] ss:$8 sps:$4 sm:$0xff]   ;;  %v869_v34 = vld [vmem:[%s988_s7 + $0x84] ss:$8 sps:$4 sm:$0xff]   ;;  %v871_v35 = vld [vmem:[%s988_s7 + $0x80] ss:$8 sps:$4 sm:$0xff]  }
  0x2d   : > { %533 = vmatprep.subr.bf16.mxu0 %v833_v9  ;;  %v872_v36 = vld [vmem:[%s240_s8] ss:$8 sps:$4 sm:$0xff]   ;;  %p776_p11 = scmp.ne.s32.totalorder %s905_s14, 8 }
  0x2e   : > { %v319_v37 = vld [vmem:[%s1110_s3] sm:$0xff]  ;;  %v320_v39 = vld [vmem:[%s1110_s3 + $0x8] sm:$0xff]  ;;  %v321_v42 = vld [vmem:[%s1110_s3 + $0x10] sm:$0xff] }
  0x2f   : > { %v322_v45 = vld [vmem:[%s1110_s3 + $0x18] sm:$0xff] }
  0x30   : > { %534 = vmatpush1.bf16.msra.mxu0 %v835_v10 }
  0x31   : > { %535 = vmatprep.subr.bf16.mxu0 %v836_v11 }
  0x34   : > { %536 = vmatpush1.bf16.msra.mxu0 %v838_v12 }
  0x35   : > { %537 = vmatprep.subr.bf16.mxu0 %v839_v13 }
  0x38   : > { %538 = vmatpush1.bf16.msra.mxu0 %v841_v14 }
  0x39   : > { %539 = vmatprep.subr.bf16.mxu0 %v842_v15 }
  0x3c   : > { %540 = vmatpush1.bf16.msra.mxu0 %v844_v17 }
  0x3d   : > { %541 = vmatprep.subr.bf16.mxu0 %v845_v18 }
  0x40   : > { %542 = vmatpush1.bf16.msra.mxu0 %v847_v19 }
  0x41   : > { %543 = vmatprep.subr.bf16.mxu0 %v848_v20 }
  0x44   : > { %544 = vmatpush2.bf16.msra.mxu0 %v850_v21 }
  0x45   : > { %545 = vmatprep.subr.bf16.mxu0 %v851_v22 }
  0x48   : > { %546 = vmatpush2.bf16.msra.mxu0 %v853_v23 }
  0x49   : > { %547 = vmatprep.subr.bf16.mxu0 %v854_v24 }
  0x4c   : > { %548 = vmatpush2.bf16.msra.mxu0 %v856_v25 }
  0x4d   : > { %549 = vmatprep.subr.bf16.mxu0 %v857_v26 }
  0x50   : > { %550 = vmatpush2.bf16.msra.mxu0 %v859_v27 }
  0x51   : > { %551 = vmatprep.subr.bf16.mxu0 %v860_v28 }
  0x54   : > { %552 = vmatpush2.bf16.msra.mxu0 %v862_v29 }
  0x55   : > { %553 = vmatprep.subr.bf16.mxu0 %v863_v30 }
  0x58   : > { %554 = vmatpush2.bf16.msra.mxu0 %v865_v31 }
  0x59   : > { %555 = vmatprep.subr.bf16.mxu0 %v866_v32 }
  0x5c   : > { %556 = vmatpush2.bf16.msra.mxu0 %v868_v33 }
  0x5d   : > { %557 = vmatprep.subr.bf16.mxu0 %v869_v34 }
  0x60   : > { %558 = vmatpush2.bf16.msra.mxu0 %v871_v35 }
  0x63   : > { %560 = vmatmul.mubr.bf16.vlgmr.msra.gmra.mxu0 %v872_v36 }
 0x123   : > { %v561_v38 = vpop.f32.mrf.mxu0 }
 0x124   : > { %v570_v40 = vadd.f32 %v561_v38, %v319_v37 }
 0x125   : > { %v563_v41 = vpop.f32.mrf.mxu0 }
 0x126   : > { %574 = vst [vmem:[%s1110_s3] sm:$0xff] %v570_v40  ;;  %v571_v43 = vadd.f32 %v563_v41, %v320_v39 }
 0x127   : > { %v565_v44 = vpop.f32.mrf.mxu0 }
 0x128   : > { %575 = vst [vmem:[%s1110_s3 + $0x8] sm:$0xff] %v571_v43  ;;  %v572_v46 = vadd.f32 %v565_v44, %v321_v42  ;;  %581 = sbr.rel (%p776_p11) target bundleno = 313 (0x139), region = 78 }
 0x129   : > { %v567_v47 = vpop.f32.mrf.mxu0 }
 0x12a   : > { %576 = vst [vmem:[%s1110_s3 + $0x10] sm:$0xff] %v572_v46  ;;  %v573_v48 = vadd.f32 %v567_v47, %v322_v45 }
 0x12c   : > { %577 = vst [vmem:[%s1110_s3 + $0x18] sm:$0xff] %v573_v48 }
 0x12d   : > { %v588_v49 = vlaneseq  ;;  %v586_v51 = vld [vmem:[%s1109_s2] sm:$0x3] }
 0x12e   : > { %v582_v52 = vld [vmem:[%s1110_s3] sm:$0xff] }
 0x12f   : > { %v589_v50 = vshrl.u32 %v588_v49, 7  ;;  %v583_v55 = vld [vmem:[%s1110_s3 + $0x8] sm:$0xff] }
 0x131   : > { %v590_v53 = vsub.s32 0, %v589_v50  ;;  %v594_v54 = vsub.s32 1, %v589_v50  ;;  %v584_v56 = vld [vmem:[%s1110_s3 + $0x10] sm:$0xff] }
 0x133   : > { %v585_v57 = vld [vmem:[%s1110_s3 + $0x18] sm:$0xff]  ;;  %v591_v58 = vrot.slane %v586_v51, %v590_v53  ;;  %v595_v59 = vrot.slane %v586_v51, %v594_v54 }
 0x135   : > { %v598_v60 = vadd.f32 %v591_v58, %v582_v52  ;;  %v599_v61 = vadd.f32 %v595_v59, %v583_v55  ;;  %v600_v62 = vadd.f32 %v591_v58, %v584_v56  ;;  %v601_v63 = vadd.f32 %v595_v59, %v585_v57 }
 0x137   : > { %602 = vst [vmem:[%s1110_s3] sm:$0xff] %v598_v60  ;;  %603 = vst [vmem:[%s1110_s3 + $0x8] sm:$0xff] %v599_v61 }
 0x138   : > { %604 = vst [vmem:[%s1110_s3 + $0x10] sm:$0xff] %v600_v62  ;;  %605 = vst [vmem:[%s1110_s3 + $0x18] sm:$0xff] %v601_v63 }
 0x139 PF: > { %s13_s16 = sadd.s32 1, %s913_s16   ;;  %s1111_s12 = smov %s901_s13 }
 0x13a   : > { %p10_p12 = scmp.ge.s32.totalorder %s13_s16, 11   ;;  %s1112_s13 = smov %s971_s20 }
 0x13b   : > { %s1113_s14 = smov %s909_s15  ;;  %s1114_s15 = smov %s1116_s17 }
 0x13c   :  { %12 = sbr.rel (!%p10_p12) target bundleno = 3 (0x3), region = 119 }

// kernel: forward.45
= control target key start
LH: loop header
LB: loop body
LE: loop exit
PB: predicated region body
PF: predicated region fallthrough
CT: control target
= control target key end

     0   :  { %s948_s12 = smov 0   ;;  %s950_s13 = smov 0   ;;  %s1119_s0 = inlined_call_operand.vmem [shape: bf16[16,2304], index: 0, kind: input, shape index: {}]   ;;  %s1120_s1 = inlined_call_operand.vmem [shape: bf16[2304,256], index: 1, kind: input, shape index: {}]   ;;  %s1121_s2 = inlined_call_operand.vmem [shape: f32[1,256], index: 2, kind: input, shape index: {}]   ;;  %s1122_s3 = inlined_call_operand.vmem [shape: f32[16,256], index: 3, kind: output, shape index: {}]  }
   0x1   :  { %s952_s14 = smov 0   ;;  %s954_s15 = smov 0  }
   0x2   :  { %s956_s16 = smov 0  }
   0x3 LB: > { %s25_s17 = sadd.s32 1, %s921_s15  ;;  %p48_p1 = scmp.ne.s32.totalorder %s913_s13, %s909_s12  ;;  %s925_s16 = sphi %s956_s16, %s13_s16   ;;  %s921_s15 = sphi %s954_s15, %s1126_s15   ;;  %s917_s14 = sphi %s952_s14, %s1125_s14   ;;  %s913_s13 = sphi %s950_s13, %s1124_s13   ;;  %s909_s12 = sphi %s948_s12, %s1123_s12  }
   0x4   : > { %p26_p0 = scmp.ge.s32.totalorder %s25_s17, 9  ;;  %p49_p2 = scmp.eq.s32.totalorder %s925_s16, 0 }
   0x5   : > { %s41_s19 = sadd.s32 1, %s913_s13  ;;  %p736_p5 = scmp.ge.s32.totalorder %s925_s16, 9 }
   0x6   : > { %s1128_s17 = smov (%p26_p0, %s25_s17), 0  ;;  %p50_p3 = por %p49_p2, %p48_p1 }
   0x7   : > { %s37_s18 = ssub.s32 %s921_s15, %s1128_s17  ;;  %164 = sbr.rel (%p736_p5) target bundleno = 17 (0x11), region = 20 }
   0x8   : > { %p39_p4 = scmp.eq.s32.totalorder %s37_s18, 0 }
   0xa   : > { %s983_s20 = scalar_select %p39_p4, %s913_s13, %s41_s19  }
   0xc   : > { %167 = sbr.rel (!%p50_p3) target bundleno = 17 (0x11), region = 24  ;;  %s169_s21 = sand.u32 (%p50_p3), 1, %s913_s13  }
   0xd   : > { %s785_s22 = sshll.u32 (%p50_p3), %s921_s15, 3  ;;  %s737_s23 = sshll.u32 (%p50_p3), %s169_s21, 4 }
   0xe   : > { %s177_s26 = scalar_lea.vmem (%p50_p3), %s1119_s0, %s785_s22  ;;  %s171_s27 = scalar_lea.vmem (%p50_p3), [#allocation2], %s737_s23 }
   0xf   : > { %v208_v0 = vld [vmem:[%s177_s26] sm:$0xff] (%p50_p3)  ;;  %v210_v1 = vld [vmem:[%s177_s26 + $0x48] sm:$0xff] (%p50_p3) }
  0x10   : > { %209 = vst [vmem:[%s171_s27] sm:$0xff] (%p50_p3), %v208_v0  ;;  %211 = vst [vmem:[%s171_s27 + $0x8] sm:$0xff] (%p50_p3), %v210_v1 }
  0x11 PF: > { %p740_p6 = scmp.ge.s32.totalorder %s925_s16, 1  ;;  %p231_p7 = scmp.lt.s32.totalorder %s925_s16, 10 }
  0x13   : > { %p232_p8 = pnand %p740_p6, %p231_p7 }
  0x14   : > { %s238_s28 = sand.u32 (!%p232_p8), 1, %s909_s12   ;;  %s742_s29 = sshll.u32 (!%p232_p8), %s917_s14, 5 }
  0x15   : > { %235 = sbr.rel (%p232_p8) target bundleno = 329 (0x149), region = 66  ;;  %s995_s30 = sshll.u32 (!%p232_p8), %s238_s28, 4 }
  0x16   : > { %p284_p9 = scmp.lt.s32.totalorder (!%p232_p8), %s742_s29, 287  ;;  %s240_s8 = scalar_lea.vmem (!%p232_p8), [#allocation2], %s995_s30 }
  0x17   : > { %p745_p10 = scmp.ne.s32.totalorder (!%p232_p8), %s917_s14, 0 }
  0x1a   : > { %s1130_s29 = smov (!%p284_p9, %s742_s29), 287  ;;  %314 = sbr.rel (%p745_p10) target bundleno = 34 (0x22), region = 74 }
  0x1b   : > { %s786_s4 = sshll.u32 %s1130_s29, 3 }
  0x1c   : > { %s1000_s7 = scalar_lea.vmem %s1120_s1, %s786_s4 }
  0x1f   : > { %v927_v2 = vmov 0.0  }
  0x20   : > { %315 = vst [vmem:[%s1122_s3] sm:$0xff] %v927_v2  ;;  %316 = vst [vmem:[%s1122_s3 + $0x8] sm:$0xff] %v927_v2 }
  0x21   : > { %317 = vst [vmem:[%s1122_s3 + $0x10] sm:$0xff] %v927_v2  ;;  %318 = vst [vmem:[%s1122_s3 + $0x18] sm:$0xff] %v927_v2 }
  0x22 PF: > { %v828_v3 = vld [vmem:[%s1000_s7 + $0x74] ss:$8 sps:$4 sm:$0xff]   ;;  %v830_v4 = vld [vmem:[%s1000_s7 + $0x70] ss:$8 sps:$4 sm:$0xff]   ;;  %v831_v5 = vld [vmem:[%s1000_s7 + $0x64] ss:$8 sps:$4 sm:$0xff]  }
  0x23   : > { %527 = vmatprep.subr.bf16.mxu0 %v828_v3  ;;  %v833_v6 = vld [vmem:[%s1000_s7 + $0x60] ss:$8 sps:$4 sm:$0xff]   ;;  %v834_v7 = vld [vmem:[%s1000_s7 + $0x54] ss:$8 sps:$4 sm:$0xff]   ;;  %v836_v8 = vld [vmem:[%s1000_s7 + $0x50] ss:$8 sps:$4 sm:$0xff]  }
  0x24   : > { %528 = vmatpush1.bf16.msra.mxu0 %v830_v4  ;;  %v837_v9 = vld [vmem:[%s1000_s7 + $0x44] ss:$8 sps:$4 sm:$0xff]   ;;  %v839_v10 = vld [vmem:[%s1000_s7 + $0x40] ss:$8 sps:$4 sm:$0xff]   ;;  %v840_v11 = vld [vmem:[%s1000_s7 + $0x34] ss:$8 sps:$4 sm:$0xff]  }
  0x25   : > { %529 = vmatprep.subr.bf16.mxu0 %v831_v5  ;;  %v842_v12 = vld [vmem:[%s1000_s7 + $0x30] ss:$8 sps:$4 sm:$0xff]   ;;  %v843_v13 = vld [vmem:[%s1000_s7 + $0x24] ss:$8 sps:$4 sm:$0xff]   ;;  %v845_v14 = vld [vmem:[%s1000_s7 + $0x20] ss:$8 sps:$4 sm:$0xff]  }
  0x26   : > { %v846_v15 = vld [vmem:[%s1000_s7 + $0x14] ss:$8 sps:$4 sm:$0xff]   ;;  %v848_v17 = vld [vmem:[%s1000_s7 + $0x10] ss:$8 sps:$4 sm:$0xff]   ;;  %v849_v18 = vld [vmem:[%s1000_s7 + $0x4] ss:$8 sps:$4 sm:$0xff]  }
  0x27   : > { %v878_v16 = vld [vmem:[%s240_s8 + $0x4] ss:$8 sps:$4 sm:$0xff]   ;;  %v851_v19 = vld [vmem:[%s1000_s7] ss:$8 sps:$4 sm:$0xff]   ;;  %v854_v21 = vld [vmem:[%s1000_s7 + $0xf0] ss:$8 sps:$4 sm:$0xff]  }
  0x28   : > { %530 = vmatpush1.bf16.msra.mxu0 %v833_v6  ;;  %559 = vmatprep.mubr.bf16.mxu0 %v878_v16  ;;  %v852_v20 = vld [vmem:[%s1000_s7 + $0xf4] ss:$8 sps:$4 sm:$0xff]   ;;  %v855_v22 = vld [vmem:[%s1000_s7 + $0xe4] ss:$8 sps:$4 sm:$0xff]   ;;  %v857_v23 = vld [vmem:[%s1000_s7 + $0xe0] ss:$8 sps:$4 sm:$0xff]  }
  0x29   : > { %531 = vmatprep.subr.bf16.mxu0 %v834_v7  ;;  %v858_v24 = vld [vmem:[%s1000_s7 + $0xd4] ss:$8 sps:$4 sm:$0xff]   ;;  %v860_v25 = vld [vmem:[%s1000_s7 + $0xd0] ss:$8 sps:$4 sm:$0xff]   ;;  %v861_v26 = vld [vmem:[%s1000_s7 + $0xc4] ss:$8 sps:$4 sm:$0xff]  }
  0x2a   : > { %v863_v27 = vld [vmem:[%s1000_s7 + $0xc0] ss:$8 sps:$4 sm:$0xff]   ;;  %v864_v28 = vld [vmem:[%s1000_s7 + $0xb4] ss:$8 sps:$4 sm:$0xff]   ;;  %v866_v29 = vld [vmem:[%s1000_s7 + $0xb0] ss:$8 sps:$4 sm:$0xff]  }
  0x2b   : > { %v867_v30 = vld [vmem:[%s1000_s7 + $0xa4] ss:$8 sps:$4 sm:$0xff]   ;;  %v869_v31 = vld [vmem:[%s1000_s7 + $0xa0] ss:$8 sps:$4 sm:$0xff]   ;;  %v870_v32 = vld [vmem:[%s1000_s7 + $0x94] ss:$8 sps:$4 sm:$0xff]  }
  0x2c   : > { %532 = vmatpush1.bf16.msra.mxu0 %v836_v8  ;;  %v872_v33 = vld [vmem:[%s1000_s7 + $0x90] ss:$8 sps:$4 sm:$0xff]   ;;  %v873_v34 = vld [vmem:[%s1000_s7 + $0x84] ss:$8 sps:$4 sm:$0xff]   ;;  %v875_v35 = vld [vmem:[%s1000_s7 + $0x80] ss:$8 sps:$4 sm:$0xff]  }
  0x2d   : > { %533 = vmatprep.subr.bf16.mxu0 %v837_v9  ;;  %v876_v36 = vld [vmem:[%s240_s8] ss:$8 sps:$4 sm:$0xff]   ;;  %p780_p11 = scmp.ne.s32.totalorder %s917_s14, 8 }
  0x2e   : > { %v319_v37 = vld [vmem:[%s1122_s3] sm:$0xff]  ;;  %v320_v39 = vld [vmem:[%s1122_s3 + $0x8] sm:$0xff]  ;;  %v321_v42 = vld [vmem:[%s1122_s3 + $0x10] sm:$0xff] }
  0x2f   : > { %v322_v45 = vld [vmem:[%s1122_s3 + $0x18] sm:$0xff] }
  0x30   : > { %534 = vmatpush1.bf16.msra.mxu0 %v839_v10 }
  0x31   : > { %535 = vmatprep.subr.bf16.mxu0 %v840_v11 }
  0x34   : > { %536 = vmatpush1.bf16.msra.mxu0 %v842_v12 }
  0x35   : > { %537 = vmatprep.subr.bf16.mxu0 %v843_v13 }
  0x38   : > { %538 = vmatpush1.bf16.msra.mxu0 %v845_v14 }
  0x39   : > { %539 = vmatprep.subr.bf16.mxu0 %v846_v15 }
  0x3c   : > { %540 = vmatpush1.bf16.msra.mxu0 %v848_v17 }
  0x3d   : > { %541 = vmatprep.subr.bf16.mxu0 %v849_v18 }
  0x40   : > { %542 = vmatpush1.bf16.msra.mxu0 %v851_v19 }
  0x41   : > { %543 = vmatprep.subr.bf16.mxu0 %v852_v20 }
  0x44   : > { %544 = vmatpush2.bf16.msra.mxu0 %v854_v21 }
  0x45   : > { %545 = vmatprep.subr.bf16.mxu0 %v855_v22 }
  0x48   : > { %546 = vmatpush2.bf16.msra.mxu0 %v857_v23 }
  0x49   : > { %547 = vmatprep.subr.bf16.mxu0 %v858_v24 }
  0x4c   : > { %548 = vmatpush2.bf16.msra.mxu0 %v860_v25 }
  0x4d   : > { %549 = vmatprep.subr.bf16.mxu0 %v861_v26 }
  0x50   : > { %550 = vmatpush2.bf16.msra.mxu0 %v863_v27 }
  0x51   : > { %551 = vmatprep.subr.bf16.mxu0 %v864_v28 }
  0x54   : > { %552 = vmatpush2.bf16.msra.mxu0 %v866_v29 }
  0x55   : > { %553 = vmatprep.subr.bf16.mxu0 %v867_v30 }
  0x58   : > { %554 = vmatpush2.bf16.msra.mxu0 %v869_v31 }
  0x59   : > { %555 = vmatprep.subr.bf16.mxu0 %v870_v32 }
  0x5c   : > { %556 = vmatpush2.bf16.msra.mxu0 %v872_v33 }
  0x5d   : > { %557 = vmatprep.subr.bf16.mxu0 %v873_v34 }
  0x60   : > { %558 = vmatpush2.bf16.msra.mxu0 %v875_v35 }
  0x63   : > { %560 = vmatmul.mubr.bf16.vlgmr.msra.gmra.mxu0 %v876_v36 }
 0x123   : > { %v561_v38 = vpop.f32.mrf.mxu0 }
 0x124   : > { %v570_v40 = vadd.f32 %v561_v38, %v319_v37 }
 0x125   : > { %v563_v41 = vpop.f32.mrf.mxu0 }
 0x126   : > { %574 = vst [vmem:[%s1122_s3] sm:$0xff] %v570_v40  ;;  %v571_v43 = vadd.f32 %v563_v41, %v320_v39 }
 0x127   : > { %v565_v44 = vpop.f32.mrf.mxu0 }
 0x128   : > { %575 = vst [vmem:[%s1122_s3 + $0x8] sm:$0xff] %v571_v43  ;;  %v572_v46 = vadd.f32 %v565_v44, %v321_v42  ;;  %581 = sbr.rel (%p780_p11) target bundleno = 329 (0x149), region = 78 }
 0x129   : > { %v567_v47 = vpop.f32.mrf.mxu0 }
 0x12a   : > { %576 = vst [vmem:[%s1122_s3 + $0x10] sm:$0xff] %v572_v46  ;;  %v573_v48 = vadd.f32 %v567_v47, %v322_v45 }
 0x12c   : > { %577 = vst [vmem:[%s1122_s3 + $0x18] sm:$0xff] %v573_v48 }
 0x12d   : > { %v588_v49 = vlaneseq  ;;  %v586_v51 = vld [vmem:[%s1121_s2] sm:$0x3] }
 0x12e   : > { %v582_v54 = vld [vmem:[%s1122_s3] sm:$0xff] }
 0x12f   : > { %v589_v50 = vshrl.u32 %v588_v49, 7  ;;  %v583_v55 = vld [vmem:[%s1122_s3 + $0x8] sm:$0xff] }
 0x131   : > { %v590_v52 = vsub.s32 0, %v589_v50  ;;  %v594_v53 = vsub.s32 1, %v589_v50  ;;  %v584_v56 = vld [vmem:[%s1122_s3 + $0x10] sm:$0xff] }
 0x133   : > { %v591_v57 = vrot.slane %v586_v51, %v590_v52  ;;  %v595_v58 = vrot.slane %v586_v51, %v594_v53  ;;  %v585_v59 = vld [vmem:[%s1122_s3 + $0x18] sm:$0xff] }
 0x135   : > { %v598_v60 = vadd.f32 %v591_v57, %v582_v54  ;;  %v599_v61 = vadd.f32 %v595_v58, %v583_v55  ;;  %v600_v62 = vadd.f32 %v591_v57, %v584_v56  ;;  %v601_v63 = vadd.f32 %v595_v58, %v585_v59 }
 0x137   : > { %879 = vtanh.f32 %v598_v60 }
 0x138   : > { %881 = vtanh.f32 %v599_v61 }
 0x139   : > { %883 = vtanh.f32 %v600_v62 }
 0x13a   : > { %885 = vtanh.f32 %v601_v63 }
 0x144   : > { %v880_v0 = vpop.eup %879 }
 0x145   : > { %v882_v1 = vpop.eup %881  ;;  %606 = vst [vmem:[%s1122_s3] sm:$0xff] %v880_v0 }
 0x146   : > { %v884_v2 = vpop.eup %883  ;;  %607 = vst [vmem:[%s1122_s3 + $0x8] sm:$0xff] %v882_v1 }
 0x147   : > { %v886_v3 = vpop.eup %885  ;;  %608 = vst [vmem:[%s1122_s3 + $0x10] sm:$0xff] %v884_v2 }
 0x148   : > { %609 = vst [vmem:[%s1122_s3 + $0x18] sm:$0xff] %v886_v3 }
 0x149 PF: > { %s13_s16 = sadd.s32 1, %s925_s16   ;;  %s1123_s12 = smov %s913_s13 }
 0x14a   : > { %p10_p12 = scmp.ge.s32.totalorder %s13_s16, 11   ;;  %s1124_s13 = smov %s983_s20 }
 0x14b   : > { %s1125_s14 = smov %s921_s15  ;;  %s1126_s15 = smov %s1128_s17 }
 0x14c   :  { %12 = sbr.rel (!%p10_p12) target bundleno = 3 (0x3), region = 119 }

// kernel: forward.46
= control target key start
LH: loop header
LB: loop body
LE: loop exit
PB: predicated region body
PF: predicated region fallthrough
CT: control target
= control target key end

     0   :  { %s550_s9 = smov 0   ;;  %s552_s10 = smov 0   ;;  %s629_s0 = inlined_call_operand.vmem [shape: f32[2,8,256], index: 0, kind: input, shape index: {}]   ;;  %s630_s1 = inlined_call_operand.vmem [shape: f32[2,256,128], index: 1, kind: input, shape index: {}]   ;;  %s631_s2 = inlined_call_operand.vmem [shape: f32[2,8,128], index: 2, kind: output, shape index: {}]  }
   0x1   :  { %s554_s11 = smov 0  }
   0x2 LB: > { %s31_s12 = sadd.s32 1, %s529_s10  ;;  %p442_p0 = scmp.ge.s32.totalorder %s533_s11, 1  ;;  %s533_s11 = sphi %s554_s11, %s12_s11   ;;  %s529_s10 = sphi %s552_s10, %s633_s10   ;;  %s525_s9 = sphi %s550_s9, %s632_s9  }
   0x3   : > { %p33_p1 = scmp.ge.s32.totalorder %s31_s12, 2  ;;  %p156_p2 = scmp.lt.s32.totalorder %s533_s11, 3 }
   0x5   : > { %s635_s12 = smov (%p33_p1, %s31_s12), 0  ;;  %p157_p3 = pnand %p442_p0, %p156_p2 }
   0x6   : > { %p195_p4 = scmp.lt.s32.totalorder (!%p157_p3), %s525_s9, 1 }
   0x7   : > { %160 = sbr.rel (%p157_p3) target bundleno = 246 (0xf6), region = 28 }
   0xc   : > { %s637_s9 = smov (!%p195_p4, %s525_s9), 1 }
   0xd   : > { %s451_s13 = sshll.u32 %s637_s9, 8  ;;  %s450_s17 = sshll.u32 %s637_s9, 4 }
   0xe   : > { %s574_s16 = scalar_lea.vmem %s630_s1, %s451_s13  ;;  %s590_s20 = scalar_lea.vmem %s629_s0, %s450_s17 }
   0xf   : > { %v255_v0 = vld [vmem:[%s574_s16 + $0xf8] sm:$0xff]  ;;  %v254_v2 = vld [vmem:[%s574_s16 + $0xf0] sm:$0xff]  ;;  %v253_v4 = vld [vmem:[%s574_s16 + $0xe8] sm:$0xff]  ;;  %s447_s21 = sshll.u32 %s637_s9, 3 }
  0x10   : > { %v239_v1 = vld [vmem:[%s574_s16 + $0x78] sm:$0xff]  ;;  %452 = vmatprep.subr.mxu0 %v255_v0  ;;  %v238_v3 = vld [vmem:[%s574_s16 + $0x70] sm:$0xff]  ;;  %v237_v5 = vld [vmem:[%s574_s16 + $0x68] sm:$0xff]  ;;  %s221_s24 = scalar_lea.vmem %s631_s2, %s447_s21 }
  0x11   : > { %453 = vmatpush3.msra.mxu0 %v239_v1  ;;  %v252_v6 = vld [vmem:[%s574_s16 + $0xe0] sm:$0xff]  ;;  %v251_v8 = vld [vmem:[%s574_s16 + $0xd8] sm:$0xff]  ;;  %v250_v10 = vld [vmem:[%s574_s16 + $0xd0] sm:$0xff] }
  0x12   : > { %454 = vmatprep.subr.mxu0 %v254_v2  ;;  %v236_v7 = vld [vmem:[%s574_s16 + $0x60] sm:$0xff]  ;;  %v235_v9 = vld [vmem:[%s574_s16 + $0x58] sm:$0xff]  ;;  %v234_v11 = vld [vmem:[%s574_s16 + $0x50] sm:$0xff] }
  0x13   : > { %455 = vmatpush3.msra.mxu0 %v238_v3  ;;  %v249_v12 = vld [vmem:[%s574_s16 + $0xc8] sm:$0xff]  ;;  %v248_v15 = vld [vmem:[%s574_s16 + $0xc0] sm:$0xff]  ;;  %v247_v17 = vld [vmem:[%s574_s16 + $0xb8] sm:$0xff] }
  0x14   : > { %456 = vmatprep.subr.mxu0 %v253_v4  ;;  %v223_v13 = vld [vmem:[%s590_s20 + $0x8] sm:$0xff]  ;;  %v232_v16 = vld [vmem:[%s574_s16 + $0x40] sm:$0xff]  ;;  %v231_v18 = vld [vmem:[%s574_s16 + $0x38] sm:$0xff] }
  0x15   : > { %457 = vmatpush3.msra.mxu0 %v237_v5  ;;  %v233_v14 = vld [vmem:[%s574_s16 + $0x48] sm:$0xff]  ;;  %320 = vmatprep.mubr.f32.mxu0 %v223_v13  ;;  %v246_v19 = vld [vmem:[%s574_s16 + $0xb0] sm:$0xff]  ;;  %v244_v23 = vld [vmem:[%s574_s16 + $0xa0] sm:$0xff] }
  0x16   : > { %458 = vmatprep.subr.mxu0 %v252_v6  ;;  %v230_v20 = vld [vmem:[%s574_s16 + $0x30] sm:$0xff]  ;;  %v245_v21 = vld [vmem:[%s574_s16 + $0xa8] sm:$0xff]  ;;  %v228_v24 = vld [vmem:[%s574_s16 + $0x20] sm:$0xff] }
  0x17   : > { %459 = vmatpush3.msra.mxu0 %v236_v7  ;;  %v229_v22 = vld [vmem:[%s574_s16 + $0x28] sm:$0xff]  ;;  %v243_v25 = vld [vmem:[%s574_s16 + $0x98] sm:$0xff]  ;;  %v242_v27 = vld [vmem:[%s574_s16 + $0x90] sm:$0xff] }
  0x18   : > { %460 = vmatprep.subr.mxu0 %v251_v8  ;;  %v227_v26 = vld [vmem:[%s574_s16 + $0x18] sm:$0xff]  ;;  %v226_v28 = vld [vmem:[%s574_s16 + $0x10] sm:$0xff]  ;;  %v241_v29 = vld [vmem:[%s574_s16 + $0x88] sm:$0xff] }
  0x19   : > { %461 = vmatpush3.msra.mxu0 %v235_v9  ;;  %v225_v30 = vld [vmem:[%s574_s16 + $0x8] sm:$0xff]  ;;  %v240_v31 = vld [vmem:[%s574_s16 + $0x80] sm:$0xff] }
  0x1a   : > { %462 = vmatprep.subr.mxu0 %v250_v10  ;;  %v224_v32 = vld [vmem:[%s574_s16] sm:$0xff] }
  0x1b   : > { %463 = vmatpush3.msra.mxu0 %v234_v11  ;;  %v222_v33 = vld [vmem:[%s590_s20] sm:$0xff] }
  0x1c   : > { %464 = vmatprep.subr.mxu0 %v249_v12 }
  0x1d   : > { %465 = vmatpush3.msra.mxu0 %v233_v14 }
  0x1e   : > { %466 = vmatprep.subr.mxu0 %v248_v15 }
  0x1f   : > { %467 = vmatpush3.msra.mxu0 %v232_v16 }
  0x20   : > { %468 = vmatprep.subr.mxu0 %v247_v17 }
  0x21   : > { %469 = vmatpush3.msra.mxu0 %v231_v18 }
  0x22   : > { %470 = vmatprep.subr.mxu0 %v246_v19 }
  0x23   : > { %471 = vmatpush3.msra.mxu0 %v230_v20 }
  0x24   : > { %472 = vmatprep.subr.mxu0 %v245_v21 }
  0x25   : > { %473 = vmatpush3.msra.mxu0 %v229_v22 }
  0x26   : > { %474 = vmatprep.subr.mxu0 %v244_v23 }
  0x27   : > { %475 = vmatpush3.msra.mxu0 %v228_v24 }
  0x28   : > { %476 = vmatprep.subr.mxu0 %v243_v25 }
  0x29   : > { %477 = vmatpush3.msra.mxu0 %v227_v26 }
  0x2a   : > { %478 = vmatprep.subr.mxu0 %v242_v27 }
  0x2b   : > { %479 = vmatpush3.msra.mxu0 %v226_v28 }
  0x2c   : > { %480 = vmatprep.subr.mxu0 %v241_v29 }
  0x2d   : > { %481 = vmatpush3.msra.mxu0 %v225_v30 }
  0x2e   : > { %482 = vmatprep.subr.mxu0 %v240_v31 }
  0x2f   : > { %483 = vmatpush3.msra.mxu0 %v224_v32 }
  0x30   : > { %321 = vmatmul.mubr.f32.vlgmr.msra.gmra.mxu0 %v222_v33 }
  0xf0   : > { %v484_v34 = vpop.f32.mrf.mxu0 }
  0xf2   : > { %v485_v35 = vpop.f32.mrf.mxu0 }
  0xf3   : > { %v486_v36 = vadd.f32 %v485_v35, %v484_v34 }
  0xf5   : > { %326 = vst [vmem:[%s221_s24] sm:$0xff] %v486_v36 }
  0xf6 PF: > { %s12_s11 = sadd.s32 1, %s533_s11   ;;  %s632_s9 = smov %s529_s10 }
  0xf7   : > { %p9_p5 = scmp.ge.s32.totalorder %s12_s11, 4   ;;  %s633_s10 = smov %s635_s12 }
  0xf9   :  { %11 = sbr.rel (!%p9_p5) target bundleno = 2 (0x2), region = 61 }

// kernel: forward.69
= control target key start
LH: loop header
LB: loop body
LE: loop exit
PB: predicated region body
PF: predicated region fallthrough
CT: control target
= control target key end

     0   :  { %s577_s9 = smov 0   ;;  %s579_s10 = smov 0   ;;  %s613_s0 = inlined_call_operand.vmem [shape: bf16[2,16,64], index: 0, kind: input, shape index: {}]   ;;  %s614_s1 = inlined_call_operand.vmem [shape: bf16[2,64,256], index: 1, kind: input, shape index: {}]   ;;  %s615_s2 = inlined_call_operand.vmem [shape: f32[2,16,256], index: 2, kind: output, shape index: {}]  }
   0x1   :  { %s581_s11 = smov 0  }
   0x2 LB: > { %s31_s12 = sadd.s32 1, %s555_s10  ;;  %p477_p0 = scmp.ge.s32.totalorder %s559_s11, 1  ;;  %s559_s11 = sphi %s581_s11, %s12_s11   ;;  %s555_s10 = sphi %s579_s10, %s617_s10   ;;  %s551_s9 = sphi %s577_s9, %s616_s9  }
   0x3   : > { %p33_p1 = scmp.ge.s32.totalorder %s31_s12, 2  ;;  %p159_p2 = scmp.lt.s32.totalorder %s559_s11, 3 }
   0x5   : > { %s619_s12 = smov (%p33_p1, %s31_s12), 0  ;;  %p160_p3 = pnand %p477_p0, %p159_p2 }
   0x6   : > { %p204_p4 = scmp.lt.s32.totalorder (!%p160_p3), %s551_s9, 1 }
   0x7   : > { %163 = sbr.rel (%p160_p3) target bundleno = 232 (0xe8), region = 28 }
   0xc   : > { %v561_v0 = vmov 0   ;;  %s621_s9 = smov (!%p204_p4, %s551_s9), 1  ;;  %vm295_vm0 = vcmask 523264  }
   0xd   : > { %331 = vmatprep.mubr.bf16.mxu0 %v561_v0  ;;  %s497_s13 = sshll.u32 %s621_s9, 6  ;;  %s496_s17 = sshll.u32 %s621_s9, 3 }
   0xe   : > { %s221_s16 = scalar_lea.vmem %s614_s1, %s497_s13  ;;  %s211_s20 = scalar_lea.vmem %s613_s0, %s496_s17 }
   0xf   : > { %v524_v1 = vld [vmem:[%s221_s16 + $0x34] ss:$8 sps:$4 sm:$0xff]   ;;  %v526_v2 = vld [vmem:[%s221_s16 + $0x30] ss:$8 sps:$4 sm:$0xff]   ;;  %v527_v3 = vld [vmem:[%s221_s16 + $0x24] ss:$8 sps:$4 sm:$0xff]  }
  0x10   : > { %307 = vmatprep.subr.bf16.mxu0 %v524_v1  ;;  %v529_v4 = vld [vmem:[%s221_s16 + $0x20] ss:$8 sps:$4 sm:$0xff]   ;;  %v530_v5 = vld [vmem:[%s221_s16 + $0x14] ss:$8 sps:$4 sm:$0xff]   ;;  %v532_v6 = vld [vmem:[%s221_s16 + $0x10] ss:$8 sps:$4 sm:$0xff]  }
  0x11   : > { %308 = vmatpush1.bf16.msra.mxu0 %v526_v2  ;;  %v533_v7 = vld [vmem:[%s221_s16 + $0x4] ss:$8 sps:$4 sm:$0xff]   ;;  %v535_v8 = vld [vmem:[%s221_s16] ss:$8 sps:$4 sm:$0xff]   ;;  %s498_s21 = sshll.u32 %s621_s9, 5 }
  0x12   : > { %309 = vmatprep.subr.bf16.mxu0 %v527_v3  ;;  %v536_v9 = vld [vmem:[%s211_s20] sm:$0xff]   ;;  %s236_s24 = scalar_lea.vmem %s615_s2, %s498_s21 }
  0x15   : > { %310 = vmatpush1.bf16.msra.mxu0 %v529_v4 }
  0x16   : > { %311 = vmatprep.subr.bf16.mxu0 %v530_v5 }
  0x19   : > { %312 = vmatpush1.bf16.msra.mxu0 %v532_v6 }
  0x1a   : > { %313 = vmatprep.subr.bf16.mxu0 %v533_v7 }
  0x1d   : > { %314 = vmatpush1.bf16.msra.mxu0 %v535_v8 }
  0x20   : > { %493 = vmatmul.mubr.msk.bf16.vlgmr.msra.gmra.mxu0 %vm295_vm0, %v536_v9 }
  0xe0   : > { %v333_v10 = vpop.f32.mrf.mxu0 }
  0xe1   : > { %342 = vst [vmem:[%s236_s24] sm:$0xff] %v333_v10 }
  0xe2   : > { %v335_v11 = vpop.f32.mrf.mxu0 }
  0xe3   : > { %343 = vst [vmem:[%s236_s24 + $0x8] sm:$0xff] %v335_v11 }
  0xe4   : > { %v337_v12 = vpop.f32.mrf.mxu0 }
  0xe5   : > { %344 = vst [vmem:[%s236_s24 + $0x10] sm:$0xff] %v337_v12 }
  0xe6   : > { %v339_v13 = vpop.f32.mrf.mxu0 }
  0xe7   : > { %345 = vst [vmem:[%s236_s24 + $0x18] sm:$0xff] %v339_v13 }
  0xe8 PF: > { %s12_s11 = sadd.s32 1, %s559_s11   ;;  %s616_s9 = smov %s555_s10 }
  0xe9   : > { %p9_p5 = scmp.ge.s32.totalorder %s12_s11, 4   ;;  %s617_s10 = smov %s619_s12 }
  0xeb   :  { %11 = sbr.rel (!%p9_p5) target bundleno = 2 (0x2), region = 61 }

// kernel: forward.70
= control target key start
LH: loop header
LB: loop body
LE: loop exit
PB: predicated region body
PF: predicated region fallthrough
CT: control target
= control target key end

     0   :  { %s1039_s12 = smov 0   ;;  %s1041_s13 = smov 0   ;;  %s1269_s0 = inlined_call_operand.vmem [shape: bf16[32,4608], index: 0, kind: input, shape index: {}]   ;;  %s1270_s1 = inlined_call_operand.vmem [shape: bf16[4608,256], index: 1, kind: input, shape index: {}]   ;;  %s1271_s2 = inlined_call_operand.vmem [shape: f32[1,256], index: 2, kind: input, shape index: {}]   ;;  %s1272_s3 = inlined_call_operand.vmem [shape: f32[32,256], index: 3, kind: output, shape index: {}]  }
   0x1   :  { %s1043_s14 = smov 0   ;;  %s1045_s15 = smov 0  }
   0x2   :  { %s1047_s16 = smov 0  }
   0x3 LB: > { %s25_s17 = sadd.s32 1, %s1012_s15  ;;  %p48_p1 = scmp.ne.s32.totalorder %s1004_s13, %s1000_s12  ;;  %s1016_s16 = sphi %s1047_s16, %s13_s16   ;;  %s1012_s15 = sphi %s1045_s15, %s1276_s15   ;;  %s1008_s14 = sphi %s1043_s14, %s1275_s14   ;;  %s1004_s13 = sphi %s1041_s13, %s1274_s13   ;;  %s1000_s12 = sphi %s1039_s12, %s1273_s12  }
   0x4   : > { %p26_p0 = scmp.ge.s32.totalorder %s25_s17, 18  ;;  %p49_p2 = scmp.eq.s32.totalorder %s1016_s16, 0 }
   0x5   : > { %s41_s19 = sadd.s32 1, %s1004_s13  ;;  %p798_p5 = scmp.ge.s32.totalorder %s1016_s16, 18 }
   0x6   : > { %s1278_s17 = smov (%p26_p0, %s25_s17), 0  ;;  %p50_p3 = por %p49_p2, %p48_p1 }
   0x7   : > { %s37_s18 = ssub.s32 %s1012_s15, %s1278_s17  ;;  %164 = sbr.rel (%p798_p5) target bundleno = 18 (0x12), region = 20 }
   0x8   : > { %p39_p4 = scmp.eq.s32.totalorder %s37_s18, 0 }
   0xa   : > { %s1074_s20 = scalar_select %p39_p4, %s1004_s13, %s41_s19  }
   0xc   : > { %167 = sbr.rel (!%p50_p3) target bundleno = 18 (0x12), region = 24  ;;  %s169_s21 = sand.u32 (%p50_p3), 1, %s1004_s13  }
   0xd   : > { %s849_s22 = sshll.u32 (%p50_p3), %s1012_s15, 3  ;;  %s799_s23 = sshll.u32 (%p50_p3), %s169_s21, 5 }
   0xe   : > { %s177_s26 = scalar_lea.vmem (%p50_p3), %s1269_s0, %s849_s22  ;;  %s171_s27 = scalar_lea.vmem (%p50_p3), [#allocation2], %s799_s23 }
   0xf   : > { %v212_v0 = vld [vmem:[%s177_s26] sm:$0xff] (%p50_p3)  ;;  %v214_v1 = vld [vmem:[%s177_s26 + $0x90] sm:$0xff] (%p50_p3) }
  0x10   : > { %v216_v2 = vld [vmem:[%s177_s26 + $0x120] sm:$0xff] (%p50_p3)  ;;  %213 = vst [vmem:[%s171_s27] sm:$0xff] (%p50_p3), %v212_v0  ;;  %215 = vst [vmem:[%s171_s27 + $0x8] sm:$0xff] (%p50_p3), %v214_v1  ;;  %v218_v3 = vld [vmem:[%s177_s26 + $0x1b0] sm:$0xff] (%p50_p3) }
  0x11   : > { %217 = vst [vmem:[%s171_s27 + $0x10] sm:$0xff] %v216_v2  ;;  %219 = vst [vmem:[%s171_s27 + $0x18] sm:$0xff] %v218_v3 }
  0x12 PF: > { %p802_p6 = scmp.ge.s32.totalorder %s1016_s16, 1  ;;  %p239_p7 = scmp.lt.s32.totalorder %s1016_s16, 19 }
  0x14   : > { %p240_p8 = pnand %p802_p6, %p239_p7 }
  0x15   : > { %s246_s28 = sand.u32 (!%p240_p8), 1, %s1000_s12   ;;  %s804_s29 = sshll.u32 (!%p240_p8), %s1008_s14, 5 }
  0x16   : > { %243 = sbr.rel (%p240_p8) target bundleno = 320 (0x140), region = 66  ;;  %s803_s30 = sshll.u32 (!%p240_p8), %s246_s28, 5 }
  0x17   : > { %p292_p9 = scmp.lt.s32.totalorder (!%p240_p8), %s804_s29, 575  ;;  %s1091_s8 = scalar_lea.vmem (!%p240_p8), [#allocation2], %s803_s30 }
  0x18   : > { %p807_p10 = scmp.ne.s32.totalorder (!%p240_p8), %s1008_s14, 0 }
  0x1b   : > { %s1280_s29 = smov (!%p292_p9, %s804_s29), 575  ;;  %322 = sbr.rel (%p807_p10) target bundleno = 37 (0x25), region = 74 }
  0x1c   : > { %s850_s4 = sshll.u32 %s1280_s29, 3 }
  0x1d   : > { %s1089_s7 = scalar_lea.vmem %s1270_s1, %s850_s4 }
  0x20   : > { %v1018_v4 = vmov 0.0  }
  0x21   : > { %323 = vst [vmem:[%s1272_s3] sm:$0xff] %v1018_v4  ;;  %324 = vst [vmem:[%s1272_s3 + $0x8] sm:$0xff] %v1018_v4 }
  0x22   : > { %325 = vst [vmem:[%s1272_s3 + $0x10] sm:$0xff] %v1018_v4  ;;  %326 = vst [vmem:[%s1272_s3 + $0x18] sm:$0xff] %v1018_v4 }
  0x23   : > { %327 = vst [vmem:[%s1272_s3 + $0x20] sm:$0xff] %v1018_v4  ;;  %328 = vst [vmem:[%s1272_s3 + $0x28] sm:$0xff] %v1018_v4 }
  0x24   : > { %329 = vst [vmem:[%s1272_s3 + $0x30] sm:$0xff] %v1018_v4  ;;  %330 = vst [vmem:[%s1272_s3 + $0x38] sm:$0xff] %v1018_v4 }
  0x25 PF: > { %v924_v5 = vld [vmem:[%s1089_s7 + $0x74] ss:$8 sps:$4 sm:$0xff]   ;;  %v926_v6 = vld [vmem:[%s1089_s7 + $0x70] ss:$8 sps:$4 sm:$0xff]   ;;  %v927_v7 = vld [vmem:[%s1089_s7 + $0x64] ss:$8 sps:$4 sm:$0xff]  }
  0x26   : > { %555 = vmatprep.subr.bf16.mxu0 %v924_v5  ;;  %851 = vmatprep.subr.bf16.mxu1 %v924_v5  ;;  %v929_v8 = vld [vmem:[%s1089_s7 + $0x60] ss:$8 sps:$4 sm:$0xff]   ;;  %v930_v9 = vld [vmem:[%s1089_s7 + $0x54] ss:$8 sps:$4 sm:$0xff]   ;;  %v932_v10 = vld [vmem:[%s1089_s7 + $0x50] ss:$8 sps:$4 sm:$0xff]  }
  0x27   : > { %556 = vmatpush1.bf16.msra.mxu0 %v926_v6  ;;  %867 = vmatpush1.bf16.msra.mxu1 %v926_v6  ;;  %v933_v11 = vld [vmem:[%s1089_s7 + $0x44] ss:$8 sps:$4 sm:$0xff]   ;;  %v935_v12 = vld [vmem:[%s1089_s7 + $0x40] ss:$8 sps:$4 sm:$0xff]   ;;  %v936_v13 = vld [vmem:[%s1089_s7 + $0x34] ss:$8 sps:$4 sm:$0xff]  }
  0x28   : > { %557 = vmatprep.subr.bf16.mxu0 %v927_v7  ;;  %852 = vmatprep.subr.bf16.mxu1 %v927_v7  ;;  %v938_v14 = vld [vmem:[%s1089_s7 + $0x30] ss:$8 sps:$4 sm:$0xff]   ;;  %v939_v15 = vld [vmem:[%s1089_s7 + $0x24] ss:$8 sps:$4 sm:$0xff]   ;;  %v941_v16 = vld [vmem:[%s1089_s7 + $0x20] ss:$8 sps:$4 sm:$0xff]  }
  0x29   : > { %v942_v17 = vld [vmem:[%s1089_s7 + $0x14] ss:$8 sps:$4 sm:$0xff]   ;;  %v974_v18 = vld [vmem:[%s1091_s8 + $0x4] ss:$8 sps:$4 sm:$0xff]   ;;  %v944_v19 = vld [vmem:[%s1089_s7 + $0x10] ss:$8 sps:$4 sm:$0xff]  }
  0x2a   : > { %v977_v20 = vld [vmem:[%s1091_s8 + $0x14] ss:$8 sps:$4 sm:$0xff]   ;;  %v945_v21 = vld [vmem:[%s1089_s7 + $0x4] ss:$8 sps:$4 sm:$0xff]   ;;  %587 = vmatprep.mubr.bf16.mxu0 %v974_v18  ;;  %v947_v22 = vld [vmem:[%s1089_s7] ss:$8 sps:$4 sm:$0xff]  }
  0x2b   : > { %558 = vmatpush1.bf16.msra.mxu0 %v929_v8  ;;  %868 = vmatpush1.bf16.msra.mxu1 %v929_v8  ;;  %v948_v23 = vld [vmem:[%s1089_s7 + $0xf4] ss:$8 sps:$4 sm:$0xff]   ;;  %v950_v24 = vld [vmem:[%s1089_s7 + $0xf0] ss:$8 sps:$4 sm:$0xff]   ;;  %v951_v25 = vld [vmem:[%s1089_s7 + $0xe4] ss:$8 sps:$4 sm:$0xff]  }
  0x2c   : > { %559 = vmatprep.subr.bf16.mxu0 %v930_v9  ;;  %853 = vmatprep.subr.bf16.mxu1 %v930_v9  ;;  %v953_v26 = vld [vmem:[%s1089_s7 + $0xe0] ss:$8 sps:$4 sm:$0xff]   ;;  %v954_v27 = vld [vmem:[%s1089_s7 + $0xd4] ss:$8 sps:$4 sm:$0xff]   ;;  %v956_v28 = vld [vmem:[%s1089_s7 + $0xd0] ss:$8 sps:$4 sm:$0xff]  }
  0x2d   : > { %597 = vmatprep.mubr.bf16.mxu1 %v977_v20  ;;  %v957_v29 = vld [vmem:[%s1089_s7 + $0xc4] ss:$8 sps:$4 sm:$0xff]   ;;  %v959_v30 = vld [vmem:[%s1089_s7 + $0xc0] ss:$8 sps:$4 sm:$0xff]   ;;  %v960_v31 = vld [vmem:[%s1089_s7 + $0xb4] ss:$8 sps:$4 sm:$0xff]  }
  0x2e   : > { %v962_v32 = vld [vmem:[%s1089_s7 + $0xb0] ss:$8 sps:$4 sm:$0xff]   ;;  %v963_v33 = vld [vmem:[%s1089_s7 + $0xa4] ss:$8 sps:$4 sm:$0xff]   ;;  %v965_v34 = vld [vmem:[%s1089_s7 + $0xa0] ss:$8 sps:$4 sm:$0xff]  }
  0x2f   : > { %560 = vmatpush1.bf16.msra.mxu0 %v932_v10  ;;  %869 = vmatpush1.bf16.msra.mxu1 %v932_v10  ;;  %v966_v35 = vld [vmem:[%s1089_s7 + $0x94] ss:$8 sps:$4 sm:$0xff]   ;;  %v968_v36 = vld [vmem:[%s1089_s7 + $0x90] ss:$8 sps:$4 sm:$0xff]   ;;  %v969_v37 = vld [vmem:[%s1089_s7 + $0x84] ss:$8 sps:$4 sm:$0xff]  }
  0x30   : > { %561 = vmatprep.subr.bf16.mxu0 %v933_v11  ;;  %854 = vmatprep.subr.bf16.mxu1 %v933_v11  ;;  %v971_v38 = vld [vmem:[%s1089_s7 + $0x80] ss:$8 sps:$4 sm:$0xff]   ;;  %v975_v40 = vld [vmem:[%s1091_s8 + $0x10] ss:$8 sps:$4 sm:$0xff]   ;;  %p844_p11 = scmp.ne.s32.totalorder %s1008_s14, 17 }
  0x31   : > { %v972_v39 = vld [vmem:[%s1091_s8] ss:$8 sps:$4 sm:$0xff]   ;;  %v333_v51 = vld [vmem:[%s1272_s3 + $0x10] sm:$0xff]  ;;  %v334_v57 = vld [vmem:[%s1272_s3 + $0x18] sm:$0xff] }
  0x32   : > { %v331_v41 = vld [vmem:[%s1272_s3] sm:$0xff]  ;;  %v332_v45 = vld [vmem:[%s1272_s3 + $0x8] sm:$0xff]  ;;  %v337_v52 = vld [vmem:[%s1272_s3 + $0x30] sm:$0xff] }
  0x33   : > { %562 = vmatpush1.bf16.msra.mxu0 %v935_v12  ;;  %870 = vmatpush1.bf16.msra.mxu1 %v935_v12  ;;  %v335_v42 = vld [vmem:[%s1272_s3 + $0x20] sm:$0xff]  ;;  %v336_v46 = vld [vmem:[%s1272_s3 + $0x28] sm:$0xff]  ;;  %v338_v58 = vld [vmem:[%s1272_s3 + $0x38] sm:$0xff] }
  0x34   : > { %563 = vmatprep.subr.bf16.mxu0 %v936_v13  ;;  %855 = vmatprep.subr.bf16.mxu1 %v936_v13 }
  0x37   : > { %564 = vmatpush1.bf16.msra.mxu0 %v938_v14  ;;  %871 = vmatpush1.bf16.msra.mxu1 %v938_v14 }
  0x38   : > { %565 = vmatprep.subr.bf16.mxu0 %v939_v15  ;;  %856 = vmatprep.subr.bf16.mxu1 %v939_v15 }
  0x3b   : > { %566 = vmatpush1.bf16.msra.mxu0 %v941_v16  ;;  %872 = vmatpush1.bf16.msra.mxu1 %v941_v16 }
  0x3c   : > { %567 = vmatprep.subr.bf16.mxu0 %v942_v17  ;;  %857 = vmatprep.subr.bf16.mxu1 %v942_v17 }
  0x3f   : > { %568 = vmatpush1.bf16.msra.mxu0 %v944_v19  ;;  %873 = vmatpush1.bf16.msra.mxu1 %v944_v19 }
  0x40   : > { %569 = vmatprep.subr.bf16.mxu0 %v945_v21  ;;  %858 = vmatprep.subr.bf16.mxu1 %v945_v21 }
  0x43   : > { %570 = vmatpush1.bf16.msra.mxu0 %v947_v22  ;;  %874 = vmatpush1.bf16.msra.mxu1 %v947_v22 }
  0x44   : > { %571 = vmatprep.subr.bf16.mxu0 %v948_v23  ;;  %859 = vmatprep.subr.bf16.mxu1 %v948_v23 }
  0x47   : > { %572 = vmatpush2.bf16.msra.mxu0 %v950_v24  ;;  %875 = vmatpush2.bf16.msra.mxu1 %v950_v24 }
  0x48   : > { %573 = vmatprep.subr.bf16.mxu0 %v951_v25  ;;  %860 = vmatprep.subr.bf16.mxu1 %v951_v25 }
  0x4b   : > { %574 = vmatpush2.bf16.msra.mxu0 %v953_v26  ;;  %876 = vmatpush2.bf16.msra.mxu1 %v953_v26 }
  0x4c   : > { %575 = vmatprep.subr.bf16.mxu0 %v954_v27  ;;  %861 = vmatprep.subr.bf16.mxu1 %v954_v27 }
  0x4f   : > { %576 = vmatpush2.bf16.msra.mxu0 %v956_v28  ;;  %877 = vmatpush2.bf16.msra.mxu1 %v956_v28 }
  0x50   : > { %577 = vmatprep.subr.bf16.mxu0 %v957_v29  ;;  %862 = vmatprep.subr.bf16.mxu1 %v957_v29 }
  0x53   : > { %578 = vmatpush2.bf16.msra.mxu0 %v959_v30  ;;  %878 = vmatpush2.bf16.msra.mxu1 %v959_v30 }
  0x54   : > { %579 = vmatprep.subr.bf16.mxu0 %v960_v31  ;;  %863 = vmatprep.subr.bf16.mxu1 %v960_v31 }
  0x57   : > { %580 = vmatpush2.bf16.msra.mxu0 %v962_v32  ;;  %879 = vmatpush2.bf16.msra.mxu1 %v962_v32 }
  0x58   : > { %581 = vmatprep.subr.bf16.mxu0 %v963_v33  ;;  %864 = vmatprep.subr.bf16.mxu1 %v963_v33 }
  0x5b   : > { %582 = vmatpush2.bf16.msra.mxu0 %v965_v34  ;;  %880 = vmatpush2.bf16.msra.mxu1 %v965_v34 }
  0x5c   : > { %583 = vmatprep.subr.bf16.mxu0 %v966_v35  ;;  %865 = vmatprep.subr.bf16.mxu1 %v966_v35 }
  0x5f   : > { %584 = vmatpush2.bf16.msra.mxu0 %v968_v36  ;;  %881 = vmatpush2.bf16.msra.mxu1 %v968_v36 }
  0x60   : > { %585 = vmatprep.subr.bf16.mxu0 %v969_v37  ;;  %866 = vmatprep.subr.bf16.mxu1 %v969_v37 }
  0x63   : > { %586 = vmatpush2.bf16.msra.mxu0 %v971_v38  ;;  %882 = vmatpush2.bf16.msra.mxu1 %v971_v38 }
  0x66   : > { %588 = vmatmul.mubr.bf16.vlgmr.msra.gmra.mxu0 %v972_v39  ;;  %598 = vmatmul.mubr.bf16.vlgmr.msra.gmra.mxu1 %v975_v40 }
 0x126   : > { %v589_v43 = vpop.f32.mrf.mxu0  ;;  %v599_v44 = vpop.f32.mrf.mxu1 }
 0x127   : > { %v608_v47 = vadd.f32 %v589_v43, %v331_v41  ;;  %v612_v48 = vadd.f32 %v599_v44, %v335_v42 }
 0x128   : > { %v591_v49 = vpop.f32.mrf.mxu0  ;;  %v601_v50 = vpop.f32.mrf.mxu1 }
 0x129   : > { %616 = vst [vmem:[%s1272_s3] sm:$0xff] %v608_v47  ;;  %620 = vst [vmem:[%s1272_s3 + $0x20] sm:$0xff] %v612_v48  ;;  %v609_v53 = vadd.f32 %v591_v49, %v332_v45  ;;  %v613_v54 = vadd.f32 %v601_v50, %v336_v46 }
 0x12a   : > { %v593_v55 = vpop.f32.mrf.mxu0  ;;  %v603_v56 = vpop.f32.mrf.mxu1 }
 0x12b   : > { %617 = vst [vmem:[%s1272_s3 + $0x8] sm:$0xff] %v609_v53  ;;  %621 = vst [vmem:[%s1272_s3 + $0x28] sm:$0xff] %v613_v54  ;;  %v610_v59 = vadd.f32 %v593_v55, %v333_v51  ;;  %v614_v60 = vadd.f32 %v603_v56, %v337_v52  ;;  %627 = sbr.rel (%p844_p11) target bundleno = 320 (0x140), region = 78 }
 0x12c   : > { %v595_v61 = vpop.f32.mrf.mxu0  ;;  %v605_v62 = vpop.f32.mrf.mxu1 }
 0x12d   : > { %618 = vst [vmem:[%s1272_s3 + $0x10] sm:$0xff] %v610_v59  ;;  %622 = vst [vmem:[%s1272_s3 + $0x30] sm:$0xff] %v614_v60  ;;  %v611_v63 = vadd.f32 %v595_v61, %v334_v57  ;;  %v615_v0 = vadd.f32 %v605_v62, %v338_v58 }
 0x12f   : > { %619 = vst [vmem:[%s1272_s3 + $0x18] sm:$0xff] %v611_v63  ;;  %623 = vst [vmem:[%s1272_s3 + $0x38] sm:$0xff] %v615_v0 }
 0x130   : > { %v638_v1 = vlaneseq  ;;  %v636_v3 = vld [vmem:[%s1271_s2] sm:$0x3] }
 0x131   : > { %v628_v4 = vld [vmem:[%s1272_s3] sm:$0xff] }
 0x132   : > { %v639_v2 = vshrl.u32 %v638_v1, 7  ;;  %v629_v6 = vld [vmem:[%s1272_s3 + $0x8] sm:$0xff]  ;;  %v632_v10 = vld [vmem:[%s1272_s3 + $0x20] sm:$0xff] }
 0x133   : > { %v633_v13 = vld [vmem:[%s1272_s3 + $0x28] sm:$0xff] }
 0x134   : > { %v640_v5 = vsub.s32 0, %v639_v2  ;;  %v644_v7 = vsub.s32 1, %v639_v2  ;;  %v630_v8 = vld [vmem:[%s1272_s3 + $0x10] sm:$0xff] }
 0x135   : > { %v634_v14 = vld [vmem:[%s1272_s3 + $0x30] sm:$0xff] }
 0x136   : > { %v631_v9 = vld [vmem:[%s1272_s3 + $0x18] sm:$0xff]  ;;  %v641_v11 = vrot.slane %v636_v3, %v640_v5  ;;  %v645_v12 = vrot.slane %v636_v3, %v644_v7 }
 0x137   : > { %v635_v15 = vld [vmem:[%s1272_s3 + $0x38] sm:$0xff] }
 0x138   : > { %v648_v16 = vadd.f32 %v641_v11, %v628_v4  ;;  %v649_v17 = vadd.f32 %v645_v12, %v629_v6  ;;  %v650_v18 = vadd.f32 %v641_v11, %v630_v8  ;;  %v651_v19 = vadd.f32 %v645_v12, %v631_v9 }
 0x139   : > { %v652_v20 = vadd.f32 %v641_v11, %v632_v10  ;;  %v653_v21 = vadd.f32 %v645_v12, %v633_v13  ;;  %v654_v22 = vadd.f32 %v641_v11, %v634_v14  ;;  %v655_v23 = vadd.f32 %v645_v12, %v635_v15 }
 0x13a   : > { %v656_v24 = vmax.f32 %v648_v16, 0.0  ;;  %v657_v25 = vmax.f32 %v649_v17, 0.0  ;;  %v658_v26 = vmax.f32 %v650_v18, 0.0  ;;  %v659_v27 = vmax.f32 %v651_v19, 0.0 }
 0x13b   : > { %v660_v28 = vmax.f32 %v652_v20, 0.0  ;;  %v661_v29 = vmax.f32 %v653_v21, 0.0  ;;  %v662_v30 = vmax.f32 %v654_v22, 0.0  ;;  %v663_v31 = vmax.f32 %v655_v23, 0.0 }
 0x13c   : > { %664 = vst [vmem:[%s1272_s3] sm:$0xff] %v656_v24  ;;  %665 = vst [vmem:[%s1272_s3 + $0x8] sm:$0xff] %v657_v25 }
 0x13d   : > { %666 = vst [vmem:[%s1272_s3 + $0x10] sm:$0xff] %v658_v26  ;;  %667 = vst [vmem:[%s1272_s3 + $0x18] sm:$0xff] %v659_v27 }
 0x13e   : > { %668 = vst [vmem:[%s1272_s3 + $0x20] sm:$0xff] %v660_v28  ;;  %669 = vst [vmem:[%s1272_s3 + $0x28] sm:$0xff] %v661_v29 }
 0x13f   : > { %670 = vst [vmem:[%s1272_s3 + $0x30] sm:$0xff] %v662_v30  ;;  %671 = vst [vmem:[%s1272_s3 + $0x38] sm:$0xff] %v663_v31 }
 0x140 PF: > { %s13_s16 = sadd.s32 1, %s1016_s16   ;;  %s1273_s12 = smov %s1004_s13 }
 0x141   : > { %p10_p12 = scmp.ge.s32.totalorder %s13_s16, 20   ;;  %s1274_s13 = smov %s1074_s20 }
 0x142   : > { %s1275_s14 = smov %s1012_s15  ;;  %s1276_s15 = smov %s1278_s17 }
 0x143   :  { %12 = sbr.rel (!%p10_p12) target bundleno = 3 (0x3), region = 119 }

// kernel: forward.71
= control target key start
LH: loop header
LB: loop body
LE: loop exit
PB: predicated region body
PF: predicated region fallthrough
CT: control target
= control target key end

     0   :  { %s1182_s12 = smov 0   ;;  %s1184_s13 = smov 0   ;;  %s1546_s0 = inlined_call_operand.vmem [shape: bf16[128,6400], index: 0, kind: input, shape index: {}]   ;;  %s1547_s1 = inlined_call_operand.vmem [shape: bf16[6400,128], index: 1, kind: input, shape index: {}]   ;;  %s1548_s2 = inlined_call_operand.vmem [shape: f32[1,128], index: 2, kind: input, shape index: {}]   ;;  %s1549_s3 = inlined_call_operand.vmem [shape: f32[128,128], index: 3, kind: output, shape index: {}]  }
   0x1   :  { %s1186_s14 = smov 0   ;;  %s1188_s15 = smov 0  }
   0x2   :  { %s1190_s16 = smov 0  }
   0x3 LB: > { %s25_s17 = sadd.s32 1, %s1155_s15  ;;  %p48_p1 = scmp.ne.s32.totalorder %s1147_s13, %s1143_s12  ;;  %s1159_s16 = sphi %s1190_s16, %s13_s16   ;;  %s1155_s15 = sphi %s1188_s15, %s1553_s15   ;;  %s1151_s14 = sphi %s1186_s14, %s1552_s14   ;;  %s1147_s13 = sphi %s1184_s13, %s1551_s13   ;;  %s1143_s12 = sphi %s1182_s12, %s1550_s12  }
   0x4   : > { %p26_p0 = scmp.ge.s32.totalorder %s25_s17, 25  ;;  %p49_p2 = scmp.eq.s32.totalorder %s1159_s16, 0 }
   0x5   : > { %s41_s19 = sadd.s32 1, %s1147_s13  ;;  %p912_p5 = scmp.ge.s32.totalorder %s1159_s16, 25 }
   0x6   : > { %s1555_s17 = smov (%p26_p0, %s25_s17), 0  ;;  %p50_p3 = por %p49_p2, %p48_p1 }
   0x7   : > { %s37_s18 = ssub.s32 %s1155_s15, %s1555_s17  ;;  %162 = sbr.rel (%p912_p5) target bundleno = 24 (0x18), region = 20 }
   0x8   : > { %p39_p4 = scmp.eq.s32.totalorder %s37_s18, 0 }
   0xa   : > { %s1217_s20 = scalar_select %p39_p4, %s1147_s13, %s41_s19  }
   0xc   : > { %165 = sbr.rel (!%p50_p3) target bundleno = 24 (0x18), region = 24  ;;  %s167_s21 = sand.u32 (%p50_p3), 1, %s1147_s13  }
   0xd   : > { %s959_s22 = sshll.u32 (%p50_p3), %s1155_s15, 3  ;;  %s913_s23 = sshll.u32 (%p50_p3), %s167_s21, 7 }
   0xe   : > { %s1225_s26 = scalar_lea.vmem (%p50_p3), %s1546_s0, %s959_s22  ;;  %s169_s27 = scalar_lea.vmem (%p50_p3), [#allocation2], %s913_s23 }
   0xf   : > { %v234_v0 = vld [vmem:[%s1225_s26] sm:$0xff] (%p50_p3)  ;;  %v236_v1 = vld [vmem:[%s1225_s26 + $0xc8] sm:$0xff] (%p50_p3)  ;;  %v238_v2 = vld [vmem:[%s1225_s26 + $0x190] sm:$0xff] (%p50_p3) }
  0x10   : > { %235 = vst [vmem:[%s169_s27] sm:$0xff] (%p50_p3), %v234_v0  ;;  %237 = vst [vmem:[%s169_s27 + $0x8] sm:$0xff] (%p50_p3), %v236_v1  ;;  %v240_v3 = vld [vmem:[%s1225_s26 + $0x258] sm:$0xff] (%p50_p3)  ;;  %v242_v4 = vld [vmem:[%s1225_s26 + $0x320] sm:$0xff] (%p50_p3) }
  0x11   : > { %239 = vst [vmem:[%s169_s27 + $0x10] sm:$0xff] %v238_v2  ;;  %v244_v5 = vld [vmem:[%s1225_s26 + $0x3e8] sm:$0xff]  ;;  %241 = vst [vmem:[%s169_s27 + $0x18] sm:$0xff] %v240_v3  ;;  %v246_v6 = vld [vmem:[%s1225_s26 + $0x4b0] sm:$0xff] }
  0x12   : > { %243 = vst [vmem:[%s169_s27 + $0x20] sm:$0xff] %v242_v4  ;;  %245 = vst [vmem:[%s169_s27 + $0x28] sm:$0xff] %v244_v5  ;;  %v248_v7 = vld [vmem:[%s1225_s26 + $0x578] sm:$0xff]  ;;  %v250_v8 = vld [vmem:[%s1225_s26 + $0x640] sm:$0xff] }
  0x13   : > { %247 = vst [vmem:[%s169_s27 + $0x30] sm:$0xff] %v246_v6  ;;  %249 = vst [vmem:[%s169_s27 + $0x38] sm:$0xff] %v248_v7  ;;  %v252_v9 = vld [vmem:[%s1225_s26 + $0x708] sm:$0xff]  ;;  %v254_v10 = vld [vmem:[%s1225_s26 + $0x7d0] sm:$0xff] }
  0x14   : > { %251 = vst [vmem:[%s169_s27 + $0x40] sm:$0xff] %v250_v8  ;;  %v256_v11 = vld [vmem:[%s1225_s26 + $0x898] sm:$0xff]  ;;  %253 = vst [vmem:[%s169_s27 + $0x48] sm:$0xff] %v252_v9  ;;  %v258_v12 = vld [vmem:[%s1225_s26 + $0x960] sm:$0xff] }
  0x15   : > { %255 = vst [vmem:[%s169_s27 + $0x50] sm:$0xff] %v254_v10  ;;  %257 = vst [vmem:[%s169_s27 + $0x58] sm:$0xff] %v256_v11  ;;  %v260_v13 = vld [vmem:[%s1225_s26 + $0xa28] sm:$0xff]  ;;  %v262_v14 = vld [vmem:[%s1225_s26 + $0xaf0] sm:$0xff] }
  0x16   : > { %259 = vst [vmem:[%s169_s27 + $0x60] sm:$0xff] %v258_v12  ;;  %261 = vst [vmem:[%s169_s27 + $0x68] sm:$0xff] %v260_v13  ;;  %v264_v15 = vld [vmem:[%s1225_s26 + $0xbb8] sm:$0xff] }
  0x17   : > { %263 = vst [vmem:[%s169_s27 + $0x70] sm:$0xff] %v262_v14  ;;  %265 = vst [vmem:[%s169_s27 + $0x78] sm:$0xff] %v264_v15 }
  0x18 PF: > { %p916_p6 = scmp.ge.s32.totalorder %s1159_s16, 1  ;;  %p282_p7 = scmp.lt.s32.totalorder %s1159_s16, 26 }
  0x1a   : > { %p283_p8 = pnand %p916_p6, %p282_p7 }
  0x1b   : > { %s289_s28 = sand.u32 (!%p283_p8), 1, %s1143_s12   ;;  %s918_s29 = sshll.u32 (!%p283_p8), %s1151_s14, 5 }
  0x1c   : > { %286 = sbr.rel (%p283_p8) target bundleno = 320 (0x140), region = 66  ;;  %s917_s30 = sshll.u32 (!%p283_p8), %s289_s28, 7 }
  0x1d   : > { %p329_p9 = scmp.lt.s32.totalorder (!%p283_p8), %s918_s29, 799  ;;  %s1252_s8 = scalar_lea.vmem (!%p283_p8), [#allocation2], %s917_s30 }
  0x1e   : > { %p920_p10 = scmp.ne.s32.totalorder (!%p283_p8), %s1151_s14, 0 }
  0x21   : > { %s1557_s29 = smov (!%p329_p9, %s918_s29), 799  ;;  %353 = sbr.rel (%p920_p10) target bundleno = 47 (0x2f), region = 74 }
  0x22   : > { %s919_s4 = sshll.u32 %s1557_s29, 2 }
  0x23   : > { %s1250_s7 = scalar_lea.vmem %s1547_s1, %s919_s4 }
  0x26   : > { %v1161_v16 = vmov 0.0  }
  0x27   : > { %354 = vst [vmem:[%s1549_s3] sm:$0xff] %v1161_v16  ;;  %355 = vst [vmem:[%s1549_s3 + $0x8] sm:$0xff] %v1161_v16 }
  0x28   : > { %356 = vst [vmem:[%s1549_s3 + $0x10] sm:$0xff] %v1161_v16  ;;  %357 = vst [vmem:[%s1549_s3 + $0x18] sm:$0xff] %v1161_v16 }
  0x29   : > { %358 = vst [vmem:[%s1549_s3 + $0x20] sm:$0xff] %v1161_v16  ;;  %359 = vst [vmem:[%s1549_s3 + $0x28] sm:$0xff] %v1161_v16 }
  0x2a   : > { %360 = vst [vmem:[%s1549_s3 + $0x30] sm:$0xff] %v1161_v16  ;;  %361 = vst [vmem:[%s1549_s3 + $0x38] sm:$0xff] %v1161_v16 }
  0x2b   : > { %362 = vst [vmem:[%s1549_s3 + $0x40] sm:$0xff] %v1161_v16  ;;  %363 = vst [vmem:[%s1549_s3 + $0x48] sm:$0xff] %v1161_v16 }
  0x2c   : > { %364 = vst [vmem:[%s1549_s3 + $0x50] sm:$0xff] %v1161_v16  ;;  %365 = vst [vmem:[%s1549_s3 + $0x58] sm:$0xff] %v1161_v16 }
  0x2d   : > { %366 = vst [vmem:[%s1549_s3 + $0x60] sm:$0xff] %v1161_v16  ;;  %367 = vst [vmem:[%s1549_s3 + $0x68] sm:$0xff] %v1161_v16 }
  0x2e   : > { %368 = vst [vmem:[%s1549_s3 + $0x70] sm:$0xff] %v1161_v16  ;;  %369 = vst [vmem:[%s1549_s3 + $0x78] sm:$0xff] %v1161_v16 }
  0x2f PF: > { %v1081_v17 = vld [vmem:[%s1250_s7 + $0x78] sm:$0xff]   ;;  %v1083_v19 = vld [vmem:[%s1250_s7 + $0x70] sm:$0xff]   ;;  %v1085_v21 = vld [vmem:[%s1250_s7 + $0x68] sm:$0xff]   ;;  %p953_p11 = scmp.ne.s32.totalorder %s1151_s14, 24 }
  0x30   : > { %v1082_v18 = vld [vmem:[%s1250_s7 + $0x38] sm:$0xff]   ;;  %960 = vmatprep.subr.bf16.mxu0 %v1081_v17  ;;  %1024 = vmatprep.subr.bf16.mxu1 %v1081_v17  ;;  %v1084_v20 = vld [vmem:[%s1250_s7 + $0x30] sm:$0xff]   ;;  %v1086_v22 = vld [vmem:[%s1250_s7 + $0x28] sm:$0xff]  }
  0x31   : > { %961 = vmatpush3.bf16.msra.mxu0 %v1082_v18  ;;  %1032 = vmatpush3.bf16.msra.mxu1 %v1082_v18  ;;  %v1087_v23 = vld [vmem:[%s1250_s7 + $0x60] sm:$0xff]   ;;  %v1089_v25 = vld [vmem:[%s1250_s7 + $0x58] sm:$0xff]   ;;  %v1091_v27 = vld [vmem:[%s1250_s7 + $0x50] sm:$0xff]  }
  0x32   : > { %962 = vmatprep.subr.bf16.mxu0 %v1083_v19  ;;  %1025 = vmatprep.subr.bf16.mxu1 %v1083_v19  ;;  %v1088_v24 = vld [vmem:[%s1250_s7 + $0x20] sm:$0xff]   ;;  %v1090_v26 = vld [vmem:[%s1250_s7 + $0x18] sm:$0xff]   ;;  %v1092_v30 = vld [vmem:[%s1250_s7 + $0x10] sm:$0xff]  }
  0x33   : > { %v1099_v28 = vld [vmem:[%s1252_s8 + $0x4] ss:$8 sps:$4 sm:$0xff]   ;;  %v1097_v35 = vld [vmem:[%s1252_s8] ss:$8 sps:$4 sm:$0xff]   ;;  %v1103_v37 = vld [vmem:[%s1252_s8 + $0x14] ss:$8 sps:$4 sm:$0xff]  }
  0x34   : > { %v1102_v29 = vld [vmem:[%s1252_s8 + $0x44] ss:$8 sps:$4 sm:$0xff]   ;;  %642 = vmatprep.mubr.bf16.mxu0 %v1099_v28  ;;  %v1100_v36 = vld [vmem:[%s1252_s8 + $0x40] ss:$8 sps:$4 sm:$0xff]   ;;  %v1105_v38 = vld [vmem:[%s1252_s8 + $0x54] ss:$8 sps:$4 sm:$0xff]  }
  0x35   : > { %963 = vmatpush3.bf16.msra.mxu0 %v1084_v20  ;;  %1033 = vmatpush3.bf16.msra.mxu1 %v1084_v20  ;;  %v1093_v31 = vld [vmem:[%s1250_s7 + $0x48] sm:$0xff]   ;;  %v1095_v33 = vld [vmem:[%s1250_s7 + $0x40] sm:$0xff]   ;;  %v1107_v39 = vld [vmem:[%s1252_s8 + $0x10] ss:$8 sps:$4 sm:$0xff]  }
  0x36   : > { %964 = vmatprep.subr.bf16.mxu0 %v1085_v21  ;;  %1026 = vmatprep.subr.bf16.mxu1 %v1085_v21  ;;  %v1094_v32 = vld [vmem:[%s1250_s7 + $0x8] sm:$0xff]   ;;  %v1096_v34 = vld [vmem:[%s1250_s7] sm:$0xff]   ;;  %v1108_v40 = vld [vmem:[%s1252_s8 + $0x50] ss:$8 sps:$4 sm:$0xff]  }
  0x37   : > { %674 = vmatprep.mubr.bf16.mxu1 %v1102_v29  ;;  %v1109_v41 = vld [vmem:[%s1252_s8 + $0x24] ss:$8 sps:$4 sm:$0xff]   ;;  %v1113_v43 = vld [vmem:[%s1252_s8 + $0x20] ss:$8 sps:$4 sm:$0xff]   ;;  %v1115_v45 = vld [vmem:[%s1252_s8 + $0x34] ss:$8 sps:$4 sm:$0xff]  }
  0x38   : > { %v1111_v42 = vld [vmem:[%s1252_s8 + $0x64] ss:$8 sps:$4 sm:$0xff]   ;;  %v1114_v44 = vld [vmem:[%s1252_s8 + $0x60] ss:$8 sps:$4 sm:$0xff]   ;;  %v1117_v46 = vld [vmem:[%s1252_s8 + $0x74] ss:$8 sps:$4 sm:$0xff]  }
  0x39   : > { %965 = vmatpush3.bf16.msra.mxu0 %v1086_v22  ;;  %1034 = vmatpush3.bf16.msra.mxu1 %v1086_v22  ;;  %v1119_v47 = vld [vmem:[%s1252_s8 + $0x30] ss:$8 sps:$4 sm:$0xff]   ;;  %v370_v51 = vld [vmem:[%s1549_s3] sm:$0xff]  ;;  %v371_v61 = vld [vmem:[%s1549_s3 + $0x8] sm:$0xff] }
  0x3a   : > { %966 = vmatprep.subr.bf16.mxu0 %v1087_v23  ;;  %1027 = vmatprep.subr.bf16.mxu1 %v1087_v23  ;;  %v1120_v48 = vld [vmem:[%s1252_s8 + $0x70] ss:$8 sps:$4 sm:$0xff]   ;;  %v378_v53 = vld [vmem:[%s1549_s3 + $0x40] sm:$0xff]  ;;  %v379_v63 = vld [vmem:[%s1549_s3 + $0x48] sm:$0xff] }
  0x3b   : > { %v372_v7 = vld [vmem:[%s1549_s3 + $0x10] sm:$0xff]  ;;  %v373_v17 = vld [vmem:[%s1549_s3 + $0x18] sm:$0xff]  ;;  %v382_v29 = vld [vmem:[%s1549_s3 + $0x60] sm:$0xff] }
  0x3c   : > { %v380_v9 = vld [vmem:[%s1549_s3 + $0x50] sm:$0xff]  ;;  %v381_v19 = vld [vmem:[%s1549_s3 + $0x58] sm:$0xff] }
  0x3d   : > { %967 = vmatpush3.bf16.msra.mxu0 %v1088_v24  ;;  %1035 = vmatpush3.bf16.msra.mxu1 %v1088_v24 }
  0x3e   : > { %968 = vmatprep.subr.bf16.mxu0 %v1089_v25  ;;  %1028 = vmatprep.subr.bf16.mxu1 %v1089_v25 }
  0x41   : > { %969 = vmatpush3.bf16.msra.mxu0 %v1090_v26  ;;  %1036 = vmatpush3.bf16.msra.mxu1 %v1090_v26 }
  0x42   : > { %970 = vmatprep.subr.bf16.mxu0 %v1091_v27  ;;  %1029 = vmatprep.subr.bf16.mxu1 %v1091_v27  ;;  %v374_v27 = vld [vmem:[%s1549_s3 + $0x20] sm:$0xff] }
  0x45   : > { %971 = vmatpush3.bf16.msra.mxu0 %v1092_v30  ;;  %1037 = vmatpush3.bf16.msra.mxu1 %v1092_v30 }
  0x46   : > { %972 = vmatprep.subr.bf16.mxu0 %v1093_v31  ;;  %1030 = vmatprep.subr.bf16.mxu1 %v1093_v31 }
  0x49   : > { %973 = vmatpush3.bf16.msra.mxu0 %v1094_v32  ;;  %1038 = vmatpush3.bf16.msra.mxu1 %v1094_v32 }
  0x4a   : > { %974 = vmatprep.subr.bf16.mxu0 %v1095_v33  ;;  %1031 = vmatprep.subr.bf16.mxu1 %v1095_v33 }
  0x4d   : > { %975 = vmatpush3.bf16.msra.mxu0 %v1096_v34  ;;  %1039 = vmatpush3.bf16.msra.mxu1 %v1096_v34 }
  0x50   : > { %643 = vmatmul.mubr.bf16.vlgmr.msra.gmra.mxu0 %v1097_v35  ;;  %675 = vmatmul.mubr.bf16.vlgmr.msra.gmra.mxu1 %v1100_v36 }
  0x51   : > { %650 = vmatprep.mubr.bf16.mxu0 %v1103_v37  ;;  %682 = vmatprep.mubr.bf16.mxu1 %v1105_v38  ;;  %v375_v37 = vld [vmem:[%s1549_s3 + $0x28] sm:$0xff] }
  0x58   : > { %651 = vmatmul.mubr.bf16.gmra.mxu0 %v1107_v39  ;;  %683 = vmatmul.mubr.bf16.gmra.mxu1 %v1108_v40  ;;  %v383_v39 = vld [vmem:[%s1549_s3 + $0x68] sm:$0xff] }
  0x59   : > { %658 = vmatprep.mubr.bf16.mxu0 %v1109_v41  ;;  %690 = vmatprep.mubr.bf16.mxu1 %v1111_v42 }
  0x60   : > { %659 = vmatmul.mubr.bf16.gmra.mxu0 %v1113_v43  ;;  %691 = vmatmul.mubr.bf16.gmra.mxu1 %v1114_v44 }
  0x61   : > { %666 = vmatprep.mubr.bf16.mxu0 %v1115_v45  ;;  %698 = vmatprep.mubr.bf16.mxu1 %v1117_v46 }
  0x68   : > { %667 = vmatmul.mubr.bf16.gmra.mxu0 %v1119_v47  ;;  %699 = vmatmul.mubr.bf16.gmra.mxu1 %v1120_v48  ;;  %v376_v47 = vld [vmem:[%s1549_s3 + $0x30] sm:$0xff] }
 0x110   : > { %v976_v49 = vpop.f32.mrf.mxu0  ;;  %v1000_v50 = vpop.f32.mrf.mxu1 }
 0x112   : > { %v977_v52 = vpop.f32.mrf.mxu0  ;;  %v1001_v54 = vpop.f32.mrf.mxu1 }
 0x113   : > { %v978_v55 = vadd.f32 %v977_v52, %v976_v49  ;;  %v1002_v56 = vadd.f32 %v1001_v54, %v1000_v50  ;;  %v384_v49 = vld [vmem:[%s1549_s3 + $0x70] sm:$0xff] }
 0x114   : > { %v979_v57 = vpop.f32.mrf.mxu0  ;;  %v1003_v58 = vpop.f32.mrf.mxu1 }
 0x115   : > { %v707_v59 = vadd.f32 %v978_v55, %v370_v51  ;;  %v715_v60 = vadd.f32 %v1002_v56, %v378_v53 }
 0x116   : > { %v980_v62 = vpop.f32.mrf.mxu0  ;;  %v1004_v0 = vpop.f32.mrf.mxu1 }
 0x117   : > { %723 = vst [vmem:[%s1549_s3] sm:$0xff] %v707_v59  ;;  %731 = vst [vmem:[%s1549_s3 + $0x40] sm:$0xff] %v715_v60  ;;  %v981_v1 = vadd.f32 %v980_v62, %v979_v57  ;;  %v1005_v2 = vadd.f32 %v1004_v0, %v1003_v58  ;;  %v377_v57 = vld [vmem:[%s1549_s3 + $0x38] sm:$0xff] }
 0x118   : > { %v982_v3 = vpop.f32.mrf.mxu0  ;;  %v1006_v4 = vpop.f32.mrf.mxu1  ;;  %v385_v59 = vld [vmem:[%s1549_s3 + $0x78] sm:$0xff] }
 0x119   : > { %v708_v5 = vadd.f32 %v981_v1, %v371_v61  ;;  %v716_v6 = vadd.f32 %v1005_v2, %v379_v63 }
 0x11a   : > { %v983_v8 = vpop.f32.mrf.mxu0  ;;  %v1007_v10 = vpop.f32.mrf.mxu1 }
 0x11b   : > { %724 = vst [vmem:[%s1549_s3 + $0x8] sm:$0xff] %v708_v5  ;;  %732 = vst [vmem:[%s1549_s3 + $0x48] sm:$0xff] %v716_v6  ;;  %v984_v11 = vadd.f32 %v983_v8, %v982_v3  ;;  %v1008_v12 = vadd.f32 %v1007_v10, %v1006_v4 }
 0x11c   : > { %v985_v13 = vpop.f32.mrf.mxu0  ;;  %v1009_v14 = vpop.f32.mrf.mxu1 }
 0x11d   : > { %v709_v15 = vadd.f32 %v984_v11, %v372_v7  ;;  %v717_v16 = vadd.f32 %v1008_v12, %v380_v9 }
 0x11e   : > { %v986_v18 = vpop.f32.mrf.mxu0  ;;  %v1010_v20 = vpop.f32.mrf.mxu1 }
 0x11f   : > { %725 = vst [vmem:[%s1549_s3 + $0x10] sm:$0xff] %v709_v15  ;;  %733 = vst [vmem:[%s1549_s3 + $0x50] sm:$0xff] %v717_v16  ;;  %v987_v21 = vadd.f32 %v986_v18, %v985_v13  ;;  %v1011_v22 = vadd.f32 %v1010_v20, %v1009_v14 }
 0x120   : > { %v988_v23 = vpop.f32.mrf.mxu0  ;;  %v1012_v24 = vpop.f32.mrf.mxu1 }
 0x121   : > { %v710_v25 = vadd.f32 %v987_v21, %v373_v17  ;;  %v718_v26 = vadd.f32 %v1011_v22, %v381_v19 }
 0x122   : > { %v989_v28 = vpop.f32.mrf.mxu0  ;;  %v1013_v30 = vpop.f32.mrf.mxu1 }
 0x123   : > { %726 = vst [vmem:[%s1549_s3 + $0x18] sm:$0xff] %v710_v25  ;;  %734 = vst [vmem:[%s1549_s3 + $0x58] sm:$0xff] %v718_v26  ;;  %v990_v31 = vadd.f32 %v989_v28, %v988_v23  ;;  %v1014_v32 = vadd.f32 %v1013_v30, %v1012_v24 }
 0x124   : > { %v991_v33 = vpop.f32.mrf.mxu0  ;;  %v1015_v34 = vpop.f32.mrf.mxu1 }
 0x125   : > { %v711_v35 = vadd.f32 %v990_v31, %v374_v27  ;;  %v719_v36 = vadd.f32 %v1014_v32, %v382_v29 }
 0x126   : > { %v992_v38 = vpop.f32.mrf.mxu0  ;;  %v1016_v40 = vpop.f32.mrf.mxu1 }
 0x127   : > { %727 = vst [vmem:[%s1549_s3 + $0x20] sm:$0xff] %v711_v35  ;;  %735 = vst [vmem:[%s1549_s3 + $0x60] sm:$0xff] %v719_v36  ;;  %v993_v41 = vadd.f32 %v992_v38, %v991_v33  ;;  %v1017_v42 = vadd.f32 %v1016_v40, %v1015_v34 }
 0x128   : > { %v994_v43 = vpop.f32.mrf.mxu0  ;;  %v1018_v44 = vpop.f32.mrf.mxu1 }
 0x129   : > { %v712_v45 = vadd.f32 %v993_v41, %v375_v37  ;;  %v720_v46 = vadd.f32 %v1017_v42, %v383_v39 }
 0x12a   : > { %v995_v48 = vpop.f32.mrf.mxu0  ;;  %v1019_v50 = vpop.f32.mrf.mxu1 }
 0x12b   : > { %728 = vst [vmem:[%s1549_s3 + $0x28] sm:$0xff] %v712_v45  ;;  %736 = vst [vmem:[%s1549_s3 + $0x68] sm:$0xff] %v720_v46  ;;  %v996_v51 = vadd.f32 %v995_v48, %v994_v43  ;;  %v1020_v52 = vadd.f32 %v1019_v50, %v1018_v44 }
 0x12c   : > { %v997_v53 = vpop.f32.mrf.mxu0  ;;  %v1021_v54 = vpop.f32.mrf.mxu1 }
 0x12d   : > { %v713_v55 = vadd.f32 %v996_v51, %v376_v47  ;;  %v721_v56 = vadd.f32 %v1020_v52, %v384_v49 }
 0x12e   : > { %v998_v58 = vpop.f32.mrf.mxu0  ;;  %v1022_v60 = vpop.f32.mrf.mxu1 }
 0x12f   : > { %729 = vst [vmem:[%s1549_s3 + $0x30] sm:$0xff] %v713_v55  ;;  %737 = vst [vmem:[%s1549_s3 + $0x70] sm:$0xff] %v721_v56  ;;  %v999_v61 = vadd.f32 %v998_v58, %v997_v53  ;;  %v1023_v62 = vadd.f32 %v1022_v60, %v1021_v54  ;;  %742 = sbr.rel (%p953_p11) target bundleno = 320 (0x140), region = 78 }
 0x131   : > { %v714_v63 = vadd.f32 %v999_v61, %v377_v57  ;;  %v722_v0 = vadd.f32 %v1023_v62, %v385_v59 }
 0x133   : > { %730 = vst [vmem:[%s1549_s3 + $0x38] sm:$0xff] %v714_v63  ;;  %738 = vst [vmem:[%s1549_s3 + $0x78] sm:$0xff] %v722_v0 }
 0x134   : > { %v743_v1 = vld [vmem:[%s1549_s3] sm:$0xff]  ;;  %v744_v3 = vld [vmem:[%s1549_s3 + $0x8] sm:$0xff]  ;;  %v745_v6 = vld [vmem:[%s1549_s3 + $0x10] sm:$0xff] }
 0x135   : > { %v954_v2 = vld [vmem:[%s1548_s2] ss:$0 sm:$0xff]  ;;  %v746_v7 = vld [vmem:[%s1549_s3 + $0x18] sm:$0xff]  ;;  %v748_v12 = vld [vmem:[%s1549_s3 + $0x28] sm:$0xff] }
 0x136   : > { %v766_v4 = vadd.f32 %v954_v2, %v743_v1  ;;  %v767_v5 = vadd.f32 %v954_v2, %v744_v3  ;;  %v747_v8 = vld [vmem:[%s1549_s3 + $0x20] sm:$0xff]  ;;  %v768_v9 = vadd.f32 %v954_v2, %v745_v6  ;;  %v769_v10 = vadd.f32 %v954_v2, %v746_v7  ;;  %v749_v13 = vld [vmem:[%s1549_s3 + $0x30] sm:$0xff]  ;;  %v752_v19 = vld [vmem:[%s1549_s3 + $0x48] sm:$0xff] }
 0x137   : > { %v770_v11 = vadd.f32 %v954_v2, %v747_v8  ;;  %v771_v15 = vadd.f32 %v954_v2, %v748_v12  ;;  %v772_v16 = vadd.f32 %v954_v2, %v749_v13  ;;  %v751_v18 = vld [vmem:[%s1549_s3 + $0x40] sm:$0xff]  ;;  %v753_v20 = vld [vmem:[%s1549_s3 + $0x50] sm:$0xff]  ;;  %v775_v22 = vadd.f32 %v954_v2, %v752_v19  ;;  %v754_v24 = vld [vmem:[%s1549_s3 + $0x58] sm:$0xff] }
 0x138   : > { %782 = vst [vmem:[%s1549_s3] sm:$0xff] %v766_v4  ;;  %783 = vst [vmem:[%s1549_s3 + $0x8] sm:$0xff] %v767_v5  ;;  %v774_v21 = vadd.f32 %v954_v2, %v751_v18  ;;  %v776_v23 = vadd.f32 %v954_v2, %v753_v20  ;;  %v755_v25 = vld [vmem:[%s1549_s3 + $0x60] sm:$0xff]  ;;  %v756_v26 = vld [vmem:[%s1549_s3 + $0x68] sm:$0xff]  ;;  %v777_v27 = vadd.f32 %v954_v2, %v754_v24 }
 0x139   : > { %784 = vst [vmem:[%s1549_s3 + $0x10] sm:$0xff] %v768_v9  ;;  %785 = vst [vmem:[%s1549_s3 + $0x18] sm:$0xff] %v769_v10  ;;  %v778_v28 = vadd.f32 %v954_v2, %v755_v25  ;;  %v779_v29 = vadd.f32 %v954_v2, %v756_v26  ;;  %v757_v30 = vld [vmem:[%s1549_s3 + $0x70] sm:$0xff] }
 0x13a   : > { %v750_v14 = vld [vmem:[%s1549_s3 + $0x38] sm:$0xff]  ;;  %786 = vst [vmem:[%s1549_s3 + $0x20] sm:$0xff] %v770_v11  ;;  %787 = vst [vmem:[%s1549_s3 + $0x28] sm:$0xff] %v771_v15  ;;  %v780_v32 = vadd.f32 %v954_v2, %v757_v30 }
 0x13b   : > { %v773_v17 = vadd.f32 %v954_v2, %v750_v14  ;;  %788 = vst [vmem:[%s1549_s3 + $0x30] sm:$0xff] %v772_v16  ;;  %v758_v31 = vld [vmem:[%s1549_s3 + $0x78] sm:$0xff]  ;;  %790 = vst [vmem:[%s1549_s3 + $0x40] sm:$0xff] %v774_v21 }
 0x13c   : > { %791 = vst [vmem:[%s1549_s3 + $0x48] sm:$0xff] %v775_v22  ;;  %792 = vst [vmem:[%s1549_s3 + $0x50] sm:$0xff] %v776_v23  ;;  %v781_v33 = vadd.f32 %v954_v2, %v758_v31 }
 0x13d   : > { %789 = vst [vmem:[%s1549_s3 + $0x38] sm:$0xff] %v773_v17  ;;  %793 = vst [vmem:[%s1549_s3 + $0x58] sm:$0xff] %v777_v27 }
 0x13e   : > { %794 = vst [vmem:[%s1549_s3 + $0x60] sm:$0xff] %v778_v28  ;;  %795 = vst [vmem:[%s1549_s3 + $0x68] sm:$0xff] %v779_v29 }
 0x13f   : > { %796 = vst [vmem:[%s1549_s3 + $0x70] sm:$0xff] %v780_v32  ;;  %797 = vst [vmem:[%s1549_s3 + $0x78] sm:$0xff] %v781_v33 }
 0x140 PF: > { %s13_s16 = sadd.s32 1, %s1159_s16   ;;  %s1550_s12 = smov %s1147_s13 }
 0x141   : > { %p10_p12 = scmp.ge.s32.totalorder %s13_s16, 27   ;;  %s1551_s13 = smov %s1217_s20 }
 0x142   : > { %s1552_s14 = smov %s1155_s15  ;;  %s1553_s15 = smov %s1555_s17 }
 0x143   :  { %12 = sbr.rel (!%p10_p12) target bundleno = 3 (0x3), region = 119 }

// kernel: forward.72
= control target key start
LH: loop header
LB: loop body
LE: loop exit
PB: predicated region body
PF: predicated region fallthrough
CT: control target
= control target key end

     0   :  { %s1419_s12 = smov 0   ;;  %s1421_s13 = smov 0   ;;  %s1808_s0 = inlined_call_operand.vmem [shape: bf16[512,3200], index: 0, kind: input, shape index: {}]   ;;  %s1809_s1 = inlined_call_operand.vmem [shape: bf16[3200,128], index: 1, kind: input, shape index: {}]   ;;  %s1810_s2 = inlined_call_operand.vmem [shape: f32[1,128], index: 2, kind: input, shape index: {}]   ;;  %s1811_s3 = inlined_call_operand.vmem [shape: f32[512,128], index: 3, kind: output, shape index: {}]  }
   0x1   :  { %s1423_s14 = smov 0   ;;  %s1425_s15 = smov 0  }
   0x2   :  { %s1427_s16 = smov 0   ;;  %s1429_s17 = smov 0  }
   0x3   :  { %s1431_s18 = smov 0  }
   0x4 LB: > { %s25_s19 = sadd.s32 1, %s1388_s16  ;;  %s32_s20 = sadd.s32 1, %s1392_s17  ;;  %s1396_s18 = sphi %s1431_s18, %s13_s18   ;;  %s1392_s17 = sphi %s1429_s17, %s1817_s17   ;;  %s1388_s16 = sphi %s1427_s16, %s1816_s16   ;;  %s1384_s15 = sphi %s1425_s15, %s1815_s15   ;;  %s1380_s14 = sphi %s1423_s14, %s1814_s14   ;;  %s1376_s13 = sphi %s1421_s13, %s1813_s13   ;;  %s1372_s12 = sphi %s1419_s12, %s1812_s12  }
   0x5   : > { %p26_p0 = scmp.ge.s32.totalorder %s25_s19, 25  ;;  %p48_p1 = scmp.ne.s32.totalorder %s1376_s13, %s1372_s12 }
   0x6   : > { %p49_p2 = scmp.eq.s32.totalorder %s1396_s18, 0  ;;  %s41_s24 = sadd.s32 1, %s1376_s13 }
   0x7   : > { %s1819_s19 = smov (%p26_p0, %s25_s19), 0  ;;  %s1821_s20 = smov (!%p26_p0, %s32_s20), %s1392_s17 }
   0x8   : > { %p50_p3 = por %p49_p2, %p48_p1  ;;  %p34_p4 = scmp.ge.s32.totalorder %s1821_s20, 2 }
   0x9   : > { %s37_s21 = ssub.s32 %s1388_s16, %s1819_s19  ;;  %p1132_p6 = scmp.ge.s32.totalorder %s1396_s18, 50 }
   0xa   : > { %s1823_s20 = smov (%p34_p4, %s1821_s20), 0 }
   0xb   : > { %s36_s22 = ssub.s32 %s1392_s17, %s1823_s20  ;;  %162 = sbr.rel (%p1132_p6) target bundleno = 44 (0x2c), region = 20 }
   0xc   : > { %s38_s23 = sor.u32 %s37_s21, %s36_s22 }
   0xd   : > { %p39_p5 = scmp.eq.s32.totalorder %s38_s23, 0 }
   0xf   : > { %s1470_s25 = scalar_select %p39_p5, %s1376_s13, %s41_s24  }
  0x10   : > { %165 = sbr.rel (!%p50_p3) target bundleno = 44 (0x2c), region = 24  ;;  %s167_s26 = sand.u32 (%p50_p3), 1, %s1376_s13  }
  0x11   : > { %s1260_s27 = smul.u32 (%p50_p3), 800, %s1392_s17  ;;  %s1133_s28 = sshll.u32 (%p50_p3), %s167_s26, 7 }
  0x12   : > { %s1484_s7 = scalar_lea.vmem (%p50_p3), [#allocation2], %s1133_s28 }
  0x13   : > { %s172_s29 = sadd.s32 (%p50_p3), %s1388_s16, %s1260_s27 }
  0x14   : > { %s1136_s30 = sshll.u32 (%p50_p3), %s172_s29, 2 }
  0x15   : > { %s1479_s6 = scalar_lea.vmem %s1808_s0, %s1136_s30 }
  0x16   : > { %v191_v0 = vld [vmem:[%s1479_s6] sm:$0xf]  ;;  %v193_v1 = vld [vmem:[%s1479_s6 + $0x64] sm:$0xf]  ;;  %v195_v2 = vld [vmem:[%s1479_s6 + $0xc8] sm:$0xf] }
  0x17   : > { %192 = vst [vmem:[%s1484_s7] sm:$0xf] %v191_v0  ;;  %194 = vst [vmem:[%s1484_s7 + $0x4] sm:$0xf] %v193_v1  ;;  %v197_v3 = vld [vmem:[%s1479_s6 + $0x12c] sm:$0xf] }
  0x18   : > { %196 = vst [vmem:[%s1484_s7 + $0x8] sm:$0xf] %v195_v2  ;;  %v199_v4 = vld [vmem:[%s1479_s6 + $0x190] sm:$0xf]  ;;  %v201_v5 = vld [vmem:[%s1479_s6 + $0x1f4] sm:$0xf] }
  0x19   : > { %198 = vst [vmem:[%s1484_s7 + $0xc] sm:$0xf] %v197_v3  ;;  %200 = vst [vmem:[%s1484_s7 + $0x10] sm:$0xf] %v199_v4  ;;  %v203_v6 = vld [vmem:[%s1479_s6 + $0x258] sm:$0xf] }
  0x1a   : > { %202 = vst [vmem:[%s1484_s7 + $0x14] sm:$0xf] %v201_v5  ;;  %v205_v7 = vld [vmem:[%s1479_s6 + $0x2bc] sm:$0xf]  ;;  %v207_v8 = vld [vmem:[%s1479_s6 + $0x320] sm:$0xf] }
  0x1b   : > { %204 = vst [vmem:[%s1484_s7 + $0x18] sm:$0xf] %v203_v6  ;;  %206 = vst [vmem:[%s1484_s7 + $0x1c] sm:$0xf] %v205_v7  ;;  %v209_v9 = vld [vmem:[%s1479_s6 + $0x384] sm:$0xf] }
  0x1c   : > { %208 = vst [vmem:[%s1484_s7 + $0x20] sm:$0xf] %v207_v8  ;;  %v211_v10 = vld [vmem:[%s1479_s6 + $0x3e8] sm:$0xf]  ;;  %v213_v11 = vld [vmem:[%s1479_s6 + $0x44c] sm:$0xf] }
  0x1d   : > { %210 = vst [vmem:[%s1484_s7 + $0x24] sm:$0xf] %v209_v9  ;;  %212 = vst [vmem:[%s1484_s7 + $0x28] sm:$0xf] %v211_v10  ;;  %v215_v12 = vld [vmem:[%s1479_s6 + $0x4b0] sm:$0xf] }
  0x1e   : > { %214 = vst [vmem:[%s1484_s7 + $0x2c] sm:$0xf] %v213_v11  ;;  %v217_v13 = vld [vmem:[%s1479_s6 + $0x514] sm:$0xf]  ;;  %v219_v14 = vld [vmem:[%s1479_s6 + $0x578] sm:$0xf] }
  0x1f   : > { %216 = vst [vmem:[%s1484_s7 + $0x30] sm:$0xf] %v215_v12  ;;  %218 = vst [vmem:[%s1484_s7 + $0x34] sm:$0xf] %v217_v13  ;;  %v221_v15 = vld [vmem:[%s1479_s6 + $0x5dc] sm:$0xf] }
  0x20   : > { %220 = vst [vmem:[%s1484_s7 + $0x38] sm:$0xf] %v219_v14  ;;  %v223_v16 = vld [vmem:[%s1479_s6 + $0x640] sm:$0xf]  ;;  %v225_v17 = vld [vmem:[%s1479_s6 + $0x6a4] sm:$0xf] }
  0x21   : > { %222 = vst [vmem:[%s1484_s7 + $0x3c] sm:$0xf] %v221_v15  ;;  %224 = vst [vmem:[%s1484_s7 + $0x40] sm:$0xf] %v223_v16  ;;  %v227_v18 = vld [vmem:[%s1479_s6 + $0x708] sm:$0xf] }
  0x22   : > { %226 = vst [vmem:[%s1484_s7 + $0x44] sm:$0xf] %v225_v17  ;;  %v229_v19 = vld [vmem:[%s1479_s6 + $0x76c] sm:$0xf]  ;;  %v231_v20 = vld [vmem:[%s1479_s6 + $0x7d0] sm:$0xf] }
  0x23   : > { %228 = vst [vmem:[%s1484_s7 + $0x48] sm:$0xf] %v227_v18  ;;  %230 = vst [vmem:[%s1484_s7 + $0x4c] sm:$0xf] %v229_v19  ;;  %v233_v21 = vld [vmem:[%s1479_s6 + $0x834] sm:$0xf] }
  0x24   : > { %232 = vst [vmem:[%s1484_s7 + $0x50] sm:$0xf] %v231_v20  ;;  %v235_v22 = vld [vmem:[%s1479_s6 + $0x898] sm:$0xf]  ;;  %v237_v23 = vld [vmem:[%s1479_s6 + $0x8fc] sm:$0xf] }
  0x25   : > { %234 = vst [vmem:[%s1484_s7 + $0x54] sm:$0xf] %v233_v21  ;;  %236 = vst [vmem:[%s1484_s7 + $0x58] sm:$0xf] %v235_v22  ;;  %v239_v24 = vld [vmem:[%s1479_s6 + $0x960] sm:$0xf] }
  0x26   : > { %238 = vst [vmem:[%s1484_s7 + $0x5c] sm:$0xf] %v237_v23  ;;  %v241_v25 = vld [vmem:[%s1479_s6 + $0x9c4] sm:$0xf]  ;;  %v243_v26 = vld [vmem:[%s1479_s6 + $0xa28] sm:$0xf] }
  0x27   : > { %240 = vst [vmem:[%s1484_s7 + $0x60] sm:$0xf] %v239_v24  ;;  %242 = vst [vmem:[%s1484_s7 + $0x64] sm:$0xf] %v241_v25  ;;  %v245_v27 = vld [vmem:[%s1479_s6 + $0xa8c] sm:$0xf] }
  0x28   : > { %244 = vst [vmem:[%s1484_s7 + $0x68] sm:$0xf] %v243_v26  ;;  %v247_v28 = vld [vmem:[%s1479_s6 + $0xaf0] sm:$0xf]  ;;  %v249_v29 = vld [vmem:[%s1479_s6 + $0xb54] sm:$0xf] }
  0x29   : > { %246 = vst [vmem:[%s1484_s7 + $0x6c] sm:$0xf] %v245_v27  ;;  %248 = vst [vmem:[%s1484_s7 + $0x70] sm:$0xf] %v247_v28  ;;  %v251_v30 = vld [vmem:[%s1479_s6 + $0xbb8] sm:$0xf] }
  0x2a   : > { %250 = vst [vmem:[%s1484_s7 + $0x74] sm:$0xf] %v249_v29  ;;  %v253_v31 = vld [vmem:[%s1479_s6 + $0xc1c] sm:$0xf]  ;;  %252 = vst [vmem:[%s1484_s7 + $0x78] sm:$0xf] %v251_v30 }
  0x2b   : > { %254 = vst [vmem:[%s1484_s7 + $0x7c] sm:$0xf] %v253_v31 }
  0x2c PF: > { %p1137_p7 = scmp.ge.s32.totalorder %s1396_s18, 1  ;;  %p353_p8 = scmp.lt.s32.totalorder %s1396_s18, 51 }
  0x2e   : > { %p354_p9 = pnand %p1137_p7, %p353_p8 }
  0x2f   : > { %s360_s8 = sand.u32 (!%p354_p9), 1, %s1372_s12   ;;  %s1139_s9 = sshll.u32 (!%p354_p9), %s1380_s14, 4 }
  0x30   : > { %357 = sbr.rel (%p354_p9) target bundleno = 357 (0x165), region = 69  ;;  %s1138_s10 = sshll.u32 (!%p354_p9), %s360_s8, 7 }
  0x31   : > { %p399_p10 = scmp.lt.s32.totalorder (!%p354_p9), %s1139_s9, 399  ;;  %s1141_s11 = sshll.u32 (!%p354_p9), %s1384_s15, 5 }
  0x32   : > { %p411_p11 = scmp.lt.s32.totalorder (!%p354_p9), %s1141_s11, 63  ;;  %s1562_s12 = scalar_lea.vmem (!%p354_p9), [#allocation2], %s1138_s10 }
  0x33   : > { %p1143_p12 = scmp.ne.s32.totalorder (!%p354_p9), %s1380_s14, 0 }
  0x35   : > { %s1825_s9 = smov (!%p399_p10, %s1139_s9), 399  ;;  %s1827_s11 = smov (!%p411_p11, %s1141_s11), 63 }
  0x36   : > { %s1140_s21 = sshll.u32 %s1825_s9, 2  ;;  %s1142_s26 = sshll.u32 %s1827_s11, 3 }
  0x37   : > { %s1555_s24 = scalar_lea.vmem %s1809_s1, %s1140_s21  ;;  %s1560_s29 = scalar_lea.vmem %s1811_s3, %s1142_s26 }
  0x38   : > { %423 = sbr.rel (%p1143_p12) target bundleno = 78 (0x4e), region = 77 }
  0x3d   : > { %v1398_v32 = vmov 0.0  }
  0x3e   : > { %424 = vst [vmem:[%s1560_s29] sm:$0xff] %v1398_v32  ;;  %425 = vst [vmem:[%s1560_s29 + $0x8] sm:$0xff] %v1398_v32 }
  0x3f   : > { %426 = vst [vmem:[%s1560_s29 + $0x10] sm:$0xff] %v1398_v32  ;;  %427 = vst [vmem:[%s1560_s29 + $0x18] sm:$0xff] %v1398_v32 }
  0x40   : > { %428 = vst [vmem:[%s1560_s29 + $0x20] sm:$0xff] %v1398_v32  ;;  %429 = vst [vmem:[%s1560_s29 + $0x28] sm:$0xff] %v1398_v32 }
  0x41   : > { %430 = vst [vmem:[%s1560_s29 + $0x30] sm:$0xff] %v1398_v32  ;;  %431 = vst [vmem:[%s1560_s29 + $0x38] sm:$0xff] %v1398_v32 }
  0x42   : > { %432 = vst [vmem:[%s1560_s29 + $0x40] sm:$0xff] %v1398_v32  ;;  %433 = vst [vmem:[%s1560_s29 + $0x48] sm:$0xff] %v1398_v32 }
  0x43   : > { %434 = vst [vmem:[%s1560_s29 + $0x50] sm:$0xff] %v1398_v32  ;;  %435 = vst [vmem:[%s1560_s29 + $0x58] sm:$0xff] %v1398_v32 }
  0x44   : > { %436 = vst [vmem:[%s1560_s29 + $0x60] sm:$0xff] %v1398_v32  ;;  %437 = vst [vmem:[%s1560_s29 + $0x68] sm:$0xff] %v1398_v32 }
  0x45   : > { %438 = vst [vmem:[%s1560_s29 + $0x70] sm:$0xff] %v1398_v32  ;;  %439 = vst [vmem:[%s1560_s29 + $0x78] sm:$0xff] %v1398_v32 }
  0x46   : > { %440 = vst [vmem:[%s1560_s29 + $0x80] sm:$0xff] %v1398_v32  ;;  %441 = vst [vmem:[%s1560_s29 + $0x88] sm:$0xff] %v1398_v32 }
  0x47   : > { %442 = vst [vmem:[%s1560_s29 + $0x90] sm:$0xff] %v1398_v32  ;;  %443 = vst [vmem:[%s1560_s29 + $0x98] sm:$0xff] %v1398_v32 }
  0x48   : > { %444 = vst [vmem:[%s1560_s29 + $0xa0] sm:$0xff] %v1398_v32  ;;  %445 = vst [vmem:[%s1560_s29 + $0xa8] sm:$0xff] %v1398_v32 }
  0x49   : > { %446 = vst [vmem:[%s1560_s29 + $0xb0] sm:$0xff] %v1398_v32  ;;  %447 = vst [vmem:[%s1560_s29 + $0xb8] sm:$0xff] %v1398_v32 }
  0x4a   : > { %448 = vst [vmem:[%s1560_s29 + $0xc0] sm:$0xff] %v1398_v32  ;;  %449 = vst [vmem:[%s1560_s29 + $0xc8] sm:$0xff] %v1398_v32 }
  0x4b   : > { %450 = vst [vmem:[%s1560_s29 + $0xd0] sm:$0xff] %v1398_v32  ;;  %451 = vst [vmem:[%s1560_s29 + $0xd8] sm:$0xff] %v1398_v32 }
  0x4c   : > { %452 = vst [vmem:[%s1560_s29 + $0xe0] sm:$0xff] %v1398_v32  ;;  %453 = vst [vmem:[%s1560_s29 + $0xe8] sm:$0xff] %v1398_v32 }
  0x4d   : > { %454 = vst [vmem:[%s1560_s29 + $0xf0] sm:$0xff] %v1398_v32  ;;  %455 = vst [vmem:[%s1560_s29 + $0xf8] sm:$0xff] %v1398_v32 }
  0x4e PF: > { %v1318_v33 = vld [vmem:[%s1555_s24 + $0x38] sm:$0xff]   ;;  %v1319_v34 = vld [vmem:[%s1555_s24 + $0x30] sm:$0xff]   ;;  %v1320_v35 = vld [vmem:[%s1555_s24 + $0x28] sm:$0xff]   ;;  %p1168_p13 = scmp.ne.s32.totalorder %s1380_s14, 24 }
  0x4f   : > { %1196 = vmatprep.subr.bf16.mxu0 %v1318_v33  ;;  %1244 = vmatprep.subr.bf16.mxu1 %v1318_v33  ;;  %v1321_v36 = vld [vmem:[%s1555_s24 + $0x20] sm:$0xff]   ;;  %v1322_v39 = vld [vmem:[%s1555_s24 + $0x18] sm:$0xff]   ;;  %v1323_v40 = vld [vmem:[%s1555_s24 + $0x10] sm:$0xff]  }
  0x50   : > { %1197 = vmatpush3.bf16.msra.mxu0 %v1318_v33  ;;  %1252 = vmatpush3.bf16.msra.mxu1 %v1318_v33  ;;  %v1326_v37 = vld [vmem:[%s1562_s12] sm:$0xff]   ;;  %v1324_v41 = vld [vmem:[%s1555_s24 + $0x8] sm:$0xff]   ;;  %v1330_v45 = vld [vmem:[%s1562_s12 + $0x10] sm:$0xff]  }
  0x51   : > { %1198 = vmatprep.subr.bf16.mxu0 %v1319_v34  ;;  %1245 = vmatprep.subr.bf16.mxu1 %v1319_v34  ;;  %v1327_v38 = vld [vmem:[%s1562_s12 + $0x40] sm:$0xff]   ;;  %v1328_v43 = vld [vmem:[%s1562_s12 + $0x8] sm:$0xff]   ;;  %v1331_v46 = vld [vmem:[%s1562_s12 + $0x50] sm:$0xff]  }
  0x52   : > { %1212 = vmatprep.mubr.bf16.mxu0 %v1326_v37  ;;  %1228 = vmatprep.mubr.bf16.mxu1 %v1327_v38  ;;  %v1325_v42 = vld [vmem:[%s1555_s24] sm:$0xff]   ;;  %v1329_v44 = vld [vmem:[%s1562_s12 + $0x48] sm:$0xff]   ;;  %v1332_v47 = vld [vmem:[%s1562_s12 + $0x18] sm:$0xff]  }
  0x53   : > { %v1333_v48 = vld [vmem:[%s1562_s12 + $0x58] sm:$0xff]   ;;  %v1334_v49 = vld [vmem:[%s1562_s12 + $0x20] sm:$0xff]   ;;  %v1336_v51 = vld [vmem:[%s1562_s12 + $0x28] sm:$0xff]  }
  0x54   : > { %1199 = vmatpush3.bf16.msra.mxu0 %v1319_v34  ;;  %1253 = vmatpush3.bf16.msra.mxu1 %v1319_v34  ;;  %v1335_v50 = vld [vmem:[%s1562_s12 + $0x60] sm:$0xff]   ;;  %v1337_v52 = vld [vmem:[%s1562_s12 + $0x68] sm:$0xff]   ;;  %v1338_v53 = vld [vmem:[%s1562_s12 + $0x30] sm:$0xff]  }
  0x55   : > { %1200 = vmatprep.subr.bf16.mxu0 %v1320_v35  ;;  %1246 = vmatprep.subr.bf16.mxu1 %v1320_v35  ;;  %v1339_v54 = vld [vmem:[%s1562_s12 + $0x70] sm:$0xff]   ;;  %v1340_v55 = vld [vmem:[%s1562_s12 + $0x38] sm:$0xff]   ;;  %v456_v61 = vld [vmem:[%s1560_s29] sm:$0xff] }
  0x56   : > { %v1341_v56 = vld [vmem:[%s1562_s12 + $0x78] sm:$0xff]   ;;  %v458_v57 = vld [vmem:[%s1560_s29 + $0x10] sm:$0xff]  ;;  %v472_v62 = vld [vmem:[%s1560_s29 + $0x80] sm:$0xff] }
  0x57   : > { %v474_v58 = vld [vmem:[%s1560_s29 + $0x90] sm:$0xff]  ;;  %v459_v3 = vld [vmem:[%s1560_s29 + $0x18] sm:$0xff]  ;;  %v457_v9 = vld [vmem:[%s1560_s29 + $0x8] sm:$0xff] }
  0x58   : > { %1201 = vmatpush3.bf16.msra.mxu0 %v1320_v35  ;;  %1254 = vmatpush3.bf16.msra.mxu1 %v1320_v35  ;;  %v475_v4 = vld [vmem:[%s1560_s29 + $0x98] sm:$0xff]  ;;  %v473_v10 = vld [vmem:[%s1560_s29 + $0x88] sm:$0xff]  ;;  %v462_v15 = vld [vmem:[%s1560_s29 + $0x30] sm:$0xff] }
  0x59   : > { %1202 = vmatprep.subr.bf16.mxu0 %v1321_v36  ;;  %1247 = vmatprep.subr.bf16.mxu1 %v1321_v36  ;;  %v478_v16 = vld [vmem:[%s1560_s29 + $0xb0] sm:$0xff]  ;;  %v460_v21 = vld [vmem:[%s1560_s29 + $0x20] sm:$0xff]  ;;  %v463_v27 = vld [vmem:[%s1560_s29 + $0x38] sm:$0xff] }
  0x5a   : > { %v476_v22 = vld [vmem:[%s1560_s29 + $0xa0] sm:$0xff]  ;;  %v479_v28 = vld [vmem:[%s1560_s29 + $0xb8] sm:$0xff]  ;;  %v461_v33 = vld [vmem:[%s1560_s29 + $0x28] sm:$0xff] }
  0x5b   : > { %v477_v34 = vld [vmem:[%s1560_s29 + $0xa8] sm:$0xff] }
  0x5c   : > { %1203 = vmatpush3.bf16.msra.mxu0 %v1321_v36  ;;  %1255 = vmatpush3.bf16.msra.mxu1 %v1321_v36 }
  0x5d   : > { %1204 = vmatprep.subr.bf16.mxu0 %v1322_v39  ;;  %1248 = vmatprep.subr.bf16.mxu1 %v1322_v39 }
  0x60   : > { %1205 = vmatpush3.bf16.msra.mxu0 %v1322_v39  ;;  %1256 = vmatpush3.bf16.msra.mxu1 %v1322_v39  ;;  %v466_v39 = vld [vmem:[%s1560_s29 + $0x50] sm:$0xff] }
  0x61   : > { %1206 = vmatprep.subr.bf16.mxu0 %v1323_v40  ;;  %1249 = vmatprep.subr.bf16.mxu1 %v1323_v40 }
  0x64   : > { %1207 = vmatpush3.bf16.msra.mxu0 %v1323_v40  ;;  %1257 = vmatpush3.bf16.msra.mxu1 %v1323_v40  ;;  %v482_v40 = vld [vmem:[%s1560_s29 + $0xd0] sm:$0xff] }
  0x65   : > { %1208 = vmatprep.subr.bf16.mxu0 %v1324_v41  ;;  %1250 = vmatprep.subr.bf16.mxu1 %v1324_v41 }
  0x68   : > { %1209 = vmatpush3.bf16.msra.mxu0 %v1324_v41  ;;  %1258 = vmatpush3.bf16.msra.mxu1 %v1324_v41 }
  0x69   : > { %1210 = vmatprep.subr.bf16.mxu0 %v1325_v42  ;;  %1251 = vmatprep.subr.bf16.mxu1 %v1325_v42 }
  0x6c   : > { %1211 = vmatpush3.bf16.msra.mxu0 %v1325_v42  ;;  %1259 = vmatpush3.bf16.msra.mxu1 %v1325_v42 }
  0x6f   : > { %1213 = vmatmul.mubr.bf16.vlgmr.msra.gmra.mxu0 %v1328_v43  ;;  %1229 = vmatmul.mubr.bf16.vlgmr.msra.gmra.mxu1 %v1329_v44 }
  0x70   : > { %1216 = vmatprep.mubr.bf16.mxu0 %v1330_v45  ;;  %1232 = vmatprep.mubr.bf16.mxu1 %v1331_v46  ;;  %v464_v45 = vld [vmem:[%s1560_s29 + $0x40] sm:$0xff] }
  0x71   : > { %v480_v46 = vld [vmem:[%s1560_s29 + $0xc0] sm:$0xff] }
  0x77   : > { %1217 = vmatmul.mubr.bf16.gmra.mxu0 %v1332_v47  ;;  %1233 = vmatmul.mubr.bf16.gmra.mxu1 %v1333_v48 }
  0x78   : > { %1220 = vmatprep.mubr.bf16.mxu0 %v1334_v49  ;;  %1236 = vmatprep.mubr.bf16.mxu1 %v1335_v50 }
  0x7f   : > { %1221 = vmatmul.mubr.bf16.gmra.mxu0 %v1336_v51  ;;  %1237 = vmatmul.mubr.bf16.gmra.mxu1 %v1337_v52  ;;  %v467_v51 = vld [vmem:[%s1560_s29 + $0x58] sm:$0xff] }
  0x80   : > { %1224 = vmatprep.mubr.bf16.mxu0 %v1338_v53  ;;  %1240 = vmatprep.mubr.bf16.mxu1 %v1339_v54  ;;  %v483_v52 = vld [vmem:[%s1560_s29 + $0xd8] sm:$0xff] }
  0x87   : > { %1225 = vmatmul.mubr.bf16.gmra.mxu0 %v1340_v55  ;;  %1241 = vmatmul.mubr.bf16.gmra.mxu1 %v1341_v56 }
 0x12f   : > { %v1214_v59 = vpop.f32.mrf.mxu0  ;;  %v1230_v60 = vpop.f32.mrf.mxu1 }
 0x130   : > { %v843_v63 = vadd.f32 %v1214_v59, %v458_v57  ;;  %v859_v0 = vadd.f32 %v1230_v60, %v474_v58  ;;  %v465_v57 = vld [vmem:[%s1560_s29 + $0x48] sm:$0xff] }
 0x131   : > { %v714_v1 = vpop.f32.mrf.mxu0  ;;  %v778_v2 = vpop.f32.mrf.mxu1  ;;  %v481_v58 = vld [vmem:[%s1560_s29 + $0xc8] sm:$0xff] }
 0x132   : > { %875 = vst [vmem:[%s1560_s29 + $0x10] sm:$0xff] %v843_v63  ;;  %891 = vst [vmem:[%s1560_s29 + $0x90] sm:$0xff] %v859_v0  ;;  %v841_v5 = vadd.f32 %v714_v1, %v456_v61  ;;  %v857_v6 = vadd.f32 %v778_v2, %v472_v62  ;;  %v470_v63 = vld [vmem:[%s1560_s29 + $0x70] sm:$0xff] }
 0x133   : > { %v1215_v7 = vpop.f32.mrf.mxu0  ;;  %v1231_v8 = vpop.f32.mrf.mxu1  ;;  %v486_v0 = vld [vmem:[%s1560_s29 + $0xf0] sm:$0xff] }
 0x134   : > { %873 = vst [vmem:[%s1560_s29] sm:$0xff] %v841_v5  ;;  %889 = vst [vmem:[%s1560_s29 + $0x80] sm:$0xff] %v857_v6  ;;  %v844_v11 = vadd.f32 %v1215_v7, %v459_v3  ;;  %v860_v12 = vadd.f32 %v1231_v8, %v475_v4  ;;  %v468_v5 = vld [vmem:[%s1560_s29 + $0x60] sm:$0xff] }
 0x135   : > { %v717_v13 = vpop.f32.mrf.mxu0  ;;  %v781_v14 = vpop.f32.mrf.mxu1  ;;  %v484_v6 = vld [vmem:[%s1560_s29 + $0xe0] sm:$0xff] }
 0x136   : > { %876 = vst [vmem:[%s1560_s29 + $0x18] sm:$0xff] %v844_v11  ;;  %892 = vst [vmem:[%s1560_s29 + $0x98] sm:$0xff] %v860_v12  ;;  %v842_v17 = vadd.f32 %v717_v13, %v457_v9  ;;  %v858_v18 = vadd.f32 %v781_v14, %v473_v10  ;;  %v471_v11 = vld [vmem:[%s1560_s29 + $0x78] sm:$0xff] }
 0x137   : > { %v1218_v19 = vpop.f32.mrf.mxu0  ;;  %v1234_v20 = vpop.f32.mrf.mxu1  ;;  %v487_v12 = vld [vmem:[%s1560_s29 + $0xf8] sm:$0xff] }
 0x138   : > { %874 = vst [vmem:[%s1560_s29 + $0x8] sm:$0xff] %v842_v17  ;;  %890 = vst [vmem:[%s1560_s29 + $0x88] sm:$0xff] %v858_v18  ;;  %v847_v23 = vadd.f32 %v1218_v19, %v462_v15  ;;  %v863_v24 = vadd.f32 %v1234_v20, %v478_v16  ;;  %v469_v17 = vld [vmem:[%s1560_s29 + $0x68] sm:$0xff] }
 0x139   : > { %v730_v25 = vpop.f32.mrf.mxu0  ;;  %v794_v26 = vpop.f32.mrf.mxu1  ;;  %v485_v18 = vld [vmem:[%s1560_s29 + $0xe8] sm:$0xff] }
 0x13a   : > { %879 = vst [vmem:[%s1560_s29 + $0x30] sm:$0xff] %v847_v23  ;;  %895 = vst [vmem:[%s1560_s29 + $0xb0] sm:$0xff] %v863_v24  ;;  %v845_v29 = vadd.f32 %v730_v25, %v460_v21  ;;  %v861_v30 = vadd.f32 %v794_v26, %v476_v22 }
 0x13b   : > { %v1219_v31 = vpop.f32.mrf.mxu0  ;;  %v1235_v32 = vpop.f32.mrf.mxu1 }
 0x13c   : > { %877 = vst [vmem:[%s1560_s29 + $0x20] sm:$0xff] %v845_v29  ;;  %893 = vst [vmem:[%s1560_s29 + $0xa0] sm:$0xff] %v861_v30  ;;  %v848_v35 = vadd.f32 %v1219_v31, %v463_v27  ;;  %v864_v36 = vadd.f32 %v1235_v32, %v479_v28 }
 0x13d   : > { %v733_v37 = vpop.f32.mrf.mxu0  ;;  %v797_v38 = vpop.f32.mrf.mxu1 }
 0x13e   : > { %880 = vst [vmem:[%s1560_s29 + $0x38] sm:$0xff] %v848_v35  ;;  %896 = vst [vmem:[%s1560_s29 + $0xb8] sm:$0xff] %v864_v36  ;;  %v846_v41 = vadd.f32 %v733_v37, %v461_v33  ;;  %v862_v42 = vadd.f32 %v797_v38, %v477_v34 }
 0x13f   : > { %v1222_v43 = vpop.f32.mrf.mxu0  ;;  %v1238_v44 = vpop.f32.mrf.mxu1 }
 0x140   : > { %878 = vst [vmem:[%s1560_s29 + $0x28] sm:$0xff] %v846_v41  ;;  %894 = vst [vmem:[%s1560_s29 + $0xa8] sm:$0xff] %v862_v42  ;;  %v851_v47 = vadd.f32 %v1222_v43, %v466_v39  ;;  %v867_v48 = vadd.f32 %v1238_v44, %v482_v40 }
 0x141   : > { %v746_v49 = vpop.f32.mrf.mxu0  ;;  %v810_v50 = vpop.f32.mrf.mxu1 }
 0x142   : > { %883 = vst [vmem:[%s1560_s29 + $0x50] sm:$0xff] %v851_v47  ;;  %899 = vst [vmem:[%s1560_s29 + $0xd0] sm:$0xff] %v867_v48  ;;  %v849_v53 = vadd.f32 %v746_v49, %v464_v45  ;;  %v865_v54 = vadd.f32 %v810_v50, %v480_v46 }
 0x143   : > { %v1223_v55 = vpop.f32.mrf.mxu0  ;;  %v1239_v56 = vpop.f32.mrf.mxu1 }
 0x144   : > { %881 = vst [vmem:[%s1560_s29 + $0x40] sm:$0xff] %v849_v53  ;;  %897 = vst [vmem:[%s1560_s29 + $0xc0] sm:$0xff] %v865_v54  ;;  %v852_v59 = vadd.f32 %v1223_v55, %v467_v51  ;;  %v868_v60 = vadd.f32 %v1239_v56, %v483_v52 }
 0x145   : > { %v749_v61 = vpop.f32.mrf.mxu0  ;;  %v813_v62 = vpop.f32.mrf.mxu1 }
 0x146   : > { %884 = vst [vmem:[%s1560_s29 + $0x58] sm:$0xff] %v852_v59  ;;  %900 = vst [vmem:[%s1560_s29 + $0xd8] sm:$0xff] %v868_v60  ;;  %v850_v1 = vadd.f32 %v749_v61, %v465_v57  ;;  %v866_v2 = vadd.f32 %v813_v62, %v481_v58 }
 0x147   : > { %v1226_v3 = vpop.f32.mrf.mxu0  ;;  %v1242_v4 = vpop.f32.mrf.mxu1 }
 0x148   : > { %882 = vst [vmem:[%s1560_s29 + $0x48] sm:$0xff] %v850_v1  ;;  %898 = vst [vmem:[%s1560_s29 + $0xc8] sm:$0xff] %v866_v2  ;;  %v855_v7 = vadd.f32 %v1226_v3, %v470_v63  ;;  %v871_v8 = vadd.f32 %v1242_v4, %v486_v0 }
 0x149   : > { %v762_v9 = vpop.f32.mrf.mxu0  ;;  %v826_v10 = vpop.f32.mrf.mxu1 }
 0x14a   : > { %887 = vst [vmem:[%s1560_s29 + $0x70] sm:$0xff] %v855_v7  ;;  %903 = vst [vmem:[%s1560_s29 + $0xf0] sm:$0xff] %v871_v8  ;;  %v853_v13 = vadd.f32 %v762_v9, %v468_v5  ;;  %v869_v14 = vadd.f32 %v826_v10, %v484_v6 }
 0x14b   : > { %v1227_v15 = vpop.f32.mrf.mxu0  ;;  %v1243_v16 = vpop.f32.mrf.mxu1 }
 0x14c   : > { %885 = vst [vmem:[%s1560_s29 + $0x60] sm:$0xff] %v853_v13  ;;  %901 = vst [vmem:[%s1560_s29 + $0xe0] sm:$0xff] %v869_v14  ;;  %v856_v19 = vadd.f32 %v1227_v15, %v471_v11  ;;  %v872_v20 = vadd.f32 %v1243_v16, %v487_v12  ;;  %908 = sbr.rel (%p1168_p13) target bundleno = 357 (0x165), region = 81 }
 0x14d   : > { %v765_v21 = vpop.f32.mrf.mxu0  ;;  %v829_v22 = vpop.f32.mrf.mxu1 }
 0x14e   : > { %888 = vst [vmem:[%s1560_s29 + $0x78] sm:$0xff] %v856_v19  ;;  %904 = vst [vmem:[%s1560_s29 + $0xf8] sm:$0xff] %v872_v20  ;;  %v854_v23 = vadd.f32 %v765_v21, %v469_v17  ;;  %v870_v24 = vadd.f32 %v829_v22, %v485_v18 }
 0x150   : > { %886 = vst [vmem:[%s1560_s29 + $0x68] sm:$0xff] %v854_v23  ;;  %902 = vst [vmem:[%s1560_s29 + $0xe8] sm:$0xff] %v870_v24 }
 0x151   : > { %v909_v25 = vld [vmem:[%s1560_s29] sm:$0xff]  ;;  %v910_v27 = vld [vmem:[%s1560_s29 + $0x8] sm:$0xff]  ;;  %v911_v30 = vld [vmem:[%s1560_s29 + $0x10] sm:$0xff] }
 0x152   : > { %v1690_v26 = vld [vmem:[%s1810_s2] ss:$0 sm:$0xff]  ;;  %v912_v31 = vld [vmem:[%s1560_s29 + $0x18] sm:$0xff]  ;;  %v914_v36 = vld [vmem:[%s1560_s29 + $0x28] sm:$0xff] }
 0x153   : > { %v948_v28 = vadd.f32 %v1690_v26, %v909_v25  ;;  %v949_v29 = vadd.f32 %v1690_v26, %v910_v27  ;;  %v913_v32 = vld [vmem:[%s1560_s29 + $0x20] sm:$0xff]  ;;  %v950_v33 = vadd.f32 %v1690_v26, %v911_v30  ;;  %v951_v34 = vadd.f32 %v1690_v26, %v912_v31  ;;  %v915_v37 = vld [vmem:[%s1560_s29 + $0x30] sm:$0xff]  ;;  %v916_v38 = vld [vmem:[%s1560_s29 + $0x38] sm:$0xff] }
 0x154   : > { %v952_v35 = vadd.f32 %v1690_v26, %v913_v32  ;;  %v953_v39 = vadd.f32 %v1690_v26, %v914_v36  ;;  %v954_v40 = vadd.f32 %v1690_v26, %v915_v37  ;;  %v955_v41 = vadd.f32 %v1690_v26, %v916_v38  ;;  %v917_v42 = vld [vmem:[%s1560_s29 + $0x40] sm:$0xff]  ;;  %v918_v43 = vld [vmem:[%s1560_s29 + $0x48] sm:$0xff]  ;;  %v919_v44 = vld [vmem:[%s1560_s29 + $0x50] sm:$0xff] }
 0x155   : > { %980 = vst [vmem:[%s1560_s29] sm:$0xff] %v948_v28  ;;  %981 = vst [vmem:[%s1560_s29 + $0x8] sm:$0xff] %v949_v29  ;;  %v956_v45 = vadd.f32 %v1690_v26, %v917_v42  ;;  %v957_v46 = vadd.f32 %v1690_v26, %v918_v43  ;;  %v958_v47 = vadd.f32 %v1690_v26, %v919_v44  ;;  %v920_v48 = vld [vmem:[%s1560_s29 + $0x58] sm:$0xff]  ;;  %v921_v49 = vld [vmem:[%s1560_s29 + $0x60] sm:$0xff] }
 0x156   : > { %982 = vst [vmem:[%s1560_s29 + $0x10] sm:$0xff] %v950_v33  ;;  %983 = vst [vmem:[%s1560_s29 + $0x18] sm:$0xff] %v951_v34  ;;  %v959_v51 = vadd.f32 %v1690_v26, %v920_v48  ;;  %v960_v52 = vadd.f32 %v1690_v26, %v921_v49  ;;  %v923_v54 = vld [vmem:[%s1560_s29 + $0x70] sm:$0xff]  ;;  %v924_v55 = vld [vmem:[%s1560_s29 + $0x78] sm:$0xff] }
 0x157   : > { %984 = vst [vmem:[%s1560_s29 + $0x20] sm:$0xff] %v952_v35  ;;  %v922_v50 = vld [vmem:[%s1560_s29 + $0x68] sm:$0xff]  ;;  %985 = vst [vmem:[%s1560_s29 + $0x28] sm:$0xff] %v953_v39  ;;  %v925_v56 = vld [vmem:[%s1560_s29 + $0x80] sm:$0xff]  ;;  %v962_v57 = vadd.f32 %v1690_v26, %v923_v54  ;;  %v963_v58 = vadd.f32 %v1690_v26, %v924_v55 }
 0x158   : > { %986 = vst [vmem:[%s1560_s29 + $0x30] sm:$0xff] %v954_v40  ;;  %987 = vst [vmem:[%s1560_s29 + $0x38] sm:$0xff] %v955_v41  ;;  %v961_v53 = vadd.f32 %v1690_v26, %v922_v50  ;;  %v964_v59 = vadd.f32 %v1690_v26, %v925_v56  ;;  %v926_v60 = vld [vmem:[%s1560_s29 + $0x88] sm:$0xff]  ;;  %v927_v61 = vld [vmem:[%s1560_s29 + $0x90] sm:$0xff] }
 0x159   : > { %988 = vst [vmem:[%s1560_s29 + $0x40] sm:$0xff] %v956_v45  ;;  %989 = vst [vmem:[%s1560_s29 + $0x48] sm:$0xff] %v957_v46  ;;  %v928_v62 = vld [vmem:[%s1560_s29 + $0x98] sm:$0xff]  ;;  %v965_v63 = vadd.f32 %v1690_v26, %v926_v60  ;;  %v966_v0 = vadd.f32 %v1690_v26, %v927_v61  ;;  %v929_v2 = vld [vmem:[%s1560_s29 + $0xa0] sm:$0xff] }
 0x15a   : > { %990 = vst [vmem:[%s1560_s29 + $0x50] sm:$0xff] %v958_v47  ;;  %991 = vst [vmem:[%s1560_s29 + $0x58] sm:$0xff] %v959_v51  ;;  %v967_v1 = vadd.f32 %v1690_v26, %v928_v62  ;;  %v930_v3 = vld [vmem:[%s1560_s29 + $0xa8] sm:$0xff]  ;;  %v931_v4 = vld [vmem:[%s1560_s29 + $0xb0] sm:$0xff]  ;;  %v968_v5 = vadd.f32 %v1690_v26, %v929_v2 }
 0x15b   : > { %992 = vst [vmem:[%s1560_s29 + $0x60] sm:$0xff] %v960_v52  ;;  %993 = vst [vmem:[%s1560_s29 + $0x68] sm:$0xff] %v961_v53  ;;  %v969_v6 = vadd.f32 %v1690_v26, %v930_v3  ;;  %v970_v7 = vadd.f32 %v1690_v26, %v931_v4  ;;  %v932_v8 = vld [vmem:[%s1560_s29 + $0xb8] sm:$0xff]  ;;  %v933_v9 = vld [vmem:[%s1560_s29 + $0xc0] sm:$0xff] }
 0x15c   : > { %994 = vst [vmem:[%s1560_s29 + $0x70] sm:$0xff] %v962_v57  ;;  %995 = vst [vmem:[%s1560_s29 + $0x78] sm:$0xff] %v963_v58  ;;  %v934_v10 = vld [vmem:[%s1560_s29 + $0xc8] sm:$0xff]  ;;  %v971_v11 = vadd.f32 %v1690_v26, %v932_v8  ;;  %v972_v12 = vadd.f32 %v1690_v26, %v933_v9  ;;  %v935_v14 = vld [vmem:[%s1560_s29 + $0xd0] sm:$0xff] }
 0x15d   : > { %996 = vst [vmem:[%s1560_s29 + $0x80] sm:$0xff] %v964_v59  ;;  %997 = vst [vmem:[%s1560_s29 + $0x88] sm:$0xff] %v965_v63  ;;  %v973_v13 = vadd.f32 %v1690_v26, %v934_v10  ;;  %v936_v15 = vld [vmem:[%s1560_s29 + $0xd8] sm:$0xff]  ;;  %v937_v16 = vld [vmem:[%s1560_s29 + $0xe0] sm:$0xff]  ;;  %v974_v17 = vadd.f32 %v1690_v26, %v935_v14 }
 0x15e   : > { %998 = vst [vmem:[%s1560_s29 + $0x90] sm:$0xff] %v966_v0  ;;  %999 = vst [vmem:[%s1560_s29 + $0x98] sm:$0xff] %v967_v1  ;;  %v975_v18 = vadd.f32 %v1690_v26, %v936_v15  ;;  %v976_v19 = vadd.f32 %v1690_v26, %v937_v16  ;;  %v938_v20 = vld [vmem:[%s1560_s29 + $0xe8] sm:$0xff]  ;;  %v939_v21 = vld [vmem:[%s1560_s29 + $0xf0] sm:$0xff] }
 0x15f   : > { %1000 = vst [vmem:[%s1560_s29 + $0xa0] sm:$0xff] %v968_v5  ;;  %1001 = vst [vmem:[%s1560_s29 + $0xa8] sm:$0xff] %v969_v6  ;;  %v940_v22 = vld [vmem:[%s1560_s29 + $0xf8] sm:$0xff]  ;;  %v977_v23 = vadd.f32 %v1690_v26, %v938_v20  ;;  %v978_v24 = vadd.f32 %v1690_v26, %v939_v21 }
 0x160   : > { %1002 = vst [vmem:[%s1560_s29 + $0xb0] sm:$0xff] %v970_v7  ;;  %1003 = vst [vmem:[%s1560_s29 + $0xb8] sm:$0xff] %v971_v11  ;;  %v979_v25 = vadd.f32 %v1690_v26, %v940_v22 }
 0x161   : > { %1004 = vst [vmem:[%s1560_s29 + $0xc0] sm:$0xff] %v972_v12  ;;  %1005 = vst [vmem:[%s1560_s29 + $0xc8] sm:$0xff] %v973_v13 }
 0x162   : > { %1006 = vst [vmem:[%s1560_s29 + $0xd0] sm:$0xff] %v974_v17  ;;  %1007 = vst [vmem:[%s1560_s29 + $0xd8] sm:$0xff] %v975_v18 }
 0x163   : > { %1008 = vst [vmem:[%s1560_s29 + $0xe0] sm:$0xff] %v976_v19  ;;  %1009 = vst [vmem:[%s1560_s29 + $0xe8] sm:$0xff] %v977_v23 }
 0x164   : > { %1010 = vst [vmem:[%s1560_s29 + $0xf0] sm:$0xff] %v978_v24  ;;  %1011 = vst [vmem:[%s1560_s29 + $0xf8] sm:$0xff] %v979_v25 }
 0x165 PF: > { %s13_s18 = sadd.s32 1, %s1396_s18   ;;  %s1812_s12 = smov %s1376_s13 }
 0x166   : > { %p10_p0 = scmp.ge.s32.totalorder %s13_s18, 52   ;;  %s1813_s13 = smov %s1470_s25 }
 0x167   : > { %s1814_s14 = smov %s1388_s16  ;;  %s1815_s15 = smov %s1392_s17 }
 0x168   : > { %s1816_s16 = smov %s1819_s19  ;;  %s1817_s17 = smov %s1823_s20 }
 0x169   :  { %12 = sbr.rel (!%p10_p0) target bundleno = 4 (0x4), region = 122 }

// kernel: forward.76
= control target key start
LH: loop header
LB: loop body
LE: loop exit
PB: predicated region body
PF: predicated region fallthrough
CT: control target
= control target key end

     0   :  { %s1515_s12 = smov 0   ;;  %s1517_s13 = smov 0   ;;  %s1904_s0 = inlined_call_operand.vmem [shape: bf16[512,3200], index: 0, kind: input, shape index: {}]   ;;  %s1905_s1 = inlined_call_operand.vmem [shape: bf16[3200,128], index: 1, kind: input, shape index: {}]   ;;  %s1906_s2 = inlined_call_operand.vmem [shape: f32[1,128], index: 2, kind: input, shape index: {}]   ;;  %s1907_s3 = inlined_call_operand.vmem [shape: f32[512,128], index: 3, kind: output, shape index: {}]  }
   0x1   :  { %s1519_s14 = smov 0   ;;  %s1521_s15 = smov 0  }
   0x2   :  { %s1523_s16 = smov 0   ;;  %s1525_s17 = smov 0  }
   0x3   :  { %s1527_s18 = smov 0  }
   0x4 LB: > { %s25_s19 = sadd.s32 1, %s1484_s16  ;;  %s32_s20 = sadd.s32 1, %s1488_s17  ;;  %s1492_s18 = sphi %s1527_s18, %s13_s18   ;;  %s1488_s17 = sphi %s1525_s17, %s1913_s17   ;;  %s1484_s16 = sphi %s1523_s16, %s1912_s16   ;;  %s1480_s15 = sphi %s1521_s15, %s1911_s15   ;;  %s1476_s14 = sphi %s1519_s14, %s1910_s14   ;;  %s1472_s13 = sphi %s1517_s13, %s1909_s13   ;;  %s1468_s12 = sphi %s1515_s12, %s1908_s12  }
   0x5   : > { %p26_p0 = scmp.ge.s32.totalorder %s25_s19, 25  ;;  %p48_p1 = scmp.ne.s32.totalorder %s1472_s13, %s1468_s12 }
   0x6   : > { %p49_p2 = scmp.eq.s32.totalorder %s1492_s18, 0  ;;  %s41_s24 = sadd.s32 1, %s1472_s13 }
   0x7   : > { %s1915_s19 = smov (%p26_p0, %s25_s19), 0  ;;  %s1917_s20 = smov (!%p26_p0, %s32_s20), %s1488_s17 }
   0x8   : > { %p50_p3 = por %p49_p2, %p48_p1  ;;  %p34_p4 = scmp.ge.s32.totalorder %s1917_s20, 2 }
   0x9   : > { %s37_s21 = ssub.s32 %s1484_s16, %s1915_s19  ;;  %p1164_p6 = scmp.ge.s32.totalorder %s1492_s18, 50 }
   0xa   : > { %s1919_s20 = smov (%p34_p4, %s1917_s20), 0 }
   0xb   : > { %s36_s22 = ssub.s32 %s1488_s17, %s1919_s20  ;;  %162 = sbr.rel (%p1164_p6) target bundleno = 44 (0x2c), region = 20 }
   0xc   : > { %s38_s23 = sor.u32 %s37_s21, %s36_s22 }
   0xd   : > { %p39_p5 = scmp.eq.s32.totalorder %s38_s23, 0 }
   0xf   : > { %s1566_s25 = scalar_select %p39_p5, %s1472_s13, %s41_s24  }
  0x10   : > { %165 = sbr.rel (!%p50_p3) target bundleno = 44 (0x2c), region = 24  ;;  %s167_s26 = sand.u32 (%p50_p3), 1, %s1472_s13  }
  0x11   : > { %s1292_s27 = smul.u32 (%p50_p3), 800, %s1488_s17  ;;  %s1165_s28 = sshll.u32 (%p50_p3), %s167_s26, 7 }
  0x12   : > { %s1580_s7 = scalar_lea.vmem (%p50_p3), [#allocation2], %s1165_s28 }
  0x13   : > { %s172_s29 = sadd.s32 (%p50_p3), %s1484_s16, %s1292_s27 }
  0x14   : > { %s1168_s30 = sshll.u32 (%p50_p3), %s172_s29, 2 }
  0x15   : > { %s1575_s6 = scalar_lea.vmem %s1904_s0, %s1168_s30 }
  0x16   : > { %v191_v0 = vld [vmem:[%s1575_s6] sm:$0xf]  ;;  %v193_v1 = vld [vmem:[%s1575_s6 + $0x64] sm:$0xf]  ;;  %v195_v2 = vld [vmem:[%s1575_s6 + $0xc8] sm:$0xf] }
  0x17   : > { %192 = vst [vmem:[%s1580_s7] sm:$0xf] %v191_v0  ;;  %194 = vst [vmem:[%s1580_s7 + $0x4] sm:$0xf] %v193_v1  ;;  %v197_v3 = vld [vmem:[%s1575_s6 + $0x12c] sm:$0xf] }
  0x18   : > { %196 = vst [vmem:[%s1580_s7 + $0x8] sm:$0xf] %v195_v2  ;;  %v199_v4 = vld [vmem:[%s1575_s6 + $0x190] sm:$0xf]  ;;  %v201_v5 = vld [vmem:[%s1575_s6 + $0x1f4] sm:$0xf] }
  0x19   : > { %198 = vst [vmem:[%s1580_s7 + $0xc] sm:$0xf] %v197_v3  ;;  %200 = vst [vmem:[%s1580_s7 + $0x10] sm:$0xf] %v199_v4  ;;  %v203_v6 = vld [vmem:[%s1575_s6 + $0x258] sm:$0xf] }
  0x1a   : > { %202 = vst [vmem:[%s1580_s7 + $0x14] sm:$0xf] %v201_v5  ;;  %v205_v7 = vld [vmem:[%s1575_s6 + $0x2bc] sm:$0xf]  ;;  %v207_v8 = vld [vmem:[%s1575_s6 + $0x320] sm:$0xf] }
  0x1b   : > { %204 = vst [vmem:[%s1580_s7 + $0x18] sm:$0xf] %v203_v6  ;;  %206 = vst [vmem:[%s1580_s7 + $0x1c] sm:$0xf] %v205_v7  ;;  %v209_v9 = vld [vmem:[%s1575_s6 + $0x384] sm:$0xf] }
  0x1c   : > { %208 = vst [vmem:[%s1580_s7 + $0x20] sm:$0xf] %v207_v8  ;;  %v211_v10 = vld [vmem:[%s1575_s6 + $0x3e8] sm:$0xf]  ;;  %v213_v11 = vld [vmem:[%s1575_s6 + $0x44c] sm:$0xf] }
  0x1d   : > { %210 = vst [vmem:[%s1580_s7 + $0x24] sm:$0xf] %v209_v9  ;;  %212 = vst [vmem:[%s1580_s7 + $0x28] sm:$0xf] %v211_v10  ;;  %v215_v12 = vld [vmem:[%s1575_s6 + $0x4b0] sm:$0xf] }
  0x1e   : > { %214 = vst [vmem:[%s1580_s7 + $0x2c] sm:$0xf] %v213_v11  ;;  %v217_v13 = vld [vmem:[%s1575_s6 + $0x514] sm:$0xf]  ;;  %v219_v14 = vld [vmem:[%s1575_s6 + $0x578] sm:$0xf] }
  0x1f   : > { %216 = vst [vmem:[%s1580_s7 + $0x30] sm:$0xf] %v215_v12  ;;  %218 = vst [vmem:[%s1580_s7 + $0x34] sm:$0xf] %v217_v13  ;;  %v221_v15 = vld [vmem:[%s1575_s6 + $0x5dc] sm:$0xf] }
  0x20   : > { %220 = vst [vmem:[%s1580_s7 + $0x38] sm:$0xf] %v219_v14  ;;  %v223_v16 = vld [vmem:[%s1575_s6 + $0x640] sm:$0xf]  ;;  %v225_v17 = vld [vmem:[%s1575_s6 + $0x6a4] sm:$0xf] }
  0x21   : > { %222 = vst [vmem:[%s1580_s7 + $0x3c] sm:$0xf] %v221_v15  ;;  %224 = vst [vmem:[%s1580_s7 + $0x40] sm:$0xf] %v223_v16  ;;  %v227_v18 = vld [vmem:[%s1575_s6 + $0x708] sm:$0xf] }
  0x22   : > { %226 = vst [vmem:[%s1580_s7 + $0x44] sm:$0xf] %v225_v17  ;;  %v229_v19 = vld [vmem:[%s1575_s6 + $0x76c] sm:$0xf]  ;;  %v231_v20 = vld [vmem:[%s1575_s6 + $0x7d0] sm:$0xf] }
  0x23   : > { %228 = vst [vmem:[%s1580_s7 + $0x48] sm:$0xf] %v227_v18  ;;  %230 = vst [vmem:[%s1580_s7 + $0x4c] sm:$0xf] %v229_v19  ;;  %v233_v21 = vld [vmem:[%s1575_s6 + $0x834] sm:$0xf] }
  0x24   : > { %232 = vst [vmem:[%s1580_s7 + $0x50] sm:$0xf] %v231_v20  ;;  %v235_v22 = vld [vmem:[%s1575_s6 + $0x898] sm:$0xf]  ;;  %v237_v23 = vld [vmem:[%s1575_s6 + $0x8fc] sm:$0xf] }
  0x25   : > { %234 = vst [vmem:[%s1580_s7 + $0x54] sm:$0xf] %v233_v21  ;;  %236 = vst [vmem:[%s1580_s7 + $0x58] sm:$0xf] %v235_v22  ;;  %v239_v24 = vld [vmem:[%s1575_s6 + $0x960] sm:$0xf] }
  0x26   : > { %238 = vst [vmem:[%s1580_s7 + $0x5c] sm:$0xf] %v237_v23  ;;  %v241_v25 = vld [vmem:[%s1575_s6 + $0x9c4] sm:$0xf]  ;;  %v243_v26 = vld [vmem:[%s1575_s6 + $0xa28] sm:$0xf] }
  0x27   : > { %240 = vst [vmem:[%s1580_s7 + $0x60] sm:$0xf] %v239_v24  ;;  %242 = vst [vmem:[%s1580_s7 + $0x64] sm:$0xf] %v241_v25  ;;  %v245_v27 = vld [vmem:[%s1575_s6 + $0xa8c] sm:$0xf] }
  0x28   : > { %244 = vst [vmem:[%s1580_s7 + $0x68] sm:$0xf] %v243_v26  ;;  %v247_v28 = vld [vmem:[%s1575_s6 + $0xaf0] sm:$0xf]  ;;  %v249_v29 = vld [vmem:[%s1575_s6 + $0xb54] sm:$0xf] }
  0x29   : > { %246 = vst [vmem:[%s1580_s7 + $0x6c] sm:$0xf] %v245_v27  ;;  %248 = vst [vmem:[%s1580_s7 + $0x70] sm:$0xf] %v247_v28  ;;  %v251_v30 = vld [vmem:[%s1575_s6 + $0xbb8] sm:$0xf] }
  0x2a   : > { %250 = vst [vmem:[%s1580_s7 + $0x74] sm:$0xf] %v249_v29  ;;  %v253_v31 = vld [vmem:[%s1575_s6 + $0xc1c] sm:$0xf]  ;;  %252 = vst [vmem:[%s1580_s7 + $0x78] sm:$0xf] %v251_v30 }
  0x2b   : > { %254 = vst [vmem:[%s1580_s7 + $0x7c] sm:$0xf] %v253_v31 }
  0x2c PF: > { %p1169_p7 = scmp.ge.s32.totalorder %s1492_s18, 1  ;;  %p353_p8 = scmp.lt.s32.totalorder %s1492_s18, 51 }
  0x2e   : > { %p354_p9 = pnand %p1169_p7, %p353_p8 }
  0x2f   : > { %s360_s8 = sand.u32 (!%p354_p9), 1, %s1468_s12   ;;  %s1171_s9 = sshll.u32 (!%p354_p9), %s1476_s14, 4 }
  0x30   : > { %357 = sbr.rel (%p354_p9) target bundleno = 387 (0x183), region = 69  ;;  %s1170_s10 = sshll.u32 (!%p354_p9), %s360_s8, 7 }
  0x31   : > { %p399_p10 = scmp.lt.s32.totalorder (!%p354_p9), %s1171_s9, 399  ;;  %s1173_s11 = sshll.u32 (!%p354_p9), %s1480_s15, 5 }
  0x32   : > { %p411_p11 = scmp.lt.s32.totalorder (!%p354_p9), %s1173_s11, 63  ;;  %s1658_s12 = scalar_lea.vmem (!%p354_p9), [#allocation2], %s1170_s10 }
  0x33   : > { %p1175_p12 = scmp.ne.s32.totalorder (!%p354_p9), %s1476_s14, 0 }
  0x35   : > { %s1921_s9 = smov (!%p399_p10, %s1171_s9), 399  ;;  %s1923_s11 = smov (!%p411_p11, %s1173_s11), 63 }
  0x36   : > { %s1172_s21 = sshll.u32 %s1921_s9, 2  ;;  %s1174_s26 = sshll.u32 %s1923_s11, 3 }
  0x37   : > { %s1651_s24 = scalar_lea.vmem %s1905_s1, %s1172_s21  ;;  %s1656_s29 = scalar_lea.vmem %s1907_s3, %s1174_s26 }
  0x38   : > { %423 = sbr.rel (%p1175_p12) target bundleno = 78 (0x4e), region = 77 }
  0x3d   : > { %v1494_v32 = vmov 0.0  }
  0x3e   : > { %424 = vst [vmem:[%s1656_s29] sm:$0xff] %v1494_v32  ;;  %425 = vst [vmem:[%s1656_s29 + $0x8] sm:$0xff] %v1494_v32 }
  0x3f   : > { %426 = vst [vmem:[%s1656_s29 + $0x10] sm:$0xff] %v1494_v32  ;;  %427 = vst [vmem:[%s1656_s29 + $0x18] sm:$0xff] %v1494_v32 }
  0x40   : > { %428 = vst [vmem:[%s1656_s29 + $0x20] sm:$0xff] %v1494_v32  ;;  %429 = vst [vmem:[%s1656_s29 + $0x28] sm:$0xff] %v1494_v32 }
  0x41   : > { %430 = vst [vmem:[%s1656_s29 + $0x30] sm:$0xff] %v1494_v32  ;;  %431 = vst [vmem:[%s1656_s29 + $0x38] sm:$0xff] %v1494_v32 }
  0x42   : > { %432 = vst [vmem:[%s1656_s29 + $0x40] sm:$0xff] %v1494_v32  ;;  %433 = vst [vmem:[%s1656_s29 + $0x48] sm:$0xff] %v1494_v32 }
  0x43   : > { %434 = vst [vmem:[%s1656_s29 + $0x50] sm:$0xff] %v1494_v32  ;;  %435 = vst [vmem:[%s1656_s29 + $0x58] sm:$0xff] %v1494_v32 }
  0x44   : > { %436 = vst [vmem:[%s1656_s29 + $0x60] sm:$0xff] %v1494_v32  ;;  %437 = vst [vmem:[%s1656_s29 + $0x68] sm:$0xff] %v1494_v32 }
  0x45   : > { %438 = vst [vmem:[%s1656_s29 + $0x70] sm:$0xff] %v1494_v32  ;;  %439 = vst [vmem:[%s1656_s29 + $0x78] sm:$0xff] %v1494_v32 }
  0x46   : > { %440 = vst [vmem:[%s1656_s29 + $0x80] sm:$0xff] %v1494_v32  ;;  %441 = vst [vmem:[%s1656_s29 + $0x88] sm:$0xff] %v1494_v32 }
  0x47   : > { %442 = vst [vmem:[%s1656_s29 + $0x90] sm:$0xff] %v1494_v32  ;;  %443 = vst [vmem:[%s1656_s29 + $0x98] sm:$0xff] %v1494_v32 }
  0x48   : > { %444 = vst [vmem:[%s1656_s29 + $0xa0] sm:$0xff] %v1494_v32  ;;  %445 = vst [vmem:[%s1656_s29 + $0xa8] sm:$0xff] %v1494_v32 }
  0x49   : > { %446 = vst [vmem:[%s1656_s29 + $0xb0] sm:$0xff] %v1494_v32  ;;  %447 = vst [vmem:[%s1656_s29 + $0xb8] sm:$0xff] %v1494_v32 }
  0x4a   : > { %448 = vst [vmem:[%s1656_s29 + $0xc0] sm:$0xff] %v1494_v32  ;;  %449 = vst [vmem:[%s1656_s29 + $0xc8] sm:$0xff] %v1494_v32 }
  0x4b   : > { %450 = vst [vmem:[%s1656_s29 + $0xd0] sm:$0xff] %v1494_v32  ;;  %451 = vst [vmem:[%s1656_s29 + $0xd8] sm:$0xff] %v1494_v32 }
  0x4c   : > { %452 = vst [vmem:[%s1656_s29 + $0xe0] sm:$0xff] %v1494_v32  ;;  %453 = vst [vmem:[%s1656_s29 + $0xe8] sm:$0xff] %v1494_v32 }
  0x4d   : > { %454 = vst [vmem:[%s1656_s29 + $0xf0] sm:$0xff] %v1494_v32  ;;  %455 = vst [vmem:[%s1656_s29 + $0xf8] sm:$0xff] %v1494_v32 }
  0x4e PF: > { %v1350_v33 = vld [vmem:[%s1651_s24 + $0x38] sm:$0xff]   ;;  %v1351_v34 = vld [vmem:[%s1651_s24 + $0x30] sm:$0xff]   ;;  %v1352_v35 = vld [vmem:[%s1651_s24 + $0x28] sm:$0xff]   ;;  %p1200_p13 = scmp.ne.s32.totalorder %s1476_s14, 24 }
  0x4f   : > { %1228 = vmatprep.subr.bf16.mxu0 %v1350_v33  ;;  %1276 = vmatprep.subr.bf16.mxu1 %v1350_v33  ;;  %v1353_v36 = vld [vmem:[%s1651_s24 + $0x20] sm:$0xff]   ;;  %v1354_v39 = vld [vmem:[%s1651_s24 + $0x18] sm:$0xff]   ;;  %v1355_v40 = vld [vmem:[%s1651_s24 + $0x10] sm:$0xff]  }
  0x50   : > { %1229 = vmatpush3.bf16.msra.mxu0 %v1350_v33  ;;  %1284 = vmatpush3.bf16.msra.mxu1 %v1350_v33  ;;  %v1358_v37 = vld [vmem:[%s1658_s12] sm:$0xff]   ;;  %v1356_v41 = vld [vmem:[%s1651_s24 + $0x8] sm:$0xff]   ;;  %v1362_v45 = vld [vmem:[%s1658_s12 + $0x10] sm:$0xff]  }
  0x51   : > { %1230 = vmatprep.subr.bf16.mxu0 %v1351_v34  ;;  %1277 = vmatprep.subr.bf16.mxu1 %v1351_v34  ;;  %v1359_v38 = vld [vmem:[%s1658_s12 + $0x40] sm:$0xff]   ;;  %v1360_v43 = vld [vmem:[%s1658_s12 + $0x8] sm:$0xff]   ;;  %v1363_v46 = vld [vmem:[%s1658_s12 + $0x50] sm:$0xff]  }
  0x52   : > { %1244 = vmatprep.mubr.bf16.mxu0 %v1358_v37  ;;  %1260 = vmatprep.mubr.bf16.mxu1 %v1359_v38  ;;  %v1357_v42 = vld [vmem:[%s1651_s24] sm:$0xff]   ;;  %v1361_v44 = vld [vmem:[%s1658_s12 + $0x48] sm:$0xff]   ;;  %v1364_v47 = vld [vmem:[%s1658_s12 + $0x18] sm:$0xff]  }
  0x53   : > { %v1365_v48 = vld [vmem:[%s1658_s12 + $0x58] sm:$0xff]   ;;  %v1366_v49 = vld [vmem:[%s1658_s12 + $0x20] sm:$0xff]   ;;  %v1368_v51 = vld [vmem:[%s1658_s12 + $0x28] sm:$0xff]  }
  0x54   : > { %1231 = vmatpush3.bf16.msra.mxu0 %v1351_v34  ;;  %1285 = vmatpush3.bf16.msra.mxu1 %v1351_v34  ;;  %v1367_v50 = vld [vmem:[%s1658_s12 + $0x60] sm:$0xff]   ;;  %v1369_v52 = vld [vmem:[%s1658_s12 + $0x68] sm:$0xff]   ;;  %v1370_v53 = vld [vmem:[%s1658_s12 + $0x30] sm:$0xff]  }
  0x55   : > { %1232 = vmatprep.subr.bf16.mxu0 %v1352_v35  ;;  %1278 = vmatprep.subr.bf16.mxu1 %v1352_v35  ;;  %v1371_v54 = vld [vmem:[%s1658_s12 + $0x70] sm:$0xff]   ;;  %v1372_v55 = vld [vmem:[%s1658_s12 + $0x38] sm:$0xff]   ;;  %v456_v61 = vld [vmem:[%s1656_s29] sm:$0xff] }
  0x56   : > { %v1373_v56 = vld [vmem:[%s1658_s12 + $0x78] sm:$0xff]   ;;  %v458_v57 = vld [vmem:[%s1656_s29 + $0x10] sm:$0xff]  ;;  %v472_v62 = vld [vmem:[%s1656_s29 + $0x80] sm:$0xff] }
  0x57   : > { %v474_v58 = vld [vmem:[%s1656_s29 + $0x90] sm:$0xff]  ;;  %v459_v3 = vld [vmem:[%s1656_s29 + $0x18] sm:$0xff]  ;;  %v457_v9 = vld [vmem:[%s1656_s29 + $0x8] sm:$0xff] }
  0x58   : > { %1233 = vmatpush3.bf16.msra.mxu0 %v1352_v35  ;;  %1286 = vmatpush3.bf16.msra.mxu1 %v1352_v35  ;;  %v475_v4 = vld [vmem:[%s1656_s29 + $0x98] sm:$0xff]  ;;  %v473_v10 = vld [vmem:[%s1656_s29 + $0x88] sm:$0xff]  ;;  %v462_v15 = vld [vmem:[%s1656_s29 + $0x30] sm:$0xff] }
  0x59   : > { %1234 = vmatprep.subr.bf16.mxu0 %v1353_v36  ;;  %1279 = vmatprep.subr.bf16.mxu1 %v1353_v36  ;;  %v478_v16 = vld [vmem:[%s1656_s29 + $0xb0] sm:$0xff]  ;;  %v460_v21 = vld [vmem:[%s1656_s29 + $0x20] sm:$0xff]  ;;  %v463_v27 = vld [vmem:[%s1656_s29 + $0x38] sm:$0xff] }
  0x5a   : > { %v476_v22 = vld [vmem:[%s1656_s29 + $0xa0] sm:$0xff]  ;;  %v479_v28 = vld [vmem:[%s1656_s29 + $0xb8] sm:$0xff]  ;;  %v461_v33 = vld [vmem:[%s1656_s29 + $0x28] sm:$0xff] }
  0x5b   : > { %v477_v34 = vld [vmem:[%s1656_s29 + $0xa8] sm:$0xff] }
  0x5c   : > { %1235 = vmatpush3.bf16.msra.mxu0 %v1353_v36  ;;  %1287 = vmatpush3.bf16.msra.mxu1 %v1353_v36 }
  0x5d   : > { %1236 = vmatprep.subr.bf16.mxu0 %v1354_v39  ;;  %1280 = vmatprep.subr.bf16.mxu1 %v1354_v39 }
  0x60   : > { %1237 = vmatpush3.bf16.msra.mxu0 %v1354_v39  ;;  %1288 = vmatpush3.bf16.msra.mxu1 %v1354_v39  ;;  %v466_v39 = vld [vmem:[%s1656_s29 + $0x50] sm:$0xff] }
  0x61   : > { %1238 = vmatprep.subr.bf16.mxu0 %v1355_v40  ;;  %1281 = vmatprep.subr.bf16.mxu1 %v1355_v40 }
  0x64   : > { %1239 = vmatpush3.bf16.msra.mxu0 %v1355_v40  ;;  %1289 = vmatpush3.bf16.msra.mxu1 %v1355_v40  ;;  %v482_v40 = vld [vmem:[%s1656_s29 + $0xd0] sm:$0xff] }
  0x65   : > { %1240 = vmatprep.subr.bf16.mxu0 %v1356_v41  ;;  %1282 = vmatprep.subr.bf16.mxu1 %v1356_v41 }
  0x68   : > { %1241 = vmatpush3.bf16.msra.mxu0 %v1356_v41  ;;  %1290 = vmatpush3.bf16.msra.mxu1 %v1356_v41 }
  0x69   : > { %1242 = vmatprep.subr.bf16.mxu0 %v1357_v42  ;;  %1283 = vmatprep.subr.bf16.mxu1 %v1357_v42 }
  0x6c   : > { %1243 = vmatpush3.bf16.msra.mxu0 %v1357_v42  ;;  %1291 = vmatpush3.bf16.msra.mxu1 %v1357_v42 }
  0x6f   : > { %1245 = vmatmul.mubr.bf16.vlgmr.msra.gmra.mxu0 %v1360_v43  ;;  %1261 = vmatmul.mubr.bf16.vlgmr.msra.gmra.mxu1 %v1361_v44 }
  0x70   : > { %1248 = vmatprep.mubr.bf16.mxu0 %v1362_v45  ;;  %1264 = vmatprep.mubr.bf16.mxu1 %v1363_v46  ;;  %v464_v45 = vld [vmem:[%s1656_s29 + $0x40] sm:$0xff] }
  0x71   : > { %v480_v46 = vld [vmem:[%s1656_s29 + $0xc0] sm:$0xff] }
  0x77   : > { %1249 = vmatmul.mubr.bf16.gmra.mxu0 %v1364_v47  ;;  %1265 = vmatmul.mubr.bf16.gmra.mxu1 %v1365_v48 }
  0x78   : > { %1252 = vmatprep.mubr.bf16.mxu0 %v1366_v49  ;;  %1268 = vmatprep.mubr.bf16.mxu1 %v1367_v50 }
  0x7f   : > { %1253 = vmatmul.mubr.bf16.gmra.mxu0 %v1368_v51  ;;  %1269 = vmatmul.mubr.bf16.gmra.mxu1 %v1369_v52  ;;  %v467_v51 = vld [vmem:[%s1656_s29 + $0x58] sm:$0xff] }
  0x80   : > { %1256 = vmatprep.mubr.bf16.mxu0 %v1370_v53  ;;  %1272 = vmatprep.mubr.bf16.mxu1 %v1371_v54  ;;  %v483_v52 = vld [vmem:[%s1656_s29 + $0xd8] sm:$0xff] }
  0x87   : > { %1257 = vmatmul.mubr.bf16.gmra.mxu0 %v1372_v55  ;;  %1273 = vmatmul.mubr.bf16.gmra.mxu1 %v1373_v56 }
 0x12f   : > { %v1246_v59 = vpop.f32.mrf.mxu0  ;;  %v1262_v60 = vpop.f32.mrf.mxu1 }
 0x130   : > { %v843_v63 = vadd.f32 %v1246_v59, %v458_v57  ;;  %v859_v0 = vadd.f32 %v1262_v60, %v474_v58  ;;  %v465_v57 = vld [vmem:[%s1656_s29 + $0x48] sm:$0xff] }
 0x131   : > { %v714_v1 = vpop.f32.mrf.mxu0  ;;  %v778_v2 = vpop.f32.mrf.mxu1  ;;  %v481_v58 = vld [vmem:[%s1656_s29 + $0xc8] sm:$0xff] }
 0x132   : > { %875 = vst [vmem:[%s1656_s29 + $0x10] sm:$0xff] %v843_v63  ;;  %891 = vst [vmem:[%s1656_s29 + $0x90] sm:$0xff] %v859_v0  ;;  %v841_v5 = vadd.f32 %v714_v1, %v456_v61  ;;  %v857_v6 = vadd.f32 %v778_v2, %v472_v62  ;;  %v470_v63 = vld [vmem:[%s1656_s29 + $0x70] sm:$0xff] }
 0x133   : > { %v1247_v7 = vpop.f32.mrf.mxu0  ;;  %v1263_v8 = vpop.f32.mrf.mxu1  ;;  %v486_v0 = vld [vmem:[%s1656_s29 + $0xf0] sm:$0xff] }
 0x134   : > { %873 = vst [vmem:[%s1656_s29] sm:$0xff] %v841_v5  ;;  %889 = vst [vmem:[%s1656_s29 + $0x80] sm:$0xff] %v857_v6  ;;  %v844_v11 = vadd.f32 %v1247_v7, %v459_v3  ;;  %v860_v12 = vadd.f32 %v1263_v8, %v475_v4  ;;  %v468_v5 = vld [vmem:[%s1656_s29 + $0x60] sm:$0xff] }
 0x135   : > { %v717_v13 = vpop.f32.mrf.mxu0  ;;  %v781_v14 = vpop.f32.mrf.mxu1  ;;  %v484_v6 = vld [vmem:[%s1656_s29 + $0xe0] sm:$0xff] }
 0x136   : > { %876 = vst [vmem:[%s1656_s29 + $0x18] sm:$0xff] %v844_v11  ;;  %892 = vst [vmem:[%s1656_s29 + $0x98] sm:$0xff] %v860_v12  ;;  %v842_v17 = vadd.f32 %v717_v13, %v457_v9  ;;  %v858_v18 = vadd.f32 %v781_v14, %v473_v10  ;;  %v471_v11 = vld [vmem:[%s1656_s29 + $0x78] sm:$0xff] }
 0x137   : > { %v1250_v19 = vpop.f32.mrf.mxu0  ;;  %v1266_v20 = vpop.f32.mrf.mxu1  ;;  %v487_v12 = vld [vmem:[%s1656_s29 + $0xf8] sm:$0xff] }
 0x138   : > { %874 = vst [vmem:[%s1656_s29 + $0x8] sm:$0xff] %v842_v17  ;;  %890 = vst [vmem:[%s1656_s29 + $0x88] sm:$0xff] %v858_v18  ;;  %v847_v23 = vadd.f32 %v1250_v19, %v462_v15  ;;  %v863_v24 = vadd.f32 %v1266_v20, %v478_v16  ;;  %v469_v17 = vld [vmem:[%s1656_s29 + $0x68] sm:$0xff] }
 0x139   : > { %v730_v25 = vpop.f32.mrf.mxu0  ;;  %v794_v26 = vpop.f32.mrf.mxu1  ;;  %v485_v18 = vld [vmem:[%s1656_s29 + $0xe8] sm:$0xff] }
 0x13a   : > { %879 = vst [vmem:[%s1656_s29 + $0x30] sm:$0xff] %v847_v23  ;;  %895 = vst [vmem:[%s1656_s29 + $0xb0] sm:$0xff] %v863_v24  ;;  %v845_v29 = vadd.f32 %v730_v25, %v460_v21  ;;  %v861_v30 = vadd.f32 %v794_v26, %v476_v22 }
 0x13b   : > { %v1251_v31 = vpop.f32.mrf.mxu0  ;;  %v1267_v32 = vpop.f32.mrf.mxu1 }
 0x13c   : > { %877 = vst [vmem:[%s1656_s29 + $0x20] sm:$0xff] %v845_v29  ;;  %893 = vst [vmem:[%s1656_s29 + $0xa0] sm:$0xff] %v861_v30  ;;  %v848_v35 = vadd.f32 %v1251_v31, %v463_v27  ;;  %v864_v36 = vadd.f32 %v1267_v32, %v479_v28 }
 0x13d   : > { %v733_v37 = vpop.f32.mrf.mxu0  ;;  %v797_v38 = vpop.f32.mrf.mxu1 }
 0x13e   : > { %880 = vst [vmem:[%s1656_s29 + $0x38] sm:$0xff] %v848_v35  ;;  %896 = vst [vmem:[%s1656_s29 + $0xb8] sm:$0xff] %v864_v36  ;;  %v846_v41 = vadd.f32 %v733_v37, %v461_v33  ;;  %v862_v42 = vadd.f32 %v797_v38, %v477_v34 }
 0x13f   : > { %v1254_v43 = vpop.f32.mrf.mxu0  ;;  %v1270_v44 = vpop.f32.mrf.mxu1 }
 0x140   : > { %878 = vst [vmem:[%s1656_s29 + $0x28] sm:$0xff] %v846_v41  ;;  %894 = vst [vmem:[%s1656_s29 + $0xa8] sm:$0xff] %v862_v42  ;;  %v851_v47 = vadd.f32 %v1254_v43, %v466_v39  ;;  %v867_v48 = vadd.f32 %v1270_v44, %v482_v40 }
 0x141   : > { %v746_v49 = vpop.f32.mrf.mxu0  ;;  %v810_v50 = vpop.f32.mrf.mxu1 }
 0x142   : > { %883 = vst [vmem:[%s1656_s29 + $0x50] sm:$0xff] %v851_v47  ;;  %899 = vst [vmem:[%s1656_s29 + $0xd0] sm:$0xff] %v867_v48  ;;  %v849_v53 = vadd.f32 %v746_v49, %v464_v45  ;;  %v865_v54 = vadd.f32 %v810_v50, %v480_v46 }
 0x143   : > { %v1255_v55 = vpop.f32.mrf.mxu0  ;;  %v1271_v56 = vpop.f32.mrf.mxu1 }
 0x144   : > { %881 = vst [vmem:[%s1656_s29 + $0x40] sm:$0xff] %v849_v53  ;;  %897 = vst [vmem:[%s1656_s29 + $0xc0] sm:$0xff] %v865_v54  ;;  %v852_v59 = vadd.f32 %v1255_v55, %v467_v51  ;;  %v868_v60 = vadd.f32 %v1271_v56, %v483_v52 }
 0x145   : > { %v749_v61 = vpop.f32.mrf.mxu0  ;;  %v813_v62 = vpop.f32.mrf.mxu1 }
 0x146   : > { %884 = vst [vmem:[%s1656_s29 + $0x58] sm:$0xff] %v852_v59  ;;  %900 = vst [vmem:[%s1656_s29 + $0xd8] sm:$0xff] %v868_v60  ;;  %v850_v1 = vadd.f32 %v749_v61, %v465_v57  ;;  %v866_v2 = vadd.f32 %v813_v62, %v481_v58 }
 0x147   : > { %v1258_v3 = vpop.f32.mrf.mxu0  ;;  %v1274_v4 = vpop.f32.mrf.mxu1 }
 0x148   : > { %882 = vst [vmem:[%s1656_s29 + $0x48] sm:$0xff] %v850_v1  ;;  %898 = vst [vmem:[%s1656_s29 + $0xc8] sm:$0xff] %v866_v2  ;;  %v855_v7 = vadd.f32 %v1258_v3, %v470_v63  ;;  %v871_v8 = vadd.f32 %v1274_v4, %v486_v0 }
 0x149   : > { %v762_v9 = vpop.f32.mrf.mxu0  ;;  %v826_v10 = vpop.f32.mrf.mxu1 }
 0x14a   : > { %887 = vst [vmem:[%s1656_s29 + $0x70] sm:$0xff] %v855_v7  ;;  %903 = vst [vmem:[%s1656_s29 + $0xf0] sm:$0xff] %v871_v8  ;;  %v853_v13 = vadd.f32 %v762_v9, %v468_v5  ;;  %v869_v14 = vadd.f32 %v826_v10, %v484_v6 }
 0x14b   : > { %v1259_v15 = vpop.f32.mrf.mxu0  ;;  %v1275_v16 = vpop.f32.mrf.mxu1 }
 0x14c   : > { %885 = vst [vmem:[%s1656_s29 + $0x60] sm:$0xff] %v853_v13  ;;  %901 = vst [vmem:[%s1656_s29 + $0xe0] sm:$0xff] %v869_v14  ;;  %v856_v19 = vadd.f32 %v1259_v15, %v471_v11  ;;  %v872_v20 = vadd.f32 %v1275_v16, %v487_v12  ;;  %908 = sbr.rel (%p1200_p13) target bundleno = 387 (0x183), region = 81 }
 0x14d   : > { %v765_v21 = vpop.f32.mrf.mxu0  ;;  %v829_v22 = vpop.f32.mrf.mxu1 }
 0x14e   : > { %888 = vst [vmem:[%s1656_s29 + $0x78] sm:$0xff] %v856_v19  ;;  %904 = vst [vmem:[%s1656_s29 + $0xf8] sm:$0xff] %v872_v20  ;;  %v854_v23 = vadd.f32 %v765_v21, %v469_v17  ;;  %v870_v24 = vadd.f32 %v829_v22, %v485_v18 }
 0x150   : > { %886 = vst [vmem:[%s1656_s29 + $0x68] sm:$0xff] %v854_v23  ;;  %902 = vst [vmem:[%s1656_s29 + $0xe8] sm:$0xff] %v870_v24 }
 0x151   : > { %v909_v25 = vld [vmem:[%s1656_s29] sm:$0xff]  ;;  %v910_v27 = vld [vmem:[%s1656_s29 + $0x8] sm:$0xff]  ;;  %v911_v30 = vld [vmem:[%s1656_s29 + $0x10] sm:$0xff] }
 0x152   : > { %v1786_v26 = vld [vmem:[%s1906_s2] ss:$0 sm:$0xff]  ;;  %v912_v31 = vld [vmem:[%s1656_s29 + $0x18] sm:$0xff]  ;;  %v914_v35 = vld [vmem:[%s1656_s29 + $0x28] sm:$0xff] }
 0x153   : > { %v948_v28 = vadd.f32 %v1786_v26, %v909_v25  ;;  %v949_v29 = vadd.f32 %v1786_v26, %v910_v27  ;;  %v913_v32 = vld [vmem:[%s1656_s29 + $0x20] sm:$0xff]  ;;  %v950_v33 = vadd.f32 %v1786_v26, %v911_v30  ;;  %v951_v34 = vadd.f32 %v1786_v26, %v912_v31  ;;  %v915_v36 = vld [vmem:[%s1656_s29 + $0x30] sm:$0xff]  ;;  %v916_v38 = vld [vmem:[%s1656_s29 + $0x38] sm:$0xff] }
 0x154   : > { %v952_v37 = vadd.f32 %v1786_v26, %v913_v32  ;;  %v953_v39 = vadd.f32 %v1786_v26, %v914_v35  ;;  %v917_v40 = vld [vmem:[%s1656_s29 + $0x40] sm:$0xff]  ;;  %v954_v41 = vadd.f32 %v1786_v26, %v915_v36  ;;  %v918_v42 = vld [vmem:[%s1656_s29 + $0x48] sm:$0xff]  ;;  %v955_v43 = vadd.f32 %v1786_v26, %v916_v38  ;;  %v919_v44 = vld [vmem:[%s1656_s29 + $0x50] sm:$0xff] }
 0x155   : > { %1374 = vtanh.f32 %v948_v28  ;;  %v956_v45 = vadd.f32 %v1786_v26, %v917_v40  ;;  %v920_v46 = vld [vmem:[%s1656_s29 + $0x58] sm:$0xff]  ;;  %v957_v47 = vadd.f32 %v1786_v26, %v918_v42  ;;  %v921_v48 = vld [vmem:[%s1656_s29 + $0x60] sm:$0xff]  ;;  %v958_v49 = vadd.f32 %v1786_v26, %v919_v44  ;;  %v923_v52 = vld [vmem:[%s1656_s29 + $0x70] sm:$0xff] }
 0x156   : > { %1376 = vtanh.f32 %v949_v29  ;;  %v959_v51 = vadd.f32 %v1786_v26, %v920_v46  ;;  %v960_v53 = vadd.f32 %v1786_v26, %v921_v48  ;;  %v924_v54 = vld [vmem:[%s1656_s29 + $0x78] sm:$0xff]  ;;  %v925_v56 = vld [vmem:[%s1656_s29 + $0x80] sm:$0xff]  ;;  %v962_v57 = vadd.f32 %v1786_v26, %v923_v52  ;;  %v926_v58 = vld [vmem:[%s1656_s29 + $0x88] sm:$0xff] }
 0x157   : > { %1378 = vtanh.f32 %v950_v33  ;;  %v922_v50 = vld [vmem:[%s1656_s29 + $0x68] sm:$0xff]  ;;  %v963_v59 = vadd.f32 %v1786_v26, %v924_v54  ;;  %v927_v60 = vld [vmem:[%s1656_s29 + $0x90] sm:$0xff]  ;;  %v964_v61 = vadd.f32 %v1786_v26, %v925_v56  ;;  %v928_v62 = vld [vmem:[%s1656_s29 + $0x98] sm:$0xff]  ;;  %v965_v0 = vadd.f32 %v1786_v26, %v926_v58 }
 0x158   : > { %1380 = vtanh.f32 %v951_v34  ;;  %v961_v55 = vadd.f32 %v1786_v26, %v922_v50  ;;  %v929_v1 = vld [vmem:[%s1656_s29 + $0xa0] sm:$0xff]  ;;  %v966_v3 = vadd.f32 %v1786_v26, %v927_v60  ;;  %v930_v4 = vld [vmem:[%s1656_s29 + $0xa8] sm:$0xff]  ;;  %v967_v6 = vadd.f32 %v1786_v26, %v928_v62  ;;  %v931_v7 = vld [vmem:[%s1656_s29 + $0xb0] sm:$0xff] }
 0x159   : > { %1382 = vtanh.f32 %v952_v37  ;;  %v968_v9 = vadd.f32 %v1786_v26, %v929_v1  ;;  %v932_v10 = vld [vmem:[%s1656_s29 + $0xb8] sm:$0xff]  ;;  %v969_v12 = vadd.f32 %v1786_v26, %v930_v4  ;;  %v933_v13 = vld [vmem:[%s1656_s29 + $0xc0] sm:$0xff]  ;;  %v970_v15 = vadd.f32 %v1786_v26, %v931_v7  ;;  %v934_v16 = vld [vmem:[%s1656_s29 + $0xc8] sm:$0xff] }
 0x15a   : > { %1384 = vtanh.f32 %v953_v39  ;;  %v971_v18 = vadd.f32 %v1786_v26, %v932_v10  ;;  %v935_v19 = vld [vmem:[%s1656_s29 + $0xd0] sm:$0xff]  ;;  %v972_v21 = vadd.f32 %v1786_v26, %v933_v13  ;;  %v936_v22 = vld [vmem:[%s1656_s29 + $0xd8] sm:$0xff]  ;;  %v973_v24 = vadd.f32 %v1786_v26, %v934_v16  ;;  %v937_v25 = vld [vmem:[%s1656_s29 + $0xe0] sm:$0xff] }
 0x15b   : > { %1386 = vtanh.f32 %v954_v41  ;;  %v974_v28 = vadd.f32 %v1786_v26, %v935_v19  ;;  %v938_v29 = vld [vmem:[%s1656_s29 + $0xe8] sm:$0xff]  ;;  %v975_v31 = vadd.f32 %v1786_v26, %v936_v22  ;;  %v939_v32 = vld [vmem:[%s1656_s29 + $0xf0] sm:$0xff]  ;;  %v976_v34 = vadd.f32 %v1786_v26, %v937_v25  ;;  %v940_v35 = vld [vmem:[%s1656_s29 + $0xf8] sm:$0xff] }
 0x15c   : > { %1388 = vtanh.f32 %v955_v43  ;;  %v977_v37 = vadd.f32 %v1786_v26, %v938_v29  ;;  %v978_v39 = vadd.f32 %v1786_v26, %v939_v32  ;;  %v979_v41 = vadd.f32 %v1786_v26, %v940_v35 }
 0x15d   : > { %1390 = vtanh.f32 %v956_v45 }
 0x15e   : > { %1392 = vtanh.f32 %v957_v47 }
 0x15f   : > { %1394 = vtanh.f32 %v958_v49 }
 0x160   : > { %1396 = vtanh.f32 %v959_v51 }
 0x161   : > { %1398 = vtanh.f32 %v960_v53 }
 0x162   : > { %v1375_v63 = vpop.eup %1374  ;;  %1400 = vtanh.f32 %v961_v55 }
 0x163   : > { %v1377_v2 = vpop.eup %1376  ;;  %1012 = vst [vmem:[%s1656_s29] sm:$0xff] %v1375_v63  ;;  %1402 = vtanh.f32 %v962_v57 }
 0x164   : > { %v1379_v5 = vpop.eup %1378  ;;  %1013 = vst [vmem:[%s1656_s29 + $0x8] sm:$0xff] %v1377_v2  ;;  %1404 = vtanh.f32 %v963_v59 }
 0x165   : > { %v1381_v8 = vpop.eup %1380  ;;  %1014 = vst [vmem:[%s1656_s29 + $0x10] sm:$0xff] %v1379_v5  ;;  %1406 = vtanh.f32 %v964_v61 }
 0x166   : > { %v1383_v11 = vpop.eup %1382  ;;  %1015 = vst [vmem:[%s1656_s29 + $0x18] sm:$0xff] %v1381_v8  ;;  %1408 = vtanh.f32 %v965_v0 }
 0x167   : > { %v1385_v14 = vpop.eup %1384  ;;  %1016 = vst [vmem:[%s1656_s29 + $0x20] sm:$0xff] %v1383_v11  ;;  %1410 = vtanh.f32 %v966_v3 }
 0x168   : > { %v1387_v17 = vpop.eup %1386  ;;  %1017 = vst [vmem:[%s1656_s29 + $0x28] sm:$0xff] %v1385_v14  ;;  %1412 = vtanh.f32 %v967_v6 }
 0x169   : > { %v1389_v20 = vpop.eup %1388  ;;  %1018 = vst [vmem:[%s1656_s29 + $0x30] sm:$0xff] %v1387_v17  ;;  %1414 = vtanh.f32 %v968_v9 }
 0x16a   : > { %v1391_v23 = vpop.eup %1390  ;;  %1019 = vst [vmem:[%s1656_s29 + $0x38] sm:$0xff] %v1389_v20  ;;  %1416 = vtanh.f32 %v969_v12 }
 0x16b   : > { %v1393_v27 = vpop.eup %1392  ;;  %1020 = vst [vmem:[%s1656_s29 + $0x40] sm:$0xff] %v1391_v23  ;;  %1418 = vtanh.f32 %v970_v15 }
 0x16c   : > { %v1395_v30 = vpop.eup %1394  ;;  %1021 = vst [vmem:[%s1656_s29 + $0x48] sm:$0xff] %v1393_v27  ;;  %1420 = vtanh.f32 %v971_v18 }
 0x16d   : > { %v1397_v33 = vpop.eup %1396  ;;  %1022 = vst [vmem:[%s1656_s29 + $0x50] sm:$0xff] %v1395_v30  ;;  %1422 = vtanh.f32 %v972_v21 }
 0x16e   : > { %v1399_v36 = vpop.eup %1398  ;;  %1023 = vst [vmem:[%s1656_s29 + $0x58] sm:$0xff] %v1397_v33  ;;  %1424 = vtanh.f32 %v973_v24 }
 0x16f   : > { %v1401_v38 = vpop.eup %1400  ;;  %1024 = vst [vmem:[%s1656_s29 + $0x60] sm:$0xff] %v1399_v36  ;;  %1426 = vtanh.f32 %v974_v28 }
 0x170   : > { %v1403_v40 = vpop.eup %1402  ;;  %1025 = vst [vmem:[%s1656_s29 + $0x68] sm:$0xff] %v1401_v38  ;;  %1428 = vtanh.f32 %v975_v31 }
 0x171   : > { %v1405_v42 = vpop.eup %1404  ;;  %1026 = vst [vmem:[%s1656_s29 + $0x70] sm:$0xff] %v1403_v40  ;;  %1430 = vtanh.f32 %v976_v34 }
 0x172   : > { %v1407_v43 = vpop.eup %1406  ;;  %1027 = vst [vmem:[%s1656_s29 + $0x78] sm:$0xff] %v1405_v42  ;;  %1432 = vtanh.f32 %v977_v37 }
 0x173   : > { %v1409_v44 = vpop.eup %1408  ;;  %1028 = vst [vmem:[%s1656_s29 + $0x80] sm:$0xff] %v1407_v43  ;;  %1434 = vtanh.f32 %v978_v39 }
 0x174   : > { %v1411_v45 = vpop.eup %1410  ;;  %1029 = vst [vmem:[%s1656_s29 + $0x88] sm:$0xff] %v1409_v44  ;;  %1436 = vtanh.f32 %v979_v41 }
 0x175   : > { %v1413_v26 = vpop.eup %1412  ;;  %1030 = vst [vmem:[%s1656_s29 + $0x90] sm:$0xff] %v1411_v45 }
 0x176   : > { %v1415_v46 = vpop.eup %1414  ;;  %1031 = vst [vmem:[%s1656_s29 + $0x98] sm:$0xff] %v1413_v26 }
 0x177   : > { %v1417_v47 = vpop.eup %1416  ;;  %1032 = vst [vmem:[%s1656_s29 + $0xa0] sm:$0xff] %v1415_v46 }
 0x178   : > { %v1419_v48 = vpop.eup %1418  ;;  %1033 = vst [vmem:[%s1656_s29 + $0xa8] sm:$0xff] %v1417_v47 }
 0x179   : > { %v1421_v49 = vpop.eup %1420  ;;  %1034 = vst [vmem:[%s1656_s29 + $0xb0] sm:$0xff] %v1419_v48 }
 0x17a   : > { %v1423_v50 = vpop.eup %1422  ;;  %1035 = vst [vmem:[%s1656_s29 + $0xb8] sm:$0xff] %v1421_v49 }
 0x17b   : > { %v1425_v51 = vpop.eup %1424  ;;  %1036 = vst [vmem:[%s1656_s29 + $0xc0] sm:$0xff] %v1423_v50 }
 0x17c   : > { %v1427_v52 = vpop.eup %1426  ;;  %1037 = vst [vmem:[%s1656_s29 + $0xc8] sm:$0xff] %v1425_v51 }
 0x17d   : > { %v1429_v53 = vpop.eup %1428  ;;  %1038 = vst [vmem:[%s1656_s29 + $0xd0] sm:$0xff] %v1427_v52 }
 0x17e   : > { %v1431_v54 = vpop.eup %1430  ;;  %1039 = vst [vmem:[%s1656_s29 + $0xd8] sm:$0xff] %v1429_v53 }
 0x17f   : > { %v1433_v55 = vpop.eup %1432  ;;  %1040 = vst [vmem:[%s1656_s29 + $0xe0] sm:$0xff] %v1431_v54 }
 0x180   : > { %v1435_v56 = vpop.eup %1434  ;;  %1041 = vst [vmem:[%s1656_s29 + $0xe8] sm:$0xff] %v1433_v55 }
 0x181   : > { %v1437_v57 = vpop.eup %1436  ;;  %1042 = vst [vmem:[%s1656_s29 + $0xf0] sm:$0xff] %v1435_v56 }
 0x182   : > { %1043 = vst [vmem:[%s1656_s29 + $0xf8] sm:$0xff] %v1437_v57 }
 0x183 PF: > { %s13_s18 = sadd.s32 1, %s1492_s18   ;;  %s1908_s12 = smov %s1472_s13 }
 0x184   : > { %p10_p0 = scmp.ge.s32.totalorder %s13_s18, 52   ;;  %s1909_s13 = smov %s1566_s25 }
 0x185   : > { %s1910_s14 = smov %s1484_s16  ;;  %s1911_s15 = smov %s1488_s17 }
 0x186   : > { %s1912_s16 = smov %s1915_s19  ;;  %s1913_s17 = smov %s1919_s20 }
 0x187   :  { %12 = sbr.rel (!%p10_p0) target bundleno = 4 (0x4), region = 122 }

// kernel: forward.77
= control target key start
LH: loop header
LB: loop body
LE: loop exit
PB: predicated region body
PF: predicated region fallthrough
CT: control target
= control target key end

     0   :  { %10 = vsyncpa [#allocation3], 0  ;;  %vm88_vm0 = vcmask 130048   ;;  %s460_s0 = inlined_call_operand.vmem [shape: f32[96,16], index: 0, kind: input, shape index: {}]   ;;  %s461_s1 = inlined_call_operand.vmem [shape: f32[96,16], index: 1, kind: input, shape index: {}]   ;;  %s462_s2 = inlined_call_operand.hbm [shape: f32[96,16], index: 2, kind: output, shape index: {0}]   ;;  %s463_s3 = inlined_call_operand.hbm [shape: f32[96,16], index: 3, kind: output, shape index: {1}]   ;;  %s464_s4 = inlined_call_operand.hbm [shape: f32[96,16], index: 4, kind: output, shape index: {2}]  }
   0x1   :  { %v16_v0 = vld [vmem:[%s460_s0] sm:$0xff]  ;;  %v17_v1 = vld [vmem:[%s460_s0 + $0x8] sm:$0xff]  ;;  %v18_v2 = vld [vmem:[%s460_s0 + $0x10] sm:$0xff] }
   0x2   :  { %v28_v3 = vmul.f32 0.5, %v16_v0  ;;  %v29_v4 = vmul.f32 0.5, %v17_v1  ;;  %v30_v5 = vmul.f32 0.5, %v18_v2  ;;  %v19_v6 = vld [vmem:[%s460_s0 + $0x18] sm:$0xff]  ;;  %v20_v7 = vld [vmem:[%s460_s0 + $0x20] sm:$0xff]  ;;  %v21_v8 = vld [vmem:[%s460_s0 + $0x28] sm:$0xff] }
   0x3   :  { %v31_v9 = vmul.f32 0.5, %v19_v6  ;;  %v32_v10 = vmul.f32 0.5, %v20_v7  ;;  %v33_v11 = vmul.f32 0.5, %v21_v8  ;;  %v22_v12 = vld [vmem:[%s460_s0 + $0x30] sm:$0xff]  ;;  %v23_v13 = vld [vmem:[%s460_s0 + $0x38] sm:$0xff]  ;;  %v24_v14 = vld [vmem:[%s460_s0 + $0x40] sm:$0xff] }
   0x4   :  { %v310_v15 = vadd.f32 0.5, %v28_v3  ;;  %v312_v16 = vadd.f32 0.5, %v29_v4  ;;  %v314_v17 = vadd.f32 0.5, %v30_v5  ;;  %v34_v18 = vmul.f32 0.5, %v22_v12  ;;  %v25_v19 = vld [vmem:[%s460_s0 + $0x48] sm:$0xff]  ;;  %v26_v20 = vld [vmem:[%s460_s0 + $0x50] sm:$0xff] }
   0x5   :  { %v322_v21 = vadd.f32 0.5, %v31_v9  ;;  %v324_v22 = vadd.f32 0.5, %v32_v10  ;;  %v326_v23 = vadd.f32 0.5, %v33_v11  ;;  %v35_v24 = vmul.f32 0.5, %v23_v13  ;;  %v27_v25 = vld [vmem:[%s460_s0 + $0x58] sm:$0xff]  ;;  %v52_v26 = vld [vmem:[%s461_s1] sm:$0xff] }
   0x6   :  { %89 = vst.msk [vmem:[#allocation4] sm:$0xff] %vm88_vm0, %v310_v15  ;;  %90 = vst.msk [vmem:[#allocation4 + $0x8] sm:$0xff] %vm88_vm0, %v312_v16  ;;  %v340_v27 = vadd.f32 0.5, %v34_v18  ;;  %v36_v28 = vmul.f32 0.5, %v24_v14  ;;  %v37_v29 = vmul.f32 0.5, %v25_v19  ;;  %v38_v30 = vmul.f32 0.5, %v26_v20 }
   0x7   :  { %91 = vst.msk [vmem:[#allocation4 + $0x10] sm:$0xff] %vm88_vm0, %v314_v17  ;;  %v53_v31 = vld [vmem:[%s461_s1 + $0x8] sm:$0xff]  ;;  %v54_v32 = vld [vmem:[%s461_s1 + $0x10] sm:$0xff]  ;;  %92 = vst.msk [vmem:[#allocation4 + $0x18] sm:$0xff] %vm88_vm0, %v322_v21  ;;  %v354_v33 = vadd.f32 0.5, %v35_v24  ;;  %v39_v34 = vmul.f32 0.5, %v27_v25 }
   0x8   :  { %93 = vst.msk [vmem:[#allocation4 + $0x20] sm:$0xff] %vm88_vm0, %v324_v22  ;;  %94 = vst.msk [vmem:[#allocation4 + $0x28] sm:$0xff] %vm88_vm0, %v326_v23  ;;  %v64_v35 = vmul.f32 0.5, %v52_v26  ;;  %v65_v36 = vmul.f32 0.5, %v53_v31  ;;  %v55_v37 = vld [vmem:[%s461_s1 + $0x18] sm:$0xff]  ;;  %v56_v38 = vld [vmem:[%s461_s1 + $0x20] sm:$0xff] }
   0x9   :  { %95 = vst.msk [vmem:[#allocation4 + $0x30] sm:$0xff] %vm88_vm0, %v340_v27  ;;  %v364_v39 = vadd.f32 0.5, %v36_v28  ;;  %v366_v40 = vadd.f32 0.5, %v37_v29  ;;  %v368_v41 = vadd.f32 0.5, %v38_v30  ;;  %v66_v42 = vmul.f32 0.5, %v54_v32  ;;  %v57_v43 = vld [vmem:[%s461_s1 + $0x28] sm:$0xff] }
   0xa   :  { %v58_v44 = vld [vmem:[%s461_s1 + $0x30] sm:$0xff]  ;;  %96 = vst.msk [vmem:[#allocation4 + $0x38] sm:$0xff] %vm88_vm0, %v354_v33  ;;  %v378_v45 = vadd.f32 0.5, %v39_v34  ;;  %v76_v46 = vadd.f32 0.5, %v64_v35  ;;  %v77_v47 = vadd.f32 0.5, %v65_v36  ;;  %v67_v48 = vmul.f32 0.5, %v55_v37 }
   0xb   :  { %v59_v49 = vld [vmem:[%s461_s1 + $0x38] sm:$0xff]  ;;  %v60_v50 = vld [vmem:[%s461_s1 + $0x40] sm:$0xff]  ;;  %97 = vst.msk [vmem:[#allocation4 + $0x40] sm:$0xff] %vm88_vm0, %v364_v39  ;;  %98 = vst.msk [vmem:[#allocation4 + $0x48] sm:$0xff] %vm88_vm0, %v366_v40  ;;  %v78_v51 = vadd.f32 0.5, %v66_v42  ;;  %v68_v52 = vmul.f32 0.5, %v56_v38 }
   0xc   :  { %99 = vst.msk [vmem:[#allocation4 + $0x50] sm:$0xff] %vm88_vm0, %v368_v41  ;;  %v69_v53 = vmul.f32 0.5, %v57_v43  ;;  %v70_v54 = vmul.f32 0.5, %v58_v44  ;;  %v61_v55 = vld [vmem:[%s461_s1 + $0x48] sm:$0xff]  ;;  %v62_v56 = vld [vmem:[%s461_s1 + $0x50] sm:$0xff]  ;;  %100 = vst.msk [vmem:[#allocation4 + $0x58] sm:$0xff] %vm88_vm0, %v378_v45 }
   0xd   :  { %101 = vst.msk [vmem:[#allocation6] sm:$0xff] %vm88_vm0, %v76_v46  ;;  %102 = vst.msk [vmem:[#allocation6 + $0x8] sm:$0xff] %vm88_vm0, %v77_v47  ;;  %v79_v57 = vadd.f32 0.5, %v67_v48  ;;  %v71_v58 = vmul.f32 0.5, %v59_v49  ;;  %v72_v59 = vmul.f32 0.5, %v60_v50  ;;  %v73_v60 = vmul.f32 0.5, %v61_v55 }
   0xe   :  { %v63_v61 = vld [vmem:[%s461_s1 + $0x58] sm:$0xff]  ;;  %103 = vst.msk [vmem:[#allocation6 + $0x10] sm:$0xff] %vm88_vm0, %v78_v51  ;;  %v80_v62 = vadd.f32 0.5, %v68_v52  ;;  %v81_v63 = vadd.f32 0.5, %v69_v53  ;;  %v82_v0 = vadd.f32 0.5, %v70_v54  ;;  %v74_v1 = vmul.f32 0.5, %v62_v56 }
   0xf   :  { %11 = vsyncpa [#allocation5], 0  ;;  %104 = vst.msk [vmem:[#allocation6 + $0x18] sm:$0xff] %vm88_vm0, %v79_v57  ;;  %v83_v2 = vadd.f32 0.5, %v71_v58  ;;  %v84_v3 = vadd.f32 0.5, %v72_v59  ;;  %v85_v4 = vadd.f32 0.5, %v73_v60  ;;  %v113_v7 = vmul.f32 %v76_v46, %v310_v15 }
  0x10   :  { %v75_v5 = vmul.f32 0.5, %v63_v61  ;;  %s253_s10 = smov [#allocation4]   ;;  %105 = vst.msk [vmem:[#allocation6 + $0x20] sm:$0xff] %vm88_vm0, %v80_v62  ;;  %106 = vst.msk [vmem:[#allocation6 + $0x28] sm:$0xff] %vm88_vm0, %v81_v63  ;;  %v86_v6 = vadd.f32 0.5, %v74_v1  ;;  %v114_v8 = vmul.f32 %v77_v47, %v312_v16  ;;  %v115_v9 = vmul.f32 %v78_v51, %v314_v17  ;;  %s254_s1 = smov [#allocation2]  }
  0x11   :  { %s154_s11 = sshll.u32 %s253_s10, 4  ;;  %107 = vst.msk [vmem:[#allocation6 + $0x30] sm:$0xff] %vm88_vm0, %v82_v0  ;;  %s413_s12 = sshll.u32 %s254_s1, 4  ;;  %108 = vst.msk [vmem:[#allocation6 + $0x38] sm:$0xff] %vm88_vm0, %v83_v2  ;;  %v116_v11 = vmul.f32 %v79_v57, %v322_v21  ;;  %v117_v12 = vmul.f32 %v80_v62, %v324_v22  ;;  %v118_v13 = vmul.f32 %v81_v63, %v326_v23  ;;  %s155_s11 = int_to_ptr.vmem [resolvable:$true] %s154_s11  ;;  %s143_s12 = int_to_ptr.vmem [resolvable:$true] %s413_s12 }
  0x12   :  { %109 = vst.msk [vmem:[#allocation6 + $0x40] sm:$0xff] %vm88_vm0, %v84_v3  ;;  %110 = vst.msk [vmem:[#allocation6 + $0x48] sm:$0xff] %vm88_vm0, %v85_v4  ;;  %v87_v10 = vadd.f32 0.5, %v75_v5  ;;  %s189_s13 = scalar_lea.vmem %s155_s11, 1536  ;;  %p194_p1 = scmp.lt.s32.totalorder %s155_s11, %s155_s11 }
  0x13   :  { %p190_p0 = scmp.ne.s32.totalorder %s155_s11, %s189_s13  ;;  %p195_p2 = scmp.lt.s32.totalorder %s189_s13, %s189_s13 }
  0x15   :  { %p196_p3 = por %p195_p2, %p194_p1 }
  0x17   :  { %p197_p4 = pnand %p196_p3, %p190_p0 }
  0x19   :  { %200 = shalt.err (!%p197_p4)
}
  0x1a   :  { %s255_s14 = smov 128   ;;  %s256_s15 = smov 8   ;;  %111 = vst.msk [vmem:[#allocation6 + $0x50] sm:$0xff] %vm88_vm0, %v86_v6  ;;  %125 = vst.msk [vmem:[#allocation2] sm:$0xff] %vm88_vm0, %v113_v7  ;;  %v119_v14 = vmul.f32 %v82_v0, %v340_v27  ;;  %v120_v15 = vmul.f32 %v83_v2, %v354_v33  ;;  %v121_v16 = vmul.f32 %v84_v3, %v364_v39 }
  0x1b   :  { %160 = dma.vmem_to_hbm [thread:$0]  %s155_s11, 1536, %s463_s3, [#allocation5], %s255_s14, %s255_s14, %s256_s15   ;;  %126 = vst.msk [vmem:[#allocation2 + $0x8] sm:$0xff] %vm88_vm0, %v114_v8  ;;  %127 = vst.msk [vmem:[#allocation2 + $0x10] sm:$0xff] %vm88_vm0, %v115_v9  ;;  %v122_v17 = vmul.f32 %v85_v4, %v366_v40  ;;  %v123_v18 = vmul.f32 %v86_v6, %v368_v41  ;;  %v124_v19 = vmul.f32 %v87_v10, %v378_v45 }
  0x1c   :  { %112 = vst.msk [vmem:[#allocation6 + $0x58] sm:$0xff] %vm88_vm0, %v87_v10  ;;  %128 = vst.msk [vmem:[#allocation2 + $0x18] sm:$0xff] %vm88_vm0, %v116_v11  ;;  %s257_s3 = smov [#allocation6]  }
  0x1d   :  { %129 = vst.msk [vmem:[#allocation2 + $0x20] sm:$0xff] %vm88_vm0, %v117_v12  ;;  %130 = vst.msk [vmem:[#allocation2 + $0x28] sm:$0xff] %vm88_vm0, %v118_v13  ;;  %s166_s17 = sshll.u32 %s257_s3, 4  ;;  %s167_s17 = int_to_ptr.vmem [resolvable:$true] %s166_s17 }
  0x1e   :  { %131 = vst.msk [vmem:[#allocation2 + $0x30] sm:$0xff] %vm88_vm0, %v119_v14  ;;  %132 = vst.msk [vmem:[#allocation2 + $0x38] sm:$0xff] %vm88_vm0, %v120_v15  ;;  %s209_s18 = scalar_lea.vmem %s167_s17, 1536  ;;  %p214_p6 = scmp.lt.s32.totalorder %s167_s17, %s167_s17 }
  0x1f   :  { %133 = vst.msk [vmem:[#allocation2 + $0x40] sm:$0xff] %vm88_vm0, %v121_v16  ;;  %134 = vst.msk [vmem:[#allocation2 + $0x48] sm:$0xff] %vm88_vm0, %v122_v17  ;;  %p210_p5 = scmp.ne.s32.totalorder %s167_s17, %s209_s18  ;;  %p215_p7 = scmp.lt.s32.totalorder %s209_s18, %s209_s18 }
  0x20   :  { %135 = vst.msk [vmem:[#allocation2 + $0x50] sm:$0xff] %vm88_vm0, %v123_v18  ;;  %136 = vst.msk [vmem:[#allocation2 + $0x58] sm:$0xff] %vm88_vm0, %v124_v19 }
  0x21   :  { %p216_p8 = por %p215_p7, %p214_p6 }
  0x23   :  { %p217_p9 = pnand %p216_p8, %p210_p5 }
  0x25   :  { %220 = shalt.err (!%p217_p9)
}
  0x26   :  { %172 = dma.vmem_to_hbm [thread:$0]  %s167_s17, 1536, %s464_s4, [#allocation5], %s255_s14, %s255_s14, %s256_s15  }
  0x27   :  { %s229_s21 = scalar_lea.vmem %s143_s12, 1536  ;;  %p234_p11 = scmp.lt.s32.totalorder %s143_s12, %s143_s12 }
  0x28   :  { %p230_p10 = scmp.ne.s32.totalorder %s143_s12, %s229_s21  ;;  %p235_p12 = scmp.lt.s32.totalorder %s229_s21, %s229_s21 }
  0x2a   :  { %p236_p13 = por %p235_p12, %p234_p11 }
  0x2c   :  { %p237_p0 = pnand %p236_p13, %p230_p10 }
  0x2e   :  { %240 = shalt.err (!%p237_p0)
}
  0x2f   :  { %148 = dma.vmem_to_hbm [thread:$0]  %s143_s12, 1536, %s462_s2, [#allocation3], %s255_s14, %s255_s14, %s256_s15  }
  0x30   :  { %249 = dma.done.wait [#allocation3], 1536  }
  0x31   :  { %250 = vsyncadd [#allocation3], 4294965760 }
  0x32   :  { %251 = dma.done.wait [#allocation5], 3072  }
  0x33   :  { %252 = vsyncadd [#allocation5], 4294964224 }
  0x34   :  { %182 = vsyncpa [#allocation3], 1 }
  0x35   :  { %183 = vsyncpa [#allocation5], 1 }

</bundles_post_ra>
